<compile_context>
chip_gen: v7x
topology: tpu7x:2x2x1
jax: 0.10.0
libtpu: 0.0.40
codegen_flags: <defaults>
</compile_context>

<pallas_src>
import functools
import math

import jax
import jax.numpy as jnp
from jax import lax
from jax.experimental import pallas as pl
from jax.experimental.pallas import tpu as pltpu

# ----------------------------- model configuration -----------------------------
NUM_CLASSES = 4
FPN_CHANNELS = 64
HEAD_CONVS = 4
NUM_ANCHORS = 3                              # 3 aspect ratios x 1 size per level
ANCHOR_SIZES = ((16.0,), (32.0,), (64.0,), (128.0,), (256.0,))
ASPECT_RATIOS = ((0.5, 1.0, 2.0),) * 5
RESIZE_CONFIG = {"height": 64, "width": 64}  # fixed-size RCNN transform
SCORE_THRESH = 0.05
NMS_THRESH = 0.5
TOPK_CANDIDATES = 64
DETECTIONS_PER_IMG = 10
BBOX_CLIP = math.log(1000.0 / 16.0)
IMAGE_MEAN = jnp.array([0.485, 0.456, 0.406], jnp.float32)
IMAGE_STD = jnp.array([0.229, 0.224, 0.225], jnp.float32)


def _round_up(x, m):
    return (x + m - 1) // m * m


def _tm_cap():
    # Cap the M tile at 128 on v4/v5 (4x128^2 MXU, lowest HBM BW); 512 otherwise.
    try:
        kind = jax.devices()[0].device_kind.lower()
        if "v5" in kind or "v4" in kind:
            return 128
    except Exception:
        pass
    return 512


TM_CAP = _tm_cap()


def _gemm_tiles(M):
    """Pick (Mp, tm) for an (M, K) GEMM.  Tiny M -> single full-extent block (16-row pad),
    large M -> 256/512-row tiles so the grid has >=2 parallel steps (megacore on v7x)."""
    if M <= 256:
        Mp = _round_up(M, 16)
        return Mp, Mp
    tm = 512 if M >= 1024 else 256
    tm = min(tm, TM_CAP)
    Mp = _round_up(M, tm)
    return Mp, tm


# ----------------------------- static conv specs (NOT traced) -------------------
def _spec(cin, cout, k):
    kd = k * k * cin
    return {"kh": k, "kw": k, "cin": cin, "cout": cout, "kd": kd,
            "kp": _round_up(kd, 128), "npad": _round_up(cout, 128)}


SPECS = {
    "stem": _spec(3, 16, 3),
    "c3": _spec(16, 32, 3),
    "c4": _spec(32, 64, 3),
    "c5": _spec(64, 64, 3),
    "lat3": _spec(32, FPN_CHANNELS, 1),          # same padded Kp=128 as lat4/lat5
    "lat": _spec(64, FPN_CHANNELS, 1),
    "smooth": _spec(FPN_CHANNELS, FPN_CHANNELS, 3),
    "p6": _spec(64, FPN_CHANNELS, 3),
    "p7": _spec(FPN_CHANNELS, FPN_CHANNELS, 3),
    "head": _spec(FPN_CHANNELS, FPN_CHANNELS, 3),
    "head0": _spec(FPN_CHANNELS, 2 * FPN_CHANNELS, 3),      # fused cls0+reg0 (N=128)
    "cls_logits": _spec(FPN_CHANNELS, NUM_ANCHORS * NUM_CLASSES, 3),
    "bbox_reg": _spec(FPN_CHANNELS, NUM_ANCHORS * 4, 3),
}


# ----------------------------- Pallas kernels -----------------------------------
def _gemm_bias_act_kernel(a_ref, b_ref, bias_ref, o_ref, *, activation):
    acc = jnp.dot(a_ref[...], b_ref[...], preferred_element_type=jnp.float32)
    acc = acc + bias_ref[...]
    if activation == "relu":
        acc = jnp.maximum(acc, 0.0)
    elif activation == "sigmoid":
        acc = 1.0 / (1.0 + jnp.exp(-acc))      # exact: scores compared against 0.05
    o_ref[...] = acc.astype(o_ref.dtype)


def pallas_gemm_bias(a, w2d, b2d, n_out, activation=None, out_dtype=jnp.bfloat16):
    """a:(M,Kp) bf16 (already lane-padded) @ w2d:(Kp,Np) bf16 + b2d:(1,Np) f32.

    M-tiled on the MXU; bf16 operands, f32 accumulation; returns (M, n_out) out_dtype."""
    M, Kp = a.shape
    _, Np = w2d.shape
    if a.dtype != jnp.bfloat16:
        a = a.astype(jnp.bfloat16)
    Mp, tm = _gemm_tiles(M)
    if Mp != M:
        a = jnp.pad(a, ((0, Mp - M), (0, 0)))
    out = pl.pallas_call(
        functools.partial(_gemm_bias_act_kernel, activation=activation),
        out_shape=jax.ShapeDtypeStruct((Mp, Np), out_dtype),
        grid_spec=pltpu.PrefetchScalarGridSpec(
            num_scalar_prefetch=0,
            grid=(Mp // tm,),
            in_specs=[pl.BlockSpec((tm, Kp), lambda i: (i, 0)),
                      pl.BlockSpec((Kp, Np), lambda i: (0, 0)),
                      pl.BlockSpec((1, Np), lambda i: (0, 0))],
            out_specs=pl.BlockSpec((tm, Np), lambda i: (i, 0)),
        ),
        compiler_params=pltpu.CompilerParams(dimension_semantics=("parallel",)),
    )(a, w2d, b2d)
    return out[:M, :n_out]


def _gemm_bias_act_multi_kernel(lvl_ref, a_ref, w_ref, bias_ref, o_ref, *, activation):
    del lvl_ref  # consumed by the index maps (scalar prefetch)
    acc = jnp.dot(a_ref[...], w_ref[0], preferred_element_type=jnp.float32)
    acc = acc + bias_ref[0]
    if activation == "relu":
        acc = jnp.maximum(acc, 0.0)
    elif activation == "sigmoid":
        acc = 1.0 / (1.0 + jnp.exp(-acc))
    o_ref[...] = acc.astype(o_ref.dtype)


def pallas_gemm_bias_multi(a_list, w3d, b3d, n_out, activation=None,
                           out_dtype=jnp.bfloat16, tm=128):
    """Batched GEMM over 'levels' with DIFFERENT weights per level in ONE pallas_call.

    a_list[l]: (Ml, Kp) bf16; w3d: (L, Kp, Np) bf16; b3d: (L, 1, Np) f32.  A scalar-prefetch
    level-id table (P2 pattern) selects the weight block per M tile.  Returns per-level
    (Ml, n_out) arrays."""
    L, Kp, Np = w3d.shape
    assert len(a_list) == L
    tm = min(tm, TM_CAP)
    padded, level_ids, sizes = [], [], []
    for lvl, a in enumerate(a_list):
        if a.dtype != jnp.bfloat16:
            a = a.astype(jnp.bfloat16)
        Mi = a.shape[0]
        Mp = _round_up(Mi, tm)
        if Mp != Mi:
            a = jnp.pad(a, ((0, Mp - Mi), (0, 0)))
        padded.append(a)
        level_ids += [lvl] * (Mp // tm)
        sizes.append((Mi, Mp))
    big = jnp.concatenate(padded, axis=0)
    lvl_arr = jnp.asarray(level_ids, jnp.int32)
    n_tiles = len(level_ids)
    out = pl.pallas_call(
        functools.partial(_gemm_bias_act_multi_kernel, activation=activation),
        out_shape=jax.ShapeDtypeStruct((big.shape[0], Np), out_dtype),
        grid_spec=pltpu.PrefetchScalarGridSpec(
            num_scalar_prefetch=1,
            grid=(n_tiles,),
            in_specs=[pl.BlockSpec((tm, Kp), lambda i, lvl: (i, 0)),
                      pl.BlockSpec((1, Kp, Np), lambda i, lvl: (lvl[i], 0, 0)),
                      pl.BlockSpec((1, 1, Np), lambda i, lvl: (lvl[i], 0, 0))],
            out_specs=pl.BlockSpec((tm, Np), lambda i, lvl: (i, 0)),
        ),
        compiler_params=pltpu.CompilerParams(dimension_semantics=("parallel",)),
    )(lvl_arr, big, w3d, b3d)
    outs, off = [], 0
    for (Mi, Mp) in sizes:
        outs.append(out[off:off + Mi, :n_out])
        off += Mp
    return outs


def _decode_kernel(ad_ref, box_ref, *, img_h, img_w):
    ad = ad_ref[...]                   # (8, L): rows 0-3 anchors x1,y1,x2,y2; 4-7 deltas
    x1, y1, x2, y2 = ad[0:1], ad[1:2], ad[2:3], ad[3:4]
    dx, dy = ad[4:5], ad[5:6]
    dw = jnp.minimum(ad[6:7], BBOX_CLIP)
    dh = jnp.minimum(ad[7:8], BBOX_CLIP)
    w = x2 - x1
    h = y2 - y1
    cx = x1 + 0.5 * w
    cy = y1 + 0.5 * h
    pcx = dx * w + cx
    pcy = dy * h + cy
    pw = jnp.exp(dw) * w
    ph = jnp.exp(dh) * h
    nx1 = jnp.clip(pcx - 0.5 * pw, 0.0, img_w)
    ny1 = jnp.clip(pcy - 0.5 * ph, 0.0, img_h)
    nx2 = jnp.clip(pcx + 0.5 * pw, 0.0, img_w)
    ny2 = jnp.clip(pcy + 0.5 * ph, 0.0, img_h)
    box_ref[...] = jnp.concatenate([nx1, ny1, nx2, ny2], axis=0)


def pallas_decode_boxes(anchors, deltas, img_h, img_w):
    """torchvision BoxCoder.decode (weights=(1,1,1,1)) + clip-to-image, for the top-k only.

    Anchors and deltas are packed into a single (8, lanes) block: one DMA, full sublanes."""
    M = anchors.shape[0]
    Mp = _round_up(M, 128)
    packed = jnp.zeros((8, Mp), jnp.float32)
    packed = packed.at[0:4, :M].set(anchors.T).at[4:8, :M].set(deltas.T)
    out = pl.pallas_call(
        functools.partial(_decode_kernel, img_h=float(img_h), img_w=float(img_w)),
        out_shape=jax.ShapeDtypeStruct((4, Mp), jnp.float32),
        grid_spec=pltpu.PrefetchScalarGridSpec(
            num_scalar_prefetch=0,
            grid=(1,),
            in_specs=[pl.BlockSpec((8, Mp), lambda i: (0, 0))],
            out_specs=pl.BlockSpec((4, Mp), lambda i: (0, 0)),
        ),
    )(packed)
    return out[:, :M].T


# ----------------------------- conv via im2col + Pallas GEMM --------------------
# TODO(synk): folding the 3x3 kh*kw reduction into the Pallas grid (shifted index_maps +
# f32 VMEM accumulator) would cut conv-input HBM traffic ~9x for the head tower, but the
# concatenated multi-level feature makes the shifted tiles non-rectangular; im2col kept.
def _im2col(x, kh, kw, stride, padding, kp):
    """Returns (M, kp) patches with the K axis already zero-padded to kp lanes (the pad tap
    rides inside the single concat, so no separate pad copy per GEMM)."""
    Nb, H, W, Cin = x.shape
    xp = jnp.pad(x, ((0, 0), (padding, padding), (padding, padding), (0, 0)))
    Ho = (H + 2 * padding - kh) // stride + 1
    Wo = (W + 2 * padding - kw) // stride + 1
    cols = []
    for i in range(kh):
        for j in range(kw):
            cols.append(xp[:, i:i + (Ho - 1) * stride + 1:stride,
                           j:j + (Wo - 1) * stride + 1:stride, :])
    kd = kh * kw * Cin
    if kp > kd:
        cols.append(jnp.zeros((Nb, Ho, Wo, kp - kd), x.dtype))
    patches = jnp.concatenate(cols, axis=-1).reshape(Nb * Ho * Wo, kp)
    return patches, (Nb, Ho, Wo)


def conv2d(x, w2d, b2d, spec, stride=1, padding=1, activation=None,
           out_dtype=jnp.bfloat16):
    patches, (Nb, Ho, Wo) = _im2col(x, spec["kh"], spec["kw"], stride, padding, spec["kp"])
    out = pallas_gemm_bias(patches, w2d, b2d, spec["cout"], activation=activation,
                           out_dtype=out_dtype)
    return out.reshape(Nb, Ho, Wo, spec["cout"])


def upsample_nearest_2x(x):
    return jnp.repeat(jnp.repeat(x, 2, axis=1), 2, axis=2)


# ----------------------------- anchors (torchvision AnchorGenerator) ------------
def generate_anchors(feat_shapes, image_hw):
    img_h, img_w = image_hw
    all_anchors = []
    for (fh, fw), sizes, ratios in zip(feat_shapes, ANCHOR_SIZES, ASPECT_RATIOS):
        stride_y = img_h // fh
        stride_x = img_w // fw
        sizes = jnp.array(sizes, jnp.float32)
        ratios = jnp.array(ratios, jnp.float32)
        h_ratios = jnp.sqrt(ratios)
        w_ratios = 1.0 / h_ratios
        ws = (w_ratios[:, None] * sizes[None, :]).reshape(-1)
        hs = (h_ratios[:, None] * sizes[None, :]).reshape(-1)
        base = jnp.round(jnp.stack([-ws, -hs, ws, hs], axis=1) / 2.0)
        sx = jnp.arange(fw, dtype=jnp.float32) * stride_x
        sy = jnp.arange(fh, dtype=jnp.float32) * stride_y
        gy, gx = jnp.meshgrid(sy, sx, indexing="ij")
        shifts = jnp.stack([gx.reshape(-1), gy.reshape(-1),
                            gx.reshape(-1), gy.reshape(-1)], axis=1)
        anchors = (shifts[:, None, :] + base[None, :, :]).reshape(-1, 4)
        all_anchors.append(anchors)
    return jnp.concatenate(all_anchors, axis=0)


# ----------------------------- parameters (arrays only; specs are static) -------
def init_params(seed=0):
    key = jax.random.PRNGKey(seed)
    keys = iter(jax.random.split(key, 32))

    def raw(spec):
        return 0.05 * jax.random.normal(next(keys),
                                        (spec["kd"], spec["cout"]), jnp.float32)

    def pack(w, bias_val, spec):
        w2d = jnp.zeros((spec["kp"], spec["npad"]), jnp.bfloat16)
        w2d = w2d.at[:spec["kd"], :spec["cout"]].set(w.astype(jnp.bfloat16))
        b2d = jnp.zeros((1, spec["npad"]), jnp.float32)
        b2d = b2d.at[0, :spec["cout"]].set(jnp.full((spec["cout"],), bias_val, jnp.float32))
        return w2d, b2d

    def conv(spec, bias=0.0):
        return pack(raw(spec), bias, spec)

    params = {}
    for name in ("stem", "c3", "c4", "c5", "p6", "p7"):
        params[name + "_w"], params[name + "_b"] = conv(SPECS[name])

    # lateral 1x1 convs (lat3 has cin=32; zero-padded to the shared Kp=128) -> stacked
    lat_ws, lat_bs = [], []
    for s in (SPECS["lat3"], SPECS["lat"], SPECS["lat"]):
        w2d, b2d = conv(s)
        lat_ws.append(w2d)
        lat_bs.append(b2d)
    params["lat_w3d"] = jnp.stack(lat_ws, axis=0)           # (3, 128, 128)
    params["lat_b3d"] = jnp.stack(lat_bs, axis=0)           # (3, 1, 128)

    # FPN smooth 3x3 convs -> stacked
    sm_ws, sm_bs = [], []
    for _ in range(3):
        w2d, b2d = conv(SPECS["smooth"])
        sm_ws.append(w2d)
        sm_bs.append(b2d)
    params["smooth_w3d"] = jnp.stack(sm_ws, axis=0)          # (3, 640, 128)
    params["smooth_b3d"] = jnp.stack(sm_bs, axis=0)          # (3, 1, 128)

    # head layer 0: cls_convs[0] and reg_convs[0] fused along N (real N = 128, lanes full)
    hs, h0 = SPECS["head"], SPECS["head0"]
    cls0 = raw(hs)
    reg0 = raw(hs)
    w0 = jnp.zeros((h0["kp"], h0["npad"]), jnp.bfloat16)
    w0 = w0.at[:hs["kd"], :FPN_CHANNELS].set(cls0.astype(jnp.bfloat16))
    w0 = w0.at[:hs["kd"], FPN_CHANNELS:2 * FPN_CHANNELS].set(reg0.astype(jnp.bfloat16))
    params["head0_w"] = w0
    params["head0_b"] = jnp.zeros((1, h0["npad"]), jnp.float32)

    # head layers 1..3: (cls, reg) weight stacks for the multi-weight GEMM
    head_w3d, head_b3d = [], []
    for _ in range(HEAD_CONVS - 1):
        cw, cb = conv(hs)
        rw, rb = conv(hs)
        head_w3d.append(jnp.stack([cw, rw], axis=0))          # (2, 640, 128)
        head_b3d.append(jnp.stack([cb, rb], axis=0))          # (2, 1, 128)
    params["head_w3d"] = head_w3d
    params["head_b3d"] = head_b3d

    prior_bias = -math.log((1.0 - 0.01) / 0.01)               # RetinaNet focal-loss prior
    params["cls_logits_w"], params["cls_logits_b"] = conv(SPECS["cls_logits"], bias=prior_bias)
    params["bbox_reg_w"], params["bbox_reg_b"] = conv(SPECS["bbox_reg"])
    return params


# ----------------------------- post-processing (plain-JAX glue) -----------------
def _nms_keep_mask(boxes, scores, iou_thresh):
    # boxes already sorted by descending score
    K = boxes.shape[0]
    x1, y1, x2, y2 = boxes[:, 0], boxes[:, 1], boxes[:, 2], boxes[:, 3]
    area = jnp.maximum(x2 - x1, 0.0) * jnp.maximum(y2 - y1, 0.0)
    ix1 = jnp.maximum(x1[:, None], x1[None, :])
    iy1 = jnp.maximum(y1[:, None], y1[None, :])
    ix2 = jnp.minimum(x2[:, None], x2[None, :])
    iy2 = jnp.minimum(y2[:, None], y2[None, :])
    inter = jnp.maximum(ix2 - ix1, 0.0) * jnp.maximum(iy2 - iy1, 0.0)
    iou = inter / jnp.maximum(area[:, None] + area[None, :] - inter, 1e-6)
    valid = scores > 0.0
    keep0 = jnp.ones((K,), jnp.bool_)

    def body(i, keep):
        sup = (iou[i] > iou_thresh) & (jnp.arange(K) > i) & keep[i] & valid[i]
        return keep & (~sup)

    keep = lax.fori_loop(0, K, body, keep0)
    return keep & valid


def postprocess_topk(top_boxes, top_scores, labels, orig_h, orig_w):
    # top_boxes: (K,4) decoded boxes (resized-image coords), top_scores/labels: (K,)
    offset = labels.astype(jnp.float32)[:, None] * float(
        max(RESIZE_CONFIG["height"], RESIZE_CONFIG["width"]) + 1)
    keep = _nms_keep_mask(top_boxes + offset, top_scores, NMS_THRESH)
    kept_scores = jnp.where(keep & (top_scores > 0.0), top_scores, -1.0)
    final_scores, sel = lax.top_k(kept_scores, DETECTIONS_PER_IMG)
    final_boxes = top_boxes[sel]
    final_labels = labels[sel]
    valid = final_scores > 0.0
    # map boxes back to the original (pre-resize) image size
    sx = orig_w / float(RESIZE_CONFIG["width"])
    sy = orig_h / float(RESIZE_CONFIG["height"])
    final_boxes = final_boxes * jnp.array([sx, sy, sx, sy], jnp.float32)
    return {"boxes": jnp.where(valid[:, None], final_boxes, 0.0),
            "scores": jnp.where(valid, final_scores, 0.0),
            "labels": jnp.where(valid, final_labels, -1)}


# ----------------------------- full serve-time forward pass ---------------------
def retinanet_serve(params, x_nchw):
    """x_nchw: (B, 3, H, W) float32 in [0,1].  Returns fixed-size batched detections."""
    B, C, H0, W0 = x_nchw.shape
    x = jnp.transpose(x_nchw, (0, 2, 3, 1))                   # NHWC
    # RCNN transform: normalize + fixed resize (f32), then bf16 for the conv stack
    x = (x - IMAGE_MEAN) / IMAGE_STD
    Hr, Wr = RESIZE_CONFIG["height"], RESIZE_CONFIG["width"]
    x = jax.image.resize(x, (B, Hr, Wr, C), method="bilinear").astype(jnp.bfloat16)

    # backbone (strides 2,4,8,16), bf16 activations
    s = conv2d(x, params["stem_w"], params["stem_b"], SPECS["stem"], 2, 1, "relu")
    c3 = conv2d(s, params["c3_w"], params["c3_b"], SPECS["c3"], 2, 1, "relu")
    c4 = conv2d(c3, params["c4_w"], params["c4_b"], SPECS["c4"], 2, 1, "relu")
    c5 = conv2d(c4, params["c5_w"], params["c5_b"], SPECS["c5"], 2, 1, "relu")

    # FPN lateral 1x1 convs: all 3 levels in ONE multi-weight GEMM
    l3_mat, m3 = _im2col(c3, 1, 1, 1, 0, SPECS["lat"]["kp"])
    l4_mat, m4 = _im2col(c4, 1, 1, 1, 0, SPECS["lat"]["kp"])
    l5_mat, m5 = _im2col(c5, 1, 1, 1, 0, SPECS["lat"]["kp"])
    l3, l4, l5 = pallas_gemm_bias_multi(
        [l3_mat, l4_mat, l5_mat], params["lat_w3d"], params["lat_b3d"],
        FPN_CHANNELS, activation=None, out_dtype=jnp.bfloat16, tm=128)
    l3 = l3.reshape(m3[0], m3[1], m3[2], FPN_CHANNELS)
    l4 = l4.reshape(m4[0], m4[1], m4[2], FPN_CHANNELS)
    l5 = l5.reshape(m5[0], m5[1], m5[2], FPN_CHANNELS)
    p5 = l5
    p4 = l4 + upsample_nearest_2x(p5)
    p3 = l3 + upsample_nearest_2x(p4)

    # FPN smooth 3x3 convs: all 3 levels in ONE multi-weight GEMM
    s3_mat, _ = _im2col(p3, 3, 3, 1, 1, SPECS["smooth"]["kp"])
    s4_mat, _ = _im2col(p4, 3, 3, 1, 1, SPECS["smooth"]["kp"])
    s5_mat, _ = _im2col(p5, 3, 3, 1, 1, SPECS["smooth"]["kp"])
    p3f, p4f, p5f = pallas_gemm_bias_multi(
        [s3_mat, s4_mat, s5_mat], params["smooth_w3d"], params["smooth_b3d"],
        FPN_CHANNELS, activation=None, out_dtype=jnp.bfloat16, tm=128)
    p3 = p3f.reshape(m3[0], m3[1], m3[2], FPN_CHANNELS)
    p4 = p4f.reshape(m4[0], m4[1], m4[2], FPN_CHANNELS)
    p5 = p5f.reshape(m5[0], m5[1], m5[2], FPN_CHANNELS)

    p6 = conv2d(c5, params["p6_w"], params["p6_b"], SPECS["p6"], 2, 1, None)
    p7 = conv2d(jnp.maximum(p6, 0.0), params["p7_w"], params["p7_b"], SPECS["p7"], 2, 1, None)
    feats = [p3, p4, p5, p6, p7]

    # ----- shared RetinaNet heads, batched across the 5 FPN levels -----
    head_kp = SPECS["head"]["kp"]
    feat_metas, feat_mats = [], []
    for f in feats:
        mat, meta = _im2col(f, 3, 3, 1, 1, head_kp)
        feat_mats.append(mat)
        feat_metas.append((meta[0], meta[1], meta[2], mat.shape[0]))

    def split_levels(mat, cout):
        outs, off = [], 0
        for (Nb, Ho, Wo, m) in feat_metas:
            outs.append(mat[off:off + m].reshape(Nb, Ho, Wo, cout))
            off += m
        return outs

    def levels_to_mat(lvls):
        mats = [_im2col(f, 3, 3, 1, 1, head_kp)[0] for f in lvls]
        return jnp.concatenate(mats, axis=0)

    # layer 0: cls+reg fused along N (shared input im2col done once)
    big0 = jnp.concatenate(feat_mats, axis=0)
    fused0 = pallas_gemm_bias(big0, params["head0_w"], params["head0_b"],
                              2 * FPN_CHANNELS, activation="relu", out_dtype=jnp.bfloat16)
    cls_lvls = split_levels(fused0[:, :FPN_CHANNELS], FPN_CHANNELS)
    reg_lvls = split_levels(fused0[:, FPN_CHANNELS:], FPN_CHANNELS)

    # layers 1..3: cls and reg towers batched in ONE multi-weight GEMM per layer
    for k in range(HEAD_CONVS - 1):
        cls_mat = levels_to_mat(cls_lvls)
        reg_mat = levels_to_mat(reg_lvls)
        cls_out, reg_out = pallas_gemm_bias_multi(
            [cls_mat, reg_mat], params["head_w3d"][k], params["head_b3d"][k],
            FPN_CHANNELS, activation="relu", out_dtype=jnp.bfloat16, tm=256)
        cls_lvls = split_levels(cls_out, FPN_CHANNELS)
        reg_lvls = split_levels(reg_out, FPN_CHANNELS)

    # predictors: sigmoid fused into the classification GEMM epilogue; f32 outputs
    cls_pred = pallas_gemm_bias(levels_to_mat(cls_lvls), params["cls_logits_w"],
                                params["cls_logits_b"], NUM_ANCHORS * NUM_CLASSES,
                                activation="sigmoid", out_dtype=jnp.float32)
    reg_pred = pallas_gemm_bias(levels_to_mat(reg_lvls), params["bbox_reg_w"],
                                params["bbox_reg_b"], NUM_ANCHORS * 4,
                                activation=None, out_dtype=jnp.float32)
    cls_maps = split_levels(cls_pred, NUM_ANCHORS * NUM_CLASSES)
    reg_maps = split_levels(reg_pred, NUM_ANCHORS * 4)

    cls_outs, reg_outs = [], []
    for cl, rg in zip(cls_maps, reg_maps):
        _, Hc, Wc, _ = cl.shape
        cls_outs.append(cl.reshape(B, Hc * Wc * NUM_ANCHORS, NUM_CLASSES))
        reg_outs.append(rg.reshape(B, Hc * Wc * NUM_ANCHORS, 4))
    scores = jnp.concatenate(cls_outs, axis=1)                 # (B, A_total, C), sigmoid'd
    bbox_reg = jnp.concatenate(reg_outs, axis=1)               # (B, A_total, 4)

    # anchors
    feat_shapes = [(f.shape[1], f.shape[2]) for f in feats]
    anchors = generate_anchors(feat_shapes, (Hr, Wr))          # (A_total, 4)
    A_total = anchors.shape[0]
    Cn = NUM_CLASSES

    # per-image top-k candidate selection (score threshold + top-k), THEN decode only
    # the selected anchors with the Pallas decode kernel (decode doesn't change ranking).
    flat = scores.reshape(B, A_total * Cn)
    flat = jnp.where(flat > SCORE_THRESH, flat, -1.0)
    Kc = min(TOPK_CANDIDATES, A_total * Cn)
    top_scores, top_idx = lax.top_k(flat, Kc)                  # (B, Kc)
    anchor_idx = top_idx // Cn
    labels = top_idx % Cn
    top_anchors = anchors[anchor_idx]                          # (B, Kc, 4)
    top_deltas = jnp.take_along_axis(bbox_reg, anchor_idx[..., None], axis=1)
    top_boxes = pallas_decode_boxes(top_anchors.reshape(-1, 4),
                                    top_deltas.reshape(-1, 4),
                                    Hr, Wr).reshape(B, Kc, 4)

    # per-image detection selection (torchvision returns variable-length lists of dicts;
    # here detections are fixed-size arrays padded with score 0 / label -1).
    # TODO(synk): torchvision's exact per-level topk-before-merge and dynamic-length
    # outputs have no clean static-shape Pallas equivalent; a fixed-size global topk+NMS
    # is used instead.
    post = jax.vmap(lambda b, s, l: postprocess_topk(b, s, l, float(H0), float(W0)))
    return post(top_boxes, top_scores, labels)


if __name__ == "__main__":
    key = jax.random.PRNGKey(0)
    x = jax.random.uniform(key, (2, 3, 48, 64), jnp.float32)   # NCHW, like the PyTorch module
    params = init_params(seed=0)
    run = jax.jit(retinanet_serve)
    out = run(params, x)
    jax.block_until_ready(out)
    assert out["boxes"].shape == (2, DETECTIONS_PER_IMG, 4)
    assert out["scores"].shape == (2, DETECTIONS_PER_IMG)
    assert out["labels"].shape == (2, DETECTIONS_PER_IMG)
    print("KERNEL_OK")
</pallas_src>

<mosaic_0001>
module attributes {stable_mosaic.version = 11 : i64} {
  func.func @_gemm_bias_act_kernel(%arg0: i32, %arg1: memref<512x128xbf16, #tpu.memory_space<vmem>>, %arg2: memref<128x128xbf16, #tpu.memory_space<vmem>>, %arg3: memref<1x128xf32, #tpu.memory_space<vmem>>, %arg4: memref<512x128xbf16, #tpu.memory_space<vmem>>) attributes {dimension_semantics = [#tpu.dimension_semantics<parallel>], iteration_bounds = array<i64: 4>, scalar_prefetch = 0 : i64, scratch_operands = 0 : i64, tpu.core_type = #tpu.core_type<tc>, window_params = [{transform_indices = @transform_0, window_bounds = array<i64: 512, 128>}, {pipeline_mode = #tpu.pipeline_mode<synchronous>, transform_indices = @transform_1, window_bounds = array<i64: 128, 128>}, {pipeline_mode = #tpu.pipeline_mode<synchronous>, transform_indices = @transform_2, window_bounds = array<i64: 1, 128>}, {transform_indices = @transform_3, window_bounds = array<i64: 512, 128>}]} {
    %c0 = arith.constant 0 : index
    %c0_0 = arith.constant 0 : index
    %0 = vector.load %arg1[%c0, %c0_0] : memref<512x128xbf16, #tpu.memory_space<vmem>>, vector<512x128xbf16>
    %c0_1 = arith.constant 0 : index
    %c0_2 = arith.constant 0 : index
    %1 = vector.load %arg2[%c0_1, %c0_2] : memref<128x128xbf16, #tpu.memory_space<vmem>>, vector<128x128xbf16>
    %cst = arith.constant dense<0.000000e+00> : vector<512x128xf32>
    %2 = tpu.matmul %0, %1, %cst {dimension_numbers = #tpu.dot_dimension_numbers<[1], [0], [0], [1], [0, 0, 1, 1], [], []>} : vector<512x128xbf16>, vector<128x128xbf16>, vector<512x128xf32> -> vector<512x128xf32>
    %c0_3 = arith.constant 0 : index
    %c0_4 = arith.constant 0 : index
    %3 = vector.load %arg3[%c0_3, %c0_4] : memref<1x128xf32, #tpu.memory_space<vmem>>, vector<1x128xf32>
    %4 = vector.broadcast %3 : vector<1x128xf32> to vector<512x128xf32>
    %5 = arith.addf %2, %4 : vector<512x128xf32>
    %cst_5 = arith.constant 0.000000e+00 : f32
    %6 = vector.broadcast %cst_5 : f32 to vector<512x128xf32>
    %7 = arith.maximumf %5, %6 : vector<512x128xf32>
    %8 = arith.truncf %7 : vector<512x128xf32> to vector<512x128xbf16>
    %c0_6 = arith.constant 0 : index
    %c0_7 = arith.constant 0 : index
    %9 = vector.load %arg4[%c0_6, %c0_7] : memref<512x128xbf16, #tpu.memory_space<vmem>>, vector<512x128xbf16>
    tpu.vector_store %arg4[%c0_6, %c0_7], %8 {strides = array<i32>} : memref<512x128xbf16, #tpu.memory_space<vmem>>, vector<512x128xbf16>,
    return
  }
  func.func @transform_0(%arg0: i32) -> (i32, i32) {
    %c0_i32 = arith.constant 0 : i32
    %c0_i32_0 = arith.constant 0 : i32
    return %arg0, %c0_i32 : i32, i32
  }
  func.func @transform_1(%arg0: i32) -> (i32, i32) {
    %c0_i32 = arith.constant 0 : i32
    %c0_i32_0 = arith.constant 0 : i32
    %c0_i32_1 = arith.constant 0 : i32
    return %c0_i32, %c0_i32_0 : i32, i32
  }
  func.func @transform_2(%arg0: i32) -> (i32, i32) {
    %c0_i32 = arith.constant 0 : i32
    %c0_i32_0 = arith.constant 0 : i32
    %c0_i32_1 = arith.constant 0 : i32
    return %c0_i32, %c0_i32_0 : i32, i32
  }
  func.func @transform_3(%arg0: i32) -> (i32, i32) {
    %c0_i32 = arith.constant 0 : i32
    %c0_i32_0 = arith.constant 0 : i32
    return %arg0, %c0_i32 : i32, i32
  }
}

module attributes {stable_mosaic.version = 11 : i64} {
  func.func @_gemm_bias_act_kernel(%arg0: i32, %arg1: memref<256x256xbf16, #tpu.memory_space<vmem>>, %arg2: memref<256x128xbf16, #tpu.memory_space<vmem>>, %arg3: memref<1x128xf32, #tpu.memory_space<vmem>>, %arg4: memref<256x128xbf16, #tpu.memory_space<vmem>>) attributes {dimension_semantics = [#tpu.dimension_semantics<parallel>], iteration_bounds = array<i64: 2>, scalar_prefetch = 0 : i64, scratch_operands = 0 : i64, tpu.core_type = #tpu.core_type<tc>, window_params = [{transform_indices = @transform_0, window_bounds = array<i64: 256, 256>}, {pipeline_mode = #tpu.pipeline_mode<synchronous>, transform_indices = @transform_1, window_bounds = array<i64: 256, 128>}, {pipeline_mode = #tpu.pipeline_mode<synchronous>, transform_indices = @transform_2, window_bounds = array<i64: 1, 128>}, {transform_indices = @transform_3, window_bounds = array<i64: 256, 128>}]} {
    %c0 = arith.constant 0 : index
    %c0_0 = arith.constant 0 : index
    %0 = vector.load %arg1[%c0, %c0_0] : memref<256x256xbf16, #tpu.memory_space<vmem>>, vector<256x256xbf16>
    %c0_1 = arith.constant 0 : index
    %c0_2 = arith.constant 0 : index
    %1 = vector.load %arg2[%c0_1, %c0_2] : memref<256x128xbf16, #tpu.memory_space<vmem>>, vector<256x128xbf16>
    %cst = arith.constant dense<0.000000e+00> : vector<256x128xf32>
    %2 = tpu.matmul %0, %1, %cst {dimension_numbers = #tpu.dot_dimension_numbers<[1], [0], [0], [1], [0, 0, 1, 1], [], []>} : vector<256x256xbf16>, vector<256x128xbf16>, vector<256x128xf32> -> vector<256x128xf32>
    %c0_3 = arith.constant 0 : index
    %c0_4 = arith.constant 0 : index
    %3 = vector.load %arg3[%c0_3, %c0_4] : memref<1x128xf32, #tpu.memory_space<vmem>>, vector<1x128xf32>
    %4 = vector.broadcast %3 : vector<1x128xf32> to vector<256x128xf32>
    %5 = arith.addf %2, %4 : vector<256x128xf32>
    %cst_5 = arith.constant 0.000000e+00 : f32
    %6 = vector.broadcast %cst_5 : f32 to vector<256x128xf32>
    %7 = arith.maximumf %5, %6 : vector<256x128xf32>
    %8 = arith.truncf %7 : vector<256x128xf32> to vector<256x128xbf16>
    %c0_6 = arith.constant 0 : index
    %c0_7 = arith.constant 0 : index
    %9 = vector.load %arg4[%c0_6, %c0_7] : memref<256x128xbf16, #tpu.memory_space<vmem>>, vector<256x128xbf16>
    tpu.vector_store %arg4[%c0_6, %c0_7], %8 {strides = array<i32>} : memref<256x128xbf16, #tpu.memory_space<vmem>>, vector<256x128xbf16>,
    return
  }
  func.func @transform_0(%arg0: i32) -> (i32, i32) {
    %c0_i32 = arith.constant 0 : i32
    %c0_i32_0 = arith.constant 0 : i32
    return %arg0, %c0_i32 : i32, i32
  }
  func.func @transform_1(%arg0: i32) -> (i32, i32) {
    %c0_i32 = arith.constant 0 : i32
    %c0_i32_0 = arith.constant 0 : i32
    %c0_i32_1 = arith.constant 0 : i32
    return %c0_i32, %c0_i32_0 : i32, i32
  }
  func.func @transform_2(%arg0: i32) -> (i32, i32) {
    %c0_i32 = arith.constant 0 : i32
    %c0_i32_0 = arith.constant 0 : i32
    %c0_i32_1 = arith.constant 0 : i32
    return %c0_i32, %c0_i32_0 : i32, i32
  }
  func.func @transform_3(%arg0: i32) -> (i32, i32) {
    %c0_i32 = arith.constant 0 : i32
    %c0_i32_0 = arith.constant 0 : i32
    return %arg0, %c0_i32 : i32, i32
  }
}

module attributes {stable_mosaic.version = 11 : i64} {
  func.func @_gemm_bias_act_kernel(%arg0: i32, %arg1: memref<128x384xbf16, #tpu.memory_space<vmem>>, %arg2: memref<384x128xbf16, #tpu.memory_space<vmem>>, %arg3: memref<1x128xf32, #tpu.memory_space<vmem>>, %arg4: memref<128x128xbf16, #tpu.memory_space<vmem>>) attributes {dimension_semantics = [#tpu.dimension_semantics<parallel>], iteration_bounds = array<i64: 1>, scalar_prefetch = 0 : i64, scratch_operands = 0 : i64, tpu.core_type = #tpu.core_type<tc>, window_params = [{transform_indices = @transform_0, window_bounds = array<i64: 128, 384>}, {pipeline_mode = #tpu.pipeline_mode<synchronous>, transform_indices = @transform_1, window_bounds = array<i64: 384, 128>}, {pipeline_mode = #tpu.pipeline_mode<synchronous>, transform_indices = @transform_2, window_bounds = array<i64: 1, 128>}, {transform_indices = @transform_3, window_bounds = array<i64: 128, 128>}]} {
    %c0 = arith.constant 0 : index
    %c0_0 = arith.constant 0 : index
    %0 = vector.load %arg1[%c0, %c0_0] : memref<128x384xbf16, #tpu.memory_space<vmem>>, vector<128x384xbf16>
    %c0_1 = arith.constant 0 : index
    %c0_2 = arith.constant 0 : index
    %1 = vector.load %arg2[%c0_1, %c0_2] : memref<384x128xbf16, #tpu.memory_space<vmem>>, vector<384x128xbf16>
    %cst = arith.constant dense<0.000000e+00> : vector<128x128xf32>
    %2 = tpu.matmul %0, %1, %cst {dimension_numbers = #tpu.dot_dimension_numbers<[1], [0], [0], [1], [0, 0, 1, 1], [], []>} : vector<128x384xbf16>, vector<384x128xbf16>, vector<128x128xf32> -> vector<128x128xf32>
    %c0_3 = arith.constant 0 : index
    %c0_4 = arith.constant 0 : index
    %3 = vector.load %arg3[%c0_3, %c0_4] : memref<1x128xf32, #tpu.memory_space<vmem>>, vector<1x128xf32>
    %4 = vector.broadcast %3 : vector<1x128xf32> to vector<128x128xf32>
    %5 = arith.addf %2, %4 : vector<128x128xf32>
    %cst_5 = arith.constant 0.000000e+00 : f32
    %6 = vector.broadcast %cst_5 : f32 to vector<128x128xf32>
    %7 = arith.maximumf %5, %6 : vector<128x128xf32>
    %8 = arith.truncf %7 : vector<128x128xf32> to vector<128x128xbf16>
    %c0_6 = arith.constant 0 : index
    %c0_7 = arith.constant 0 : index
    %9 = vector.load %arg4[%c0_6, %c0_7] : memref<128x128xbf16, #tpu.memory_space<vmem>>, vector<128x128xbf16>
    tpu.vector_store %arg4[%c0_6, %c0_7], %8 {strides = array<i32>} : memref<128x128xbf16, #tpu.memory_space<vmem>>, vector<128x128xbf16>,
    return
  }
  func.func @transform_0(%arg0: i32) -> (i32, i32) {
    %c0_i32 = arith.constant 0 : i32
    %c0_i32_0 = arith.constant 0 : i32
    return %arg0, %c0_i32 : i32, i32
  }
  func.func @transform_1(%arg0: i32) -> (i32, i32) {
    %c0_i32 = arith.constant 0 : i32
    %c0_i32_0 = arith.constant 0 : i32
    %c0_i32_1 = arith.constant 0 : i32
    return %c0_i32, %c0_i32_0 : i32, i32
  }
  func.func @transform_2(%arg0: i32) -> (i32, i32) {
    %c0_i32 = arith.constant 0 : i32
    %c0_i32_0 = arith.constant 0 : i32
    %c0_i32_1 = arith.constant 0 : i32
    return %c0_i32, %c0_i32_0 : i32, i32
  }
  func.func @transform_3(%arg0: i32) -> (i32, i32) {
    %c0_i32 = arith.constant 0 : i32
    %c0_i32_0 = arith.constant 0 : i32
    return %arg0, %c0_i32 : i32, i32
  }
}

module attributes {stable_mosaic.version = 11 : i64} {
  func.func @_gemm_bias_act_kernel(%arg0: i32, %arg1: memref<32x640xbf16, #tpu.memory_space<vmem>>, %arg2: memref<640x128xbf16, #tpu.memory_space<vmem>>, %arg3: memref<1x128xf32, #tpu.memory_space<vmem>>, %arg4: memref<32x128xbf16, #tpu.memory_space<vmem>>) attributes {dimension_semantics = [#tpu.dimension_semantics<parallel>], iteration_bounds = array<i64: 1>, scalar_prefetch = 0 : i64, scratch_operands = 0 : i64, tpu.core_type = #tpu.core_type<tc>, window_params = [{transform_indices = @transform_0, window_bounds = array<i64: 32, 640>}, {pipeline_mode = #tpu.pipeline_mode<synchronous>, transform_indices = @transform_1, window_bounds = array<i64: 640, 128>}, {pipeline_mode = #tpu.pipeline_mode<synchronous>, transform_indices = @transform_2, window_bounds = array<i64: 1, 128>}, {transform_indices = @transform_3, window_bounds = array<i64: 32, 128>}]} {
    %c0 = arith.constant 0 : index
    %c0_0 = arith.constant 0 : index
    %0 = vector.load %arg1[%c0, %c0_0] : memref<32x640xbf16, #tpu.memory_space<vmem>>, vector<32x640xbf16>
    %c0_1 = arith.constant 0 : index
    %c0_2 = arith.constant 0 : index
    %1 = vector.load %arg2[%c0_1, %c0_2] : memref<640x128xbf16, #tpu.memory_space<vmem>>, vector<640x128xbf16>
    %cst = arith.constant dense<0.000000e+00> : vector<32x128xf32>
    %2 = tpu.matmul %0, %1, %cst {dimension_numbers = #tpu.dot_dimension_numbers<[1], [0], [0], [1], [0, 0, 1, 1], [], []>} : vector<32x640xbf16>, vector<640x128xbf16>, vector<32x128xf32> -> vector<32x128xf32>
    %c0_3 = arith.constant 0 : index
    %c0_4 = arith.constant 0 : index
    %3 = vector.load %arg3[%c0_3, %c0_4] : memref<1x128xf32, #tpu.memory_space<vmem>>, vector<1x128xf32>
    %4 = vector.broadcast %3 : vector<1x128xf32> to vector<32x128xf32>
    %5 = arith.addf %2, %4 : vector<32x128xf32>
    %cst_5 = arith.constant 0.000000e+00 : f32
    %6 = vector.broadcast %cst_5 : f32 to vector<32x128xf32>
    %7 = arith.maximumf %5, %6 : vector<32x128xf32>
    %8 = arith.truncf %7 : vector<32x128xf32> to vector<32x128xbf16>
    %c0_6 = arith.constant 0 : index
    %c0_7 = arith.constant 0 : index
    %9 = vector.load %arg4[%c0_6, %c0_7] : memref<32x128xbf16, #tpu.memory_space<vmem>>, vector<32x128xbf16>
    tpu.vector_store %arg4[%c0_6, %c0_7], %8 {strides = array<i32>} : memref<32x128xbf16, #tpu.memory_space<vmem>>, vector<32x128xbf16>,
    return
  }
  func.func @transform_0(%arg0: i32) -> (i32, i32) {
    %c0_i32 = arith.constant 0 : i32
    %c0_i32_0 = arith.constant 0 : i32
    return %arg0, %c0_i32 : i32, i32
  }
  func.func @transform_1(%arg0: i32) -> (i32, i32) {
    %c0_i32 = arith.constant 0 : i32
    %c0_i32_0 = arith.constant 0 : i32
    %c0_i32_1 = arith.constant 0 : i32
    return %c0_i32, %c0_i32_0 : i32, i32
  }
  func.func @transform_2(%arg0: i32) -> (i32, i32) {
    %c0_i32 = arith.constant 0 : i32
    %c0_i32_0 = arith.constant 0 : i32
    %c0_i32_1 = arith.constant 0 : i32
    return %c0_i32, %c0_i32_0 : i32, i32
  }
  func.func @transform_3(%arg0: i32) -> (i32, i32) {
    %c0_i32 = arith.constant 0 : i32
    %c0_i32_0 = arith.constant 0 : i32
    return %arg0, %c0_i32 : i32, i32
  }
}

module attributes {stable_mosaic.version = 11 : i64} {
  func.func @_gemm_bias_act_kernel(%arg0: i32, %arg1: memref<16x640xbf16, #tpu.memory_space<vmem>>, %arg2: memref<640x128xbf16, #tpu.memory_space<vmem>>, %arg3: memref<1x128xf32, #tpu.memory_space<vmem>>, %arg4: memref<16x128xbf16, #tpu.memory_space<vmem>>) attributes {dimension_semantics = [#tpu.dimension_semantics<parallel>], iteration_bounds = array<i64: 1>, scalar_prefetch = 0 : i64, scratch_operands = 0 : i64, tpu.core_type = #tpu.core_type<tc>, window_params = [{transform_indices = @transform_0, window_bounds = array<i64: 16, 640>}, {pipeline_mode = #tpu.pipeline_mode<synchronous>, transform_indices = @transform_1, window_bounds = array<i64: 640, 128>}, {pipeline_mode = #tpu.pipeline_mode<synchronous>, transform_indices = @transform_2, window_bounds = array<i64: 1, 128>}, {transform_indices = @transform_3, window_bounds = array<i64: 16, 128>}]} {
    %c0 = arith.constant 0 : index
    %c0_0 = arith.constant 0 : index
    %0 = vector.load %arg1[%c0, %c0_0] : memref<16x640xbf16, #tpu.memory_space<vmem>>, vector<16x640xbf16>
    %c0_1 = arith.constant 0 : index
    %c0_2 = arith.constant 0 : index
    %1 = vector.load %arg2[%c0_1, %c0_2] : memref<640x128xbf16, #tpu.memory_space<vmem>>, vector<640x128xbf16>
    %cst = arith.constant dense<0.000000e+00> : vector<16x128xf32>
    %2 = tpu.matmul %0, %1, %cst {dimension_numbers = #tpu.dot_dimension_numbers<[1], [0], [0], [1], [0, 0, 1, 1], [], []>} : vector<16x640xbf16>, vector<640x128xbf16>, vector<16x128xf32> -> vector<16x128xf32>
    %c0_3 = arith.constant 0 : index
    %c0_4 = arith.constant 0 : index
    %3 = vector.load %arg3[%c0_3, %c0_4] : memref<1x128xf32, #tpu.memory_space<vmem>>, vector<1x128xf32>
    %4 = vector.broadcast %3 : vector<1x128xf32> to vector<16x128xf32>
    %5 = arith.addf %2, %4 : vector<16x128xf32>
    %6 = arith.truncf %5 : vector<16x128xf32> to vector<16x128xbf16>
    %c0_5 = arith.constant 0 : index
    %c0_6 = arith.constant 0 : index
    %7 = vector.load %arg4[%c0_5, %c0_6] : memref<16x128xbf16, #tpu.memory_space<vmem>>, vector<16x128xbf16>
    tpu.vector_store %arg4[%c0_5, %c0_6], %6 {strides = array<i32>} : memref<16x128xbf16, #tpu.memory_space<vmem>>, vector<16x128xbf16>,
    return
  }
  func.func @transform_0(%arg0: i32) -> (i32, i32) {
    %c0_i32 = arith.constant 0 : i32
    %c0_i32_0 = arith.constant 0 : i32
    return %arg0, %c0_i32 : i32, i32
  }
  func.func @transform_1(%arg0: i32) -> (i32, i32) {
    %c0_i32 = arith.constant 0 : i32
    %c0_i32_0 = arith.constant 0 : i32
    %c0_i32_1 = arith.constant 0 : i32
    return %c0_i32, %c0_i32_0 : i32, i32
  }
  func.func @transform_2(%arg0: i32) -> (i32, i32) {
    %c0_i32 = arith.constant 0 : i32
    %c0_i32_0 = arith.constant 0 : i32
    %c0_i32_1 = arith.constant 0 : i32
    return %c0_i32, %c0_i32_0 : i32, i32
  }
  func.func @transform_3(%arg0: i32) -> (i32, i32) {
    %c0_i32 = arith.constant 0 : i32
    %c0_i32_0 = arith.constant 0 : i32
    return %arg0, %c0_i32 : i32, i32
  }
}

module attributes {stable_mosaic.version = 11 : i64} {
  func.func @_gemm_bias_act_multi_kernel(%arg0: i32, %arg1: memref<6xi32, #tpu.memory_space<smem>>, %arg2: memref<128x128xbf16, #tpu.memory_space<vmem>>, %arg3: memref<1x128x128xbf16, #tpu.memory_space<vmem>>, %arg4: memref<1x1x128xf32, #tpu.memory_space<vmem>>, %arg5: memref<128x128xbf16, #tpu.memory_space<vmem>>) attributes {dimension_semantics = [#tpu.dimension_semantics<parallel>], iteration_bounds = array<i64: 6>, scalar_prefetch = 1 : i64, scratch_operands = 0 : i64, tpu.core_type = #tpu.core_type<tc>, window_params = [{transform_indices = @transform_0, window_bounds = array<i64: 128, 128>}, {transform_indices = @transform_1, window_bounds = array<i64: 1, 128, 128>}, {transform_indices = @transform_2, window_bounds = array<i64: 1, 1, 128>}, {transform_indices = @transform_3, window_bounds = array<i64: 128, 128>}]} {
    %c0 = arith.constant 0 : index
    %c0_0 = arith.constant 0 : index
    %0 = vector.load %arg2[%c0, %c0_0] : memref<128x128xbf16, #tpu.memory_space<vmem>>, vector<128x128xbf16>
    %c0_1 = arith.constant 0 : index
    %c0_2 = arith.constant 0 : index
    %c0_3 = arith.constant 0 : index
    %1 = vector.load %arg3[%c0_1, %c0_2, %c0_3] : memref<1x128x128xbf16, #tpu.memory_space<vmem>>, vector<1x128x128xbf16>
    %2 = vector.shape_cast %1 : vector<1x128x128xbf16> to vector<128x128xbf16>
    %cst = arith.constant dense<0.000000e+00> : vector<128x128xf32>
    %3 = tpu.matmul %0, %2, %cst {dimension_numbers = #tpu.dot_dimension_numbers<[1], [0], [0], [1], [0, 0, 1, 1], [], []>} : vector<128x128xbf16>, vector<128x128xbf16>, vector<128x128xf32> -> vector<128x128xf32>
    %c0_4 = arith.constant 0 : index
    %c0_5 = arith.constant 0 : index
    %c0_6 = arith.constant 0 : index
    %4 = vector.load %arg4[%c0_4, %c0_5, %c0_6] : memref<1x1x128xf32, #tpu.memory_space<vmem>>, vector<1x1x128xf32>
    %5 = vector.shape_cast %4 : vector<1x1x128xf32> to vector<1x128xf32>
    %6 = vector.broadcast %5 : vector<1x128xf32> to vector<128x128xf32>
    %7 = arith.addf %3, %6 : vector<128x128xf32>
    %8 = arith.truncf %7 : vector<128x128xf32> to vector<128x128xbf16>
    %c0_7 = arith.constant 0 : index
    %c0_8 = arith.constant 0 : index
    %9 = vector.load %arg5[%c0_7, %c0_8] : memref<128x128xbf16, #tpu.memory_space<vmem>>, vector<128x128xbf16>
    tpu.vector_store %arg5[%c0_7, %c0_8], %8 {strides = array<i32>} : memref<128x128xbf16, #tpu.memory_space<vmem>>, vector<128x128xbf16>,
    return
  }
  func.func @transform_0(%arg0: i32, %arg1: memref<6xi32, #tpu.memory_space<smem>>) -> (i32, i32) {
    %c0_i32 = arith.constant 0 : i32
    %c0_i32_0 = arith.constant 0 : i32
    return %arg0, %c0_i32 : i32, i32
  }
  func.func @transform_1(%arg0: i32, %arg1: memref<6xi32, #tpu.memory_space<smem>>) -> (i32, i32, i32) {
    %0 = arith.index_cast %arg0 : i32 to index
    %1 = memref.load %arg1[%0] : memref<6xi32, #tpu.memory_space<smem>>
    %c0_i32 = arith.constant 0 : i32
    %c0_i32_0 = arith.constant 0 : i32
    %c0_i32_1 = arith.constant 0 : i32
    return %1, %c0_i32, %c0_i32_0 : i32, i32, i32
  }
  func.func @transform_2(%arg0: i32, %arg1: memref<6xi32, #tpu.memory_space<smem>>) -> (i32, i32, i32) {
    %0 = arith.index_cast %arg0 : i32 to index
    %1 = memref.load %arg1[%0] : memref<6xi32, #tpu.memory_space<smem>>
    %c0_i32 = arith.constant 0 : i32
    %c0_i32_0 = arith.constant 0 : i32
    %c0_i32_1 = arith.constant 0 : i32
    return %1, %c0_i32, %c0_i32_0 : i32, i32, i32
  }
  func.func @transform_3(%arg0: i32, %arg1: memref<6xi32, #tpu.memory_space<smem>>) -> (i32, i32) {
    %c0_i32 = arith.constant 0 : i32
    %c0_i32_0 = arith.constant 0 : i32
    return %arg0, %c0_i32 : i32, i32
  }
}

module attributes {stable_mosaic.version = 11 : i64} {
  func.func @_gemm_bias_act_multi_kernel(%arg0: i32, %arg1: memref<6xi32, #tpu.memory_space<smem>>, %arg2: memref<128x640xbf16, #tpu.memory_space<vmem>>, %arg3: memref<1x640x128xbf16, #tpu.memory_space<vmem>>, %arg4: memref<1x1x128xf32, #tpu.memory_space<vmem>>, %arg5: memref<128x128xbf16, #tpu.memory_space<vmem>>) attributes {dimension_semantics = [#tpu.dimension_semantics<parallel>], iteration_bounds = array<i64: 6>, scalar_prefetch = 1 : i64, scratch_operands = 0 : i64, tpu.core_type = #tpu.core_type<tc>, window_params = [{transform_indices = @transform_0, window_bounds = array<i64: 128, 640>}, {transform_indices = @transform_1, window_bounds = array<i64: 1, 640, 128>}, {transform_indices = @transform_2, window_bounds = array<i64: 1, 1, 128>}, {transform_indices = @transform_3, window_bounds = array<i64: 128, 128>}]} {
    %c0 = arith.constant 0 : index
    %c0_0 = arith.constant 0 : index
    %0 = vector.load %arg2[%c0, %c0_0] : memref<128x640xbf16, #tpu.memory_space<vmem>>, vector<128x640xbf16>
    %c0_1 = arith.constant 0 : index
    %c0_2 = arith.constant 0 : index
    %c0_3 = arith.constant 0 : index
    %1 = vector.load %arg3[%c0_1, %c0_2, %c0_3] : memref<1x640x128xbf16, #tpu.memory_space<vmem>>, vector<1x640x128xbf16>
    %2 = vector.shape_cast %1 : vector<1x640x128xbf16> to vector<640x128xbf16>
    %cst = arith.constant dense<0.000000e+00> : vector<128x128xf32>
    %3 = tpu.matmul %0, %2, %cst {dimension_numbers = #tpu.dot_dimension_numbers<[1], [0], [0], [1], [0, 0, 1, 1], [], []>} : vector<128x640xbf16>, vector<640x128xbf16>, vector<128x128xf32> -> vector<128x128xf32>
    %c0_4 = arith.constant 0 : index
    %c0_5 = arith.constant 0 : index
    %c0_6 = arith.constant 0 : index
    %4 = vector.load %arg4[%c0_4, %c0_5, %c0_6] : memref<1x1x128xf32, #tpu.memory_space<vmem>>, vector<1x1x128xf32>
    %5 = vector.shape_cast %4 : vector<1x1x128xf32> to vector<1x128xf32>
    %6 = vector.broadcast %5 : vector<1x128xf32> to vector<128x128xf32>
    %7 = arith.addf %3, %6 : vector<128x128xf32>
    %8 = arith.truncf %7 : vector<128x128xf32> to vector<128x128xbf16>
    %c0_7 = arith.constant 0 : index
    %c0_8 = arith.constant 0 : index
    %9 = vector.load %arg5[%c0_7, %c0_8] : memref<128x128xbf16, #tpu.memory_space<vmem>>, vector<128x128xbf16>
    tpu.vector_store %arg5[%c0_7, %c0_8], %8 {strides = array<i32>} : memref<128x128xbf16, #tpu.memory_space<vmem>>, vector<128x128xbf16>,
    return
  }
  func.func @transform_0(%arg0: i32, %arg1: memref<6xi32, #tpu.memory_space<smem>>) -> (i32, i32) {
    %c0_i32 = arith.constant 0 : i32
    %c0_i32_0 = arith.constant 0 : i32
    return %arg0, %c0_i32 : i32, i32
  }
  func.func @transform_1(%arg0: i32, %arg1: memref<6xi32, #tpu.memory_space<smem>>) -> (i32, i32, i32) {
    %0 = arith.index_cast %arg0 : i32 to index
    %1 = memref.load %arg1[%0] : memref<6xi32, #tpu.memory_space<smem>>
    %c0_i32 = arith.constant 0 : i32
    %c0_i32_0 = arith.constant 0 : i32
    %c0_i32_1 = arith.constant 0 : i32
    return %1, %c0_i32, %c0_i32_0 : i32, i32, i32
  }
  func.func @transform_2(%arg0: i32, %arg1: memref<6xi32, #tpu.memory_space<smem>>) -> (i32, i32, i32) {
    %0 = arith.index_cast %arg0 : i32 to index
    %1 = memref.load %arg1[%0] : memref<6xi32, #tpu.memory_space<smem>>
    %c0_i32 = arith.constant 0 : i32
    %c0_i32_0 = arith.constant 0 : i32
    %c0_i32_1 = arith.constant 0 : i32
    return %1, %c0_i32, %c0_i32_0 : i32, i32, i32
  }
  func.func @transform_3(%arg0: i32, %arg1: memref<6xi32, #tpu.memory_space<smem>>) -> (i32, i32) {
    %c0_i32 = arith.constant 0 : i32
    %c0_i32_0 = arith.constant 0 : i32
    return %arg0, %c0_i32 : i32, i32
  }
}

module attributes {stable_mosaic.version = 11 : i64} {
  func.func @_gemm_bias_act_kernel(%arg0: i32, %arg1: memref<256x640xbf16, #tpu.memory_space<vmem>>, %arg2: memref<640x128xbf16, #tpu.memory_space<vmem>>, %arg3: memref<1x128xf32, #tpu.memory_space<vmem>>, %arg4: memref<256x128xbf16, #tpu.memory_space<vmem>>) attributes {dimension_semantics = [#tpu.dimension_semantics<parallel>], iteration_bounds = array<i64: 3>, scalar_prefetch = 0 : i64, scratch_operands = 0 : i64, tpu.core_type = #tpu.core_type<tc>, window_params = [{transform_indices = @transform_0, window_bounds = array<i64: 256, 640>}, {pipeline_mode = #tpu.pipeline_mode<synchronous>, transform_indices = @transform_1, window_bounds = array<i64: 640, 128>}, {pipeline_mode = #tpu.pipeline_mode<synchronous>, transform_indices = @transform_2, window_bounds = array<i64: 1, 128>}, {transform_indices = @transform_3, window_bounds = array<i64: 256, 128>}]} {
    %c0 = arith.constant 0 : index
    %c0_0 = arith.constant 0 : index
    %0 = vector.load %arg1[%c0, %c0_0] : memref<256x640xbf16, #tpu.memory_space<vmem>>, vector<256x640xbf16>
    %c0_1 = arith.constant 0 : index
    %c0_2 = arith.constant 0 : index
    %1 = vector.load %arg2[%c0_1, %c0_2] : memref<640x128xbf16, #tpu.memory_space<vmem>>, vector<640x128xbf16>
    %cst = arith.constant dense<0.000000e+00> : vector<256x128xf32>
    %2 = tpu.matmul %0, %1, %cst {dimension_numbers = #tpu.dot_dimension_numbers<[1], [0], [0], [1], [0, 0, 1, 1], [], []>} : vector<256x640xbf16>, vector<640x128xbf16>, vector<256x128xf32> -> vector<256x128xf32>
    %c0_3 = arith.constant 0 : index
    %c0_4 = arith.constant 0 : index
    %3 = vector.load %arg3[%c0_3, %c0_4] : memref<1x128xf32, #tpu.memory_space<vmem>>, vector<1x128xf32>
    %4 = vector.broadcast %3 : vector<1x128xf32> to vector<256x128xf32>
    %5 = arith.addf %2, %4 : vector<256x128xf32>
    %cst_5 = arith.constant 0.000000e+00 : f32
    %6 = vector.broadcast %cst_5 : f32 to vector<256x128xf32>
    %7 = arith.maximumf %5, %6 : vector<256x128xf32>
    %8 = arith.truncf %7 : vector<256x128xf32> to vector<256x128xbf16>
    %c0_6 = arith.constant 0 : index
    %c0_7 = arith.constant 0 : index
    %9 = vector.load %arg4[%c0_6, %c0_7] : memref<256x128xbf16, #tpu.memory_space<vmem>>, vector<256x128xbf16>
    tpu.vector_store %arg4[%c0_6, %c0_7], %8 {strides = array<i32>} : memref<256x128xbf16, #tpu.memory_space<vmem>>, vector<256x128xbf16>,
    return
  }
  func.func @transform_0(%arg0: i32) -> (i32, i32) {
    %c0_i32 = arith.constant 0 : i32
    %c0_i32_0 = arith.constant 0 : i32
    return %arg0, %c0_i32 : i32, i32
  }
  func.func @transform_1(%arg0: i32) -> (i32, i32) {
    %c0_i32 = arith.constant 0 : i32
    %c0_i32_0 = arith.constant 0 : i32
    %c0_i32_1 = arith.constant 0 : i32
    return %c0_i32, %c0_i32_0 : i32, i32
  }
  func.func @transform_2(%arg0: i32) -> (i32, i32) {
    %c0_i32 = arith.constant 0 : i32
    %c0_i32_0 = arith.constant 0 : i32
    %c0_i32_1 = arith.constant 0 : i32
    return %c0_i32, %c0_i32_0 : i32, i32
  }
  func.func @transform_3(%arg0: i32) -> (i32, i32) {
    %c0_i32 = arith.constant 0 : i32
    %c0_i32_0 = arith.constant 0 : i32
    return %arg0, %c0_i32 : i32, i32
  }
}

module attributes {stable_mosaic.version = 11 : i64} {
  func.func @_gemm_bias_act_multi_kernel(%arg0: i32, %arg1: memref<6xi32, #tpu.memory_space<smem>>, %arg2: memref<256x640xbf16, #tpu.memory_space<vmem>>, %arg3: memref<1x640x128xbf16, #tpu.memory_space<vmem>>, %arg4: memref<1x1x128xf32, #tpu.memory_space<vmem>>, %arg5: memref<256x128xbf16, #tpu.memory_space<vmem>>) attributes {dimension_semantics = [#tpu.dimension_semantics<parallel>], iteration_bounds = array<i64: 6>, scalar_prefetch = 1 : i64, scratch_operands = 0 : i64, tpu.core_type = #tpu.core_type<tc>, window_params = [{transform_indices = @transform_0, window_bounds = array<i64: 256, 640>}, {transform_indices = @transform_1, window_bounds = array<i64: 1, 640, 128>}, {transform_indices = @transform_2, window_bounds = array<i64: 1, 1, 128>}, {transform_indices = @transform_3, window_bounds = array<i64: 256, 128>}]} {
    %c0 = arith.constant 0 : index
    %c0_0 = arith.constant 0 : index
    %0 = vector.load %arg2[%c0, %c0_0] : memref<256x640xbf16, #tpu.memory_space<vmem>>, vector<256x640xbf16>
    %c0_1 = arith.constant 0 : index
    %c0_2 = arith.constant 0 : index
    %c0_3 = arith.constant 0 : index
    %1 = vector.load %arg3[%c0_1, %c0_2, %c0_3] : memref<1x640x128xbf16, #tpu.memory_space<vmem>>, vector<1x640x128xbf16>
    %2 = vector.shape_cast %1 : vector<1x640x128xbf16> to vector<640x128xbf16>
    %cst = arith.constant dense<0.000000e+00> : vector<256x128xf32>
    %3 = tpu.matmul %0, %2, %cst {dimension_numbers = #tpu.dot_dimension_numbers<[1], [0], [0], [1], [0, 0, 1, 1], [], []>} : vector<256x640xbf16>, vector<640x128xbf16>, vector<256x128xf32> -> vector<256x128xf32>
    %c0_4 = arith.constant 0 : index
    %c0_5 = arith.constant 0 : index
    %c0_6 = arith.constant 0 : index
    %4 = vector.load %arg4[%c0_4, %c0_5, %c0_6] : memref<1x1x128xf32, #tpu.memory_space<vmem>>, vector<1x1x128xf32>
    %5 = vector.shape_cast %4 : vector<1x1x128xf32> to vector<1x128xf32>
    %6 = vector.broadcast %5 : vector<1x128xf32> to vector<256x128xf32>
    %7 = arith.addf %3, %6 : vector<256x128xf32>
    %cst_7 = arith.constant 0.000000e+00 : f32
    %8 = vector.broadcast %cst_7 : f32 to vector<256x128xf32>
    %9 = arith.maximumf %7, %8 : vector<256x128xf32>
    %10 = arith.truncf %9 : vector<256x128xf32> to vector<256x128xbf16>
    %c0_8 = arith.constant 0 : index
    %c0_9 = arith.constant 0 : index
    %11 = vector.load %arg5[%c0_8, %c0_9] : memref<256x128xbf16, #tpu.memory_space<vmem>>, vector<256x128xbf16>
    tpu.vector_store %arg5[%c0_8, %c0_9], %10 {strides = array<i32>} : memref<256x128xbf16, #tpu.memory_space<vmem>>, vector<256x128xbf16>,
    return
  }
  func.func @transform_0(%arg0: i32, %arg1: memref<6xi32, #tpu.memory_space<smem>>) -> (i32, i32) {
    %c0_i32 = arith.constant 0 : i32
    %c0_i32_0 = arith.constant 0 : i32
    return %arg0, %c0_i32 : i32, i32
  }
  func.func @transform_1(%arg0: i32, %arg1: memref<6xi32, #tpu.memory_space<smem>>) -> (i32, i32, i32) {
    %0 = arith.index_cast %arg0 : i32 to index
    %1 = memref.load %arg1[%0] : memref<6xi32, #tpu.memory_space<smem>>
    %c0_i32 = arith.constant 0 : i32
    %c0_i32_0 = arith.constant 0 : i32
    %c0_i32_1 = arith.constant 0 : i32
    return %1, %c0_i32, %c0_i32_0 : i32, i32, i32
  }
  func.func @transform_2(%arg0: i32, %arg1: memref<6xi32, #tpu.memory_space<smem>>) -> (i32, i32, i32) {
    %0 = arith.index_cast %arg0 : i32 to index
    %1 = memref.load %arg1[%0] : memref<6xi32, #tpu.memory_space<smem>>
    %c0_i32 = arith.constant 0 : i32
    %c0_i32_0 = arith.constant 0 : i32
    %c0_i32_1 = arith.constant 0 : i32
    return %1, %c0_i32, %c0_i32_0 : i32, i32, i32
  }
  func.func @transform_3(%arg0: i32, %arg1: memref<6xi32, #tpu.memory_space<smem>>) -> (i32, i32) {
    %c0_i32 = arith.constant 0 : i32
    %c0_i32_0 = arith.constant 0 : i32
    return %arg0, %c0_i32 : i32, i32
  }
}

module attributes {stable_mosaic.version = 11 : i64} {
  func.func @_gemm_bias_act_kernel(%arg0: i32, %arg1: memref<256x640xbf16, #tpu.memory_space<vmem>>, %arg2: memref<640x128xbf16, #tpu.memory_space<vmem>>, %arg3: memref<1x128xf32, #tpu.memory_space<vmem>>, %arg4: memref<256x128xf32, #tpu.memory_space<vmem>>) attributes {dimension_semantics = [#tpu.dimension_semantics<parallel>], iteration_bounds = array<i64: 3>, scalar_prefetch = 0 : i64, scratch_operands = 0 : i64, tpu.core_type = #tpu.core_type<tc>, window_params = [{transform_indices = @transform_0, window_bounds = array<i64: 256, 640>}, {pipeline_mode = #tpu.pipeline_mode<synchronous>, transform_indices = @transform_1, window_bounds = array<i64: 640, 128>}, {pipeline_mode = #tpu.pipeline_mode<synchronous>, transform_indices = @transform_2, window_bounds = array<i64: 1, 128>}, {transform_indices = @transform_3, window_bounds = array<i64: 256, 128>}]} {
    %c0 = arith.constant 0 : index
    %c0_0 = arith.constant 0 : index
    %0 = vector.load %arg1[%c0, %c0_0] : memref<256x640xbf16, #tpu.memory_space<vmem>>, vector<256x640xbf16>
    %c0_1 = arith.constant 0 : index
    %c0_2 = arith.constant 0 : index
    %1 = vector.load %arg2[%c0_1, %c0_2] : memref<640x128xbf16, #tpu.memory_space<vmem>>, vector<640x128xbf16>
    %cst = arith.constant dense<0.000000e+00> : vector<256x128xf32>
    %2 = tpu.matmul %0, %1, %cst {dimension_numbers = #tpu.dot_dimension_numbers<[1], [0], [0], [1], [0, 0, 1, 1], [], []>} : vector<256x640xbf16>, vector<640x128xbf16>, vector<256x128xf32> -> vector<256x128xf32>
    %c0_3 = arith.constant 0 : index
    %c0_4 = arith.constant 0 : index
    %3 = vector.load %arg3[%c0_3, %c0_4] : memref<1x128xf32, #tpu.memory_space<vmem>>, vector<1x128xf32>
    %4 = vector.broadcast %3 : vector<1x128xf32> to vector<256x128xf32>
    %5 = arith.addf %2, %4 : vector<256x128xf32>
    %c0_5 = arith.constant 0 : index
    %c0_6 = arith.constant 0 : index
    %6 = vector.load %arg4[%c0_5, %c0_6] : memref<256x128xf32, #tpu.memory_space<vmem>>, vector<256x128xf32>
    tpu.vector_store %arg4[%c0_5, %c0_6], %5 {strides = array<i32>} : memref<256x128xf32, #tpu.memory_space<vmem>>, vector<256x128xf32>,
    return
  }
  func.func @transform_0(%arg0: i32) -> (i32, i32) {
    %c0_i32 = arith.constant 0 : i32
    %c0_i32_0 = arith.constant 0 : i32
    return %arg0, %c0_i32 : i32, i32
  }
  func.func @transform_1(%arg0: i32) -> (i32, i32) {
    %c0_i32 = arith.constant 0 : i32
    %c0_i32_0 = arith.constant 0 : i32
    %c0_i32_1 = arith.constant 0 : i32
    return %c0_i32, %c0_i32_0 : i32, i32
  }
  func.func @transform_2(%arg0: i32) -> (i32, i32) {
    %c0_i32 = arith.constant 0 : i32
    %c0_i32_0 = arith.constant 0 : i32
    %c0_i32_1 = arith.constant 0 : i32
    return %c0_i32, %c0_i32_0 : i32, i32
  }
  func.func @transform_3(%arg0: i32) -> (i32, i32) {
    %c0_i32 = arith.constant 0 : i32
    %c0_i32_0 = arith.constant 0 : i32
    return %arg0, %c0_i32 : i32, i32
  }
}

module attributes {stable_mosaic.version = 11 : i64} {
  func.func @_gemm_bias_act_kernel(%arg0: i32, %arg1: memref<256x640xbf16, #tpu.memory_space<vmem>>, %arg2: memref<640x128xbf16, #tpu.memory_space<vmem>>, %arg3: memref<1x128xf32, #tpu.memory_space<vmem>>, %arg4: memref<256x128xf32, #tpu.memory_space<vmem>>) attributes {dimension_semantics = [#tpu.dimension_semantics<parallel>], iteration_bounds = array<i64: 3>, scalar_prefetch = 0 : i64, scratch_operands = 0 : i64, tpu.core_type = #tpu.core_type<tc>, window_params = [{transform_indices = @transform_0, window_bounds = array<i64: 256, 640>}, {pipeline_mode = #tpu.pipeline_mode<synchronous>, transform_indices = @transform_1, window_bounds = array<i64: 640, 128>}, {pipeline_mode = #tpu.pipeline_mode<synchronous>, transform_indices = @transform_2, window_bounds = array<i64: 1, 128>}, {transform_indices = @transform_3, window_bounds = array<i64: 256, 128>}]} {
    %c0 = arith.constant 0 : index
    %c0_0 = arith.constant 0 : index
    %0 = vector.load %arg1[%c0, %c0_0] : memref<256x640xbf16, #tpu.memory_space<vmem>>, vector<256x640xbf16>
    %c0_1 = arith.constant 0 : index
    %c0_2 = arith.constant 0 : index
    %1 = vector.load %arg2[%c0_1, %c0_2] : memref<640x128xbf16, #tpu.memory_space<vmem>>, vector<640x128xbf16>
    %cst = arith.constant dense<0.000000e+00> : vector<256x128xf32>
    %2 = tpu.matmul %0, %1, %cst {dimension_numbers = #tpu.dot_dimension_numbers<[1], [0], [0], [1], [0, 0, 1, 1], [], []>} : vector<256x640xbf16>, vector<640x128xbf16>, vector<256x128xf32> -> vector<256x128xf32>
    %c0_3 = arith.constant 0 : index
    %c0_4 = arith.constant 0 : index
    %3 = vector.load %arg3[%c0_3, %c0_4] : memref<1x128xf32, #tpu.memory_space<vmem>>, vector<1x128xf32>
    %4 = vector.broadcast %3 : vector<1x128xf32> to vector<256x128xf32>
    %5 = arith.addf %2, %4 : vector<256x128xf32>
    %cst_5 = arith.constant 0.000000e+00 : f32
    %6 = vector.broadcast %cst_5 : f32 to vector<256x128xf32>
    %7 = arith.subf %6, %5 : vector<256x128xf32>
    %8 = math.exp %7 : vector<256x128xf32>
    %cst_6 = arith.constant 1.000000e+00 : f32
    %9 = vector.broadcast %cst_6 : f32 to vector<256x128xf32>
    %10 = arith.addf %9, %8 : vector<256x128xf32>
    %cst_7 = arith.constant 1.000000e+00 : f32
    %11 = vector.broadcast %cst_7 : f32 to vector<256x128xf32>
    %12 = arith.divf %11, %10 : vector<256x128xf32>
    %c0_8 = arith.constant 0 : index
    %c0_9 = arith.constant 0 : index
    %13 = vector.load %arg4[%c0_8, %c0_9] : memref<256x128xf32, #tpu.memory_space<vmem>>, vector<256x128xf32>
    tpu.vector_store %arg4[%c0_8, %c0_9], %12 {strides = array<i32>} : memref<256x128xf32, #tpu.memory_space<vmem>>, vector<256x128xf32>,
    return
  }
  func.func @transform_0(%arg0: i32) -> (i32, i32) {
    %c0_i32 = arith.constant 0 : i32
    %c0_i32_0 = arith.constant 0 : i32
    return %arg0, %c0_i32 : i32, i32
  }
  func.func @transform_1(%arg0: i32) -> (i32, i32) {
    %c0_i32 = arith.constant 0 : i32
    %c0_i32_0 = arith.constant 0 : i32
    %c0_i32_1 = arith.constant 0 : i32
    return %c0_i32, %c0_i32_0 : i32, i32
  }
  func.func @transform_2(%arg0: i32) -> (i32, i32) {
    %c0_i32 = arith.constant 0 : i32
    %c0_i32_0 = arith.constant 0 : i32
    %c0_i32_1 = arith.constant 0 : i32
    return %c0_i32, %c0_i32_0 : i32, i32
  }
  func.func @transform_3(%arg0: i32) -> (i32, i32) {
    %c0_i32 = arith.constant 0 : i32
    %c0_i32_0 = arith.constant 0 : i32
    return %arg0, %c0_i32 : i32, i32
  }
}

module attributes {stable_mosaic.version = 11 : i64} {
  func.func @_decode_kernel(%arg0: i32, %arg1: memref<8x128xf32, #tpu.memory_space<vmem>>, %arg2: memref<4x128xf32, #tpu.memory_space<vmem>>) attributes {dimension_semantics = [#tpu.dimension_semantics<arbitrary>], iteration_bounds = array<i64: 1>, scalar_prefetch = 0 : i64, scratch_operands = 0 : i64, tpu.core_type = #tpu.core_type<tc>, window_params = [{pipeline_mode = #tpu.pipeline_mode<synchronous>, transform_indices = @transform_0, window_bounds = array<i64: 8, 128>}, {pipeline_mode = #tpu.pipeline_mode<synchronous>, transform_indices = @transform_1, window_bounds = array<i64: 4, 128>}]} {
    %c0 = arith.constant 0 : index
    %c0_0 = arith.constant 0 : index
    %0 = vector.load %arg1[%c0, %c0_0] : memref<8x128xf32, #tpu.memory_space<vmem>>, vector<8x128xf32>
    %1 = vector.extract_strided_slice %0 {offsets = [0, 0], sizes = [1, 128], strides = [1, 1]} : vector<8x128xf32> to vector<1x128xf32>
    %2 = vector.extract_strided_slice %0 {offsets = [1, 0], sizes = [1, 128], strides = [1, 1]} : vector<8x128xf32> to vector<1x128xf32>
    %3 = vector.extract_strided_slice %0 {offsets = [2, 0], sizes = [1, 128], strides = [1, 1]} : vector<8x128xf32> to vector<1x128xf32>
    %4 = vector.extract_strided_slice %0 {offsets = [3, 0], sizes = [1, 128], strides = [1, 1]} : vector<8x128xf32> to vector<1x128xf32>
    %5 = vector.extract_strided_slice %0 {offsets = [4, 0], sizes = [1, 128], strides = [1, 1]} : vector<8x128xf32> to vector<1x128xf32>
    %6 = vector.extract_strided_slice %0 {offsets = [5, 0], sizes = [1, 128], strides = [1, 1]} : vector<8x128xf32> to vector<1x128xf32>
    %7 = vector.extract_strided_slice %0 {offsets = [6, 0], sizes = [1, 128], strides = [1, 1]} : vector<8x128xf32> to vector<1x128xf32>
    %cst = arith.constant 4.13516665 : f32
    %8 = vector.broadcast %cst : f32 to vector<1x128xf32>
    %9 = arith.minimumf %7, %8 : vector<1x128xf32>
    %10 = vector.extract_strided_slice %0 {offsets = [7, 0], sizes = [1, 128], strides = [1, 1]} : vector<8x128xf32> to vector<1x128xf32>
    %cst_1 = arith.constant 4.13516665 : f32
    %11 = vector.broadcast %cst_1 : f32 to vector<1x128xf32>
    %12 = arith.minimumf %10, %11 : vector<1x128xf32>
    %13 = arith.subf %3, %1 : vector<1x128xf32>
    %14 = arith.subf %4, %2 : vector<1x128xf32>
    %cst_2 = arith.constant 5.000000e-01 : f32
    %15 = vector.broadcast %cst_2 : f32 to vector<1x128xf32>
    %16 = arith.mulf %15, %13 : vector<1x128xf32>
    %17 = arith.addf %1, %16 : vector<1x128xf32>
    %cst_3 = arith.constant 5.000000e-01 : f32
    %18 = vector.broadcast %cst_3 : f32 to vector<1x128xf32>
    %19 = arith.mulf %18, %14 : vector<1x128xf32>
    %20 = arith.addf %2, %19 : vector<1x128xf32>
    %21 = arith.mulf %5, %13 : vector<1x128xf32>
    %22 = arith.addf %21, %17 : vector<1x128xf32>
    %23 = arith.mulf %6, %14 : vector<1x128xf32>
    %24 = arith.addf %23, %20 : vector<1x128xf32>
    %25 = math.exp %9 : vector<1x128xf32>
    %26 = arith.mulf %25, %13 : vector<1x128xf32>
    %27 = math.exp %12 : vector<1x128xf32>
    %28 = arith.mulf %27, %14 : vector<1x128xf32>
    %cst_4 = arith.constant 5.000000e-01 : f32
    %29 = vector.broadcast %cst_4 : f32 to vector<1x128xf32>
    %30 = arith.mulf %29, %26 : vector<1x128xf32>
    %31 = arith.subf %22, %30 : vector<1x128xf32>
    %cst_5 = arith.constant 0.000000e+00 : f32
    %cst_6 = arith.constant 6.400000e+01 : f32
    %32 = vector.broadcast %cst_5 : f32 to vector<1x128xf32>
    %33 = arith.maximumf %32, %31 : vector<1x128xf32>
    %34 = vector.broadcast %cst_6 : f32 to vector<1x128xf32>
    %35 = arith.minimumf %34, %33 : vector<1x128xf32>
    %cst_7 = arith.constant 5.000000e-01 : f32
    %36 = vector.broadcast %cst_7 : f32 to vector<1x128xf32>
    %37 = arith.mulf %36, %28 : vector<1x128xf32>
    %38 = arith.subf %24, %37 : vector<1x128xf32>
    %cst_8 = arith.constant 0.000000e+00 : f32
    %cst_9 = arith.constant 6.400000e+01 : f32
    %39 = vector.broadcast %cst_8 : f32 to vector<1x128xf32>
    %40 = arith.maximumf %39, %38 : vector<1x128xf32>
    %41 = vector.broadcast %cst_9 : f32 to vector<1x128xf32>
    %42 = arith.minimumf %41, %40 : vector<1x128xf32>
    %cst_10 = arith.constant 5.000000e-01 : f32
    %43 = vector.broadcast %cst_10 : f32 to vector<1x128xf32>
    %44 = arith.mulf %43, %26 : vector<1x128xf32>
    %45 = arith.addf %22, %44 : vector<1x128xf32>
    %cst_11 = arith.constant 0.000000e+00 : f32
    %cst_12 = arith.constant 6.400000e+01 : f32
    %46 = vector.broadcast %cst_11 : f32 to vector<1x128xf32>
    %47 = arith.maximumf %46, %45 : vector<1x128xf32>
    %48 = vector.broadcast %cst_12 : f32 to vector<1x128xf32>
    %49 = arith.minimumf %48, %47 : vector<1x128xf32>
    %cst_13 = arith.constant 5.000000e-01 : f32
    %50 = vector.broadcast %cst_13 : f32 to vector<1x128xf32>
    %51 = arith.mulf %50, %28 : vector<1x128xf32>
    %52 = arith.addf %24, %51 : vector<1x128xf32>
    %cst_14 = arith.constant 0.000000e+00 : f32
    %cst_15 = arith.constant 6.400000e+01 : f32
    %53 = vector.broadcast %cst_14 : f32 to vector<1x128xf32>
    %54 = arith.maximumf %53, %52 : vector<1x128xf32>
    %55 = vector.broadcast %cst_15 : f32 to vector<1x128xf32>
    %56 = arith.minimumf %55, %54 : vector<1x128xf32>
    %57 = tpu.concatenate %35, %42, %49, %56 in 0 : vector<1x128xf32>, vector<1x128xf32>, vector<1x128xf32>, vector<1x128xf32> -> vector<4x128xf32>
    %c0_16 = arith.constant 0 : index
    %c0_17 = arith.constant 0 : index
    %58 = vector.load %arg2[%c0_16, %c0_17] : memref<4x128xf32, #tpu.memory_space<vmem>>, vector<4x128xf32>
    tpu.vector_store %arg2[%c0_16, %c0_17], %57 {strides = array<i32>} : memref<4x128xf32, #tpu.memory_space<vmem>>, vector<4x128xf32>,
    return
  }
  func.func @transform_0(%arg0: i32) -> (i32, i32) {
    %c0_i32 = arith.constant 0 : i32
    %c0_i32_0 = arith.constant 0 : i32
    %c0_i32_1 = arith.constant 0 : i32
    return %c0_i32, %c0_i32_0 : i32, i32
  }
  func.func @transform_1(%arg0: i32) -> (i32, i32) {
    %c0_i32 = arith.constant 0 : i32
    %c0_i32_0 = arith.constant 0 : i32
    %c0_i32_1 = arith.constant 0 : i32
    return %c0_i32, %c0_i32_0 : i32, i32
  }
}

</mosaic_0001>

<bundles_post_ra>
// kernel: retinanet_serve.15
= control target key start
LH: loop header
LB: loop body
LE: loop exit
PB: predicated region body
PF: predicated region fallthrough
CT: control target
= control target key end

     0   :  { %s1814_s12 = smov 0   ;;  %s1999_s0 = inlined_call_operand.vmem [shape: bf16[2048,128], index: 0, kind: input, shape index: {}]   ;;  %s2000_s1 = inlined_call_operand.vmem [shape: bf16[128,128], index: 1, kind: input, shape index: {}]   ;;  %s2001_s2 = inlined_call_operand.vmem [shape: f32[1,128], index: 2, kind: input, shape index: {}]   ;;  %s2002_s3 = inlined_call_operand.vmem [shape: bf16[2048,128], index: 3, kind: output, shape index: {}]  }
   0x1 LB: > { %s1231_s13 = sadd.s32 4294967295, %s1792_s12   ;;  %p1235_p0 = scmp.ge.s32.totalorder %s1792_s12, 1  ;;  %s1792_s12 = sphi %s1814_s12, %s13_s12  }
   0x2   : > { %p138_p1 = scmp.lt.s32.totalorder %s1792_s12, 5 }
   0x4   : > { %p139_p2 = pnand %p1235_p0, %p138_p1 }
   0x5   : > { %v1746_v0 = vld [vmem:[%s2000_s1] sm:$0xff] (!%p139_p2)   ;;  %s1236_s16 = sshll.u32 (!%p139_p2), %s1231_s13, 6  ;;  %v1747_v1 = vld [vmem:[%s2000_s1 + $0x8] sm:$0xff] (!%p139_p2)   ;;  %v1748_v2 = vld [vmem:[%s2000_s1 + $0x10] sm:$0xff] (!%p139_p2)  }
   0x6   : > { %142 = sbr.rel (%p139_p2) target bundleno = 316 (0x13c), region = 32  ;;  %p163_p3 = scmp.lt.s32.totalorder (!%p139_p2), %s1236_s16, 255  ;;  %1642 = vmatprep.subr.bf16.mxu0 (!%p139_p2), %v1746_v0  ;;  %1722 = vmatprep.subr.bf16.mxu1 (!%p139_p2), %v1746_v0  ;;  %v1749_v3 = vld [vmem:[%s2000_s1 + $0x18] sm:$0xff] (!%p139_p2)   ;;  %v1750_v6 = vld [vmem:[%s2000_s1 + $0x20] sm:$0xff] (!%p139_p2)   ;;  %v1751_v7 = vld [vmem:[%s2000_s1 + $0x28] sm:$0xff] (!%p139_p2)  }
   0x7   : > { %1643 = vmatpush3.bf16.msra.mxu0 (!%p139_p2), %v1746_v0  ;;  %1730 = vmatpush3.bf16.msra.mxu1 (!%p139_p2), %v1746_v0  ;;  %v1752_v8 = vld [vmem:[%s2000_s1 + $0x30] sm:$0xff] (!%p139_p2)   ;;  %v1753_v9 = vld [vmem:[%s2000_s1 + $0x38] sm:$0xff] (!%p139_p2)   ;;  %v1891_v40 = vld [vmem:[%s2001_s2] ss:$0 sm:$0xff] (!%p139_p2) }
   0x8   : > { %1644 = vmatprep.subr.bf16.mxu0 (!%p139_p2), %v1747_v1  ;;  %1723 = vmatprep.subr.bf16.mxu1 (!%p139_p2), %v1747_v1 }
   0xb   : > { %1645 = vmatpush3.bf16.msra.mxu0 (!%p139_p2), %v1747_v1  ;;  %1731 = vmatpush3.bf16.msra.mxu1 (!%p139_p2), %v1747_v1 }
   0xc   : > { %1646 = vmatprep.subr.bf16.mxu0 (!%p139_p2), %v1748_v2  ;;  %1724 = vmatprep.subr.bf16.mxu1 (!%p139_p2), %v1748_v2 }
   0xd   : > { %s2004_s16 = smov (!%p163_p3, %s1236_s16), 255 }
   0xe   : > { %s1237_s21 = sshll.u32 %s2004_s16, 2 }
   0xf   : > { %s1839_s24 = scalar_lea.vmem %s1999_s0, %s1237_s21  ;;  %1647 = vmatpush3.bf16.msra.mxu0 %v1748_v2  ;;  %1732 = vmatpush3.bf16.msra.mxu1 %v1748_v2  ;;  %s1906_s13 = scalar_lea.vmem %s2002_s3, %s1237_s21 }
  0x10   : > { %v1754_v4 = vld [vmem:[%s1839_s24] sm:$0xff]   ;;  %1648 = vmatprep.subr.bf16.mxu0 %v1749_v3  ;;  %1725 = vmatprep.subr.bf16.mxu1 %v1749_v3  ;;  %v1756_v10 = vld [vmem:[%s1839_s24 + $0x8] sm:$0xff]   ;;  %v1758_v12 = vld [vmem:[%s1839_s24 + $0x10] sm:$0xff]  }
  0x11   : > { %v1755_v5 = vld [vmem:[%s1839_s24 + $0x80] sm:$0xff]   ;;  %1658 = vmatprep.mubr.bf16.mxu0 %v1754_v4  ;;  %v1757_v11 = vld [vmem:[%s1839_s24 + $0x88] sm:$0xff]   ;;  %v1759_v13 = vld [vmem:[%s1839_s24 + $0x90] sm:$0xff]  }
  0x12   : > { %1690 = vmatprep.mubr.bf16.mxu1 %v1755_v5  ;;  %v1760_v14 = vld [vmem:[%s1839_s24 + $0x18] sm:$0xff]   ;;  %v1762_v16 = vld [vmem:[%s1839_s24 + $0x20] sm:$0xff]   ;;  %v1764_v18 = vld [vmem:[%s1839_s24 + $0x28] sm:$0xff]  }
  0x13   : > { %1649 = vmatpush3.bf16.msra.mxu0 %v1749_v3  ;;  %1733 = vmatpush3.bf16.msra.mxu1 %v1749_v3  ;;  %v1761_v15 = vld [vmem:[%s1839_s24 + $0x98] sm:$0xff]   ;;  %v1763_v17 = vld [vmem:[%s1839_s24 + $0xa0] sm:$0xff]   ;;  %v1765_v19 = vld [vmem:[%s1839_s24 + $0xa8] sm:$0xff]  }
  0x14   : > { %1650 = vmatprep.subr.bf16.mxu0 %v1750_v6  ;;  %1726 = vmatprep.subr.bf16.mxu1 %v1750_v6  ;;  %v1766_v20 = vld [vmem:[%s1839_s24 + $0x30] sm:$0xff]   ;;  %v1768_v22 = vld [vmem:[%s1839_s24 + $0x38] sm:$0xff]   ;;  %v1770_v24 = vld [vmem:[%s1839_s24 + $0x40] sm:$0xff]  }
  0x15   : > { %v1767_v21 = vld [vmem:[%s1839_s24 + $0xb0] sm:$0xff]   ;;  %v1769_v23 = vld [vmem:[%s1839_s24 + $0xb8] sm:$0xff]   ;;  %v1771_v25 = vld [vmem:[%s1839_s24 + $0xc0] sm:$0xff]  }
  0x16   : > { %v1772_v26 = vld [vmem:[%s1839_s24 + $0x48] sm:$0xff]   ;;  %v1774_v28 = vld [vmem:[%s1839_s24 + $0x50] sm:$0xff]   ;;  %v1776_v30 = vld [vmem:[%s1839_s24 + $0x58] sm:$0xff]  }
  0x17   : > { %1651 = vmatpush3.bf16.msra.mxu0 %v1750_v6  ;;  %1734 = vmatpush3.bf16.msra.mxu1 %v1750_v6  ;;  %v1773_v27 = vld [vmem:[%s1839_s24 + $0xc8] sm:$0xff]   ;;  %v1775_v29 = vld [vmem:[%s1839_s24 + $0xd0] sm:$0xff]   ;;  %v1777_v31 = vld [vmem:[%s1839_s24 + $0xd8] sm:$0xff]  }
  0x18   : > { %1652 = vmatprep.subr.bf16.mxu0 %v1751_v7  ;;  %1727 = vmatprep.subr.bf16.mxu1 %v1751_v7  ;;  %v1778_v32 = vld [vmem:[%s1839_s24 + $0x60] sm:$0xff]   ;;  %v1780_v34 = vld [vmem:[%s1839_s24 + $0x68] sm:$0xff]   ;;  %v1782_v36 = vld [vmem:[%s1839_s24 + $0x70] sm:$0xff]  }
  0x19   : > { %v1779_v33 = vld [vmem:[%s1839_s24 + $0xe0] sm:$0xff]   ;;  %v1781_v35 = vld [vmem:[%s1839_s24 + $0xe8] sm:$0xff]   ;;  %v1783_v37 = vld [vmem:[%s1839_s24 + $0xf0] sm:$0xff]  }
  0x1a   : > { %v1784_v38 = vld [vmem:[%s1839_s24 + $0x78] sm:$0xff]  }
  0x1b   : > { %1653 = vmatpush3.bf16.msra.mxu0 %v1751_v7  ;;  %1735 = vmatpush3.bf16.msra.mxu1 %v1751_v7  ;;  %v1785_v39 = vld [vmem:[%s1839_s24 + $0xf8] sm:$0xff]  }
  0x1c   : > { %1654 = vmatprep.subr.bf16.mxu0 %v1752_v8  ;;  %1728 = vmatprep.subr.bf16.mxu1 %v1752_v8 }
  0x1f   : > { %1655 = vmatpush3.bf16.msra.mxu0 %v1752_v8  ;;  %1736 = vmatpush3.bf16.msra.mxu1 %v1752_v8 }
  0x20   : > { %1656 = vmatprep.subr.bf16.mxu0 %v1753_v9  ;;  %1729 = vmatprep.subr.bf16.mxu1 %v1753_v9 }
  0x23   : > { %1657 = vmatpush3.bf16.msra.mxu0 %v1753_v9  ;;  %1737 = vmatpush3.bf16.msra.mxu1 %v1753_v9 }
  0x26   : > { %1659 = vmatmul.mubr.bf16.vlgmr.msra.gmra.mrb[0].mxu0 %v1756_v10  ;;  %1691 = vmatmul.mubr.bf16.vlgmr.msra.gmra.mrb[0].mxu1 %v1757_v11 }
  0x27   : > { %1662 = vmatprep.mubr.bf16.mxu0 %v1758_v12  ;;  %1694 = vmatprep.mubr.bf16.mxu1 %v1759_v13 }
  0x2e   : > { %1663 = vmatmul.mubr.bf16.gmra.mrb[4].mxu0 %v1760_v14  ;;  %1695 = vmatmul.mubr.bf16.gmra.mrb[4].mxu1 %v1761_v15 }
  0x2f   : > { %1666 = vmatprep.mubr.bf16.mxu0 %v1762_v16  ;;  %1698 = vmatprep.mubr.bf16.mxu1 %v1763_v17 }
  0x36   : > { %1667 = vmatmul.mubr.bf16.gmra.mrb[8].mxu0 %v1764_v18  ;;  %1699 = vmatmul.mubr.bf16.gmra.mrb[8].mxu1 %v1765_v19 }
  0x37   : > { %1670 = vmatprep.mubr.bf16.mxu0 %v1766_v20  ;;  %1702 = vmatprep.mubr.bf16.mxu1 %v1767_v21 }
  0x3e   : > { %1671 = vmatmul.mubr.bf16.gmra.mrb[12].mxu0 %v1768_v22  ;;  %1703 = vmatmul.mubr.bf16.gmra.mrb[12].mxu1 %v1769_v23 }
  0x3f   : > { %1674 = vmatprep.mubr.bf16.mxu0 %v1770_v24  ;;  %1706 = vmatprep.mubr.bf16.mxu1 %v1771_v25 }
  0x46   : > { %1675 = vmatmul.mubr.bf16.gmra.mrb[16].mxu0 %v1772_v26  ;;  %1707 = vmatmul.mubr.bf16.gmra.mrb[16].mxu1 %v1773_v27 }
  0x47   : > { %1678 = vmatprep.mubr.bf16.mxu0 %v1774_v28  ;;  %1710 = vmatprep.mubr.bf16.mxu1 %v1775_v29 }
  0x4e   : > { %1679 = vmatmul.mubr.bf16.gmra.mrb[20].mxu0 %v1776_v30  ;;  %1711 = vmatmul.mubr.bf16.gmra.mrb[20].mxu1 %v1777_v31 }
  0x4f   : > { %1682 = vmatprep.mubr.bf16.mxu0 %v1778_v32  ;;  %1714 = vmatprep.mubr.bf16.mxu1 %v1779_v33 }
  0x56   : > { %1683 = vmatmul.mubr.bf16.gmra.mrb[24].mxu0 %v1780_v34  ;;  %1715 = vmatmul.mubr.bf16.gmra.mrb[24].mxu1 %v1781_v35 }
  0x57   : > { %1686 = vmatprep.mubr.bf16.mxu0 %v1782_v36  ;;  %1718 = vmatprep.mubr.bf16.mxu1 %v1783_v37 }
  0x5e   : > { %1687 = vmatmul.mubr.bf16.gmra.mrb[28].mxu0 %v1784_v38  ;;  %1719 = vmatmul.mubr.bf16.gmra.mrb[28].mxu1 %v1785_v39 }
  0xf9   : > { %v1660_v41 = vpop.f32.mrb[0].mxu0  ;;  %v1692_v42 = vpop.f32.mrb[0].mxu1 }
  0xfa   : > { %v545_v43 = vadd.f32 %v1660_v41, %v1891_v40  ;;  %v673_v44 = vadd.f32 %v1692_v42, %v1891_v40  ;;  %v536_v45 = vpop.f32.mrb[1].mxu0  ;;  %v664_v46 = vpop.f32.mrb[1].mxu1 }
  0xfb   : > { %v537_v47 = vadd.f32 %v1891_v40, %v536_v45  ;;  %v665_v48 = vadd.f32 %v1891_v40, %v664_v46  ;;  %v1661_v49 = vpop.f32.mrb[2].mxu0  ;;  %v1693_v50 = vpop.f32.mrb[2].mxu1 }
  0xfc   : > { %v548_v51 = vadd.f32 %v1661_v49, %v1891_v40  ;;  %v676_v52 = vadd.f32 %v1693_v50, %v1891_v40  ;;  %v539_v53 = vpop.f32.mrb[3].mxu0  ;;  %v667_v54 = vpop.f32.mrb[3].mxu1  ;;  %v793_v57 = vmax.f32 %v545_v43, 0.0  ;;  %v825_v58 = vmax.f32 %v673_v44, 0.0 }
  0xfd   : > { %v540_v55 = vadd.f32 %v1891_v40, %v539_v53  ;;  %v668_v56 = vadd.f32 %v1891_v40, %v667_v54  ;;  %v791_v61 = vmax.f32 %v537_v47, 0.0  ;;  %v823_v62 = vmax.f32 %v665_v48, 0.0 }
  0xfe   : > { %v794_v59 = vmax.f32 %v548_v51, 0.0  ;;  %v826_v60 = vmax.f32 %v676_v52, 0.0 }
  0xff   : > { %v792_v63 = vmax.f32 %v540_v55, 0.0  ;;  %v824_v0 = vmax.f32 %v668_v56, 0.0 }
 0x100   : > { %v1419_v1 = vpack.c.bf16 %v794_v59, %v793_v57  ;;  %v1499_v2 = vpack.c.bf16 %v826_v60, %v825_v58 }
 0x101   : > { %v1414_v3 = vpack.c.bf16 %v792_v63, %v791_v61  ;;  %v1494_v4 = vpack.c.bf16 %v824_v0, %v823_v62  ;;  %v1664_v5 = vpop.f32.mrb[4].mxu0  ;;  %v1696_v6 = vpop.f32.mrb[4].mxu1 }
 0x102   : > { %1571 = vst [vmem:[%s1906_s13 + $0x8] sm:$0xff] %v1419_v1   ;;  %1587 = vst [vmem:[%s1906_s13 + $0x88] sm:$0xff] %v1499_v2   ;;  %v561_v7 = vadd.f32 %v1664_v5, %v1891_v40  ;;  %v689_v8 = vadd.f32 %v1696_v6, %v1891_v40  ;;  %v552_v9 = vpop.f32.mrb[5].mxu0  ;;  %v680_v10 = vpop.f32.mrb[5].mxu1 }
 0x103   : > { %1415 = vst [vmem:[%s1906_s13] sm:$0xff] %v1414_v3   ;;  %1586 = vst [vmem:[%s1906_s13 + $0x80] sm:$0xff] %v1494_v4   ;;  %v553_v11 = vadd.f32 %v1891_v40, %v552_v9  ;;  %v681_v12 = vadd.f32 %v1891_v40, %v680_v10  ;;  %v1665_v13 = vpop.f32.mrb[6].mxu0  ;;  %v1697_v14 = vpop.f32.mrb[6].mxu1 }
 0x104   : > { %v564_v15 = vadd.f32 %v1665_v13, %v1891_v40  ;;  %v692_v16 = vadd.f32 %v1697_v14, %v1891_v40  ;;  %v555_v17 = vpop.f32.mrb[7].mxu0  ;;  %v683_v18 = vpop.f32.mrb[7].mxu1  ;;  %v797_v21 = vmax.f32 %v561_v7, 0.0  ;;  %v829_v22 = vmax.f32 %v689_v8, 0.0 }
 0x105   : > { %v556_v19 = vadd.f32 %v1891_v40, %v555_v17  ;;  %v684_v20 = vadd.f32 %v1891_v40, %v683_v18  ;;  %v795_v25 = vmax.f32 %v553_v11, 0.0  ;;  %v827_v26 = vmax.f32 %v681_v12, 0.0 }
 0x106   : > { %v798_v23 = vmax.f32 %v564_v15, 0.0  ;;  %v830_v24 = vmax.f32 %v692_v16, 0.0 }
 0x107   : > { %v796_v27 = vmax.f32 %v556_v19, 0.0  ;;  %v828_v28 = vmax.f32 %v684_v20, 0.0 }
 0x108   : > { %v1429_v29 = vpack.c.bf16 %v798_v23, %v797_v21  ;;  %v1509_v30 = vpack.c.bf16 %v830_v24, %v829_v22 }
 0x109   : > { %v1424_v31 = vpack.c.bf16 %v796_v27, %v795_v25  ;;  %v1504_v32 = vpack.c.bf16 %v828_v28, %v827_v26  ;;  %v1668_v33 = vpop.f32.mrb[8].mxu0  ;;  %v1700_v34 = vpop.f32.mrb[8].mxu1 }
 0x10a   : > { %1573 = vst [vmem:[%s1906_s13 + $0x18] sm:$0xff] %v1429_v29   ;;  %1589 = vst [vmem:[%s1906_s13 + $0x98] sm:$0xff] %v1509_v30   ;;  %v577_v35 = vadd.f32 %v1668_v33, %v1891_v40  ;;  %v705_v36 = vadd.f32 %v1700_v34, %v1891_v40  ;;  %v568_v37 = vpop.f32.mrb[9].mxu0  ;;  %v696_v38 = vpop.f32.mrb[9].mxu1 }
 0x10b   : > { %1572 = vst [vmem:[%s1906_s13 + $0x10] sm:$0xff] %v1424_v31   ;;  %1588 = vst [vmem:[%s1906_s13 + $0x90] sm:$0xff] %v1504_v32   ;;  %v569_v39 = vadd.f32 %v1891_v40, %v568_v37  ;;  %v697_v41 = vadd.f32 %v1891_v40, %v696_v38  ;;  %v1669_v42 = vpop.f32.mrb[10].mxu0  ;;  %v1701_v43 = vpop.f32.mrb[10].mxu1 }
 0x10c   : > { %v580_v44 = vadd.f32 %v1669_v42, %v1891_v40  ;;  %v708_v45 = vadd.f32 %v1701_v43, %v1891_v40  ;;  %v571_v46 = vpop.f32.mrb[11].mxu0  ;;  %v699_v47 = vpop.f32.mrb[11].mxu1  ;;  %v801_v50 = vmax.f32 %v577_v35, 0.0  ;;  %v833_v51 = vmax.f32 %v705_v36, 0.0 }
 0x10d   : > { %v572_v48 = vadd.f32 %v1891_v40, %v571_v46  ;;  %v700_v49 = vadd.f32 %v1891_v40, %v699_v47  ;;  %v799_v54 = vmax.f32 %v569_v39, 0.0  ;;  %v831_v55 = vmax.f32 %v697_v41, 0.0 }
 0x10e   : > { %v802_v52 = vmax.f32 %v580_v44, 0.0  ;;  %v834_v53 = vmax.f32 %v708_v45, 0.0 }
 0x10f   : > { %v800_v56 = vmax.f32 %v572_v48, 0.0  ;;  %v832_v57 = vmax.f32 %v700_v49, 0.0 }
 0x110   : > { %v1439_v58 = vpack.c.bf16 %v802_v52, %v801_v50  ;;  %v1519_v59 = vpack.c.bf16 %v834_v53, %v833_v51 }
 0x111   : > { %v1434_v60 = vpack.c.bf16 %v800_v56, %v799_v54  ;;  %v1514_v61 = vpack.c.bf16 %v832_v57, %v831_v55  ;;  %v1672_v62 = vpop.f32.mrb[12].mxu0  ;;  %v1704_v63 = vpop.f32.mrb[12].mxu1 }
 0x112   : > { %1575 = vst [vmem:[%s1906_s13 + $0x28] sm:$0xff] %v1439_v58   ;;  %1591 = vst [vmem:[%s1906_s13 + $0xa8] sm:$0xff] %v1519_v59   ;;  %v593_v0 = vadd.f32 %v1672_v62, %v1891_v40  ;;  %v721_v1 = vadd.f32 %v1704_v63, %v1891_v40  ;;  %v584_v2 = vpop.f32.mrb[13].mxu0  ;;  %v712_v3 = vpop.f32.mrb[13].mxu1 }
 0x113   : > { %1574 = vst [vmem:[%s1906_s13 + $0x20] sm:$0xff] %v1434_v60   ;;  %1590 = vst [vmem:[%s1906_s13 + $0xa0] sm:$0xff] %v1514_v61   ;;  %v585_v4 = vadd.f32 %v1891_v40, %v584_v2  ;;  %v713_v5 = vadd.f32 %v1891_v40, %v712_v3  ;;  %v1673_v6 = vpop.f32.mrb[14].mxu0  ;;  %v1705_v7 = vpop.f32.mrb[14].mxu1 }
 0x114   : > { %v596_v8 = vadd.f32 %v1673_v6, %v1891_v40  ;;  %v724_v9 = vadd.f32 %v1705_v7, %v1891_v40  ;;  %v587_v10 = vpop.f32.mrb[15].mxu0  ;;  %v715_v11 = vpop.f32.mrb[15].mxu1  ;;  %v805_v14 = vmax.f32 %v593_v0, 0.0  ;;  %v837_v15 = vmax.f32 %v721_v1, 0.0 }
 0x115   : > { %v588_v12 = vadd.f32 %v1891_v40, %v587_v10  ;;  %v716_v13 = vadd.f32 %v1891_v40, %v715_v11  ;;  %v803_v18 = vmax.f32 %v585_v4, 0.0  ;;  %v835_v19 = vmax.f32 %v713_v5, 0.0 }
 0x116   : > { %v806_v16 = vmax.f32 %v596_v8, 0.0  ;;  %v838_v17 = vmax.f32 %v724_v9, 0.0 }
 0x117   : > { %v804_v20 = vmax.f32 %v588_v12, 0.0  ;;  %v836_v21 = vmax.f32 %v716_v13, 0.0 }
 0x118   : > { %v1449_v22 = vpack.c.bf16 %v806_v16, %v805_v14  ;;  %v1529_v23 = vpack.c.bf16 %v838_v17, %v837_v15 }
 0x119   : > { %v1444_v24 = vpack.c.bf16 %v804_v20, %v803_v18  ;;  %v1524_v25 = vpack.c.bf16 %v836_v21, %v835_v19  ;;  %v1676_v26 = vpop.f32.mrb[16].mxu0  ;;  %v1708_v27 = vpop.f32.mrb[16].mxu1 }
 0x11a   : > { %1577 = vst [vmem:[%s1906_s13 + $0x38] sm:$0xff] %v1449_v22   ;;  %1593 = vst [vmem:[%s1906_s13 + $0xb8] sm:$0xff] %v1529_v23   ;;  %v609_v28 = vadd.f32 %v1676_v26, %v1891_v40  ;;  %v737_v29 = vadd.f32 %v1708_v27, %v1891_v40  ;;  %v600_v30 = vpop.f32.mrb[17].mxu0  ;;  %v728_v31 = vpop.f32.mrb[17].mxu1 }
 0x11b   : > { %1576 = vst [vmem:[%s1906_s13 + $0x30] sm:$0xff] %v1444_v24   ;;  %1592 = vst [vmem:[%s1906_s13 + $0xb0] sm:$0xff] %v1524_v25   ;;  %v601_v32 = vadd.f32 %v1891_v40, %v600_v30  ;;  %v729_v33 = vadd.f32 %v1891_v40, %v728_v31  ;;  %v1677_v34 = vpop.f32.mrb[18].mxu0  ;;  %v1709_v35 = vpop.f32.mrb[18].mxu1 }
 0x11c   : > { %v612_v36 = vadd.f32 %v1677_v34, %v1891_v40  ;;  %v740_v37 = vadd.f32 %v1709_v35, %v1891_v40  ;;  %v603_v38 = vpop.f32.mrb[19].mxu0  ;;  %v731_v39 = vpop.f32.mrb[19].mxu1  ;;  %v809_v43 = vmax.f32 %v609_v28, 0.0  ;;  %v841_v44 = vmax.f32 %v737_v29, 0.0 }
 0x11d   : > { %v604_v41 = vadd.f32 %v1891_v40, %v603_v38  ;;  %v732_v42 = vadd.f32 %v1891_v40, %v731_v39  ;;  %v807_v47 = vmax.f32 %v601_v32, 0.0  ;;  %v839_v48 = vmax.f32 %v729_v33, 0.0 }
 0x11e   : > { %v810_v45 = vmax.f32 %v612_v36, 0.0  ;;  %v842_v46 = vmax.f32 %v740_v37, 0.0 }
 0x11f   : > { %v808_v49 = vmax.f32 %v604_v41, 0.0  ;;  %v840_v50 = vmax.f32 %v732_v42, 0.0 }
 0x120   : > { %v1459_v51 = vpack.c.bf16 %v810_v45, %v809_v43  ;;  %v1539_v52 = vpack.c.bf16 %v842_v46, %v841_v44 }
 0x121   : > { %v1454_v53 = vpack.c.bf16 %v808_v49, %v807_v47  ;;  %v1534_v54 = vpack.c.bf16 %v840_v50, %v839_v48  ;;  %v1680_v55 = vpop.f32.mrb[20].mxu0  ;;  %v1712_v56 = vpop.f32.mrb[20].mxu1 }
 0x122   : > { %1579 = vst [vmem:[%s1906_s13 + $0x48] sm:$0xff] %v1459_v51   ;;  %1595 = vst [vmem:[%s1906_s13 + $0xc8] sm:$0xff] %v1539_v52   ;;  %v625_v57 = vadd.f32 %v1680_v55, %v1891_v40  ;;  %v753_v58 = vadd.f32 %v1712_v56, %v1891_v40  ;;  %v616_v59 = vpop.f32.mrb[21].mxu0  ;;  %v744_v60 = vpop.f32.mrb[21].mxu1 }
 0x123   : > { %1578 = vst [vmem:[%s1906_s13 + $0x40] sm:$0xff] %v1454_v53   ;;  %1594 = vst [vmem:[%s1906_s13 + $0xc0] sm:$0xff] %v1534_v54   ;;  %v617_v61 = vadd.f32 %v1891_v40, %v616_v59  ;;  %v745_v62 = vadd.f32 %v1891_v40, %v744_v60  ;;  %v1681_v63 = vpop.f32.mrb[22].mxu0  ;;  %v1713_v0 = vpop.f32.mrb[22].mxu1 }
 0x124   : > { %v628_v1 = vadd.f32 %v1681_v63, %v1891_v40  ;;  %v756_v2 = vadd.f32 %v1713_v0, %v1891_v40  ;;  %v619_v3 = vpop.f32.mrb[23].mxu0  ;;  %v747_v4 = vpop.f32.mrb[23].mxu1  ;;  %v813_v7 = vmax.f32 %v625_v57, 0.0  ;;  %v845_v8 = vmax.f32 %v753_v58, 0.0 }
 0x125   : > { %v620_v5 = vadd.f32 %v1891_v40, %v619_v3  ;;  %v748_v6 = vadd.f32 %v1891_v40, %v747_v4  ;;  %v811_v11 = vmax.f32 %v617_v61, 0.0  ;;  %v843_v12 = vmax.f32 %v745_v62, 0.0 }
 0x126   : > { %v814_v9 = vmax.f32 %v628_v1, 0.0  ;;  %v846_v10 = vmax.f32 %v756_v2, 0.0 }
 0x127   : > { %v812_v13 = vmax.f32 %v620_v5, 0.0  ;;  %v844_v14 = vmax.f32 %v748_v6, 0.0 }
 0x128   : > { %v1469_v15 = vpack.c.bf16 %v814_v9, %v813_v7  ;;  %v1549_v16 = vpack.c.bf16 %v846_v10, %v845_v8 }
 0x129   : > { %v1464_v17 = vpack.c.bf16 %v812_v13, %v811_v11  ;;  %v1544_v18 = vpack.c.bf16 %v844_v14, %v843_v12  ;;  %v1684_v19 = vpop.f32.mrb[24].mxu0  ;;  %v1716_v20 = vpop.f32.mrb[24].mxu1 }
 0x12a   : > { %1581 = vst [vmem:[%s1906_s13 + $0x58] sm:$0xff] %v1469_v15   ;;  %1597 = vst [vmem:[%s1906_s13 + $0xd8] sm:$0xff] %v1549_v16   ;;  %v641_v21 = vadd.f32 %v1684_v19, %v1891_v40  ;;  %v769_v22 = vadd.f32 %v1716_v20, %v1891_v40  ;;  %v632_v23 = vpop.f32.mrb[25].mxu0  ;;  %v760_v24 = vpop.f32.mrb[25].mxu1 }
 0x12b   : > { %1580 = vst [vmem:[%s1906_s13 + $0x50] sm:$0xff] %v1464_v17   ;;  %1596 = vst [vmem:[%s1906_s13 + $0xd0] sm:$0xff] %v1544_v18   ;;  %v633_v25 = vadd.f32 %v1891_v40, %v632_v23  ;;  %v761_v26 = vadd.f32 %v1891_v40, %v760_v24  ;;  %v1685_v27 = vpop.f32.mrb[26].mxu0  ;;  %v1717_v28 = vpop.f32.mrb[26].mxu1 }
 0x12c   : > { %v644_v29 = vadd.f32 %v1685_v27, %v1891_v40  ;;  %v772_v30 = vadd.f32 %v1717_v28, %v1891_v40  ;;  %v635_v31 = vpop.f32.mrb[27].mxu0  ;;  %v763_v32 = vpop.f32.mrb[27].mxu1  ;;  %v817_v35 = vmax.f32 %v641_v21, 0.0  ;;  %v849_v36 = vmax.f32 %v769_v22, 0.0 }
 0x12d   : > { %v636_v33 = vadd.f32 %v1891_v40, %v635_v31  ;;  %v764_v34 = vadd.f32 %v1891_v40, %v763_v32  ;;  %v815_v39 = vmax.f32 %v633_v25, 0.0  ;;  %v847_v41 = vmax.f32 %v761_v26, 0.0 }
 0x12e   : > { %v818_v37 = vmax.f32 %v644_v29, 0.0  ;;  %v850_v38 = vmax.f32 %v772_v30, 0.0 }
 0x12f   : > { %v816_v42 = vmax.f32 %v636_v33, 0.0  ;;  %v848_v43 = vmax.f32 %v764_v34, 0.0 }
 0x130   : > { %v1479_v44 = vpack.c.bf16 %v818_v37, %v817_v35  ;;  %v1559_v45 = vpack.c.bf16 %v850_v38, %v849_v36 }
 0x131   : > { %v1474_v46 = vpack.c.bf16 %v816_v42, %v815_v39  ;;  %v1554_v47 = vpack.c.bf16 %v848_v43, %v847_v41  ;;  %v1688_v48 = vpop.f32.mrb[28].mxu0  ;;  %v1720_v49 = vpop.f32.mrb[28].mxu1 }
 0x132   : > { %1583 = vst [vmem:[%s1906_s13 + $0x68] sm:$0xff] %v1479_v44   ;;  %1599 = vst [vmem:[%s1906_s13 + $0xe8] sm:$0xff] %v1559_v45   ;;  %v657_v50 = vadd.f32 %v1688_v48, %v1891_v40  ;;  %v785_v51 = vadd.f32 %v1720_v49, %v1891_v40  ;;  %v648_v52 = vpop.f32.mrb[29].mxu0  ;;  %v776_v53 = vpop.f32.mrb[29].mxu1 }
 0x133   : > { %1582 = vst [vmem:[%s1906_s13 + $0x60] sm:$0xff] %v1474_v46   ;;  %1598 = vst [vmem:[%s1906_s13 + $0xe0] sm:$0xff] %v1554_v47   ;;  %v649_v54 = vadd.f32 %v1891_v40, %v648_v52  ;;  %v777_v55 = vadd.f32 %v1891_v40, %v776_v53  ;;  %v1689_v56 = vpop.f32.mrb[30].mxu0  ;;  %v1721_v57 = vpop.f32.mrb[30].mxu1 }
 0x134   : > { %v660_v58 = vadd.f32 %v1689_v56, %v1891_v40  ;;  %v788_v59 = vadd.f32 %v1721_v57, %v1891_v40  ;;  %v651_v60 = vpop.f32.mrb[31].mxu0  ;;  %v779_v61 = vpop.f32.mrb[31].mxu1  ;;  %v821_v0 = vmax.f32 %v657_v50, 0.0  ;;  %v853_v1 = vmax.f32 %v785_v51, 0.0 }
 0x135   : > { %v652_v62 = vadd.f32 %v1891_v40, %v651_v60  ;;  %v780_v63 = vadd.f32 %v1891_v40, %v779_v61  ;;  %v819_v4 = vmax.f32 %v649_v54, 0.0  ;;  %v851_v5 = vmax.f32 %v777_v55, 0.0 }
 0x136   : > { %v822_v2 = vmax.f32 %v660_v58, 0.0  ;;  %v854_v3 = vmax.f32 %v788_v59, 0.0 }
 0x137   : > { %v820_v6 = vmax.f32 %v652_v62, 0.0  ;;  %v852_v7 = vmax.f32 %v780_v63, 0.0 }
 0x138   : > { %v1489_v8 = vpack.c.bf16 %v822_v2, %v821_v0  ;;  %v1569_v9 = vpack.c.bf16 %v854_v3, %v853_v1 }
 0x139   : > { %v1484_v10 = vpack.c.bf16 %v820_v6, %v819_v4  ;;  %v1564_v11 = vpack.c.bf16 %v852_v7, %v851_v5 }
 0x13a   : > { %1585 = vst [vmem:[%s1906_s13 + $0x78] sm:$0xff] %v1489_v8   ;;  %1601 = vst [vmem:[%s1906_s13 + $0xf8] sm:$0xff] %v1569_v9  }
 0x13b   : > { %1584 = vst [vmem:[%s1906_s13 + $0x70] sm:$0xff] %v1484_v10   ;;  %1600 = vst [vmem:[%s1906_s13 + $0xf0] sm:$0xff] %v1564_v11  }
 0x13c PF: > { %s13_s12 = sadd.s32 1, %s1792_s12  }
 0x13d   : > { %p10_p4 = scmp.ge.s32.totalorder %s13_s12, 6  }
 0x13f   :  { %12 = sbr.rel (!%p10_p4) target bundleno = 1 (0x1), region = 62 }

// kernel: retinanet_serve.16
= control target key start
LH: loop header
LB: loop body
LE: loop exit
PB: predicated region body
PF: predicated region fallthrough
CT: control target
= control target key end

     0   :  { %s1363_s12 = smov 0   ;;  %s1521_s0 = inlined_call_operand.vmem [shape: bf16[512,256], index: 0, kind: input, shape index: {}]   ;;  %s1522_s1 = inlined_call_operand.vmem [shape: bf16[256,128], index: 1, kind: input, shape index: {}]   ;;  %s1523_s2 = inlined_call_operand.vmem [shape: f32[1,128], index: 2, kind: input, shape index: {}]   ;;  %s1524_s3 = inlined_call_operand.vmem [shape: bf16[512,128], index: 3, kind: output, shape index: {}]  }
   0x1 LB: > { %s914_s13 = sadd.s32 4294967295, %s1341_s12   ;;  %p918_p0 = scmp.ge.s32.totalorder %s1341_s12, 1  ;;  %s1341_s12 = sphi %s1363_s12, %s13_s12  }
   0x2   : > { %p139_p1 = scmp.lt.s32.totalorder %s1341_s12, 3 }
   0x4   : > { %p140_p2 = pnand %p918_p0, %p139_p1 }
   0x5   : > { %v1271_v0 = vld [vmem:[%s1522_s1 + $0x40] sm:$0xff] (!%p140_p2)   ;;  %s919_s16 = sshll.u32 (!%p140_p2), %s914_s13, 5  ;;  %v1273_v2 = vld [vmem:[%s1522_s1 + $0x48] sm:$0xff] (!%p140_p2)   ;;  %v1275_v4 = vld [vmem:[%s1522_s1 + $0x50] sm:$0xff] (!%p140_p2)  }
   0x6   : > { %143 = sbr.rel (%p140_p2) target bundleno = 319 (0x13f), region = 32  ;;  %v1272_v1 = vld [vmem:[%s1522_s1] sm:$0xff] (!%p140_p2)   ;;  %1135 = vmatprep.subr.bf16.mxu0 (!%p140_p2), %v1271_v0  ;;  %1247 = vmatprep.subr.bf16.mxu1 (!%p140_p2), %v1271_v0  ;;  %v1274_v3 = vld [vmem:[%s1522_s1 + $0x8] sm:$0xff] (!%p140_p2)   ;;  %p165_p3 = scmp.lt.s32.totalorder (!%p140_p2), %s919_s16, 63  ;;  %v1276_v5 = vld [vmem:[%s1522_s1 + $0x10] sm:$0xff] (!%p140_p2)  }
   0x7   : > { %1136 = vmatpush3.bf16.msra.mxu0 (!%p140_p2), %v1272_v1  ;;  %1255 = vmatpush3.bf16.msra.mxu1 (!%p140_p2), %v1272_v1  ;;  %v1277_v6 = vld [vmem:[%s1522_s1 + $0x58] sm:$0xff] (!%p140_p2)   ;;  %v1279_v8 = vld [vmem:[%s1522_s1 + $0x60] sm:$0xff] (!%p140_p2)   ;;  %v1281_v10 = vld [vmem:[%s1522_s1 + $0x68] sm:$0xff] (!%p140_p2)  }
   0x8   : > { %1137 = vmatprep.subr.bf16.mxu0 (!%p140_p2), %v1273_v2  ;;  %1248 = vmatprep.subr.bf16.mxu1 (!%p140_p2), %v1273_v2  ;;  %v1278_v7 = vld [vmem:[%s1522_s1 + $0x18] sm:$0xff] (!%p140_p2)   ;;  %v1280_v9 = vld [vmem:[%s1522_s1 + $0x20] sm:$0xff] (!%p140_p2)   ;;  %v1282_v13 = vld [vmem:[%s1522_s1 + $0x28] sm:$0xff] (!%p140_p2)  }
   0x9   : > { %v1283_v14 = vld [vmem:[%s1522_s1 + $0x70] sm:$0xff] (!%p140_p2)   ;;  %v1285_v16 = vld [vmem:[%s1522_s1 + $0x78] sm:$0xff] (!%p140_p2)   ;;  %v1462_v50 = vld [vmem:[%s1523_s2] ss:$0 sm:$0xff] (!%p140_p2) }
   0xa   : > { %v1284_v15 = vld [vmem:[%s1522_s1 + $0x30] sm:$0xff] (!%p140_p2)   ;;  %v1286_v17 = vld [vmem:[%s1522_s1 + $0x38] sm:$0xff] (!%p140_p2)  }
   0xb   : > { %1138 = vmatpush3.bf16.msra.mxu0 (!%p140_p2), %v1274_v3  ;;  %1256 = vmatpush3.bf16.msra.mxu1 (!%p140_p2), %v1274_v3 }
   0xc   : > { %1139 = vmatprep.subr.bf16.mxu0 (!%p140_p2), %v1275_v4  ;;  %1249 = vmatprep.subr.bf16.mxu1 (!%p140_p2), %v1275_v4 }
   0xd   : > { %s1526_s16 = smov (!%p165_p3, %s919_s16), 63 }
   0xe   : > { %s1007_s4 = sshll.u32 %s1526_s16, 3  ;;  %s923_s28 = sshll.u32 %s1526_s16, 2 }
   0xf   : > { %1140 = vmatpush3.bf16.msra.mxu0 %v1276_v5  ;;  %1257 = vmatpush3.bf16.msra.mxu1 %v1276_v5  ;;  %s1404_s9 = scalar_lea.vmem %s1521_s0, %s1007_s4  ;;  %s1472_s4 = scalar_lea.vmem %s1524_s3, %s923_s28 }
  0x10   : > { %1141 = vmatprep.subr.bf16.mxu0 %v1277_v6  ;;  %1250 = vmatprep.subr.bf16.mxu1 %v1277_v6  ;;  %v1289_v11 = vld [vmem:[%s1404_s9 + $0x4] ss:$8 sps:$4 sm:$0xff]   ;;  %v1287_v18 = vld [vmem:[%s1404_s9] ss:$8 sps:$4 sm:$0xff]   ;;  %v1293_v20 = vld [vmem:[%s1404_s9 + $0x14] ss:$8 sps:$4 sm:$0xff]  }
  0x11   : > { %v1292_v12 = vld [vmem:[%s1404_s9 + $0x84] ss:$8 sps:$4 sm:$0xff]   ;;  %537 = vmatprep.mubr.bf16.mxu0 %v1289_v11  ;;  %v1290_v19 = vld [vmem:[%s1404_s9 + $0x80] ss:$8 sps:$4 sm:$0xff]   ;;  %v1295_v21 = vld [vmem:[%s1404_s9 + $0x94] ss:$8 sps:$4 sm:$0xff]  }
  0x12   : > { %601 = vmatprep.mubr.bf16.mxu1 %v1292_v12  ;;  %v1297_v22 = vld [vmem:[%s1404_s9 + $0x10] ss:$8 sps:$4 sm:$0xff]   ;;  %v1299_v24 = vld [vmem:[%s1404_s9 + $0x24] ss:$8 sps:$4 sm:$0xff]   ;;  %v1303_v26 = vld [vmem:[%s1404_s9 + $0x20] ss:$8 sps:$4 sm:$0xff]  }
  0x13   : > { %1142 = vmatpush3.bf16.msra.mxu0 %v1278_v7  ;;  %1258 = vmatpush3.bf16.msra.mxu1 %v1278_v7  ;;  %v1298_v23 = vld [vmem:[%s1404_s9 + $0x90] ss:$8 sps:$4 sm:$0xff]   ;;  %v1301_v25 = vld [vmem:[%s1404_s9 + $0xa4] ss:$8 sps:$4 sm:$0xff]   ;;  %v1304_v27 = vld [vmem:[%s1404_s9 + $0xa0] ss:$8 sps:$4 sm:$0xff]  }
  0x14   : > { %1143 = vmatprep.subr.bf16.mxu0 %v1279_v8  ;;  %1251 = vmatprep.subr.bf16.mxu1 %v1279_v8  ;;  %v1305_v28 = vld [vmem:[%s1404_s9 + $0x34] ss:$8 sps:$4 sm:$0xff]   ;;  %v1309_v30 = vld [vmem:[%s1404_s9 + $0x30] ss:$8 sps:$4 sm:$0xff]   ;;  %v1311_v32 = vld [vmem:[%s1404_s9 + $0x44] ss:$8 sps:$4 sm:$0xff]  }
  0x15   : > { %v1307_v29 = vld [vmem:[%s1404_s9 + $0xb4] ss:$8 sps:$4 sm:$0xff]   ;;  %v1310_v31 = vld [vmem:[%s1404_s9 + $0xb0] ss:$8 sps:$4 sm:$0xff]   ;;  %v1313_v33 = vld [vmem:[%s1404_s9 + $0xc4] ss:$8 sps:$4 sm:$0xff]  }
  0x16   : > { %v1315_v34 = vld [vmem:[%s1404_s9 + $0x40] ss:$8 sps:$4 sm:$0xff]   ;;  %v1317_v36 = vld [vmem:[%s1404_s9 + $0x54] ss:$8 sps:$4 sm:$0xff]   ;;  %v1321_v38 = vld [vmem:[%s1404_s9 + $0x50] ss:$8 sps:$4 sm:$0xff]  }
  0x17   : > { %1144 = vmatpush3.bf16.msra.mxu0 %v1280_v9  ;;  %1259 = vmatpush3.bf16.msra.mxu1 %v1280_v9  ;;  %v1316_v35 = vld [vmem:[%s1404_s9 + $0xc0] ss:$8 sps:$4 sm:$0xff]   ;;  %v1319_v37 = vld [vmem:[%s1404_s9 + $0xd4] ss:$8 sps:$4 sm:$0xff]   ;;  %v1322_v39 = vld [vmem:[%s1404_s9 + $0xd0] ss:$8 sps:$4 sm:$0xff]  }
  0x18   : > { %1145 = vmatprep.subr.bf16.mxu0 %v1281_v10  ;;  %1252 = vmatprep.subr.bf16.mxu1 %v1281_v10  ;;  %v1323_v40 = vld [vmem:[%s1404_s9 + $0x64] ss:$8 sps:$4 sm:$0xff]   ;;  %v1327_v42 = vld [vmem:[%s1404_s9 + $0x60] ss:$8 sps:$4 sm:$0xff]   ;;  %v1329_v44 = vld [vmem:[%s1404_s9 + $0x74] ss:$8 sps:$4 sm:$0xff]  }
  0x19   : > { %v1325_v41 = vld [vmem:[%s1404_s9 + $0xe4] ss:$8 sps:$4 sm:$0xff]   ;;  %v1328_v43 = vld [vmem:[%s1404_s9 + $0xe0] ss:$8 sps:$4 sm:$0xff]   ;;  %v1331_v45 = vld [vmem:[%s1404_s9 + $0xf4] ss:$8 sps:$4 sm:$0xff]  }
  0x1a   : > { %v1333_v46 = vld [vmem:[%s1404_s9 + $0x70] ss:$8 sps:$4 sm:$0xff]  }
  0x1b   : > { %1146 = vmatpush3.bf16.msra.mxu0 %v1282_v13  ;;  %1260 = vmatpush3.bf16.msra.mxu1 %v1282_v13  ;;  %v1334_v47 = vld [vmem:[%s1404_s9 + $0xf0] ss:$8 sps:$4 sm:$0xff]  }
  0x1c   : > { %1147 = vmatprep.subr.bf16.mxu0 %v1283_v14  ;;  %1253 = vmatprep.subr.bf16.mxu1 %v1283_v14 }
  0x1f   : > { %1148 = vmatpush3.bf16.msra.mxu0 %v1284_v15  ;;  %1261 = vmatpush3.bf16.msra.mxu1 %v1284_v15 }
  0x20   : > { %1149 = vmatprep.subr.bf16.mxu0 %v1285_v16  ;;  %1254 = vmatprep.subr.bf16.mxu1 %v1285_v16 }
  0x23   : > { %1150 = vmatpush3.bf16.msra.mxu0 %v1286_v17  ;;  %1262 = vmatpush3.bf16.msra.mxu1 %v1286_v17 }
  0x26   : > { %538 = vmatmul.mubr.bf16.vlgmr.msra.gmra.mrb[0].mxu0 %v1287_v18  ;;  %602 = vmatmul.mubr.bf16.vlgmr.msra.gmra.mrb[0].mxu1 %v1290_v19 }
  0x27   : > { %545 = vmatprep.mubr.bf16.mxu0 %v1293_v20  ;;  %609 = vmatprep.mubr.bf16.mxu1 %v1295_v21 }
  0x2e   : > { %546 = vmatmul.mubr.bf16.gmra.mrb[4].mxu0 %v1297_v22  ;;  %610 = vmatmul.mubr.bf16.gmra.mrb[4].mxu1 %v1298_v23 }
  0x2f   : > { %553 = vmatprep.mubr.bf16.mxu0 %v1299_v24  ;;  %617 = vmatprep.mubr.bf16.mxu1 %v1301_v25 }
  0x36   : > { %554 = vmatmul.mubr.bf16.gmra.mrb[8].mxu0 %v1303_v26  ;;  %618 = vmatmul.mubr.bf16.gmra.mrb[8].mxu1 %v1304_v27 }
  0x37   : > { %561 = vmatprep.mubr.bf16.mxu0 %v1305_v28  ;;  %625 = vmatprep.mubr.bf16.mxu1 %v1307_v29 }
  0x3e   : > { %562 = vmatmul.mubr.bf16.gmra.mrb[12].mxu0 %v1309_v30  ;;  %626 = vmatmul.mubr.bf16.gmra.mrb[12].mxu1 %v1310_v31 }
  0x3f   : > { %569 = vmatprep.mubr.bf16.mxu0 %v1311_v32  ;;  %633 = vmatprep.mubr.bf16.mxu1 %v1313_v33 }
  0x46   : > { %570 = vmatmul.mubr.bf16.gmra.mrb[16].mxu0 %v1315_v34  ;;  %634 = vmatmul.mubr.bf16.gmra.mrb[16].mxu1 %v1316_v35 }
  0x47   : > { %577 = vmatprep.mubr.bf16.mxu0 %v1317_v36  ;;  %641 = vmatprep.mubr.bf16.mxu1 %v1319_v37 }
  0x4e   : > { %578 = vmatmul.mubr.bf16.gmra.mrb[20].mxu0 %v1321_v38  ;;  %642 = vmatmul.mubr.bf16.gmra.mrb[20].mxu1 %v1322_v39 }
  0x4f   : > { %585 = vmatprep.mubr.bf16.mxu0 %v1323_v40  ;;  %649 = vmatprep.mubr.bf16.mxu1 %v1325_v41 }
  0x56   : > { %586 = vmatmul.mubr.bf16.gmra.mrb[24].mxu0 %v1327_v42  ;;  %650 = vmatmul.mubr.bf16.gmra.mrb[24].mxu1 %v1328_v43 }
  0x57   : > { %593 = vmatprep.mubr.bf16.mxu0 %v1329_v44  ;;  %657 = vmatprep.mubr.bf16.mxu1 %v1331_v45 }
  0x5e   : > { %594 = vmatmul.mubr.bf16.gmra.mrb[28].mxu0 %v1333_v46  ;;  %658 = vmatmul.mubr.bf16.gmra.mrb[28].mxu1 %v1334_v47 }
  0xf9   : > { %v1151_v48 = vpop.f32.mrb[0].mxu0  ;;  %v1199_v49 = vpop.f32.mrb[0].mxu1 }
  0xfa   : > { %v1152_v51 = vpop.f32.mrb[1].mxu0  ;;  %v1200_v52 = vpop.f32.mrb[1].mxu1 }
  0xfb   : > { %v1153_v53 = vadd.f32 %v1152_v51, %v1151_v48  ;;  %v1201_v54 = vadd.f32 %v1200_v52, %v1199_v49  ;;  %v1154_v55 = vpop.f32.mrb[2].mxu0  ;;  %v1202_v56 = vpop.f32.mrb[2].mxu1 }
  0xfc   : > { %v1155_v57 = vpop.f32.mrb[3].mxu0  ;;  %v1203_v58 = vpop.f32.mrb[3].mxu1 }
  0xfd   : > { %v540_v59 = vadd.f32 %v1153_v53, %v1462_v50  ;;  %v604_v60 = vadd.f32 %v1201_v54, %v1462_v50  ;;  %v1156_v61 = vadd.f32 %v1155_v57, %v1154_v55  ;;  %v1204_v62 = vadd.f32 %v1203_v58, %v1202_v56 }
  0xff   : > { %v543_v63 = vadd.f32 %v1156_v61, %v1462_v50  ;;  %v607_v0 = vadd.f32 %v1204_v62, %v1462_v50  ;;  %v666_v1 = vmax.f32 %v540_v59, 0.0  ;;  %v682_v2 = vmax.f32 %v604_v60, 0.0 }
 0x101   : > { %v667_v3 = vmax.f32 %v543_v63, 0.0  ;;  %v683_v4 = vmax.f32 %v607_v0, 0.0  ;;  %v1157_v5 = vpop.f32.mrb[4].mxu0  ;;  %v1205_v6 = vpop.f32.mrb[4].mxu1 }
 0x102   : > { %v1158_v7 = vpop.f32.mrb[5].mxu0  ;;  %v1206_v8 = vpop.f32.mrb[5].mxu1 }
 0x103   : > { %v1043_v9 = vpack.c.bf16 %v667_v3, %v666_v1  ;;  %v1083_v10 = vpack.c.bf16 %v683_v4, %v682_v2  ;;  %v1159_v11 = vadd.f32 %v1158_v7, %v1157_v5  ;;  %v1207_v12 = vadd.f32 %v1206_v8, %v1205_v6  ;;  %v1160_v13 = vpop.f32.mrb[6].mxu0  ;;  %v1208_v14 = vpop.f32.mrb[6].mxu1 }
 0x104   : > { %v1161_v15 = vpop.f32.mrb[7].mxu0  ;;  %v1209_v16 = vpop.f32.mrb[7].mxu1 }
 0x105   : > { %1044 = vst [vmem:[%s1472_s4] sm:$0xff] %v1043_v9   ;;  %1127 = vst [vmem:[%s1472_s4 + $0x40] sm:$0xff] %v1083_v10   ;;  %v548_v17 = vadd.f32 %v1159_v11, %v1462_v50  ;;  %v612_v18 = vadd.f32 %v1207_v12, %v1462_v50  ;;  %v1162_v19 = vadd.f32 %v1161_v15, %v1160_v13 }
 0x106   : > { %v1210_v20 = vadd.f32 %v1209_v16, %v1208_v14 }
 0x107   : > { %v551_v21 = vadd.f32 %v1162_v19, %v1462_v50  ;;  %v668_v23 = vmax.f32 %v548_v17, 0.0  ;;  %v684_v24 = vmax.f32 %v612_v18, 0.0 }
 0x108   : > { %v615_v22 = vadd.f32 %v1210_v20, %v1462_v50 }
 0x109   : > { %v669_v25 = vmax.f32 %v551_v21, 0.0  ;;  %v1163_v27 = vpop.f32.mrb[8].mxu0  ;;  %v1211_v28 = vpop.f32.mrb[8].mxu1 }
 0x10a   : > { %v685_v26 = vmax.f32 %v615_v22, 0.0  ;;  %v1164_v29 = vpop.f32.mrb[9].mxu0  ;;  %v1212_v30 = vpop.f32.mrb[9].mxu1 }
 0x10b   : > { %v1048_v31 = vpack.c.bf16 %v669_v25, %v668_v23  ;;  %v1165_v33 = vadd.f32 %v1164_v29, %v1163_v27  ;;  %v1213_v34 = vadd.f32 %v1212_v30, %v1211_v28  ;;  %v1166_v35 = vpop.f32.mrb[10].mxu0  ;;  %v1214_v36 = vpop.f32.mrb[10].mxu1 }
 0x10c   : > { %v1088_v32 = vpack.c.bf16 %v685_v26, %v684_v24  ;;  %v1167_v37 = vpop.f32.mrb[11].mxu0  ;;  %v1215_v38 = vpop.f32.mrb[11].mxu1 }
 0x10d   : > { %1120 = vst [vmem:[%s1472_s4 + $0x8] sm:$0xff] %v1048_v31   ;;  %v556_v39 = vadd.f32 %v1165_v33, %v1462_v50  ;;  %v620_v40 = vadd.f32 %v1213_v34, %v1462_v50  ;;  %v1168_v41 = vadd.f32 %v1167_v37, %v1166_v35  ;;  %v1216_v42 = vadd.f32 %v1215_v38, %v1214_v36 }
 0x10e   : > { %1128 = vst [vmem:[%s1472_s4 + $0x48] sm:$0xff] %v1088_v32  }
 0x10f   : > { %v559_v43 = vadd.f32 %v1168_v41, %v1462_v50  ;;  %v623_v44 = vadd.f32 %v1216_v42, %v1462_v50  ;;  %v670_v45 = vmax.f32 %v556_v39, 0.0  ;;  %v686_v46 = vmax.f32 %v620_v40, 0.0 }
 0x111   : > { %v671_v47 = vmax.f32 %v559_v43, 0.0  ;;  %v687_v48 = vmax.f32 %v623_v44, 0.0  ;;  %v1169_v49 = vpop.f32.mrb[12].mxu0  ;;  %v1217_v51 = vpop.f32.mrb[12].mxu1 }
 0x112   : > { %v1170_v52 = vpop.f32.mrb[13].mxu0  ;;  %v1218_v53 = vpop.f32.mrb[13].mxu1 }
 0x113   : > { %v1053_v54 = vpack.c.bf16 %v671_v47, %v670_v45  ;;  %v1093_v55 = vpack.c.bf16 %v687_v48, %v686_v46  ;;  %v1171_v56 = vadd.f32 %v1170_v52, %v1169_v49  ;;  %v1219_v57 = vadd.f32 %v1218_v53, %v1217_v51  ;;  %v1172_v58 = vpop.f32.mrb[14].mxu0  ;;  %v1220_v59 = vpop.f32.mrb[14].mxu1 }
 0x114   : > { %v1173_v60 = vpop.f32.mrb[15].mxu0  ;;  %v1221_v61 = vpop.f32.mrb[15].mxu1 }
 0x115   : > { %1121 = vst [vmem:[%s1472_s4 + $0x10] sm:$0xff] %v1053_v54   ;;  %1129 = vst [vmem:[%s1472_s4 + $0x50] sm:$0xff] %v1093_v55   ;;  %v564_v62 = vadd.f32 %v1171_v56, %v1462_v50  ;;  %v628_v63 = vadd.f32 %v1219_v57, %v1462_v50  ;;  %v1174_v0 = vadd.f32 %v1173_v60, %v1172_v58 }
 0x116   : > { %v1222_v1 = vadd.f32 %v1221_v61, %v1220_v59 }
 0x117   : > { %v567_v2 = vadd.f32 %v1174_v0, %v1462_v50  ;;  %v672_v4 = vmax.f32 %v564_v62, 0.0  ;;  %v688_v5 = vmax.f32 %v628_v63, 0.0 }
 0x118   : > { %v631_v3 = vadd.f32 %v1222_v1, %v1462_v50 }
 0x119   : > { %v673_v6 = vmax.f32 %v567_v2, 0.0  ;;  %v1175_v8 = vpop.f32.mrb[16].mxu0  ;;  %v1223_v9 = vpop.f32.mrb[16].mxu1 }
 0x11a   : > { %v689_v7 = vmax.f32 %v631_v3, 0.0  ;;  %v1176_v10 = vpop.f32.mrb[17].mxu0  ;;  %v1224_v11 = vpop.f32.mrb[17].mxu1 }
 0x11b   : > { %v1058_v12 = vpack.c.bf16 %v673_v6, %v672_v4  ;;  %v1177_v14 = vadd.f32 %v1176_v10, %v1175_v8  ;;  %v1225_v15 = vadd.f32 %v1224_v11, %v1223_v9  ;;  %v1178_v16 = vpop.f32.mrb[18].mxu0  ;;  %v1226_v17 = vpop.f32.mrb[18].mxu1 }
 0x11c   : > { %v1098_v13 = vpack.c.bf16 %v689_v7, %v688_v5  ;;  %v1179_v18 = vpop.f32.mrb[19].mxu0  ;;  %v1227_v19 = vpop.f32.mrb[19].mxu1 }
 0x11d   : > { %1122 = vst [vmem:[%s1472_s4 + $0x18] sm:$0xff] %v1058_v12   ;;  %v572_v20 = vadd.f32 %v1177_v14, %v1462_v50  ;;  %v636_v21 = vadd.f32 %v1225_v15, %v1462_v50  ;;  %v1180_v22 = vadd.f32 %v1179_v18, %v1178_v16  ;;  %v1228_v23 = vadd.f32 %v1227_v19, %v1226_v17 }
 0x11e   : > { %1130 = vst [vmem:[%s1472_s4 + $0x58] sm:$0xff] %v1098_v13  }
 0x11f   : > { %v575_v24 = vadd.f32 %v1180_v22, %v1462_v50  ;;  %v639_v25 = vadd.f32 %v1228_v23, %v1462_v50  ;;  %v674_v26 = vmax.f32 %v572_v20, 0.0  ;;  %v690_v27 = vmax.f32 %v636_v21, 0.0 }
 0x121   : > { %v675_v28 = vmax.f32 %v575_v24, 0.0  ;;  %v691_v29 = vmax.f32 %v639_v25, 0.0  ;;  %v1181_v30 = vpop.f32.mrb[20].mxu0  ;;  %v1229_v31 = vpop.f32.mrb[20].mxu1 }
 0x122   : > { %v1182_v32 = vpop.f32.mrb[21].mxu0  ;;  %v1230_v33 = vpop.f32.mrb[21].mxu1 }
 0x123   : > { %v1063_v34 = vpack.c.bf16 %v675_v28, %v674_v26  ;;  %v1103_v35 = vpack.c.bf16 %v691_v29, %v690_v27  ;;  %v1183_v36 = vadd.f32 %v1182_v32, %v1181_v30  ;;  %v1231_v37 = vadd.f32 %v1230_v33, %v1229_v31  ;;  %v1184_v38 = vpop.f32.mrb[22].mxu0  ;;  %v1232_v39 = vpop.f32.mrb[22].mxu1 }
 0x124   : > { %v1185_v40 = vpop.f32.mrb[23].mxu0  ;;  %v1233_v41 = vpop.f32.mrb[23].mxu1 }
 0x125   : > { %1123 = vst [vmem:[%s1472_s4 + $0x20] sm:$0xff] %v1063_v34   ;;  %1131 = vst [vmem:[%s1472_s4 + $0x60] sm:$0xff] %v1103_v35   ;;  %v580_v42 = vadd.f32 %v1183_v36, %v1462_v50  ;;  %v644_v43 = vadd.f32 %v1231_v37, %v1462_v50  ;;  %v1186_v44 = vadd.f32 %v1185_v40, %v1184_v38 }
 0x126   : > { %v1234_v45 = vadd.f32 %v1233_v41, %v1232_v39 }
 0x127   : > { %v583_v46 = vadd.f32 %v1186_v44, %v1462_v50  ;;  %v676_v48 = vmax.f32 %v580_v42, 0.0  ;;  %v692_v49 = vmax.f32 %v644_v43, 0.0 }
 0x128   : > { %v647_v47 = vadd.f32 %v1234_v45, %v1462_v50 }
 0x129   : > { %v677_v51 = vmax.f32 %v583_v46, 0.0  ;;  %v1187_v53 = vpop.f32.mrb[24].mxu0  ;;  %v1235_v54 = vpop.f32.mrb[24].mxu1 }
 0x12a   : > { %v693_v52 = vmax.f32 %v647_v47, 0.0  ;;  %v1188_v55 = vpop.f32.mrb[25].mxu0  ;;  %v1236_v56 = vpop.f32.mrb[25].mxu1 }
 0x12b   : > { %v1068_v57 = vpack.c.bf16 %v677_v51, %v676_v48  ;;  %v1189_v59 = vadd.f32 %v1188_v55, %v1187_v53  ;;  %v1237_v60 = vadd.f32 %v1236_v56, %v1235_v54  ;;  %v1190_v61 = vpop.f32.mrb[26].mxu0  ;;  %v1238_v62 = vpop.f32.mrb[26].mxu1 }
 0x12c   : > { %v1108_v58 = vpack.c.bf16 %v693_v52, %v692_v49  ;;  %v1191_v63 = vpop.f32.mrb[27].mxu0  ;;  %v1239_v0 = vpop.f32.mrb[27].mxu1 }
 0x12d   : > { %1124 = vst [vmem:[%s1472_s4 + $0x28] sm:$0xff] %v1068_v57   ;;  %v588_v1 = vadd.f32 %v1189_v59, %v1462_v50  ;;  %v652_v2 = vadd.f32 %v1237_v60, %v1462_v50  ;;  %v1192_v3 = vadd.f32 %v1191_v63, %v1190_v61  ;;  %v1240_v4 = vadd.f32 %v1239_v0, %v1238_v62 }
 0x12e   : > { %1132 = vst [vmem:[%s1472_s4 + $0x68] sm:$0xff] %v1108_v58  }
 0x12f   : > { %v591_v5 = vadd.f32 %v1192_v3, %v1462_v50  ;;  %v655_v6 = vadd.f32 %v1240_v4, %v1462_v50  ;;  %v678_v7 = vmax.f32 %v588_v1, 0.0  ;;  %v694_v8 = vmax.f32 %v652_v2, 0.0 }
 0x131   : > { %v679_v9 = vmax.f32 %v591_v5, 0.0  ;;  %v695_v10 = vmax.f32 %v655_v6, 0.0  ;;  %v1193_v11 = vpop.f32.mrb[28].mxu0  ;;  %v1241_v12 = vpop.f32.mrb[28].mxu1 }
 0x132   : > { %v1194_v13 = vpop.f32.mrb[29].mxu0  ;;  %v1242_v14 = vpop.f32.mrb[29].mxu1 }
 0x133   : > { %v1073_v15 = vpack.c.bf16 %v679_v9, %v678_v7  ;;  %v1113_v16 = vpack.c.bf16 %v695_v10, %v694_v8  ;;  %v1195_v17 = vadd.f32 %v1194_v13, %v1193_v11  ;;  %v1243_v18 = vadd.f32 %v1242_v14, %v1241_v12  ;;  %v1196_v19 = vpop.f32.mrb[30].mxu0  ;;  %v1244_v20 = vpop.f32.mrb[30].mxu1 }
 0x134   : > { %v1197_v21 = vpop.f32.mrb[31].mxu0  ;;  %v1245_v22 = vpop.f32.mrb[31].mxu1 }
 0x135   : > { %1125 = vst [vmem:[%s1472_s4 + $0x30] sm:$0xff] %v1073_v15   ;;  %1133 = vst [vmem:[%s1472_s4 + $0x70] sm:$0xff] %v1113_v16   ;;  %v596_v23 = vadd.f32 %v1195_v17, %v1462_v50  ;;  %v660_v24 = vadd.f32 %v1243_v18, %v1462_v50  ;;  %v1198_v25 = vadd.f32 %v1197_v21, %v1196_v19 }
 0x136   : > { %v1246_v26 = vadd.f32 %v1245_v22, %v1244_v20 }
 0x137   : > { %v599_v27 = vadd.f32 %v1198_v25, %v1462_v50  ;;  %v680_v29 = vmax.f32 %v596_v23, 0.0  ;;  %v696_v30 = vmax.f32 %v660_v24, 0.0 }
 0x138   : > { %v663_v28 = vadd.f32 %v1246_v26, %v1462_v50 }
 0x139   : > { %v681_v31 = vmax.f32 %v599_v27, 0.0 }
 0x13a   : > { %v697_v32 = vmax.f32 %v663_v28, 0.0 }
 0x13b   : > { %v1078_v33 = vpack.c.bf16 %v681_v31, %v680_v29 }
 0x13c   : > { %v1118_v34 = vpack.c.bf16 %v697_v32, %v696_v30 }
 0x13d   : > { %1126 = vst [vmem:[%s1472_s4 + $0x38] sm:$0xff] %v1078_v33  }
 0x13e   : > { %1134 = vst [vmem:[%s1472_s4 + $0x78] sm:$0xff] %v1118_v34  }
 0x13f PF: > { %s13_s12 = sadd.s32 1, %s1341_s12  }
 0x140   : > { %p10_p4 = scmp.ge.s32.totalorder %s13_s12, 4  }
 0x142   :  { %12 = sbr.rel (!%p10_p4) target bundleno = 1 (0x1), region = 62 }

// kernel: retinanet_serve.17
= control target key start
LH: loop header
LB: loop body
LE: loop exit
PB: predicated region body
PF: predicated region fallthrough
CT: control target
= control target key end

     0   :  { %s1176_s1 = inlined_call_operand.vmem [shape: bf16[384,128], index: 1, kind: input, shape index: {}]   ;;  %s1177_s0 = inlined_call_operand.vmem [shape: bf16[128,384], index: 0, kind: input, shape index: {}]   ;;  %s1178_s2 = inlined_call_operand.vmem [shape: f32[1,128], index: 2, kind: input, shape index: {}]   ;;  %s1179_s3 = inlined_call_operand.vmem [shape: bf16[128,128], index: 3, kind: output, shape index: {}]  }
   0x1   :  { %v908_v0 = vld [vmem:[%s1176_s1 + $0x40] sm:$0xff]   ;;  %v910_v2 = vld [vmem:[%s1176_s1 + $0x48] sm:$0xff]   ;;  %v913_v5 = vld [vmem:[%s1176_s1 + $0x50] sm:$0xff]  }
   0x2   :  { %v909_v1 = vld [vmem:[%s1176_s1] sm:$0xff]   ;;  %796 = vmatprep.subr.bf16.mxu0 %v908_v0  ;;  %v912_v4 = vld [vmem:[%s1176_s1 + $0x8] sm:$0xff]   ;;  %v915_v7 = vld [vmem:[%s1176_s1 + $0x10] sm:$0xff]  }
   0x3   :  { %797 = vmatpush3.bf16.msra.mxu0 %v909_v1  ;;  %v911_v3 = vld [vmem:[%s1176_s1 + $0x80] sm:$0xff]   ;;  %v914_v6 = vld [vmem:[%s1176_s1 + $0x88] sm:$0xff]   ;;  %v916_v8 = vld [vmem:[%s1176_s1 + $0x58] sm:$0xff]  }
   0x4   :  { %798 = vmatprep.subr.bf16.mxu0 %v910_v2  ;;  %876 = vmatprep.subr.bf16.mxu1 %v911_v3  ;;  %v917_v9 = vld [vmem:[%s1176_s1 + $0x90] sm:$0xff]   ;;  %v918_v10 = vld [vmem:[%s1176_s1 + $0x18] sm:$0xff]   ;;  %v919_v11 = vld [vmem:[%s1176_s1 + $0x60] sm:$0xff]  }
   0x5   :  { %877 = vmatpush3.bf16.msra.mxu1 %v911_v3  ;;  %v920_v12 = vld [vmem:[%s1176_s1 + $0x98] sm:$0xff]   ;;  %v921_v13 = vld [vmem:[%s1176_s1 + $0x20] sm:$0xff]   ;;  %v922_v15 = vld [vmem:[%s1176_s1 + $0x68] sm:$0xff]  }
   0x6   :  { %878 = vmatprep.subr.bf16.mxu1 %v914_v6  ;;  %v923_v14 = vld [vmem:[%s1176_s1 + $0xa0] sm:$0xff]   ;;  %v924_v16 = vld [vmem:[%s1176_s1 + $0x28] sm:$0xff]   ;;  %v925_v18 = vld [vmem:[%s1176_s1 + $0x70] sm:$0xff]  }
   0x7   :  { %799 = vmatpush3.bf16.msra.mxu0 %v912_v4  ;;  %v926_v17 = vld [vmem:[%s1176_s1 + $0xa8] sm:$0xff]   ;;  %v927_v19 = vld [vmem:[%s1176_s1 + $0x30] sm:$0xff]   ;;  %v928_v20 = vld [vmem:[%s1176_s1 + $0x78] sm:$0xff]  }
   0x8   :  { %800 = vmatprep.subr.bf16.mxu0 %v913_v5  ;;  %v929_v21 = vld [vmem:[%s1176_s1 + $0xb0] sm:$0xff]   ;;  %v930_v23 = vld [vmem:[%s1176_s1 + $0x38] sm:$0xff]   ;;  %v931_v26 = vld [vmem:[%s1177_s0] ss:$12 sps:$4 sm:$0xff]  }
   0x9   :  { %879 = vmatpush3.bf16.msra.mxu1 %v914_v6  ;;  %v933_v22 = vld [vmem:[%s1177_s0 + $0x4] ss:$12 sps:$4 sm:$0xff]   ;;  %v935_v24 = vld [vmem:[%s1177_s0 + $0x8] ss:$12 sps:$4 sm:$0xff]   ;;  %v934_v25 = vld [vmem:[%s1176_s1 + $0xb8] sm:$0xff]  }
   0xa   :  { %880 = vmatprep.subr.bf16.mxu1 %v917_v9  ;;  %406 = vmatprep.mubr.bf16.mxu0 %v933_v22  ;;  %v937_v27 = vld [vmem:[%s1177_s0 + $0x1c] ss:$12 sps:$4 sm:$0xff]   ;;  %v936_v28 = vld [vmem:[%s1177_s0 + $0x20] ss:$12 sps:$4 sm:$0xff]   ;;  %v943_v29 = vld [vmem:[%s1177_s0 + $0x38] ss:$12 sps:$4 sm:$0xff]  }
   0xb   :  { %801 = vmatpush3.bf16.msra.mxu0 %v915_v7  ;;  %892 = vmatprep.mubr.bf16.mxu1 %v935_v24  ;;  %v939_v30 = vld [vmem:[%s1177_s0 + $0x18] ss:$12 sps:$4 sm:$0xff]   ;;  %v940_v31 = vld [vmem:[%s1177_s0 + $0x34] ss:$12 sps:$4 sm:$0xff]   ;;  %v944_v32 = vld [vmem:[%s1177_s0 + $0x50] ss:$12 sps:$4 sm:$0xff]  }
   0xc   :  { %802 = vmatprep.subr.bf16.mxu0 %v916_v8  ;;  %v951_v33 = vld [vmem:[%s1177_s0 + $0x68] ss:$12 sps:$4 sm:$0xff]   ;;  %v942_v34 = vld [vmem:[%s1177_s0 + $0x30] ss:$12 sps:$4 sm:$0xff]   ;;  %v945_v35 = vld [vmem:[%s1177_s0 + $0x4c] ss:$12 sps:$4 sm:$0xff]  }
   0xd   :  { %881 = vmatpush3.bf16.msra.mxu1 %v917_v9  ;;  %v952_v36 = vld [vmem:[%s1177_s0 + $0x80] ss:$12 sps:$4 sm:$0xff]   ;;  %v959_v37 = vld [vmem:[%s1177_s0 + $0x98] ss:$12 sps:$4 sm:$0xff]   ;;  %v947_v38 = vld [vmem:[%s1177_s0 + $0x48] ss:$12 sps:$4 sm:$0xff]  }
   0xe   :  { %882 = vmatprep.subr.bf16.mxu1 %v920_v12  ;;  %v948_v39 = vld [vmem:[%s1177_s0 + $0x64] ss:$12 sps:$4 sm:$0xff]   ;;  %v950_v41 = vld [vmem:[%s1177_s0 + $0x60] ss:$12 sps:$4 sm:$0xff]   ;;  %v953_v42 = vld [vmem:[%s1177_s0 + $0x7c] ss:$12 sps:$4 sm:$0xff]  }
   0xf   :  { %803 = vmatpush3.bf16.msra.mxu0 %v918_v10  ;;  %v960_v40 = vld [vmem:[%s1177_s0 + $0xb0] ss:$12 sps:$4 sm:$0xff]   ;;  %v955_v43 = vld [vmem:[%s1177_s0 + $0x78] ss:$12 sps:$4 sm:$0xff]   ;;  %v956_v44 = vld [vmem:[%s1177_s0 + $0x94] ss:$12 sps:$4 sm:$0xff]  }
  0x10   :  { %804 = vmatprep.subr.bf16.mxu0 %v919_v11  ;;  %v958_v45 = vld [vmem:[%s1177_s0 + $0x90] ss:$12 sps:$4 sm:$0xff]   ;;  %v961_v46 = vld [vmem:[%s1177_s0 + $0xac] ss:$12 sps:$4 sm:$0xff]   ;;  %v963_v47 = vld [vmem:[%s1177_s0 + $0xa8] ss:$12 sps:$4 sm:$0xff]  }
  0x11   :  { %883 = vmatpush3.bf16.msra.mxu1 %v920_v12  ;;  %v1131_v50 = vld [vmem:[%s1178_s2] ss:$0 sm:$0xff] }
  0x12   :  { %884 = vmatprep.subr.bf16.mxu1 %v923_v14 }
  0x13   :  { %805 = vmatpush3.bf16.msra.mxu0 %v921_v13 }
  0x14   :  { %806 = vmatprep.subr.bf16.mxu0 %v922_v15 }
  0x15   :  { %885 = vmatpush3.bf16.msra.mxu1 %v923_v14 }
  0x16   :  { %886 = vmatprep.subr.bf16.mxu1 %v926_v17 }
  0x17   :  { %807 = vmatpush3.bf16.msra.mxu0 %v924_v16 }
  0x18   :  { %808 = vmatprep.subr.bf16.mxu0 %v925_v18 }
  0x19   :  { %887 = vmatpush3.bf16.msra.mxu1 %v926_v17 }
  0x1a   :  { %888 = vmatprep.subr.bf16.mxu1 %v929_v21 }
  0x1b   :  { %809 = vmatpush3.bf16.msra.mxu0 %v927_v19 }
  0x1c   :  { %810 = vmatprep.subr.bf16.mxu0 %v928_v20 }
  0x1d   :  { %889 = vmatpush3.bf16.msra.mxu1 %v929_v21 }
  0x1e   :  { %890 = vmatprep.subr.bf16.mxu1 %v934_v25 }
  0x1f   :  { %811 = vmatpush3.bf16.msra.mxu0 %v930_v23 }
  0x21   :  { %891 = vmatpush3.bf16.msra.mxu1 %v934_v25 }
  0x22   :  { %407 = vmatmul.mubr.bf16.vlgmr.msra.gmra.mrb[0].mxu0 %v931_v26 }
  0x23   :  { %414 = vmatprep.mubr.bf16.mxu0 %v937_v27 }
  0x24   :  { %893 = vmatmul.mubr.bf16.vlgmr.msra.gmra.mrb[0].mxu1 %v936_v28 }
  0x25   :  { %896 = vmatprep.mubr.bf16.mxu1 %v943_v29 }
  0x2a   :  { %415 = vmatmul.mubr.bf16.gmra.mrb[4].mxu0 %v939_v30 }
  0x2b   :  { %422 = vmatprep.mubr.bf16.mxu0 %v940_v31 }
  0x2c   :  { %897 = vmatmul.mubr.bf16.gmra.mrb[4].mxu1 %v944_v32 }
  0x2d   :  { %900 = vmatprep.mubr.bf16.mxu1 %v951_v33 }
  0x32   :  { %423 = vmatmul.mubr.bf16.gmra.mrb[8].mxu0 %v942_v34 }
  0x33   :  { %430 = vmatprep.mubr.bf16.mxu0 %v945_v35 }
  0x34   :  { %901 = vmatmul.mubr.bf16.gmra.mrb[8].mxu1 %v952_v36 }
  0x35   :  { %904 = vmatprep.mubr.bf16.mxu1 %v959_v37 }
  0x3a   :  { %431 = vmatmul.mubr.bf16.gmra.mrb[12].mxu0 %v947_v38 }
  0x3b   :  { %438 = vmatprep.mubr.bf16.mxu0 %v948_v39 }
  0x3c   :  { %905 = vmatmul.mubr.bf16.gmra.mrb[12].mxu1 %v960_v40 }
  0x42   :  { %439 = vmatmul.mubr.bf16.gmra.mrb[16].mxu0 %v950_v41 }
  0x43   :  { %446 = vmatprep.mubr.bf16.mxu0 %v953_v42 }
  0x4a   :  { %447 = vmatmul.mubr.bf16.gmra.mrb[20].mxu0 %v955_v43 }
  0x4b   :  { %454 = vmatprep.mubr.bf16.mxu0 %v956_v44 }
  0x52   :  { %455 = vmatmul.mubr.bf16.gmra.mrb[24].mxu0 %v958_v45 }
  0x53   :  { %462 = vmatprep.mubr.bf16.mxu0 %v961_v46 }
  0x5a   :  { %463 = vmatmul.mubr.bf16.gmra.mrb[28].mxu0 %v963_v47 }
  0xf5   :  { %v812_v48 = vpop.f32.mrb[0].mxu0 }
  0xf6   :  { %v813_v49 = vpop.f32.mrb[1].mxu0 }
  0xf7   :  { %v814_v51 = vadd.f32 %v813_v49, %v812_v48  ;;  %v815_v52 = vpop.f32.mrb[2].mxu0  ;;  %v894_v54 = vpop.f32.mrb[0].mxu1 }
  0xf8   :  { %v816_v53 = vpop.f32.mrb[3].mxu0  ;;  %v505_v57 = vpop.f32.mrb[1].mxu1 }
  0xf9   :  { %v817_v55 = vadd.f32 %v816_v53, %v815_v52  ;;  %v409_v56 = vadd.f32 %v814_v51, %v1131_v50  ;;  %v895_v58 = vpop.f32.mrb[2].mxu1 }
  0xfa   :  { %v508_v61 = vpop.f32.mrb[3].mxu1 }
  0xfb   :  { %v506_v59 = vadd.f32 %v505_v57, %v409_v56  ;;  %v412_v60 = vadd.f32 %v817_v55, %v1131_v50 }
  0xfd   :  { %v509_v62 = vadd.f32 %v508_v61, %v412_v60  ;;  %v818_v63 = vpop.f32.mrb[4].mxu0  ;;  %v568_v1 = vmax.f32 %v506_v59, 0.0 }
  0xfe   :  { %v819_v0 = vpop.f32.mrb[5].mxu0 }
  0xff   :  { %v569_v2 = vmax.f32 %v509_v62, 0.0  ;;  %v820_v3 = vadd.f32 %v819_v0, %v818_v63  ;;  %v821_v4 = vpop.f32.mrb[6].mxu0  ;;  %v898_v6 = vpop.f32.mrb[4].mxu1 }
 0x100   :  { %v822_v5 = vpop.f32.mrb[7].mxu0  ;;  %v521_v10 = vpop.f32.mrb[5].mxu1 }
 0x101   :  { %v752_v7 = vpack.c.bf16 %v569_v2, %v568_v1  ;;  %v417_v8 = vadd.f32 %v820_v3, %v1131_v50  ;;  %v823_v9 = vadd.f32 %v822_v5, %v821_v4  ;;  %v899_v11 = vpop.f32.mrb[6].mxu1 }
 0x102   :  { %v524_v14 = vpop.f32.mrb[7].mxu1 }
 0x103   :  { %753 = vst [vmem:[%s1179_s3] sm:$0xff] %v752_v7   ;;  %v514_v12 = vadd.f32 %v894_v54, %v417_v8  ;;  %v420_v13 = vadd.f32 %v823_v9, %v1131_v50 }
 0x105   :  { %v517_v15 = vadd.f32 %v895_v58, %v420_v13  ;;  %v824_v16 = vpop.f32.mrb[8].mxu0  ;;  %v570_v18 = vmax.f32 %v514_v12, 0.0 }
 0x106   :  { %v825_v17 = vpop.f32.mrb[9].mxu0 }
 0x107   :  { %v571_v19 = vmax.f32 %v517_v15, 0.0  ;;  %v826_v20 = vadd.f32 %v825_v17, %v824_v16  ;;  %v827_v21 = vpop.f32.mrb[10].mxu0  ;;  %v902_v23 = vpop.f32.mrb[8].mxu1 }
 0x108   :  { %v828_v22 = vpop.f32.mrb[11].mxu0  ;;  %v537_v27 = vpop.f32.mrb[9].mxu1 }
 0x109   :  { %v757_v24 = vpack.c.bf16 %v571_v19, %v570_v18  ;;  %v829_v25 = vadd.f32 %v828_v22, %v827_v21  ;;  %v425_v26 = vadd.f32 %v826_v20, %v1131_v50  ;;  %v903_v28 = vpop.f32.mrb[10].mxu1 }
 0x10a   :  { %v540_v31 = vpop.f32.mrb[11].mxu1 }
 0x10b   :  { %789 = vst [vmem:[%s1179_s3 + $0x8] sm:$0xff] %v757_v24   ;;  %v522_v29 = vadd.f32 %v521_v10, %v425_v26  ;;  %v428_v30 = vadd.f32 %v829_v25, %v1131_v50 }
 0x10d   :  { %v525_v32 = vadd.f32 %v524_v14, %v428_v30  ;;  %v830_v33 = vpop.f32.mrb[12].mxu0  ;;  %v572_v35 = vmax.f32 %v522_v29, 0.0 }
 0x10e   :  { %v831_v34 = vpop.f32.mrb[13].mxu0 }
 0x10f   :  { %v573_v36 = vmax.f32 %v525_v32, 0.0  ;;  %v832_v37 = vadd.f32 %v831_v34, %v830_v33  ;;  %v833_v38 = vpop.f32.mrb[14].mxu0  ;;  %v1145_v40 = vpop.f32.mrb[12].mxu1 }
 0x110   :  { %v834_v39 = vpop.f32.mrb[15].mxu0  ;;  %v553_v44 = vpop.f32.mrb[13].mxu1 }
 0x111   :  { %v762_v41 = vpack.c.bf16 %v573_v36, %v572_v35  ;;  %v433_v42 = vadd.f32 %v832_v37, %v1131_v50  ;;  %v835_v43 = vadd.f32 %v834_v39, %v833_v38  ;;  %v907_v45 = vpop.f32.mrb[14].mxu1 }
 0x112   :  { %v556_v48 = vpop.f32.mrb[15].mxu1 }
 0x113   :  { %790 = vst [vmem:[%s1179_s3 + $0x10] sm:$0xff] %v762_v41   ;;  %v530_v46 = vadd.f32 %v898_v6, %v433_v42  ;;  %v436_v47 = vadd.f32 %v835_v43, %v1131_v50 }
 0x115   :  { %v533_v49 = vadd.f32 %v899_v11, %v436_v47  ;;  %v836_v51 = vpop.f32.mrb[16].mxu0  ;;  %v574_v53 = vmax.f32 %v530_v46, 0.0 }
 0x116   :  { %v837_v52 = vpop.f32.mrb[17].mxu0 }
 0x117   :  { %v575_v54 = vmax.f32 %v533_v49, 0.0  ;;  %v838_v55 = vadd.f32 %v837_v52, %v836_v51  ;;  %v839_v56 = vpop.f32.mrb[18].mxu0 }
 0x118   :  { %v840_v57 = vpop.f32.mrb[19].mxu0 }
 0x119   :  { %v767_v58 = vpack.c.bf16 %v575_v54, %v574_v53  ;;  %v841_v59 = vadd.f32 %v840_v57, %v839_v56  ;;  %v441_v60 = vadd.f32 %v838_v55, %v1131_v50 }
 0x11b   :  { %791 = vst [vmem:[%s1179_s3 + $0x18] sm:$0xff] %v767_v58   ;;  %v538_v61 = vadd.f32 %v537_v27, %v441_v60  ;;  %v444_v62 = vadd.f32 %v841_v59, %v1131_v50 }
 0x11d   :  { %v541_v63 = vadd.f32 %v540_v31, %v444_v62  ;;  %v842_v0 = vpop.f32.mrb[20].mxu0  ;;  %v576_v2 = vmax.f32 %v538_v61, 0.0 }
 0x11e   :  { %v843_v1 = vpop.f32.mrb[21].mxu0 }
 0x11f   :  { %v577_v3 = vmax.f32 %v541_v63, 0.0  ;;  %v844_v4 = vadd.f32 %v843_v1, %v842_v0  ;;  %v845_v5 = vpop.f32.mrb[22].mxu0 }
 0x120   :  { %v846_v6 = vpop.f32.mrb[23].mxu0 }
 0x121   :  { %v772_v7 = vpack.c.bf16 %v577_v3, %v576_v2  ;;  %v449_v8 = vadd.f32 %v844_v4, %v1131_v50  ;;  %v847_v9 = vadd.f32 %v846_v6, %v845_v5 }
 0x123   :  { %792 = vst [vmem:[%s1179_s3 + $0x20] sm:$0xff] %v772_v7   ;;  %v546_v10 = vadd.f32 %v902_v23, %v449_v8  ;;  %v452_v11 = vadd.f32 %v847_v9, %v1131_v50 }
 0x125   :  { %v549_v12 = vadd.f32 %v903_v28, %v452_v11  ;;  %v848_v13 = vpop.f32.mrb[24].mxu0  ;;  %v578_v15 = vmax.f32 %v546_v10, 0.0 }
 0x126   :  { %v849_v14 = vpop.f32.mrb[25].mxu0 }
 0x127   :  { %v579_v16 = vmax.f32 %v549_v12, 0.0  ;;  %v850_v17 = vadd.f32 %v849_v14, %v848_v13  ;;  %v851_v18 = vpop.f32.mrb[26].mxu0 }
 0x128   :  { %v852_v19 = vpop.f32.mrb[27].mxu0 }
 0x129   :  { %v777_v20 = vpack.c.bf16 %v579_v16, %v578_v15  ;;  %v853_v21 = vadd.f32 %v852_v19, %v851_v18  ;;  %v457_v22 = vadd.f32 %v850_v17, %v1131_v50 }
 0x12b   :  { %793 = vst [vmem:[%s1179_s3 + $0x28] sm:$0xff] %v777_v20   ;;  %v554_v24 = vadd.f32 %v553_v44, %v457_v22  ;;  %v460_v23 = vadd.f32 %v853_v21, %v1131_v50 }
 0x12d   :  { %v557_v25 = vadd.f32 %v556_v48, %v460_v23  ;;  %v854_v26 = vpop.f32.mrb[28].mxu0  ;;  %v580_v28 = vmax.f32 %v554_v24, 0.0 }
 0x12e   :  { %v855_v27 = vpop.f32.mrb[29].mxu0 }
 0x12f   :  { %v581_v29 = vmax.f32 %v557_v25, 0.0  ;;  %v856_v30 = vadd.f32 %v855_v27, %v854_v26  ;;  %v857_v31 = vpop.f32.mrb[30].mxu0 }
 0x130   :  { %v858_v32 = vpop.f32.mrb[31].mxu0 }
 0x131   :  { %v782_v33 = vpack.c.bf16 %v581_v29, %v580_v28  ;;  %v465_v34 = vadd.f32 %v856_v30, %v1131_v50  ;;  %v859_v35 = vadd.f32 %v858_v32, %v857_v31 }
 0x133   :  { %794 = vst [vmem:[%s1179_s3 + $0x30] sm:$0xff] %v782_v33   ;;  %v562_v36 = vadd.f32 %v1145_v40, %v465_v34  ;;  %v468_v37 = vadd.f32 %v859_v35, %v1131_v50 }
 0x135   :  { %v565_v38 = vadd.f32 %v907_v45, %v468_v37  ;;  %v582_v39 = vmax.f32 %v562_v36, 0.0 }
 0x137   :  { %v583_v41 = vmax.f32 %v565_v38, 0.0 }
 0x139   :  { %v787_v42 = vpack.c.bf16 %v583_v41, %v582_v39 }
 0x13b   :  { %795 = vst [vmem:[%s1179_s3 + $0x38] sm:$0xff] %v787_v42  }

// kernel: retinanet_serve.21
= control target key start
LH: loop header
LB: loop body
LE: loop exit
PB: predicated region body
PF: predicated region fallthrough
CT: control target
= control target key end

     0   :  { %v688_v33 = vmov 0.0   ;;  %vm689_vm0 = vmmov 0   ;;  %s851_s1 = inlined_call_operand.vmem [shape: bf16[640,128], index: 1, kind: input, shape index: {}]   ;;  %s852_s0 = inlined_call_operand.vmem [shape: bf16[16,640], index: 0, kind: input, shape index: {}]   ;;  %s853_s2 = inlined_call_operand.vmem [shape: f32[1,128], index: 2, kind: input, shape index: {}]   ;;  %s854_s3 = inlined_call_operand.vmem [shape: bf16[16,128], index: 3, kind: output, shape index: {}]  }
   0x1   :  { %v641_v0 = vld [vmem:[%s851_s1 + $0x40] sm:$0xff]   ;;  %v645_v4 = vld [vmem:[%s851_s1 + $0x48] sm:$0xff]   ;;  %v649_v8 = vld [vmem:[%s851_s1 + $0x50] sm:$0xff]  }
   0x2   :  { %v642_v1 = vld [vmem:[%s851_s1] sm:$0xff]   ;;  %566 = vmatprep.subr.bf16.mxu0 %v641_v0  ;;  %v646_v5 = vld [vmem:[%s851_s1 + $0x8] sm:$0xff]   ;;  %v650_v9 = vld [vmem:[%s851_s1 + $0x10] sm:$0xff]  }
   0x3   :  { %v643_v2 = vld [vmem:[%s851_s1 + $0xc0] sm:$0xff]   ;;  %567 = vmatpush3.bf16.msra.mxu0 %v642_v1  ;;  %v647_v6 = vld [vmem:[%s851_s1 + $0xc8] sm:$0xff]   ;;  %v651_v10 = vld [vmem:[%s851_s1 + $0xd0] sm:$0xff]  }
   0x4   :  { %v644_v3 = vld [vmem:[%s851_s1 + $0x80] sm:$0xff]   ;;  %588 = vmatprep.subr.bf16.mxu1 %v643_v2  ;;  %568 = vmatprep.subr.bf16.mxu0 %v645_v4  ;;  %v648_v7 = vld [vmem:[%s851_s1 + $0x88] sm:$0xff]   ;;  %v652_v11 = vld [vmem:[%s851_s1 + $0x90] sm:$0xff]  }
   0x5   :  { %589 = vmatpush3.bf16.msra.mxu1 %v644_v3  ;;  %v653_v12 = vld [vmem:[%s851_s1 + $0x58] sm:$0xff]   ;;  %v657_v16 = vld [vmem:[%s851_s1 + $0x60] sm:$0xff]   ;;  %v661_v20 = vld [vmem:[%s851_s1 + $0x68] sm:$0xff]  }
   0x6   :  { %590 = vmatprep.subr.bf16.mxu1 %v647_v6  ;;  %v654_v13 = vld [vmem:[%s851_s1 + $0x18] sm:$0xff]   ;;  %v658_v17 = vld [vmem:[%s851_s1 + $0x20] sm:$0xff]   ;;  %v662_v21 = vld [vmem:[%s851_s1 + $0x28] sm:$0xff]  }
   0x7   :  { %569 = vmatpush3.bf16.msra.mxu0 %v646_v5  ;;  %v655_v14 = vld [vmem:[%s851_s1 + $0xd8] sm:$0xff]   ;;  %v659_v18 = vld [vmem:[%s851_s1 + $0xe0] sm:$0xff]   ;;  %v663_v22 = vld [vmem:[%s851_s1 + $0xe8] sm:$0xff]  }
   0x8   :  { %570 = vmatprep.subr.bf16.mxu0 %v649_v8  ;;  %v656_v15 = vld [vmem:[%s851_s1 + $0x98] sm:$0xff]   ;;  %v660_v19 = vld [vmem:[%s851_s1 + $0xa0] sm:$0xff]   ;;  %v664_v23 = vld [vmem:[%s851_s1 + $0xa8] sm:$0xff]  }
   0x9   :  { %591 = vmatpush3.bf16.msra.mxu1 %v648_v7  ;;  %v665_v24 = vld [vmem:[%s851_s1 + $0x70] sm:$0xff]   ;;  %v669_v28 = vld [vmem:[%s851_s1 + $0x78] sm:$0xff]   ;;  %v678_v36 = vld [vmem:[%s852_s0 + $0xc] ss:$20 sps:$4 sm:$0xff]  }
   0xa   :  { %592 = vmatprep.subr.bf16.mxu1 %v651_v10  ;;  %v666_v25 = vld [vmem:[%s851_s1 + $0x30] sm:$0xff]   ;;  %v670_v29 = vld [vmem:[%s851_s1 + $0x38] sm:$0xff]   ;;  %v679_v37 = vld [vmem:[%s851_s1 + $0x100] sm:$0xff]   ;;  %447 = vmatprep.mubr.bf16.mxu1 %v678_v36 }
   0xb   :  { %571 = vmatpush3.bf16.msra.mxu0 %v650_v9  ;;  %v667_v26 = vld [vmem:[%s851_s1 + $0xf0] sm:$0xff]   ;;  %v671_v30 = vld [vmem:[%s851_s1 + $0xf8] sm:$0xff]   ;;  %v680_v38 = vld [vmem:[%s851_s1 + $0x108] sm:$0xff]  }
   0xc   :  { %572 = vmatprep.subr.bf16.mxu0 %v653_v12  ;;  %v668_v27 = vld [vmem:[%s851_s1 + $0xb0] sm:$0xff]   ;;  %v674_v32 = vld [vmem:[%s852_s0 + $0x4] ss:$20 sps:$4 sm:$0xff]   ;;  %v676_v35 = vld [vmem:[%s852_s0 + $0x8] ss:$20 sps:$4 sm:$0xff]  }
   0xd   :  { %593 = vmatpush3.bf16.msra.mxu1 %v652_v11  ;;  %v672_v31 = vld [vmem:[%s852_s0] ss:$20 sps:$4 sm:$0xff]   ;;  %v675_v34 = vld [vmem:[%s851_s1 + $0xb8] sm:$0xff]   ;;  %406 = vmatprep.mubr.bf16.mxu0 %v674_v32  ;;  %v684_v42 = vld [vmem:[%s851_s1 + $0x128] sm:$0xff]  }
   0xe   :  { %594 = vmatprep.subr.bf16.mxu1 %v655_v14  ;;  %v681_v39 = vld [vmem:[%s851_s1 + $0x110] sm:$0xff]   ;;  %v682_v40 = vld [vmem:[%s851_s1 + $0x118] sm:$0xff]   ;;  %v683_v41 = vld [vmem:[%s851_s1 + $0x120] sm:$0xff]  }
   0xf   :  { %573 = vmatpush3.bf16.msra.mxu0 %v654_v13  ;;  %v685_v43 = vld [vmem:[%s851_s1 + $0x130] sm:$0xff]   ;;  %v686_v44 = vld [vmem:[%s851_s1 + $0x138] sm:$0xff]   ;;  %v511_v47 = vld [vmem:[%s853_s2] ss:$0 sm:$0xff] }
  0x10   :  { %574 = vmatprep.subr.bf16.mxu0 %v657_v16  ;;  %v687_v45 = vld [vmem:[%s852_s0 + $0x10] ss:$20 sps:$4 sm:$0xff]  }
  0x11   :  { %595 = vmatpush3.bf16.msra.mxu1 %v656_v15 }
  0x12   :  { %596 = vmatprep.subr.bf16.mxu1 %v659_v18 }
  0x13   :  { %575 = vmatpush3.bf16.msra.mxu0 %v658_v17 }
  0x14   :  { %576 = vmatprep.subr.bf16.mxu0 %v661_v20 }
  0x15   :  { %597 = vmatpush3.bf16.msra.mxu1 %v660_v19 }
  0x16   :  { %598 = vmatprep.subr.bf16.mxu1 %v663_v22 }
  0x17   :  { %577 = vmatpush3.bf16.msra.mxu0 %v662_v21 }
  0x18   :  { %578 = vmatprep.subr.bf16.mxu0 %v665_v24 }
  0x19   :  { %599 = vmatpush3.bf16.msra.mxu1 %v664_v23 }
  0x1a   :  { %600 = vmatprep.subr.bf16.mxu1 %v667_v26 }
  0x1b   :  { %579 = vmatpush3.bf16.msra.mxu0 %v666_v25 }
  0x1c   :  { %580 = vmatprep.subr.bf16.mxu0 %v669_v28 }
  0x1d   :  { %601 = vmatpush3.bf16.msra.mxu1 %v668_v27 }
  0x1e   :  { %602 = vmatprep.subr.bf16.mxu1 %v671_v30 }
  0x1f   :  { %581 = vmatpush3.bf16.msra.mxu0 %v670_v29 }
  0x20   :  { %619 = vmatprep.subr.bf16.mxu0 %v688_v33 }
  0x21   :  { %603 = vmatpush3.bf16.msra.mxu1 %v675_v34 }
  0x22   :  { %407 = vmatmul.mubr.bf16.vlgmr.msra.gmra.mrb[0].mxu0 %v672_v31 }
  0x23   :  { %635 = vmatprep.mubr.msk.bf16.mxu0 %vm689_vm0, %v688_v33  ;;  %620 = vmatpush3.bf16.msra.mxu0 %v679_v37 }
  0x24   :  { %448 = vmatmul.mubr.bf16.vlgmr.msra.gmra.mrb[0].mxu1 %v676_v35  ;;  %621 = vmatprep.subr.bf16.mxu0 %v688_v33 }
  0x27   :  { %622 = vmatpush3.bf16.msra.mxu0 %v680_v38 }
  0x28   :  { %623 = vmatprep.subr.bf16.mxu0 %v688_v33 }
  0x2b   :  { %624 = vmatpush3.bf16.msra.mxu0 %v681_v39 }
  0x2c   :  { %625 = vmatprep.subr.bf16.mxu0 %v688_v33 }
  0x2f   :  { %626 = vmatpush3.bf16.msra.mxu0 %v682_v40 }
  0x30   :  { %627 = vmatprep.subr.bf16.mxu0 %v688_v33 }
  0x33   :  { %628 = vmatpush3.bf16.msra.mxu0 %v683_v41 }
  0x34   :  { %629 = vmatprep.subr.bf16.mxu0 %v688_v33 }
  0x37   :  { %630 = vmatpush3.bf16.msra.mxu0 %v684_v42 }
  0x38   :  { %631 = vmatprep.subr.bf16.mxu0 %v688_v33 }
  0x3b   :  { %632 = vmatpush3.bf16.msra.mxu0 %v685_v43 }
  0x3c   :  { %633 = vmatprep.subr.bf16.mxu0 %v688_v33 }
  0x3f   :  { %634 = vmatpush3.bf16.msra.mxu0 %v686_v44 }
  0x42   :  { %636 = vmatmul.mubr.bf16.vlgmr.msra.gmra.mrb[4].mxu0 %v687_v45 }
  0xf5   :  { %v582_v46 = vpop.f32.mrb[0].mxu0 }
  0xf6   :  { %v583_v48 = vpop.f32.mrb[1].mxu0 }
  0xf7   :  { %v584_v49 = vadd.f32 %v583_v48, %v582_v46  ;;  %v585_v50 = vpop.f32.mrb[2].mxu0  ;;  %v604_v51 = vpop.f32.mrb[0].mxu1 }
  0xf8   :  { %v586_v52 = vpop.f32.mrb[3].mxu0  ;;  %v605_v55 = vpop.f32.mrb[1].mxu1 }
  0xf9   :  { %v409_v53 = vadd.f32 %v584_v49, %v511_v47  ;;  %v587_v54 = vadd.f32 %v586_v52, %v585_v50  ;;  %v606_v56 = vadd.f32 %v605_v55, %v604_v51  ;;  %v607_v57 = vpop.f32.mrb[2].mxu1 }
  0xfa   :  { %v608_v59 = vpop.f32.mrb[3].mxu1 }
  0xfb   :  { %v412_v58 = vadd.f32 %v587_v54, %v511_v47  ;;  %v609_v60 = vadd.f32 %v608_v59, %v607_v57  ;;  %v450_v61 = vadd.f32 %v606_v56, %v409_v53 }
  0xfd   :  { %v453_v62 = vadd.f32 %v609_v60, %v412_v58 }
 0x115   :  { %v490_v63 = vpop.f32.mrb[4].mxu0 }
 0x116   :  { %v491_v0 = vadd.f32 %v490_v63, %v450_v61  ;;  %v637_v1 = vpop.f32.mrb[5].mxu0 }
 0x117   :  { %v493_v2 = vpop.f32.mrb[6].mxu0 }
 0x118   :  { %v494_v3 = vadd.f32 %v493_v2, %v453_v62  ;;  %v638_v4 = vpop.f32.mrb[7].mxu0 }
 0x11a   :  { %v564_v5 = vpack.c.bf16 %v494_v3, %v491_v0 }
 0x11c   :  { %565 = vst [vmem:[%s854_s3] sm:$0xff] %v564_v5  }

// kernel: retinanet_serve.18
= control target key start
LH: loop header
LB: loop body
LE: loop exit
PB: predicated region body
PF: predicated region fallthrough
CT: control target
= control target key end

     0   :  { %s970_s1 = inlined_call_operand.vmem [shape: bf16[640,128], index: 1, kind: input, shape index: {}]   ;;  %s971_s0 = inlined_call_operand.vmem [shape: bf16[32,640], index: 0, kind: input, shape index: {}]   ;;  %s972_s2 = inlined_call_operand.vmem [shape: f32[1,128], index: 2, kind: input, shape index: {}]   ;;  %s973_s3 = inlined_call_operand.vmem [shape: bf16[32,128], index: 3, kind: output, shape index: {}]  }
   0x1   :  { %v737_v0 = vld [vmem:[%s970_s1 + $0x40] sm:$0xff]   ;;  %v741_v4 = vld [vmem:[%s970_s1 + $0x48] sm:$0xff]   ;;  %v745_v8 = vld [vmem:[%s970_s1 + $0x50] sm:$0xff]  }
   0x2   :  { %v738_v1 = vld [vmem:[%s970_s1] sm:$0xff]   ;;  %651 = vmatprep.subr.bf16.mxu0 %v737_v0  ;;  %v742_v5 = vld [vmem:[%s970_s1 + $0x8] sm:$0xff]   ;;  %v746_v9 = vld [vmem:[%s970_s1 + $0x10] sm:$0xff]  }
   0x3   :  { %v739_v2 = vld [vmem:[%s970_s1 + $0xc0] sm:$0xff]   ;;  %652 = vmatpush3.bf16.msra.mxu0 %v738_v1  ;;  %v743_v6 = vld [vmem:[%s970_s1 + $0xc8] sm:$0xff]   ;;  %v747_v10 = vld [vmem:[%s970_s1 + $0xd0] sm:$0xff]  }
   0x4   :  { %v740_v3 = vld [vmem:[%s970_s1 + $0x80] sm:$0xff]   ;;  %679 = vmatprep.subr.bf16.mxu1 %v739_v2  ;;  %653 = vmatprep.subr.bf16.mxu0 %v741_v4  ;;  %v744_v7 = vld [vmem:[%s970_s1 + $0x88] sm:$0xff]   ;;  %v748_v11 = vld [vmem:[%s970_s1 + $0x90] sm:$0xff]  }
   0x5   :  { %680 = vmatpush3.bf16.msra.mxu1 %v740_v3  ;;  %v749_v12 = vld [vmem:[%s970_s1 + $0x58] sm:$0xff]   ;;  %v753_v16 = vld [vmem:[%s970_s1 + $0x60] sm:$0xff]   ;;  %v757_v20 = vld [vmem:[%s970_s1 + $0x68] sm:$0xff]  }
   0x6   :  { %681 = vmatprep.subr.bf16.mxu1 %v743_v6  ;;  %v750_v13 = vld [vmem:[%s970_s1 + $0x18] sm:$0xff]   ;;  %v754_v17 = vld [vmem:[%s970_s1 + $0x20] sm:$0xff]   ;;  %v758_v21 = vld [vmem:[%s970_s1 + $0x28] sm:$0xff]  }
   0x7   :  { %654 = vmatpush3.bf16.msra.mxu0 %v742_v5  ;;  %v751_v14 = vld [vmem:[%s970_s1 + $0xd8] sm:$0xff]   ;;  %v755_v18 = vld [vmem:[%s970_s1 + $0xe0] sm:$0xff]   ;;  %v759_v22 = vld [vmem:[%s970_s1 + $0xe8] sm:$0xff]  }
   0x8   :  { %655 = vmatprep.subr.bf16.mxu0 %v745_v8  ;;  %v752_v15 = vld [vmem:[%s970_s1 + $0x98] sm:$0xff]   ;;  %v756_v19 = vld [vmem:[%s970_s1 + $0xa0] sm:$0xff]   ;;  %v760_v23 = vld [vmem:[%s970_s1 + $0xa8] sm:$0xff]  }
   0x9   :  { %682 = vmatpush3.bf16.msra.mxu1 %v744_v7  ;;  %v761_v24 = vld [vmem:[%s970_s1 + $0x70] sm:$0xff]   ;;  %v765_v28 = vld [vmem:[%s970_s1 + $0x78] sm:$0xff]   ;;  %v772_v34 = vld [vmem:[%s970_s1 + $0x100] sm:$0xff]  }
   0xa   :  { %683 = vmatprep.subr.bf16.mxu1 %v747_v10  ;;  %v762_v25 = vld [vmem:[%s970_s1 + $0x30] sm:$0xff]   ;;  %v766_v29 = vld [vmem:[%s970_s1 + $0x38] sm:$0xff]   ;;  %v775_v36 = vld [vmem:[%s971_s0 + $0xc] ss:$20 sps:$4 sm:$0xff]  }
   0xb   :  { %656 = vmatpush3.bf16.msra.mxu0 %v746_v9  ;;  %v763_v26 = vld [vmem:[%s970_s1 + $0xf0] sm:$0xff]   ;;  %v767_v30 = vld [vmem:[%s970_s1 + $0xf8] sm:$0xff]   ;;  %v776_v37 = vld [vmem:[%s970_s1 + $0x108] sm:$0xff]   ;;  %487 = vmatprep.mubr.bf16.mxu1 %v775_v36 }
   0xc   :  { %657 = vmatprep.subr.bf16.mxu0 %v749_v12  ;;  %v764_v27 = vld [vmem:[%s970_s1 + $0xb0] sm:$0xff]   ;;  %v770_v32 = vld [vmem:[%s971_s0 + $0x4] ss:$20 sps:$4 sm:$0xff]   ;;  %v773_v35 = vld [vmem:[%s971_s0 + $0x8] ss:$20 sps:$4 sm:$0xff]  }
   0xd   :  { %684 = vmatpush3.bf16.msra.mxu1 %v748_v11  ;;  %v768_v31 = vld [vmem:[%s971_s0] ss:$20 sps:$4 sm:$0xff]   ;;  %v771_v33 = vld [vmem:[%s970_s1 + $0xb8] sm:$0xff]   ;;  %438 = vmatprep.mubr.bf16.mxu0 %v770_v32  ;;  %v786_v43 = vld [vmem:[%s971_s0 + $0x30] ss:$20 sps:$4 sm:$0xff]  }
   0xe   :  { %685 = vmatprep.subr.bf16.mxu1 %v751_v14  ;;  %v777_v38 = vld [vmem:[%s970_s1 + $0x110] sm:$0xff]   ;;  %v780_v39 = vld [vmem:[%s971_s0 + $0x2c] ss:$20 sps:$4 sm:$0xff]   ;;  %v778_v40 = vld [vmem:[%s970_s1 + $0x118] sm:$0xff]  }
   0xf   :  { %658 = vmatpush3.bf16.msra.mxu0 %v750_v13  ;;  %v783_v41 = vld [vmem:[%s971_s0 + $0x28] ss:$20 sps:$4 sm:$0xff]   ;;  %v779_v44 = vld [vmem:[%s970_s1 + $0x120] sm:$0xff]   ;;  %v787_v47 = vld [vmem:[%s970_s1 + $0x130] sm:$0xff]  }
  0x10   :  { %659 = vmatprep.subr.bf16.mxu0 %v753_v16  ;;  %v784_v42 = vld [vmem:[%s971_s0 + $0x34] ss:$20 sps:$4 sm:$0xff]   ;;  %v789_v45 = vld [vmem:[%s971_s0 + $0x10] ss:$20 sps:$4 sm:$0xff]   ;;  %v788_v48 = vld [vmem:[%s970_s1 + $0x138] sm:$0xff]  }
  0x11   :  { %686 = vmatpush3.bf16.msra.mxu1 %v752_v15  ;;  %v782_v46 = vld [vmem:[%s970_s1 + $0x128] sm:$0xff]   ;;  %v581_v51 = vld [vmem:[%s972_s2] ss:$0 sm:$0xff] }
  0x12   :  { %687 = vmatprep.subr.bf16.mxu1 %v755_v18  ;;  %v790_v49 = vld [vmem:[%s971_s0 + $0x38] ss:$20 sps:$4 sm:$0xff]  }
  0x13   :  { %660 = vmatpush3.bf16.msra.mxu0 %v754_v17 }
  0x14   :  { %661 = vmatprep.subr.bf16.mxu0 %v757_v20 }
  0x15   :  { %688 = vmatpush3.bf16.msra.mxu1 %v756_v19 }
  0x16   :  { %689 = vmatprep.subr.bf16.mxu1 %v759_v22 }
  0x17   :  { %662 = vmatpush3.bf16.msra.mxu0 %v758_v21 }
  0x18   :  { %663 = vmatprep.subr.bf16.mxu0 %v761_v24 }
  0x19   :  { %690 = vmatpush3.bf16.msra.mxu1 %v760_v23 }
  0x1a   :  { %691 = vmatprep.subr.bf16.mxu1 %v763_v26 }
  0x1b   :  { %664 = vmatpush3.bf16.msra.mxu0 %v762_v25 }
  0x1c   :  { %665 = vmatprep.subr.bf16.mxu0 %v765_v28 }
  0x1d   :  { %692 = vmatpush3.bf16.msra.mxu1 %v764_v27 }
  0x1e   :  { %693 = vmatprep.subr.bf16.mxu1 %v767_v30 }
  0x1f   :  { %666 = vmatpush3.bf16.msra.mxu0 %v766_v29 }
  0x20   :  { %717 = vmatprep.subr.bf16.mxu0 %v772_v34 }
  0x21   :  { %694 = vmatpush3.bf16.msra.mxu1 %v771_v33 }
  0x22   :  { %439 = vmatmul.mubr.bf16.vlgmr.msra.gmra.mrb[0].mxu0 %v768_v31 }
  0x23   :  { %718 = vmatpush3.bf16.msra.mxu0 %v772_v34  ;;  %446 = vmatprep.mubr.bf16.mxu0 %v780_v39 }
  0x24   :  { %488 = vmatmul.mubr.bf16.vlgmr.msra.gmra.mrb[0].mxu1 %v773_v35  ;;  %719 = vmatprep.subr.bf16.mxu0 %v776_v37 }
  0x25   :  { %495 = vmatprep.mubr.bf16.mxu1 %v784_v42 }
  0x27   :  { %720 = vmatpush3.bf16.msra.mxu0 %v776_v37 }
  0x28   :  { %721 = vmatprep.subr.bf16.mxu0 %v777_v38 }
  0x2a   :  { %447 = vmatmul.mubr.bf16.gmra.mrb[4].mxu0 %v783_v41 }
  0x2b   :  { %722 = vmatpush3.bf16.msra.mxu0 %v777_v38  ;;  %733 = vmatprep.mubr.bf16.mxu0 %v789_v45 }
  0x2c   :  { %723 = vmatprep.subr.bf16.mxu0 %v778_v40  ;;  %496 = vmatmul.mubr.bf16.gmra.mrb[4].mxu1 %v786_v43 }
  0x2f   :  { %724 = vmatpush3.bf16.msra.mxu0 %v778_v40 }
  0x30   :  { %725 = vmatprep.subr.bf16.mxu0 %v779_v44 }
  0x33   :  { %726 = vmatpush3.bf16.msra.mxu0 %v779_v44 }
  0x34   :  { %727 = vmatprep.subr.bf16.mxu0 %v782_v46 }
  0x37   :  { %728 = vmatpush3.bf16.msra.mxu0 %v782_v46 }
  0x38   :  { %729 = vmatprep.subr.bf16.mxu0 %v787_v47 }
  0x3b   :  { %730 = vmatpush3.bf16.msra.mxu0 %v787_v47 }
  0x3c   :  { %731 = vmatprep.subr.bf16.mxu0 %v788_v48 }
  0x3f   :  { %732 = vmatpush3.bf16.msra.mxu0 %v788_v48 }
  0x42   :  { %734 = vmatmul.mubr.bf16.vlgmr.msra.gmra.mrb[8].mxu0 %v790_v49 }
  0xf5   :  { %v667_v50 = vpop.f32.mrb[0].mxu0 }
  0xf6   :  { %v668_v52 = vpop.f32.mrb[1].mxu0 }
  0xf7   :  { %v669_v53 = vadd.f32 %v668_v52, %v667_v50  ;;  %v670_v54 = vpop.f32.mrb[2].mxu0  ;;  %v695_v55 = vpop.f32.mrb[0].mxu1 }
  0xf8   :  { %v671_v56 = vpop.f32.mrb[3].mxu0  ;;  %v696_v59 = vpop.f32.mrb[1].mxu1 }
  0xf9   :  { %v441_v57 = vadd.f32 %v669_v53, %v581_v51  ;;  %v672_v58 = vadd.f32 %v671_v56, %v670_v54  ;;  %v697_v60 = vadd.f32 %v696_v59, %v695_v55  ;;  %v698_v61 = vpop.f32.mrb[2].mxu1 }
  0xfa   :  { %v699_v63 = vpop.f32.mrb[3].mxu1 }
  0xfb   :  { %v444_v62 = vadd.f32 %v672_v58, %v581_v51  ;;  %v700_v0 = vadd.f32 %v699_v63, %v698_v61  ;;  %v490_v1 = vadd.f32 %v697_v60, %v441_v57 }
  0xfd   :  { %v673_v2 = vpop.f32.mrb[4].mxu0  ;;  %v493_v4 = vadd.f32 %v700_v0, %v444_v62 }
  0xfe   :  { %v674_v3 = vpop.f32.mrb[5].mxu0 }
  0xff   :  { %v675_v5 = vadd.f32 %v674_v3, %v673_v2  ;;  %v676_v6 = vpop.f32.mrb[6].mxu0  ;;  %v701_v7 = vpop.f32.mrb[4].mxu1 }
 0x100   :  { %v677_v8 = vpop.f32.mrb[7].mxu0  ;;  %v702_v11 = vpop.f32.mrb[5].mxu1 }
 0x101   :  { %v449_v9 = vadd.f32 %v675_v5, %v581_v51  ;;  %v678_v10 = vadd.f32 %v677_v8, %v676_v6  ;;  %v703_v12 = vadd.f32 %v702_v11, %v701_v7  ;;  %v704_v13 = vpop.f32.mrb[6].mxu1 }
 0x102   :  { %v705_v15 = vpop.f32.mrb[7].mxu1 }
 0x103   :  { %v452_v14 = vadd.f32 %v678_v10, %v581_v51  ;;  %v706_v16 = vadd.f32 %v705_v15, %v704_v13  ;;  %v498_v17 = vadd.f32 %v703_v12, %v449_v9 }
 0x105   :  { %v501_v18 = vadd.f32 %v706_v16, %v452_v14 }
 0x115   :  { %v735_v19 = vpop.f32.mrb[8].mxu0 }
 0x116   :  { %v547_v20 = vadd.f32 %v735_v19, %v498_v17  ;;  %v538_v21 = vpop.f32.mrb[9].mxu0 }
 0x117   :  { %v539_v22 = vadd.f32 %v538_v21, %v490_v1  ;;  %v736_v23 = vpop.f32.mrb[10].mxu0 }
 0x118   :  { %v550_v24 = vadd.f32 %v736_v23, %v501_v18  ;;  %v541_v25 = vpop.f32.mrb[11].mxu0  ;;  %v555_v27 = vmax.f32 %v547_v20, 0.0 }
 0x119   :  { %v542_v26 = vadd.f32 %v541_v25, %v493_v4  ;;  %v553_v29 = vmax.f32 %v539_v22, 0.0 }
 0x11a   :  { %v556_v28 = vmax.f32 %v550_v24, 0.0 }
 0x11b   :  { %v554_v30 = vmax.f32 %v542_v26, 0.0 }
 0x11c   :  { %v648_v31 = vpack.c.bf16 %v556_v28, %v555_v27 }
 0x11d   :  { %v643_v32 = vpack.c.bf16 %v554_v30, %v553_v29 }
 0x11e   :  { %650 = vst [vmem:[%s973_s3 + $0x8] sm:$0xff] %v648_v31  }
 0x11f   :  { %644 = vst [vmem:[%s973_s3] sm:$0xff] %v643_v32  }

// kernel: retinanet_serve.19
= control target key start
LH: loop header
LB: loop body
LE: loop exit
PB: predicated region body
PF: predicated region fallthrough
CT: control target
= control target key end

     0   :  { %s934_s0 = inlined_call_operand.vmem [shape: s32[6], index: 0, kind: input, shape index: {}]   ;;  %s935_s1 = inlined_call_operand.vmem [shape: bf16[768,128], index: 1, kind: input, shape index: {}]   ;;  %s936_s2 = inlined_call_operand.vmem [shape: bf16[3,128,128], index: 2, kind: input, shape index: {}]   ;;  %s937_s3 = inlined_call_operand.vmem [shape: f32[3,1,128], index: 3, kind: input, shape index: {}]   ;;  %s938_s4 = inlined_call_operand.vmem [shape: bf16[768,128], index: 4, kind: output, shape index: {}]  }
   0x1   :  { %s9_s17 = sshll.u32 %s934_s0, 4  ;;  %s10_s17 = int_to_ptr.vmem [resolvable:$true] %s9_s17 }
   0x2   :  { %s818_s18 = scalar_lea.vmem %s10_s17, 16  ;;  %p823_p1 = scmp.lt.s32.totalorder %s10_s17, %s10_s17 }
   0x3   :  { %p819_p0 = scmp.ne.s32.totalorder %s10_s17, %s818_s18  ;;  %p824_p2 = scmp.lt.s32.totalorder %s818_s18, %s818_s18 }
   0x5   :  { %p825_p3 = por %p824_p2, %p823_p1 }
   0x7   :  { %p826_p4 = pnand %p825_p3, %p819_p0 }
   0x9   :  { %829 = shalt.err (!%p826_p4)  }
   0xa   :  { %s840_s19 = smov [#allocation3]  }
   0xb   :  { %12 = dma.vmem_to_smem %s10_s17, 16, %s840_s19, [#allocation2] }
   0xc   :  { %834 = dma.done.wait [#allocation2], 16 }
   0xd   :  { %835 = vsyncadd [#allocation2], 4294967280 }
   0xe   :  { %14 = sfence }
   0xf   :  { %s869_s20 = smov 0  }
  0x10 LB: > { %s875_s0 = sadd.s32 4294967295, %s838_s20   ;;  %p623_p5 = scmp.ge.s32.totalorder %s838_s20, 1  ;;  %s838_s20 = sphi %s869_s20, %s20_s20  }
  0x11   : > { %p171_p6 = scmp.lt.s32.totalorder %s838_s20, 7 }
  0x13   : > { %p172_p7 = pnand %p623_p5, %p171_p6 }
  0x14   : > { %s211_s21 = sld [smem:[#allocation3 + %s875_s0]] (!%p172_p7)  ;;  %s624_s22 = sshll.u32 (!%p172_p7), %s875_s0, 4 }
  0x15   : > { %175 = sbr.rel (%p172_p7) target bundleno = 294 (0x126), region = 32  ;;  %p206_p8 = scmp.lt.s32.totalorder (!%p172_p7), %s624_s22, 95 }
  0x16   : > { %s218_s5 = sld [smem:[#allocation3 + %s875_s0]] (!%p172_p7) }
  0x1a   : > { %p212_p9 = scmp.lt.s32.totalorder (!%p172_p7), %s211_s21, 2 }
  0x1c   : > { %s940_s22 = smov (!%p206_p8, %s624_s22), 95  ;;  %s942_s21 = smov (!%p212_p9, %s211_s21), 2 }
  0x1d   : > { %s625_s23 = sshll.u32 %s940_s22, 2  ;;  %s665_s27 = sshll.u32 %s942_s21, 6 }
  0x1e   : > { %s889_s26 = scalar_lea.vmem %s935_s1, %s625_s23  ;;  %s896_s30 = scalar_lea.vmem %s936_s2, %s665_s27 }
  0x1f   : > { %v810_v0 = vld [vmem:[%s889_s26] sm:$0xff]   ;;  %v803_v3 = vld [vmem:[%s896_s30 + $0x8] sm:$0xff]   ;;  %v804_v4 = vld [vmem:[%s896_s30 + $0x10] sm:$0xff]   ;;  %p219_p10 = scmp.lt.s32.totalorder %s218_s5, 2  ;;  %s921_s11 = scalar_lea.vmem %s938_s4, %s625_s23 }
  0x20   : > { %v811_v1 = vld [vmem:[%s889_s26 + $0x20] sm:$0xff]   ;;  %761 = vmatprep.mubr.bf16.mxu0 %v810_v0  ;;  %v805_v5 = vld [vmem:[%s896_s30 + $0x18] sm:$0xff]   ;;  %v807_v7 = vld [vmem:[%s896_s30 + $0x28] sm:$0xff]  }
  0x21   : > { %769 = vmatprep.mubr.bf16.mxu1 %v811_v1  ;;  %v802_v2 = vld [vmem:[%s896_s30] sm:$0xff]   ;;  %v808_v8 = vld [vmem:[%s896_s30 + $0x30] sm:$0xff]   ;;  %v809_v9 = vld [vmem:[%s896_s30 + $0x38] sm:$0xff]   ;;  %s944_s5 = smov (!%p219_p10, %s218_s5), 2 }
  0x22   : > { %745 = vmatprep.subr.bf16.mxu0 %v802_v2  ;;  %777 = vmatprep.subr.bf16.mxu1 %v802_v2  ;;  %v806_v6 = vld [vmem:[%s896_s30 + $0x20] sm:$0xff]   ;;  %v812_v10 = vld [vmem:[%s889_s26 + $0x8] sm:$0xff]   ;;  %v814_v12 = vld [vmem:[%s889_s26 + $0x10] sm:$0xff]   ;;  %s221_s8 = scalar_lea.vmem %s937_s3, %s944_s5 }
  0x23   : > { %746 = vmatpush3.bf16.msra.mxu0 %v802_v2  ;;  %785 = vmatpush3.bf16.msra.mxu1 %v802_v2  ;;  %v813_v11 = vld [vmem:[%s889_s26 + $0x28] sm:$0xff]   ;;  %v815_v13 = vld [vmem:[%s889_s26 + $0x30] sm:$0xff]   ;;  %v816_v14 = vld [vmem:[%s889_s26 + $0x18] sm:$0xff]  }
  0x24   : > { %747 = vmatprep.subr.bf16.mxu0 %v803_v3  ;;  %778 = vmatprep.subr.bf16.mxu1 %v803_v3  ;;  %v817_v15 = vld [vmem:[%s889_s26 + $0x38] sm:$0xff]   ;;  %v630_v17 = vld [vmem:[%s221_s8] ss:$0 sm:$0xff] }
  0x27   : > { %748 = vmatpush3.bf16.msra.mxu0 %v803_v3  ;;  %786 = vmatpush3.bf16.msra.mxu1 %v803_v3 }
  0x28   : > { %749 = vmatprep.subr.bf16.mxu0 %v804_v4  ;;  %779 = vmatprep.subr.bf16.mxu1 %v804_v4 }
  0x2b   : > { %750 = vmatpush3.bf16.msra.mxu0 %v804_v4  ;;  %787 = vmatpush3.bf16.msra.mxu1 %v804_v4 }
  0x2c   : > { %751 = vmatprep.subr.bf16.mxu0 %v805_v5  ;;  %780 = vmatprep.subr.bf16.mxu1 %v805_v5 }
  0x2f   : > { %752 = vmatpush3.bf16.msra.mxu0 %v805_v5  ;;  %788 = vmatpush3.bf16.msra.mxu1 %v805_v5 }
  0x30   : > { %753 = vmatprep.subr.bf16.mxu0 %v806_v6  ;;  %781 = vmatprep.subr.bf16.mxu1 %v806_v6 }
  0x33   : > { %754 = vmatpush3.bf16.msra.mxu0 %v806_v6  ;;  %789 = vmatpush3.bf16.msra.mxu1 %v806_v6 }
  0x34   : > { %755 = vmatprep.subr.bf16.mxu0 %v807_v7  ;;  %782 = vmatprep.subr.bf16.mxu1 %v807_v7 }
  0x37   : > { %756 = vmatpush3.bf16.msra.mxu0 %v807_v7  ;;  %790 = vmatpush3.bf16.msra.mxu1 %v807_v7 }
  0x38   : > { %757 = vmatprep.subr.bf16.mxu0 %v808_v8  ;;  %783 = vmatprep.subr.bf16.mxu1 %v808_v8 }
  0x3b   : > { %758 = vmatpush3.bf16.msra.mxu0 %v808_v8  ;;  %791 = vmatpush3.bf16.msra.mxu1 %v808_v8 }
  0x3c   : > { %759 = vmatprep.subr.bf16.mxu0 %v809_v9  ;;  %784 = vmatprep.subr.bf16.mxu1 %v809_v9 }
  0x3f   : > { %760 = vmatpush3.bf16.msra.mxu0 %v809_v9  ;;  %792 = vmatpush3.bf16.msra.mxu1 %v809_v9 }
  0x42   : > { %762 = vmatmul.mubr.bf16.vlgmr.msra.gmra.mrb[0].mxu0 %v812_v10  ;;  %770 = vmatmul.mubr.bf16.vlgmr.msra.gmra.mrb[0].mxu1 %v813_v11 }
  0x43   : > { %765 = vmatprep.mubr.bf16.mxu0 %v814_v12  ;;  %773 = vmatprep.mubr.bf16.mxu1 %v815_v13 }
  0x4a   : > { %766 = vmatmul.mubr.bf16.gmra.mrb[4].mxu0 %v816_v14  ;;  %774 = vmatmul.mubr.bf16.gmra.mrb[4].mxu1 %v817_v15 }
 0x115   : > { %v763_v16 = vpop.f32.mrb[0].mxu0  ;;  %v771_v18 = vpop.f32.mrb[0].mxu1 }
 0x116   : > { %v399_v19 = vpop.f32.mrb[1].mxu0  ;;  %v431_v20 = vpop.f32.mrb[1].mxu1  ;;  %v408_v23 = vadd.f32 %v763_v16, %v630_v17  ;;  %v440_v24 = vadd.f32 %v771_v18, %v630_v17 }
 0x117   : > { %v764_v21 = vpop.f32.mrb[2].mxu0  ;;  %v772_v22 = vpop.f32.mrb[2].mxu1  ;;  %v400_v29 = vadd.f32 %v630_v17, %v399_v19  ;;  %v432_v30 = vadd.f32 %v630_v17, %v431_v20 }
 0x118   : > { %v411_v25 = vadd.f32 %v764_v21, %v630_v17  ;;  %v443_v26 = vadd.f32 %v772_v22, %v630_v17  ;;  %v402_v27 = vpop.f32.mrb[3].mxu0  ;;  %v434_v28 = vpop.f32.mrb[3].mxu1 }
 0x119   : > { %v403_v31 = vadd.f32 %v630_v17, %v402_v27  ;;  %v435_v32 = vadd.f32 %v630_v17, %v434_v28 }
 0x11a   : > { %v690_v33 = vpack.c.bf16 %v411_v25, %v408_v23  ;;  %v710_v34 = vpack.c.bf16 %v443_v26, %v440_v24 }
 0x11b   : > { %v685_v35 = vpack.c.bf16 %v403_v31, %v400_v29  ;;  %v705_v36 = vpack.c.bf16 %v435_v32, %v432_v30 }
 0x11c   : > { %722 = vst [vmem:[%s921_s11 + $0x8] sm:$0xff] %v690_v33   ;;  %726 = vst [vmem:[%s921_s11 + $0x28] sm:$0xff] %v710_v34  }
 0x11d   : > { %686 = vst [vmem:[%s921_s11] sm:$0xff] %v685_v35   ;;  %725 = vst [vmem:[%s921_s11 + $0x20] sm:$0xff] %v705_v36   ;;  %v767_v37 = vpop.f32.mrb[4].mxu0  ;;  %v775_v38 = vpop.f32.mrb[4].mxu1 }
 0x11e   : > { %v415_v39 = vpop.f32.mrb[5].mxu0  ;;  %v447_v40 = vpop.f32.mrb[5].mxu1  ;;  %v424_v43 = vadd.f32 %v767_v37, %v630_v17  ;;  %v456_v44 = vadd.f32 %v775_v38, %v630_v17 }
 0x11f   : > { %v768_v41 = vpop.f32.mrb[6].mxu0  ;;  %v776_v42 = vpop.f32.mrb[6].mxu1  ;;  %v416_v49 = vadd.f32 %v630_v17, %v415_v39  ;;  %v448_v50 = vadd.f32 %v630_v17, %v447_v40 }
 0x120   : > { %v427_v45 = vadd.f32 %v768_v41, %v630_v17  ;;  %v459_v46 = vadd.f32 %v776_v42, %v630_v17  ;;  %v418_v47 = vpop.f32.mrb[7].mxu0  ;;  %v450_v48 = vpop.f32.mrb[7].mxu1 }
 0x121   : > { %v419_v51 = vadd.f32 %v630_v17, %v418_v47  ;;  %v451_v52 = vadd.f32 %v630_v17, %v450_v48 }
 0x122   : > { %v700_v53 = vpack.c.bf16 %v427_v45, %v424_v43  ;;  %v720_v54 = vpack.c.bf16 %v459_v46, %v456_v44 }
 0x123   : > { %v695_v55 = vpack.c.bf16 %v419_v51, %v416_v49  ;;  %v715_v56 = vpack.c.bf16 %v451_v52, %v448_v50 }
 0x124   : > { %724 = vst [vmem:[%s921_s11 + $0x18] sm:$0xff] %v700_v53   ;;  %728 = vst [vmem:[%s921_s11 + $0x38] sm:$0xff] %v720_v54  }
 0x125   : > { %723 = vst [vmem:[%s921_s11 + $0x10] sm:$0xff] %v695_v55   ;;  %727 = vst [vmem:[%s921_s11 + $0x30] sm:$0xff] %v715_v56  }
 0x126 PF: > { %s20_s20 = sadd.s32 1, %s838_s20  }
 0x127   : > { %p17_p11 = scmp.ge.s32.totalorder %s20_s20, 8  }
 0x129   :  { %19 = sbr.rel (!%p17_p11) target bundleno = 16 (0x10), region = 68 }

// kernel: retinanet_serve.20
= control target key start
LH: loop header
LB: loop body
LE: loop exit
PB: predicated region body
PF: predicated region fallthrough
CT: control target
= control target key end

     0   :  { %s1957_s0 = inlined_call_operand.vmem [shape: s32[6], index: 0, kind: input, shape index: {}]   ;;  %s1958_s1 = inlined_call_operand.vmem [shape: bf16[768,640], index: 1, kind: input, shape index: {}]   ;;  %s1959_s2 = inlined_call_operand.vmem [shape: bf16[3,640,128], index: 2, kind: input, shape index: {}]   ;;  %s1960_s3 = inlined_call_operand.vmem [shape: f32[3,1,128], index: 3, kind: input, shape index: {}]   ;;  %s1961_s4 = inlined_call_operand.vmem [shape: bf16[768,128], index: 4, kind: output, shape index: {}]  }
   0x1   :  { %s9_s17 = sshll.u32 %s1957_s0, 4  ;;  %s10_s17 = int_to_ptr.vmem [resolvable:$true] %s9_s17 }
   0x2   :  { %s1735_s18 = scalar_lea.vmem %s10_s17, 16  ;;  %p1740_p1 = scmp.lt.s32.totalorder %s10_s17, %s10_s17 }
   0x3   :  { %p1736_p0 = scmp.ne.s32.totalorder %s10_s17, %s1735_s18  ;;  %p1741_p2 = scmp.lt.s32.totalorder %s1735_s18, %s1735_s18 }
   0x5   :  { %p1742_p3 = por %p1741_p2, %p1740_p1 }
   0x7   :  { %p1743_p4 = pnand %p1742_p3, %p1736_p0 }
   0x9   :  { %1746 = shalt.err (!%p1743_p4)  }
   0xa   :  { %s1757_s19 = smov [#allocation3]  }
   0xb   :  { %12 = dma.vmem_to_smem %s10_s17, 16, %s1757_s19, [#allocation2] }
   0xc   :  { %1751 = dma.done.wait [#allocation2], 16 }
   0xd   :  { %1752 = vsyncadd [#allocation2], 4294967280 }
   0xe   :  { %14 = sfence }
   0xf   :  { %s1786_s20 = smov 0  }
  0x10 LB: > { %s1792_s0 = sadd.s32 4294967295, %s1755_s20   ;;  %p1268_p5 = scmp.ge.s32.totalorder %s1755_s20, 1  ;;  %s1755_s20 = sphi %s1786_s20, %s20_s20  }
  0x11   : > { %p172_p6 = scmp.lt.s32.totalorder %s1755_s20, 7 }
  0x13   : > { %p173_p7 = pnand %p1268_p5, %p172_p6 }
  0x14   : > { %s214_s21 = sld [smem:[#allocation3 + %s1792_s0]] (!%p173_p7)  ;;  %s1269_s22 = sshll.u32 (!%p173_p7), %s1792_s0, 4 }
  0x15   : > { %176 = sbr.rel (%p173_p7) target bundleno = 360 (0x168), region = 32  ;;  %p208_p8 = scmp.lt.s32.totalorder (!%p173_p7), %s1269_s22, 95 }
  0x16   : > { %s221_s5 = sld [smem:[#allocation3 + %s1792_s0]] (!%p173_p7) }
  0x1a   : > { %p215_p9 = scmp.lt.s32.totalorder (!%p173_p7), %s214_s21, 2 }
  0x1c   : > { %s1963_s22 = smov (!%p208_p8, %s1269_s22), 95  ;;  %s1965_s21 = smov (!%p215_p9, %s214_s21), 2 }
  0x1d   : > { %s1628_s23 = smul.u32 20, %s1963_s22  ;;  %p222_p10 = scmp.lt.s32.totalorder %s221_s5, 2 }
  0x1e   : > { %s1629_s27 = smul.u32 320, %s1965_s21  ;;  %s1273_s9 = sshll.u32 %s1963_s22, 2 }
  0x1f   : > { %s1804_s26 = scalar_lea.vmem %s1958_s1, %s1628_s23  ;;  %s1967_s5 = smov (!%p222_p10, %s221_s5), 2 }
  0x20   : > { %v1673_v0 = vld [vmem:[%s1804_s26 + $0x4] ss:$20 sps:$4 sm:$0xff]   ;;  %v1676_v1 = vld [vmem:[%s1804_s26 + $0xc] ss:$20 sps:$4 sm:$0xff]   ;;  %s1811_s30 = scalar_lea.vmem %s1959_s2, %s1629_s27  ;;  %v1674_v34 = vld [vmem:[%s1804_s26 + $0x8] ss:$20 sps:$4 sm:$0xff]   ;;  %s224_s8 = scalar_lea.vmem %s1960_s3, %s1967_s5 }
  0x21   : > { %848 = vmatprep.mubr.bf16.mxu0 %v1673_v0  ;;  %945 = vmatprep.mubr.bf16.mxu1 %v1676_v1  ;;  %v1639_v2 = vld [vmem:[%s1811_s30 + $0x40] sm:$0xff]   ;;  %v1643_v6 = vld [vmem:[%s1811_s30 + $0x48] sm:$0xff]   ;;  %v1647_v10 = vld [vmem:[%s1811_s30 + $0x50] sm:$0xff]   ;;  %s1938_s12 = scalar_lea.vmem %s1961_s4, %s1273_s9 }
  0x22   : > { %v1640_v3 = vld [vmem:[%s1811_s30 + $0xc0] sm:$0xff]   ;;  %1436 = vmatprep.subr.bf16.mxu0 %v1639_v2  ;;  %v1644_v7 = vld [vmem:[%s1811_s30 + $0xc8] sm:$0xff]   ;;  %v1648_v11 = vld [vmem:[%s1811_s30 + $0xd0] sm:$0xff]  }
  0x23   : > { %v1641_v4 = vld [vmem:[%s1811_s30] sm:$0xff]   ;;  %1500 = vmatprep.subr.bf16.mxu1 %v1640_v3  ;;  %v1645_v8 = vld [vmem:[%s1811_s30 + $0x8] sm:$0xff]   ;;  %v1649_v12 = vld [vmem:[%s1811_s30 + $0x10] sm:$0xff]  }
  0x24   : > { %v1642_v5 = vld [vmem:[%s1811_s30 + $0x80] sm:$0xff]   ;;  %1437 = vmatpush3.bf16.msra.mxu0 %v1641_v4  ;;  %v1646_v9 = vld [vmem:[%s1811_s30 + $0x88] sm:$0xff]   ;;  %v1650_v13 = vld [vmem:[%s1811_s30 + $0x90] sm:$0xff]  }
  0x25   : > { %1501 = vmatpush3.bf16.msra.mxu1 %v1642_v5  ;;  %1438 = vmatprep.subr.bf16.mxu0 %v1643_v6  ;;  %v1651_v14 = vld [vmem:[%s1811_s30 + $0x58] sm:$0xff]   ;;  %v1655_v18 = vld [vmem:[%s1811_s30 + $0x60] sm:$0xff]   ;;  %v1659_v22 = vld [vmem:[%s1811_s30 + $0x68] sm:$0xff]  }
  0x26   : > { %1502 = vmatprep.subr.bf16.mxu1 %v1644_v7  ;;  %v1652_v15 = vld [vmem:[%s1811_s30 + $0xd8] sm:$0xff]   ;;  %v1656_v19 = vld [vmem:[%s1811_s30 + $0xe0] sm:$0xff]   ;;  %v1660_v23 = vld [vmem:[%s1811_s30 + $0xe8] sm:$0xff]  }
  0x27   : > { %v1653_v16 = vld [vmem:[%s1811_s30 + $0x18] sm:$0xff]   ;;  %v1657_v20 = vld [vmem:[%s1811_s30 + $0x20] sm:$0xff]   ;;  %v1661_v24 = vld [vmem:[%s1811_s30 + $0x28] sm:$0xff]  }
  0x28   : > { %1439 = vmatpush3.bf16.msra.mxu0 %v1645_v8  ;;  %v1654_v17 = vld [vmem:[%s1811_s30 + $0x98] sm:$0xff]   ;;  %v1658_v21 = vld [vmem:[%s1811_s30 + $0xa0] sm:$0xff]   ;;  %v1662_v25 = vld [vmem:[%s1811_s30 + $0xa8] sm:$0xff]  }
  0x29   : > { %1503 = vmatpush3.bf16.msra.mxu1 %v1646_v9  ;;  %1440 = vmatprep.subr.bf16.mxu0 %v1647_v10  ;;  %v1663_v26 = vld [vmem:[%s1811_s30 + $0x70] sm:$0xff]   ;;  %v1667_v30 = vld [vmem:[%s1811_s30 + $0x78] sm:$0xff]   ;;  %v1678_v36 = vld [vmem:[%s1804_s26 + $0x2c] ss:$20 sps:$4 sm:$0xff]  }
  0x2a   : > { %1504 = vmatprep.subr.bf16.mxu1 %v1648_v11  ;;  %v1664_v27 = vld [vmem:[%s1811_s30 + $0xf0] sm:$0xff]   ;;  %v1668_v31 = vld [vmem:[%s1811_s30 + $0xf8] sm:$0xff]   ;;  %v1677_v37 = vld [vmem:[%s1811_s30 + $0x100] sm:$0xff]  }
  0x2b   : > { %v1665_v28 = vld [vmem:[%s1811_s30 + $0x30] sm:$0xff]   ;;  %v1669_v33 = vld [vmem:[%s1811_s30 + $0x38] sm:$0xff]   ;;  %v1684_v39 = vld [vmem:[%s1811_s30 + $0x108] sm:$0xff]  }
  0x2c   : > { %1441 = vmatpush3.bf16.msra.mxu0 %v1649_v12  ;;  %v1666_v29 = vld [vmem:[%s1811_s30 + $0xb0] sm:$0xff]   ;;  %v1670_v35 = vld [vmem:[%s1811_s30 + $0xb8] sm:$0xff]   ;;  %v1705_v46 = vld [vmem:[%s1811_s30 + $0x120] sm:$0xff]  }
  0x2d   : > { %1505 = vmatpush3.bf16.msra.mxu1 %v1650_v13  ;;  %1442 = vmatprep.subr.bf16.mxu0 %v1651_v14  ;;  %v1671_v32 = vld [vmem:[%s1804_s26] ss:$20 sps:$4 sm:$0xff]   ;;  %v1682_v41 = vld [vmem:[%s1804_s26 + $0x28] ss:$20 sps:$4 sm:$0xff]   ;;  %v1683_v42 = vld [vmem:[%s1804_s26 + $0x30] ss:$20 sps:$4 sm:$0xff]  }
  0x2e   : > { %1506 = vmatprep.subr.bf16.mxu1 %v1652_v15  ;;  %v1680_v38 = vld [vmem:[%s1804_s26 + $0x34] ss:$20 sps:$4 sm:$0xff]   ;;  %v1687_v44 = vld [vmem:[%s1804_s26 + $0x5c] ss:$20 sps:$4 sm:$0xff]   ;;  %v1690_v48 = vld [vmem:[%s1804_s26 + $0x58] ss:$20 sps:$4 sm:$0xff]  }
  0x2f   : > { %v1691_v40 = vld [vmem:[%s1811_s30 + $0x110] sm:$0xff]   ;;  %v1698_v45 = vld [vmem:[%s1811_s30 + $0x118] sm:$0xff]   ;;  %v1712_v51 = vld [vmem:[%s1811_s30 + $0x128] sm:$0xff]  }
  0x30   : > { %1443 = vmatpush3.bf16.msra.mxu0 %v1653_v16  ;;  %v1685_v43 = vld [vmem:[%s1804_s26 + $0x54] ss:$20 sps:$4 sm:$0xff]   ;;  %v1689_v47 = vld [vmem:[%s1804_s26 + $0x50] ss:$20 sps:$4 sm:$0xff]   ;;  %v1696_v52 = vld [vmem:[%s1804_s26 + $0x78] ss:$20 sps:$4 sm:$0xff]  }
  0x31   : > { %1507 = vmatpush3.bf16.msra.mxu1 %v1654_v17  ;;  %1444 = vmatprep.subr.bf16.mxu0 %v1655_v18  ;;  %v1692_v49 = vld [vmem:[%s1804_s26 + $0x7c] ss:$20 sps:$4 sm:$0xff]   ;;  %v1694_v50 = vld [vmem:[%s1804_s26 + $0x84] ss:$20 sps:$4 sm:$0xff]   ;;  %v1697_v54 = vld [vmem:[%s1804_s26 + $0x80] ss:$20 sps:$4 sm:$0xff]  }
  0x32   : > { %1508 = vmatprep.subr.bf16.mxu1 %v1656_v19  ;;  %v1719_v53 = vld [vmem:[%s1811_s30 + $0x130] sm:$0xff]   ;;  %v1699_v55 = vld [vmem:[%s1804_s26 + $0xa4] ss:$20 sps:$4 sm:$0xff]   ;;  %v1701_v56 = vld [vmem:[%s1804_s26 + $0xac] ss:$20 sps:$4 sm:$0xff]  }
  0x33   : > { %v1726_v57 = vld [vmem:[%s1811_s30 + $0x138] sm:$0xff]   ;;  %v1703_v58 = vld [vmem:[%s1804_s26 + $0xa0] ss:$20 sps:$4 sm:$0xff]   ;;  %v1711_v63 = vld [vmem:[%s1804_s26 + $0xd0] ss:$20 sps:$4 sm:$0xff]  }
  0x34   : > { %1445 = vmatpush3.bf16.msra.mxu0 %v1657_v20  ;;  %v1704_v59 = vld [vmem:[%s1804_s26 + $0xa8] ss:$20 sps:$4 sm:$0xff]   ;;  %v1706_v60 = vld [vmem:[%s1804_s26 + $0xcc] ss:$20 sps:$4 sm:$0xff]   ;;  %v1717_v2 = vld [vmem:[%s1804_s26 + $0xf0] ss:$20 sps:$4 sm:$0xff]  }
  0x35   : > { %1509 = vmatpush3.bf16.msra.mxu1 %v1658_v21  ;;  %1446 = vmatprep.subr.bf16.mxu0 %v1659_v22  ;;  %v1708_v61 = vld [vmem:[%s1804_s26 + $0xd4] ss:$20 sps:$4 sm:$0xff]   ;;  %v1715_v1 = vld [vmem:[%s1804_s26 + $0xfc] ss:$20 sps:$4 sm:$0xff]   ;;  %v1718_v3 = vld [vmem:[%s1804_s26 + $0xf8] ss:$20 sps:$4 sm:$0xff]  }
  0x36   : > { %1510 = vmatprep.subr.bf16.mxu1 %v1660_v23  ;;  %v1710_v62 = vld [vmem:[%s1804_s26 + $0xc8] ss:$20 sps:$4 sm:$0xff]   ;;  %v1722_v5 = vld [vmem:[%s1804_s26 + $0x124] ss:$20 sps:$4 sm:$0xff]   ;;  %v1725_v7 = vld [vmem:[%s1804_s26 + $0x120] ss:$20 sps:$4 sm:$0xff]  }
  0x37   : > { %v1713_v0 = vld [vmem:[%s1804_s26 + $0xf4] ss:$20 sps:$4 sm:$0xff]   ;;  %v1720_v4 = vld [vmem:[%s1804_s26 + $0x11c] ss:$20 sps:$4 sm:$0xff]   ;;  %v1724_v6 = vld [vmem:[%s1804_s26 + $0x118] ss:$20 sps:$4 sm:$0xff]  }
  0x38   : > { %1447 = vmatpush3.bf16.msra.mxu0 %v1661_v24  ;;  %v1727_v8 = vld [vmem:[%s1804_s26 + $0x10] ss:$20 sps:$4 sm:$0xff]   ;;  %v1729_v10 = vld [vmem:[%s1804_s26 + $0x38] ss:$20 sps:$4 sm:$0xff]   ;;  %v1731_v12 = vld [vmem:[%s1804_s26 + $0x60] ss:$20 sps:$4 sm:$0xff]  }
  0x39   : > { %1511 = vmatpush3.bf16.msra.mxu1 %v1662_v25  ;;  %1448 = vmatprep.subr.bf16.mxu0 %v1663_v26  ;;  %v1728_v9 = vld [vmem:[%s1804_s26 + $0xb0] ss:$20 sps:$4 sm:$0xff]   ;;  %v1730_v11 = vld [vmem:[%s1804_s26 + $0xd8] ss:$20 sps:$4 sm:$0xff]   ;;  %v1732_v13 = vld [vmem:[%s1804_s26 + $0x100] ss:$20 sps:$4 sm:$0xff]  }
  0x3a   : > { %1512 = vmatprep.subr.bf16.mxu1 %v1664_v27  ;;  %v1733_v14 = vld [vmem:[%s1804_s26 + $0x88] ss:$20 sps:$4 sm:$0xff]   ;;  %v1895_v18 = vld [vmem:[%s224_s8] ss:$0 sm:$0xff] }
  0x3b   : > { %v1734_v15 = vld [vmem:[%s1804_s26 + $0x128] ss:$20 sps:$4 sm:$0xff]  }
  0x3c   : > { %1449 = vmatpush3.bf16.msra.mxu0 %v1665_v28 }
  0x3d   : > { %1513 = vmatpush3.bf16.msra.mxu1 %v1666_v29  ;;  %1450 = vmatprep.subr.bf16.mxu0 %v1667_v30 }
  0x3e   : > { %1514 = vmatprep.subr.bf16.mxu1 %v1668_v31 }
  0x40   : > { %1451 = vmatpush3.bf16.msra.mxu0 %v1669_v33 }
  0x41   : > { %1515 = vmatpush3.bf16.msra.mxu1 %v1670_v35  ;;  %1580 = vmatprep.subr.bf16.mxu0 %v1677_v37 }
  0x42   : > { %1612 = vmatprep.subr.bf16.mxu1 %v1677_v37 }
  0x43   : > { %849 = vmatmul.mubr.bf16.vlgmr.msra.gmra.mrb[0].mxu0 %v1671_v32 }
  0x44   : > { %946 = vmatmul.mubr.bf16.vlgmr.msra.gmra.mrb[0].mxu1 %v1674_v34  ;;  %1581 = vmatpush3.bf16.msra.mxu0 %v1677_v37 }
  0x45   : > { %1620 = vmatpush3.bf16.msra.mxu1 %v1677_v37  ;;  %856 = vmatprep.mubr.bf16.mxu0 %v1678_v36 }
  0x46   : > { %953 = vmatprep.mubr.bf16.mxu1 %v1680_v38  ;;  %1582 = vmatprep.subr.bf16.mxu0 %v1684_v39 }
  0x47   : > { %1613 = vmatprep.subr.bf16.mxu1 %v1684_v39 }
  0x48   : > { %1583 = vmatpush3.bf16.msra.mxu0 %v1684_v39 }
  0x49   : > { %1621 = vmatpush3.bf16.msra.mxu1 %v1684_v39  ;;  %1584 = vmatprep.subr.bf16.mxu0 %v1691_v40 }
  0x4a   : > { %1614 = vmatprep.subr.bf16.mxu1 %v1691_v40 }
  0x4b   : > { %857 = vmatmul.mubr.bf16.gmra.mrb[4].mxu0 %v1682_v41 }
  0x4c   : > { %954 = vmatmul.mubr.bf16.gmra.mrb[4].mxu1 %v1683_v42  ;;  %864 = vmatprep.mubr.bf16.mxu0 %v1685_v43 }
  0x4d   : > { %961 = vmatprep.mubr.bf16.mxu1 %v1687_v44  ;;  %1585 = vmatpush3.bf16.msra.mxu0 %v1691_v40 }
  0x4e   : > { %1622 = vmatpush3.bf16.msra.mxu1 %v1691_v40  ;;  %1586 = vmatprep.subr.bf16.mxu0 %v1698_v45 }
  0x4f   : > { %1615 = vmatprep.subr.bf16.mxu1 %v1698_v45 }
  0x51   : > { %1587 = vmatpush3.bf16.msra.mxu0 %v1698_v45 }
  0x52   : > { %1623 = vmatpush3.bf16.msra.mxu1 %v1698_v45  ;;  %1588 = vmatprep.subr.bf16.mxu0 %v1705_v46 }
  0x53   : > { %865 = vmatmul.mubr.bf16.gmra.mrb[8].mxu0 %v1689_v47  ;;  %1616 = vmatprep.subr.bf16.mxu1 %v1705_v46 }
  0x54   : > { %962 = vmatmul.mubr.bf16.gmra.mrb[8].mxu1 %v1690_v48  ;;  %872 = vmatprep.mubr.bf16.mxu0 %v1692_v49 }
  0x55   : > { %969 = vmatprep.mubr.bf16.mxu1 %v1694_v50  ;;  %1589 = vmatpush3.bf16.msra.mxu0 %v1705_v46 }
  0x56   : > { %1624 = vmatpush3.bf16.msra.mxu1 %v1705_v46  ;;  %1590 = vmatprep.subr.bf16.mxu0 %v1712_v51 }
  0x57   : > { %1617 = vmatprep.subr.bf16.mxu1 %v1712_v51 }
  0x59   : > { %1591 = vmatpush3.bf16.msra.mxu0 %v1712_v51 }
  0x5a   : > { %1625 = vmatpush3.bf16.msra.mxu1 %v1712_v51  ;;  %1592 = vmatprep.subr.bf16.mxu0 %v1719_v53 }
  0x5b   : > { %873 = vmatmul.mubr.bf16.gmra.mrb[12].mxu0 %v1696_v52  ;;  %1618 = vmatprep.subr.bf16.mxu1 %v1719_v53 }
  0x5c   : > { %970 = vmatmul.mubr.bf16.gmra.mrb[12].mxu1 %v1697_v54  ;;  %880 = vmatprep.mubr.bf16.mxu0 %v1699_v55 }
  0x5d   : > { %977 = vmatprep.mubr.bf16.mxu1 %v1701_v56  ;;  %1593 = vmatpush3.bf16.msra.mxu0 %v1719_v53 }
  0x5e   : > { %1626 = vmatpush3.bf16.msra.mxu1 %v1719_v53  ;;  %1594 = vmatprep.subr.bf16.mxu0 %v1726_v57 }
  0x5f   : > { %1619 = vmatprep.subr.bf16.mxu1 %v1726_v57 }
  0x61   : > { %1595 = vmatpush3.bf16.msra.mxu0 %v1726_v57 }
  0x62   : > { %1627 = vmatpush3.bf16.msra.mxu1 %v1726_v57 }
  0x63   : > { %881 = vmatmul.mubr.bf16.gmra.mrb[16].mxu0 %v1703_v58 }
  0x64   : > { %978 = vmatmul.mubr.bf16.gmra.mrb[16].mxu1 %v1704_v59  ;;  %888 = vmatprep.mubr.bf16.mxu0 %v1706_v60 }
  0x65   : > { %985 = vmatprep.mubr.bf16.mxu1 %v1708_v61 }
  0x6b   : > { %889 = vmatmul.mubr.bf16.gmra.mrb[20].mxu0 %v1710_v62 }
  0x6c   : > { %986 = vmatmul.mubr.bf16.gmra.mrb[20].mxu1 %v1711_v63  ;;  %896 = vmatprep.mubr.bf16.mxu0 %v1713_v0 }
  0x6d   : > { %993 = vmatprep.mubr.bf16.mxu1 %v1715_v1 }
  0x73   : > { %897 = vmatmul.mubr.bf16.gmra.mrb[24].mxu0 %v1717_v2 }
  0x74   : > { %994 = vmatmul.mubr.bf16.gmra.mrb[24].mxu1 %v1718_v3  ;;  %904 = vmatprep.mubr.bf16.mxu0 %v1720_v4 }
  0x75   : > { %1001 = vmatprep.mubr.bf16.mxu1 %v1722_v5 }
  0x7b   : > { %905 = vmatmul.mubr.bf16.gmra.mrb[28].mxu0 %v1724_v6 }
  0x7c   : > { %1002 = vmatmul.mubr.bf16.gmra.mrb[28].mxu1 %v1725_v7  ;;  %1596 = vmatprep.mubr.bf16.mxu0 %v1727_v8 }
  0x7d   : > { %1604 = vmatprep.mubr.bf16.mxu1 %v1728_v9 }
  0x83   : > { %1597 = vmatmul.mubr.bf16.vlgmr.msra.gmra.mrb[32].mxu0 %v1729_v10 }
  0x84   : > { %1605 = vmatmul.mubr.bf16.vlgmr.msra.gmra.mrb[32].mxu1 %v1730_v11  ;;  %1600 = vmatprep.mubr.bf16.mxu0 %v1731_v12 }
  0x85   : > { %1608 = vmatprep.mubr.bf16.mxu1 %v1732_v13 }
  0x8b   : > { %1601 = vmatmul.mubr.bf16.gmra.mrb[36].mxu0 %v1733_v14 }
  0x8c   : > { %1609 = vmatmul.mubr.bf16.gmra.mrb[36].mxu1 %v1734_v15 }
 0x116   : > { %v1452_v16 = vpop.f32.mrb[0].mxu0 }
 0x117   : > { %v1516_v17 = vpop.f32.mrb[0].mxu1  ;;  %v1453_v19 = vpop.f32.mrb[1].mxu0 }
 0x118   : > { %v1454_v20 = vadd.f32 %v1453_v19, %v1452_v16  ;;  %v1517_v21 = vpop.f32.mrb[1].mxu1  ;;  %v1455_v22 = vpop.f32.mrb[2].mxu0 }
 0x119   : > { %v1518_v23 = vadd.f32 %v1517_v21, %v1516_v17  ;;  %v1519_v24 = vpop.f32.mrb[2].mxu1  ;;  %v1456_v25 = vpop.f32.mrb[3].mxu0 }
 0x11a   : > { %v851_v26 = vadd.f32 %v1454_v20, %v1895_v18  ;;  %v1457_v27 = vadd.f32 %v1456_v25, %v1455_v22  ;;  %v1520_v28 = vpop.f32.mrb[3].mxu1 }
 0x11b   : > { %v1521_v29 = vadd.f32 %v1520_v28, %v1519_v24 }
 0x11c   : > { %v854_v30 = vadd.f32 %v1457_v27, %v1895_v18  ;;  %v1899_v31 = vadd.f32 %v1518_v23, %v851_v26 }
 0x11e   : > { %v1458_v32 = vpop.f32.mrb[4].mxu0  ;;  %v1901_v33 = vadd.f32 %v1521_v29, %v854_v30 }
 0x11f   : > { %v1522_v34 = vpop.f32.mrb[4].mxu1  ;;  %v1459_v35 = vpop.f32.mrb[5].mxu0 }
 0x120   : > { %v1460_v36 = vadd.f32 %v1459_v35, %v1458_v32  ;;  %v1523_v37 = vpop.f32.mrb[5].mxu1  ;;  %v1461_v38 = vpop.f32.mrb[6].mxu0 }
 0x121   : > { %v1524_v39 = vadd.f32 %v1523_v37, %v1522_v34  ;;  %v1525_v40 = vpop.f32.mrb[6].mxu1  ;;  %v1462_v41 = vpop.f32.mrb[7].mxu0 }
 0x122   : > { %v859_v42 = vadd.f32 %v1460_v36, %v1895_v18  ;;  %v1463_v43 = vadd.f32 %v1462_v41, %v1461_v38  ;;  %v1526_v44 = vpop.f32.mrb[7].mxu1 }
 0x123   : > { %v1527_v45 = vadd.f32 %v1526_v44, %v1525_v40 }
 0x124   : > { %v862_v46 = vadd.f32 %v1463_v43, %v1895_v18  ;;  %v1905_v47 = vadd.f32 %v1524_v39, %v859_v42 }
 0x126   : > { %v1464_v48 = vpop.f32.mrb[8].mxu0  ;;  %v1907_v49 = vadd.f32 %v1527_v45, %v862_v46 }
 0x127   : > { %v1528_v50 = vpop.f32.mrb[8].mxu1  ;;  %v1465_v51 = vpop.f32.mrb[9].mxu0 }
 0x128   : > { %v1466_v52 = vadd.f32 %v1465_v51, %v1464_v48  ;;  %v1529_v53 = vpop.f32.mrb[9].mxu1  ;;  %v1467_v54 = vpop.f32.mrb[10].mxu0 }
 0x129   : > { %v1530_v55 = vadd.f32 %v1529_v53, %v1528_v50  ;;  %v1531_v56 = vpop.f32.mrb[10].mxu1  ;;  %v1468_v57 = vpop.f32.mrb[11].mxu0 }
 0x12a   : > { %v867_v58 = vadd.f32 %v1466_v52, %v1895_v18  ;;  %v1469_v59 = vadd.f32 %v1468_v57, %v1467_v54  ;;  %v1532_v60 = vpop.f32.mrb[11].mxu1 }
 0x12b   : > { %v1533_v61 = vadd.f32 %v1532_v60, %v1531_v56 }
 0x12c   : > { %v870_v62 = vadd.f32 %v1469_v59, %v1895_v18  ;;  %v1911_v63 = vadd.f32 %v1530_v55, %v867_v58 }
 0x12e   : > { %v1470_v0 = vpop.f32.mrb[12].mxu0  ;;  %v1913_v1 = vadd.f32 %v1533_v61, %v870_v62 }
 0x12f   : > { %v1534_v2 = vpop.f32.mrb[12].mxu1  ;;  %v1471_v3 = vpop.f32.mrb[13].mxu0 }
 0x130   : > { %v1472_v4 = vadd.f32 %v1471_v3, %v1470_v0  ;;  %v1535_v5 = vpop.f32.mrb[13].mxu1  ;;  %v1473_v6 = vpop.f32.mrb[14].mxu0 }
 0x131   : > { %v1536_v7 = vadd.f32 %v1535_v5, %v1534_v2  ;;  %v1537_v8 = vpop.f32.mrb[14].mxu1  ;;  %v1474_v9 = vpop.f32.mrb[15].mxu0 }
 0x132   : > { %v875_v10 = vadd.f32 %v1472_v4, %v1895_v18  ;;  %v1475_v11 = vadd.f32 %v1474_v9, %v1473_v6  ;;  %v1538_v12 = vpop.f32.mrb[15].mxu1 }
 0x133   : > { %v1539_v13 = vadd.f32 %v1538_v12, %v1537_v8 }
 0x134   : > { %v878_v14 = vadd.f32 %v1475_v11, %v1895_v18  ;;  %v1917_v15 = vadd.f32 %v1536_v7, %v875_v10 }
 0x136   : > { %v1476_v16 = vpop.f32.mrb[16].mxu0  ;;  %v1919_v17 = vadd.f32 %v1539_v13, %v878_v14 }
 0x137   : > { %v1540_v19 = vpop.f32.mrb[16].mxu1  ;;  %v1477_v20 = vpop.f32.mrb[17].mxu0 }
 0x138   : > { %v1478_v21 = vadd.f32 %v1477_v20, %v1476_v16  ;;  %v1541_v22 = vpop.f32.mrb[17].mxu1  ;;  %v1479_v23 = vpop.f32.mrb[18].mxu0 }
 0x139   : > { %v1542_v24 = vadd.f32 %v1541_v22, %v1540_v19  ;;  %v1543_v25 = vpop.f32.mrb[18].mxu1  ;;  %v1480_v26 = vpop.f32.mrb[19].mxu0 }
 0x13a   : > { %v883_v27 = vadd.f32 %v1478_v21, %v1895_v18  ;;  %v1481_v28 = vadd.f32 %v1480_v26, %v1479_v23  ;;  %v1544_v29 = vpop.f32.mrb[19].mxu1 }
 0x13b   : > { %v1545_v30 = vadd.f32 %v1544_v29, %v1543_v25 }
 0x13c   : > { %v886_v32 = vadd.f32 %v1481_v28, %v1895_v18  ;;  %v980_v34 = vadd.f32 %v1542_v24, %v883_v27 }
 0x13e   : > { %v1482_v35 = vpop.f32.mrb[20].mxu0  ;;  %v1923_v36 = vadd.f32 %v1545_v30, %v886_v32 }
 0x13f   : > { %v1546_v37 = vpop.f32.mrb[20].mxu1  ;;  %v1483_v38 = vpop.f32.mrb[21].mxu0 }
 0x140   : > { %v1484_v39 = vadd.f32 %v1483_v38, %v1482_v35  ;;  %v1547_v40 = vpop.f32.mrb[21].mxu1  ;;  %v1485_v41 = vpop.f32.mrb[22].mxu0 }
 0x141   : > { %v1548_v42 = vadd.f32 %v1547_v40, %v1546_v37  ;;  %v1549_v43 = vpop.f32.mrb[22].mxu1  ;;  %v1486_v44 = vpop.f32.mrb[23].mxu0 }
 0x142   : > { %v891_v45 = vadd.f32 %v1484_v39, %v1895_v18  ;;  %v1487_v46 = vadd.f32 %v1486_v44, %v1485_v41  ;;  %v1550_v48 = vpop.f32.mrb[23].mxu1 }
 0x143   : > { %v1551_v50 = vadd.f32 %v1550_v48, %v1549_v43 }
 0x144   : > { %v894_v51 = vadd.f32 %v1487_v46, %v1895_v18  ;;  %v988_v52 = vadd.f32 %v1548_v42, %v891_v45 }
 0x146   : > { %v1488_v53 = vpop.f32.mrb[24].mxu0  ;;  %v991_v54 = vadd.f32 %v1551_v50, %v894_v51 }
 0x147   : > { %v1552_v55 = vpop.f32.mrb[24].mxu1  ;;  %v1489_v56 = vpop.f32.mrb[25].mxu0 }
 0x148   : > { %v1490_v57 = vadd.f32 %v1489_v56, %v1488_v53  ;;  %v1553_v58 = vpop.f32.mrb[25].mxu1  ;;  %v1491_v59 = vpop.f32.mrb[26].mxu0 }
 0x149   : > { %v1554_v60 = vadd.f32 %v1553_v58, %v1552_v55  ;;  %v1555_v61 = vpop.f32.mrb[26].mxu1  ;;  %v1492_v62 = vpop.f32.mrb[27].mxu0 }
 0x14a   : > { %v899_v0 = vadd.f32 %v1490_v57, %v1895_v18  ;;  %v1493_v2 = vadd.f32 %v1492_v62, %v1491_v59  ;;  %v1556_v3 = vpop.f32.mrb[27].mxu1 }
 0x14b   : > { %v1557_v4 = vadd.f32 %v1556_v3, %v1555_v61 }
 0x14c   : > { %v902_v5 = vadd.f32 %v1493_v2, %v1895_v18  ;;  %v996_v6 = vadd.f32 %v1554_v60, %v899_v0 }
 0x14e   : > { %v1494_v7 = vpop.f32.mrb[28].mxu0  ;;  %v999_v8 = vadd.f32 %v1557_v4, %v902_v5 }
 0x14f   : > { %v1558_v9 = vpop.f32.mrb[28].mxu1  ;;  %v1495_v10 = vpop.f32.mrb[29].mxu0 }
 0x150   : > { %v1496_v11 = vadd.f32 %v1495_v10, %v1494_v7  ;;  %v1559_v12 = vpop.f32.mrb[29].mxu1  ;;  %v1497_v13 = vpop.f32.mrb[30].mxu0 }
 0x151   : > { %v1560_v14 = vadd.f32 %v1559_v12, %v1558_v9  ;;  %v1561_v16 = vpop.f32.mrb[30].mxu1  ;;  %v1498_v19 = vpop.f32.mrb[31].mxu0 }
 0x152   : > { %v907_v20 = vadd.f32 %v1496_v11, %v1895_v18  ;;  %v1499_v21 = vadd.f32 %v1498_v19, %v1497_v13  ;;  %v1562_v22 = vpop.f32.mrb[31].mxu1 }
 0x153   : > { %v1563_v23 = vadd.f32 %v1562_v22, %v1561_v16 }
 0x154   : > { %v910_v24 = vadd.f32 %v1499_v21, %v1895_v18  ;;  %v1004_v25 = vadd.f32 %v1560_v14, %v907_v20 }
 0x156   : > { %v1598_v26 = vpop.f32.mrb[32].mxu0  ;;  %v1007_v27 = vadd.f32 %v1563_v23, %v910_v24 }
 0x157   : > { %v1053_v28 = vadd.f32 %v1598_v26, %v1905_v47  ;;  %v1606_v29 = vpop.f32.mrb[32].mxu1  ;;  %v1044_v30 = vpop.f32.mrb[33].mxu0 }
 0x158   : > { %v1085_v32 = vadd.f32 %v1606_v29, %v988_v52  ;;  %v1045_v35 = vadd.f32 %v1044_v30, %v1899_v31  ;;  %v1076_v37 = vpop.f32.mrb[33].mxu1  ;;  %v1599_v38 = vpop.f32.mrb[34].mxu0 }
 0x159   : > { %v1077_v39 = vadd.f32 %v1076_v37, %v980_v34  ;;  %v1056_v40 = vadd.f32 %v1599_v38, %v1907_v49  ;;  %v1607_v41 = vpop.f32.mrb[34].mxu1  ;;  %v1047_v42 = vpop.f32.mrb[35].mxu0 }
 0x15a   : > { %v1088_v18 = vadd.f32 %v1607_v41, %v991_v54  ;;  %v1048_v47 = vadd.f32 %v1047_v42, %v1901_v33  ;;  %v1079_v31 = vpop.f32.mrb[35].mxu1 }
 0x15b   : > { %v1397_v43 = vpack.c.bf16 %v1056_v40, %v1053_v28  ;;  %v1080_v34 = vadd.f32 %v1079_v31, %v1923_v36 }
 0x15c   : > { %v1417_v44 = vpack.c.bf16 %v1088_v18, %v1085_v32  ;;  %v1392_v49 = vpack.c.bf16 %v1048_v47, %v1045_v35 }
 0x15d   : > { %1429 = vst [vmem:[%s1938_s12 + $0x8] sm:$0xff] %v1397_v43   ;;  %v1412_v45 = vpack.c.bf16 %v1080_v34, %v1077_v39 }
 0x15e   : > { %1433 = vst [vmem:[%s1938_s12 + $0x28] sm:$0xff] %v1417_v44   ;;  %1393 = vst [vmem:[%s1938_s12] sm:$0xff] %v1392_v49   ;;  %v1602_v46 = vpop.f32.mrb[36].mxu0 }
 0x15f   : > { %1432 = vst [vmem:[%s1938_s12 + $0x20] sm:$0xff] %v1412_v45   ;;  %v1069_v48 = vadd.f32 %v1602_v46, %v1917_v15  ;;  %v1610_v50 = vpop.f32.mrb[36].mxu1  ;;  %v1060_v51 = vpop.f32.mrb[37].mxu0 }
 0x160   : > { %v1101_v52 = vadd.f32 %v1610_v50, %v1004_v25  ;;  %v1061_v33 = vadd.f32 %v1060_v51, %v1911_v63  ;;  %v1092_v53 = vpop.f32.mrb[37].mxu1  ;;  %v1603_v36 = vpop.f32.mrb[38].mxu0 }
 0x161   : > { %v1093_v54 = vadd.f32 %v1092_v53, %v996_v6  ;;  %v1072_v55 = vadd.f32 %v1603_v36, %v1919_v17  ;;  %v1611_v56 = vpop.f32.mrb[38].mxu1  ;;  %v1063_v57 = vpop.f32.mrb[39].mxu0 }
 0x162   : > { %v1104_v58 = vadd.f32 %v1611_v56, %v1007_v27  ;;  %v1064_v59 = vadd.f32 %v1063_v57, %v1913_v1  ;;  %v1095_v15 = vpop.f32.mrb[39].mxu1 }
 0x163   : > { %v1407_v60 = vpack.c.bf16 %v1072_v55, %v1069_v48  ;;  %v1096_v61 = vadd.f32 %v1095_v15, %v999_v8 }
 0x164   : > { %v1427_v62 = vpack.c.bf16 %v1104_v58, %v1101_v52  ;;  %v1402_v0 = vpack.c.bf16 %v1064_v59, %v1061_v33 }
 0x165   : > { %1431 = vst [vmem:[%s1938_s12 + $0x18] sm:$0xff] %v1407_v60   ;;  %v1422_v63 = vpack.c.bf16 %v1096_v61, %v1093_v54 }
 0x166   : > { %1435 = vst [vmem:[%s1938_s12 + $0x38] sm:$0xff] %v1427_v62   ;;  %1430 = vst [vmem:[%s1938_s12 + $0x10] sm:$0xff] %v1402_v0  }
 0x167   : > { %1434 = vst [vmem:[%s1938_s12 + $0x30] sm:$0xff] %v1422_v63  }
 0x168 PF: > { %s20_s20 = sadd.s32 1, %s1755_s20  }
 0x169   : > { %p17_p11 = scmp.ge.s32.totalorder %s20_s20, 8  }
 0x16b   :  { %19 = sbr.rel (!%p17_p11) target bundleno = 16 (0x10), region = 68 }

// kernel: retinanet_serve.23
= control target key start
LH: loop header
LB: loop body
LE: loop exit
PB: predicated region body
PF: predicated region fallthrough
CT: control target
= control target key end

     0   :  { %s2540_s12 = smov 0   ;;  %s2929_s0 = inlined_call_operand.vmem [shape: bf16[768,640], index: 0, kind: input, shape index: {}]   ;;  %s2930_s1 = inlined_call_operand.vmem [shape: bf16[640,128], index: 1, kind: input, shape index: {}]   ;;  %s2931_s2 = inlined_call_operand.vmem [shape: f32[1,128], index: 2, kind: input, shape index: {}]   ;;  %s2932_s3 = inlined_call_operand.vmem [shape: bf16[768,128], index: 3, kind: output, shape index: {}]  }
   0x1 LB: > { %s1748_s13 = sadd.s32 4294967295, %s2518_s12   ;;  %p1752_p0 = scmp.ge.s32.totalorder %s2518_s12, 1  ;;  %s2518_s12 = sphi %s2540_s12, %s13_s12  }
   0x2   : > { %p139_p1 = scmp.lt.s32.totalorder %s2518_s12, 4 }
   0x4   : > { %p140_p2 = pnand %p1752_p0, %p139_p1 }
   0x5   : > { %v2360_v0 = vld [vmem:[%s2930_s1 + $0x40] sm:$0xff] (!%p140_p2)   ;;  %s1753_s16 = sshll.u32 (!%p140_p2), %s1748_s13, 5  ;;  %v2362_v2 = vld [vmem:[%s2930_s1 + $0x48] sm:$0xff] (!%p140_p2)   ;;  %v2364_v4 = vld [vmem:[%s2930_s1 + $0x50] sm:$0xff] (!%p140_p2)  }
   0x6   : > { %143 = sbr.rel (%p140_p2) target bundleno = 416 (0x1a0), region = 32  ;;  %v2361_v1 = vld [vmem:[%s2930_s1] sm:$0xff] (!%p140_p2)   ;;  %2039 = vmatprep.subr.bf16.mxu0 (!%p140_p2), %v2360_v0  ;;  %2335 = vmatprep.subr.bf16.mxu1 (!%p140_p2), %v2360_v0  ;;  %p165_p3 = scmp.lt.s32.totalorder (!%p140_p2), %s1753_s16, 95  ;;  %v2363_v3 = vld [vmem:[%s2930_s1 + $0x8] sm:$0xff] (!%p140_p2)   ;;  %v2365_v5 = vld [vmem:[%s2930_s1 + $0x10] sm:$0xff] (!%p140_p2)  }
   0x7   : > { %2040 = vmatpush3.bf16.msra.mxu0 (!%p140_p2), %v2361_v1  ;;  %2343 = vmatpush3.bf16.msra.mxu1 (!%p140_p2), %v2361_v1  ;;  %v2366_v6 = vld [vmem:[%s2930_s1 + $0x58] sm:$0xff] (!%p140_p2)   ;;  %v2368_v8 = vld [vmem:[%s2930_s1 + $0x60] sm:$0xff] (!%p140_p2)   ;;  %v2370_v10 = vld [vmem:[%s2930_s1 + $0x68] sm:$0xff] (!%p140_p2)  }
   0x8   : > { %2041 = vmatprep.subr.bf16.mxu0 (!%p140_p2), %v2362_v2  ;;  %2336 = vmatprep.subr.bf16.mxu1 (!%p140_p2), %v2362_v2  ;;  %v2367_v7 = vld [vmem:[%s2930_s1 + $0x18] sm:$0xff] (!%p140_p2)   ;;  %v2369_v9 = vld [vmem:[%s2930_s1 + $0x20] sm:$0xff] (!%p140_p2)   ;;  %v2371_v13 = vld [vmem:[%s2930_s1 + $0x28] sm:$0xff] (!%p140_p2)  }
   0x9   : > { %v2372_v14 = vld [vmem:[%s2930_s1 + $0x70] sm:$0xff] (!%p140_p2)   ;;  %v2374_v16 = vld [vmem:[%s2930_s1 + $0x78] sm:$0xff] (!%p140_p2)   ;;  %v2382_v18 = vld [vmem:[%s2930_s1 + $0xc0] sm:$0xff] (!%p140_p2)  }
   0xa   : > { %v2373_v15 = vld [vmem:[%s2930_s1 + $0x30] sm:$0xff] (!%p140_p2)   ;;  %v2375_v17 = vld [vmem:[%s2930_s1 + $0x38] sm:$0xff] (!%p140_p2)   ;;  %v2385_v19 = vld [vmem:[%s2930_s1 + $0x100] sm:$0xff] (!%p140_p2)  }
   0xb   : > { %2042 = vmatpush3.bf16.msra.mxu0 (!%p140_p2), %v2363_v3  ;;  %2344 = vmatpush3.bf16.msra.mxu1 (!%p140_p2), %v2363_v3  ;;  %v2383_v22 = vld [vmem:[%s2930_s1 + $0x80] sm:$0xff] (!%p140_p2)   ;;  %v2384_v23 = vld [vmem:[%s2930_s1 + $0xc8] sm:$0xff] (!%p140_p2)   ;;  %v2393_v29 = vld [vmem:[%s2930_s1 + $0xd0] sm:$0xff] (!%p140_p2)  }
   0xc   : > { %2043 = vmatprep.subr.bf16.mxu0 (!%p140_p2), %v2364_v4  ;;  %2337 = vmatprep.subr.bf16.mxu1 (!%p140_p2), %v2364_v4  ;;  %v2404_v26 = vld [vmem:[%s2930_s1 + $0x108] sm:$0xff] (!%p140_p2)   ;;  %v2394_v31 = vld [vmem:[%s2930_s1 + $0x90] sm:$0xff] (!%p140_p2)   ;;  %v2395_v33 = vld [vmem:[%s2930_s1 + $0xd8] sm:$0xff] (!%p140_p2)  }
   0xd   : > { %s2934_s16 = smov (!%p165_p3, %s1753_s16), 95  ;;  %v2386_v27 = vld [vmem:[%s2930_s1 + $0x88] sm:$0xff]   ;;  %v2396_v35 = vld [vmem:[%s2930_s1 + $0x98] sm:$0xff]   ;;  %v2403_v36 = vld [vmem:[%s2930_s1 + $0xe0] sm:$0xff]  }
   0xe   : > { %s2351_s29 = smul.u32 20, %s2934_s16  ;;  %v2417_v38 = vld [vmem:[%s2930_s1 + $0x110] sm:$0xff]   ;;  %v2405_v40 = vld [vmem:[%s2930_s1 + $0xa0] sm:$0xff]   ;;  %v2406_v41 = vld [vmem:[%s2930_s1 + $0xe8] sm:$0xff]   ;;  %s1756_s27 = sshll.u32 %s2934_s16, 2 }
   0xf   : > { %2044 = vmatpush3.bf16.msra.mxu0 %v2365_v5  ;;  %2345 = vmatpush3.bf16.msra.mxu1 %v2365_v5  ;;  %v2407_v44 = vld [vmem:[%s2930_s1 + $0xa8] sm:$0xff]   ;;  %v2431_v45 = vld [vmem:[%s2930_s1 + $0x118] sm:$0xff]   ;;  %v2414_v48 = vld [vmem:[%s2930_s1 + $0xf0] sm:$0xff]   ;;  %s2852_s30 = scalar_lea.vmem %s2932_s3, %s1756_s27 }
  0x10   : > { %2045 = vmatprep.subr.bf16.mxu0 %v2366_v6  ;;  %2338 = vmatprep.subr.bf16.mxu1 %v2366_v6  ;;  %s2581_s9 = scalar_lea.vmem %s2929_s0, %s2351_s29  ;;  %v2415_v49 = vld [vmem:[%s2930_s1 + $0xb0] sm:$0xff]   ;;  %v2416_v50 = vld [vmem:[%s2930_s1 + $0xf8] sm:$0xff]   ;;  %v2438_v52 = vld [vmem:[%s2930_s1 + $0x120] sm:$0xff]  }
  0x11   : > { %v2378_v11 = vld [vmem:[%s2581_s9 + $0x4] ss:$20 sps:$4 sm:$0xff]   ;;  %v2376_v20 = vld [vmem:[%s2581_s9] ss:$20 sps:$4 sm:$0xff]   ;;  %v2391_v28 = vld [vmem:[%s2581_s9 + $0x28] ss:$20 sps:$4 sm:$0xff]  }
  0x12   : > { %v2381_v12 = vld [vmem:[%s2581_s9 + $0x1e4] ss:$20 sps:$4 sm:$0xff]   ;;  %1049 = vmatprep.mubr.bf16.mxu0 %v2378_v11  ;;  %v2379_v21 = vld [vmem:[%s2581_s9 + $0x1e0] ss:$20 sps:$4 sm:$0xff]   ;;  %v2392_v30 = vld [vmem:[%s2581_s9 + $0x208] ss:$20 sps:$4 sm:$0xff]  }
  0x13   : > { %2046 = vmatpush3.bf16.msra.mxu0 %v2367_v7  ;;  %2346 = vmatpush3.bf16.msra.mxu1 %v2367_v7  ;;  %v2387_v24 = vld [vmem:[%s2581_s9 + $0x2c] ss:$20 sps:$4 sm:$0xff]   ;;  %v2397_v32 = vld [vmem:[%s2581_s9 + $0x54] ss:$20 sps:$4 sm:$0xff]   ;;  %v2401_v37 = vld [vmem:[%s2581_s9 + $0x50] ss:$20 sps:$4 sm:$0xff]  }
  0x14   : > { %2047 = vmatprep.subr.bf16.mxu0 %v2368_v8  ;;  %2339 = vmatprep.subr.bf16.mxu1 %v2368_v8  ;;  %v2389_v25 = vld [vmem:[%s2581_s9 + $0x20c] ss:$20 sps:$4 sm:$0xff]   ;;  %v2399_v34 = vld [vmem:[%s2581_s9 + $0x234] ss:$20 sps:$4 sm:$0xff]   ;;  %v2402_v39 = vld [vmem:[%s2581_s9 + $0x230] ss:$20 sps:$4 sm:$0xff]  }
  0x15   : > { %1145 = vmatprep.mubr.bf16.mxu1 %v2381_v12  ;;  %v2408_v42 = vld [vmem:[%s2581_s9 + $0x7c] ss:$20 sps:$4 sm:$0xff]   ;;  %v2412_v46 = vld [vmem:[%s2581_s9 + $0x78] ss:$20 sps:$4 sm:$0xff]   ;;  %v2424_v56 = vld [vmem:[%s2581_s9 + $0xa0] ss:$20 sps:$4 sm:$0xff]  }
  0x16   : > { %v2410_v43 = vld [vmem:[%s2581_s9 + $0x25c] ss:$20 sps:$4 sm:$0xff]   ;;  %v2413_v47 = vld [vmem:[%s2581_s9 + $0x258] ss:$20 sps:$4 sm:$0xff]   ;;  %v2427_v59 = vld [vmem:[%s2581_s9 + $0x34] ss:$20 sps:$4 sm:$0xff]  }
  0x17   : > { %2048 = vmatpush3.bf16.msra.mxu0 %v2369_v9  ;;  %2347 = vmatpush3.bf16.msra.mxu1 %v2369_v9  ;;  %v2419_v51 = vld [vmem:[%s2581_s9 + $0xa4] ss:$20 sps:$4 sm:$0xff]   ;;  %v2423_v53 = vld [vmem:[%s2581_s9 + $0xc] ss:$20 sps:$4 sm:$0xff]   ;;  %v2421_v55 = vld [vmem:[%s2581_s9 + $0x8] ss:$20 sps:$4 sm:$0xff]  }
  0x18   : > { %2049 = vmatprep.subr.bf16.mxu0 %v2370_v10  ;;  %2340 = vmatprep.subr.bf16.mxu1 %v2370_v10  ;;  %v2418_v54 = vld [vmem:[%s2930_s1 + $0xb8] sm:$0xff]   ;;  %v2451_v57 = vld [vmem:[%s2930_s1 + $0x128] sm:$0xff]   ;;  %v2458_v60 = vld [vmem:[%s2930_s1 + $0x130] sm:$0xff]  }
  0x19   : > { %v2425_v58 = vld [vmem:[%s2581_s9 + $0xcc] ss:$20 sps:$4 sm:$0xff]   ;;  %v2429_v61 = vld [vmem:[%s2581_s9 + $0xc8] ss:$20 sps:$4 sm:$0xff]   ;;  %v2430_v62 = vld [vmem:[%s2581_s9 + $0x30] ss:$20 sps:$4 sm:$0xff]  }
  0x1a   : > { %v2432_v63 = vld [vmem:[%s2581_s9 + $0xf4] ss:$20 sps:$4 sm:$0xff]   ;;  %v2434_v0 = vld [vmem:[%s2581_s9 + $0x5c] ss:$20 sps:$4 sm:$0xff]   ;;  %v2437_v3 = vld [vmem:[%s2581_s9 + $0x58] ss:$20 sps:$4 sm:$0xff]  }
  0x1b   : > { %2050 = vmatpush3.bf16.msra.mxu0 %v2371_v13  ;;  %2348 = vmatpush3.bf16.msra.mxu1 %v2371_v13  ;;  %v2471_v1 = vld [vmem:[%s2930_s1 + $0x138] sm:$0xff]   ;;  %v2436_v2 = vld [vmem:[%s2581_s9 + $0xf0] ss:$20 sps:$4 sm:$0xff]   ;;  %v2444_v7 = vld [vmem:[%s2581_s9 + $0x80] ss:$20 sps:$4 sm:$0xff]  }
  0x1c   : > { %2051 = vmatprep.subr.bf16.mxu0 %v2372_v14  ;;  %2341 = vmatprep.subr.bf16.mxu1 %v2372_v14  ;;  %v2439_v4 = vld [vmem:[%s2581_s9 + $0x11c] ss:$20 sps:$4 sm:$0xff]   ;;  %v2441_v5 = vld [vmem:[%s2581_s9 + $0x84] ss:$20 sps:$4 sm:$0xff]   ;;  %v2447_v9 = vld [vmem:[%s2581_s9 + $0xac] ss:$20 sps:$4 sm:$0xff]  }
  0x1d   : > { %v2443_v6 = vld [vmem:[%s2581_s9 + $0x118] ss:$20 sps:$4 sm:$0xff]   ;;  %v2449_v10 = vld [vmem:[%s2581_s9 + $0x140] ss:$20 sps:$4 sm:$0xff]   ;;  %v2450_v11 = vld [vmem:[%s2581_s9 + $0xa8] ss:$20 sps:$4 sm:$0xff]  }
  0x1e   : > { %v2445_v8 = vld [vmem:[%s2581_s9 + $0x144] ss:$20 sps:$4 sm:$0xff]   ;;  %v2452_v12 = vld [vmem:[%s2581_s9 + $0x16c] ss:$20 sps:$4 sm:$0xff]   ;;  %v2454_v13 = vld [vmem:[%s2581_s9 + $0xd4] ss:$20 sps:$4 sm:$0xff]  }
  0x1f   : > { %2052 = vmatpush3.bf16.msra.mxu0 %v2373_v15  ;;  %2349 = vmatpush3.bf16.msra.mxu1 %v2373_v15  ;;  %v2456_v14 = vld [vmem:[%s2581_s9 + $0x168] ss:$20 sps:$4 sm:$0xff]   ;;  %v2457_v15 = vld [vmem:[%s2581_s9 + $0xd0] ss:$20 sps:$4 sm:$0xff]  }
  0x20   : > { %2053 = vmatprep.subr.bf16.mxu0 %v2374_v16  ;;  %2342 = vmatprep.subr.bf16.mxu1 %v2374_v16  ;;  %v2459_v16 = vld [vmem:[%s2581_s9 + $0x194] ss:$20 sps:$4 sm:$0xff]  }
  0x23   : > { %2054 = vmatpush3.bf16.msra.mxu0 %v2375_v17  ;;  %2350 = vmatpush3.bf16.msra.mxu1 %v2375_v17  ;;  %v2461_v17 = vld [vmem:[%s2581_s9 + $0xfc] ss:$20 sps:$4 sm:$0xff]  }
  0x24   : > { %2151 = vmatprep.subr.bf16.mxu1 %v2382_v18  ;;  %2287 = vmatprep.subr.bf16.mxu0 %v2385_v19  ;;  %v2463_v18 = vld [vmem:[%s2581_s9 + $0x190] ss:$20 sps:$4 sm:$0xff]  }
  0x26   : > { %1050 = vmatmul.mubr.bf16.vlgmr.msra.gmra.mrb[0].mxu0 %v2376_v20  ;;  %1146 = vmatmul.mubr.bf16.vlgmr.msra.gmra.mrb[0].mxu1 %v2379_v21  ;;  %v2465_v20 = vld [vmem:[%s2581_s9 + $0x1bc] ss:$20 sps:$4 sm:$0xff]   ;;  %v2467_v21 = vld [vmem:[%s2581_s9 + $0x124] ss:$20 sps:$4 sm:$0xff]  }
  0x27   : > { %2152 = vmatpush3.bf16.msra.mxu1 %v2383_v22  ;;  %2288 = vmatpush3.bf16.msra.mxu0 %v2385_v19  ;;  %v2464_v19 = vld [vmem:[%s2581_s9 + $0xf8] ss:$20 sps:$4 sm:$0xff]  }
  0x28   : > { %2153 = vmatprep.subr.bf16.mxu1 %v2384_v23  ;;  %1057 = vmatprep.mubr.bf16.mxu0 %v2387_v24  ;;  %v2469_v22 = vld [vmem:[%s2581_s9 + $0x1b8] ss:$20 sps:$4 sm:$0xff]   ;;  %v2470_v23 = vld [vmem:[%s2581_s9 + $0x120] ss:$20 sps:$4 sm:$0xff]  }
  0x29   : > { %1153 = vmatprep.mubr.bf16.mxu1 %v2389_v25  ;;  %2289 = vmatprep.subr.bf16.mxu0 %v2404_v26  ;;  %v2472_v24 = vld [vmem:[%s2581_s9 + $0x14c] ss:$20 sps:$4 sm:$0xff]   ;;  %v2474_v25 = vld [vmem:[%s2581_s9 + $0x10] ss:$20 sps:$4 sm:$0xff]  }
  0x2b   : > { %2154 = vmatpush3.bf16.msra.mxu1 %v2386_v27  ;;  %2290 = vmatpush3.bf16.msra.mxu0 %v2404_v26  ;;  %v2475_v26 = vld [vmem:[%s2581_s9 + $0x148] ss:$20 sps:$4 sm:$0xff]   ;;  %v2476_v27 = vld [vmem:[%s2581_s9 + $0x38] ss:$20 sps:$4 sm:$0xff]  }
  0x2c   : > { %2155 = vmatprep.subr.bf16.mxu1 %v2393_v29  ;;  %2291 = vmatprep.subr.bf16.mxu0 %v2417_v38  ;;  %v2479_v29 = vld [vmem:[%s2581_s9 + $0x60] ss:$20 sps:$4 sm:$0xff]  }
  0x2e   : > { %1058 = vmatmul.mubr.bf16.gmra.mrb[4].mxu0 %v2391_v28  ;;  %1154 = vmatmul.mubr.bf16.gmra.mrb[4].mxu1 %v2392_v30  ;;  %v2477_v28 = vld [vmem:[%s2581_s9 + $0x174] ss:$20 sps:$4 sm:$0xff]   ;;  %v2480_v30 = vld [vmem:[%s2581_s9 + $0x170] ss:$20 sps:$4 sm:$0xff]  }
  0x2f   : > { %2156 = vmatpush3.bf16.msra.mxu1 %v2394_v31  ;;  %1065 = vmatprep.mubr.bf16.mxu0 %v2397_v32  ;;  %v2481_v31 = vld [vmem:[%s2581_s9 + $0x88] ss:$20 sps:$4 sm:$0xff]  }
  0x30   : > { %2157 = vmatprep.subr.bf16.mxu1 %v2395_v33  ;;  %1161 = vmatprep.mubr.bf16.mxu1 %v2399_v34  ;;  %v2482_v32 = vld [vmem:[%s2581_s9 + $0x19c] ss:$20 sps:$4 sm:$0xff]   ;;  %v2485_v34 = vld [vmem:[%s2581_s9 + $0x198] ss:$20 sps:$4 sm:$0xff]  }
  0x31   : > { %2292 = vmatpush3.bf16.msra.mxu0 %v2417_v38  ;;  %v2484_v33 = vld [vmem:[%s2581_s9 + $0xb0] ss:$20 sps:$4 sm:$0xff]   ;;  %v2490_v38 = vld [vmem:[%s2581_s9 + $0x1c0] ss:$20 sps:$4 sm:$0xff]  }
  0x32   : > { %2293 = vmatprep.subr.bf16.mxu0 %v2431_v45 }
  0x33   : > { %2158 = vmatpush3.bf16.msra.mxu1 %v2396_v35  ;;  %v2486_v35 = vld [vmem:[%s2581_s9 + $0xd8] ss:$20 sps:$4 sm:$0xff]  }
  0x34   : > { %2159 = vmatprep.subr.bf16.mxu1 %v2403_v36  ;;  %v2487_v36 = vld [vmem:[%s2581_s9 + $0x1c4] ss:$20 sps:$4 sm:$0xff]  }
  0x35   : > { %2294 = vmatpush3.bf16.msra.mxu0 %v2431_v45  ;;  %v2499_v45 = vld [vmem:[%s2581_s9 + $0x1a0] ss:$20 sps:$4 sm:$0xff]  }
  0x36   : > { %1066 = vmatmul.mubr.bf16.gmra.mrb[8].mxu0 %v2401_v37  ;;  %1162 = vmatmul.mubr.bf16.gmra.mrb[8].mxu1 %v2402_v39  ;;  %v2489_v37 = vld [vmem:[%s2581_s9 + $0x100] ss:$20 sps:$4 sm:$0xff]   ;;  %v2491_v39 = vld [vmem:[%s2581_s9 + $0x128] ss:$20 sps:$4 sm:$0xff]  }
  0x37   : > { %2160 = vmatpush3.bf16.msra.mxu1 %v2405_v40  ;;  %1073 = vmatprep.mubr.bf16.mxu0 %v2408_v42  ;;  %v2492_v40 = vld [vmem:[%s2581_s9 + $0x1ec] ss:$20 sps:$4 sm:$0xff]   ;;  %v2495_v42 = vld [vmem:[%s2581_s9 + $0x1e8] ss:$20 sps:$4 sm:$0xff]  }
  0x38   : > { %2161 = vmatprep.subr.bf16.mxu1 %v2406_v41  ;;  %1169 = vmatprep.mubr.bf16.mxu1 %v2410_v43  ;;  %v2494_v41 = vld [vmem:[%s2581_s9 + $0x150] ss:$20 sps:$4 sm:$0xff]   ;;  %v2496_v43 = vld [vmem:[%s2581_s9 + $0x178] ss:$20 sps:$4 sm:$0xff]  }
  0x39   : > { %2295 = vmatprep.subr.bf16.mxu0 %v2438_v52 }
  0x3a   : > { %2296 = vmatpush3.bf16.msra.mxu0 %v2438_v52  ;;  %v2507_v52 = vld [vmem:[%s2581_s9 + $0x264] ss:$20 sps:$4 sm:$0xff]  }
  0x3b   : > { %2162 = vmatpush3.bf16.msra.mxu1 %v2407_v44  ;;  %2297 = vmatprep.subr.bf16.mxu0 %v2451_v57  ;;  %v2497_v44 = vld [vmem:[%s2581_s9 + $0x214] ss:$20 sps:$4 sm:$0xff]  }
  0x3c   : > { %2163 = vmatprep.subr.bf16.mxu1 %v2414_v48  ;;  %v2502_v48 = vld [vmem:[%s2581_s9 + $0x23c] ss:$20 sps:$4 sm:$0xff]  }
  0x3e   : > { %1074 = vmatmul.mubr.bf16.gmra.mrb[12].mxu0 %v2412_v46  ;;  %1170 = vmatmul.mubr.bf16.gmra.mrb[12].mxu1 %v2413_v47  ;;  %v2500_v46 = vld [vmem:[%s2581_s9 + $0x210] ss:$20 sps:$4 sm:$0xff]   ;;  %v2501_v47 = vld [vmem:[%s2581_s9 + $0x1c8] ss:$20 sps:$4 sm:$0xff]  }
  0x3f   : > { %2164 = vmatpush3.bf16.msra.mxu1 %v2415_v49  ;;  %1081 = vmatprep.mubr.bf16.mxu0 %v2419_v51  ;;  %v2504_v49 = vld [vmem:[%s2581_s9 + $0x1f0] ss:$20 sps:$4 sm:$0xff]   ;;  %v2506_v51 = vld [vmem:[%s2581_s9 + $0x218] ss:$20 sps:$4 sm:$0xff]  }
  0x40   : > { %2165 = vmatprep.subr.bf16.mxu1 %v2416_v50  ;;  %1210 = vmatprep.mubr.bf16.mxu1 %v2423_v53  ;;  %v2505_v50 = vld [vmem:[%s2581_s9 + $0x238] ss:$20 sps:$4 sm:$0xff]   ;;  %v2509_v53 = vld [vmem:[%s2581_s9 + $0x240] ss:$20 sps:$4 sm:$0xff]  }
  0x41   : > { %2298 = vmatpush3.bf16.msra.mxu0 %v2451_v57 }
  0x42   : > { %2299 = vmatprep.subr.bf16.mxu0 %v2458_v60 }
  0x43   : > { %2166 = vmatpush3.bf16.msra.mxu1 %v2418_v54  ;;  %v2510_v54 = vld [vmem:[%s2581_s9 + $0x260] ss:$20 sps:$4 sm:$0xff]  }
  0x45   : > { %2300 = vmatpush3.bf16.msra.mxu0 %v2458_v60 }
  0x46   : > { %1082 = vmatmul.mubr.bf16.gmra.mrb[16].mxu0 %v2424_v56  ;;  %1211 = vmatmul.mubr.bf16.vlgmr.msra.gmra.mrb[16].mxu1 %v2421_v55  ;;  %v2511_v55 = vld [vmem:[%s2581_s9 + $0x268] ss:$20 sps:$4 sm:$0xff]  }
  0x47   : > { %1089 = vmatprep.mubr.bf16.mxu0 %v2425_v58  ;;  %1218 = vmatprep.mubr.bf16.mxu1 %v2427_v59 }
  0x48   : > { %2301 = vmatprep.subr.bf16.mxu0 %v2471_v1 }
  0x49   : > { %2302 = vmatpush3.bf16.msra.mxu0 %v2471_v1 }
  0x4e   : > { %1090 = vmatmul.mubr.bf16.gmra.mrb[20].mxu0 %v2429_v61  ;;  %1219 = vmatmul.mubr.bf16.gmra.mrb[20].mxu1 %v2430_v62 }
  0x4f   : > { %1097 = vmatprep.mubr.bf16.mxu0 %v2432_v63  ;;  %1226 = vmatprep.mubr.bf16.mxu1 %v2434_v0 }
  0x56   : > { %1098 = vmatmul.mubr.bf16.gmra.mrb[24].mxu0 %v2436_v2  ;;  %1227 = vmatmul.mubr.bf16.gmra.mrb[24].mxu1 %v2437_v3 }
  0x57   : > { %1105 = vmatprep.mubr.bf16.mxu0 %v2439_v4  ;;  %1234 = vmatprep.mubr.bf16.mxu1 %v2441_v5 }
  0x5e   : > { %1106 = vmatmul.mubr.bf16.gmra.mrb[28].mxu0 %v2443_v6  ;;  %1235 = vmatmul.mubr.bf16.gmra.mrb[28].mxu1 %v2444_v7 }
  0x5f   : > { %1113 = vmatprep.mubr.bf16.mxu0 %v2445_v8  ;;  %1242 = vmatprep.mubr.bf16.mxu1 %v2447_v9 }
  0x66   : > { %1114 = vmatmul.mubr.bf16.gmra.mrb[32].mxu0 %v2449_v10  ;;  %1243 = vmatmul.mubr.bf16.gmra.mrb[32].mxu1 %v2450_v11 }
  0x67   : > { %1121 = vmatprep.mubr.bf16.mxu0 %v2452_v12  ;;  %1250 = vmatprep.mubr.bf16.mxu1 %v2454_v13 }
  0x6e   : > { %1122 = vmatmul.mubr.bf16.gmra.mrb[36].mxu0 %v2456_v14  ;;  %1251 = vmatmul.mubr.bf16.gmra.mrb[36].mxu1 %v2457_v15 }
  0x6f   : > { %1129 = vmatprep.mubr.bf16.mxu0 %v2459_v16  ;;  %1258 = vmatprep.mubr.bf16.mxu1 %v2461_v17 }
  0x76   : > { %1130 = vmatmul.mubr.bf16.gmra.mrb[40].mxu0 %v2463_v18  ;;  %1259 = vmatmul.mubr.bf16.gmra.mrb[40].mxu1 %v2464_v19 }
  0x77   : > { %1137 = vmatprep.mubr.bf16.mxu0 %v2465_v20  ;;  %1266 = vmatprep.mubr.bf16.mxu1 %v2467_v21 }
  0x7e   : > { %1138 = vmatmul.mubr.bf16.gmra.mrb[44].mxu0 %v2469_v22  ;;  %1267 = vmatmul.mubr.bf16.gmra.mrb[44].mxu1 %v2470_v23 }
  0x7f   : > { %1274 = vmatprep.mubr.bf16.mxu1 %v2472_v24  ;;  %2303 = vmatprep.mubr.bf16.mxu0 %v2474_v25 }
  0x86   : > { %1275 = vmatmul.mubr.bf16.gmra.mrb[48].mxu1 %v2475_v26  ;;  %2304 = vmatmul.mubr.bf16.vlgmr.msra.gmra.mrb[48].mxu0 %v2476_v27 }
  0x87   : > { %1282 = vmatprep.mubr.bf16.mxu1 %v2477_v28  ;;  %2307 = vmatprep.mubr.bf16.mxu0 %v2479_v29 }
  0x8e   : > { %1283 = vmatmul.mubr.bf16.gmra.mrb[52].mxu1 %v2480_v30  ;;  %2308 = vmatmul.mubr.bf16.gmra.mrb[52].mxu0 %v2481_v31 }
  0x8f   : > { %1290 = vmatprep.mubr.bf16.mxu1 %v2482_v32  ;;  %2311 = vmatprep.mubr.bf16.mxu0 %v2484_v33 }
  0x96   : > { %1291 = vmatmul.mubr.bf16.gmra.mrb[56].mxu1 %v2485_v34  ;;  %2312 = vmatmul.mubr.bf16.gmra.mrb[56].mxu0 %v2486_v35 }
  0x97   : > { %1298 = vmatprep.mubr.bf16.mxu1 %v2487_v36  ;;  %2315 = vmatprep.mubr.bf16.mxu0 %v2489_v37 }
  0x9e   : > { %1299 = vmatmul.mubr.bf16.gmra.mrb[60].mxu1 %v2490_v38  ;;  %2316 = vmatmul.mubr.bf16.gmra.mrb[60].mxu0 %v2491_v39 }
  0x9f   : > { %1306 = vmatprep.mubr.bf16.mxu1 %v2492_v40  ;;  %2319 = vmatprep.mubr.bf16.mxu0 %v2494_v41 }
  0xa6   : > { %1307 = vmatmul.mubr.bf16.gmra.mrb[64].mxu1 %v2495_v42  ;;  %2320 = vmatmul.mubr.bf16.gmra.mrb[64].mxu0 %v2496_v43  ;;  %v2775_v42 = vld [vmem:[%s2931_s2] ss:$0 sm:$0xff] }
  0xa7   : > { %1314 = vmatprep.mubr.bf16.mxu1 %v2497_v44  ;;  %2323 = vmatprep.mubr.bf16.mxu0 %v2499_v45 }
  0xae   : > { %1315 = vmatmul.mubr.bf16.gmra.mrb[68].mxu1 %v2500_v46  ;;  %2324 = vmatmul.mubr.bf16.gmra.mrb[68].mxu0 %v2501_v47 }
  0xaf   : > { %1322 = vmatprep.mubr.bf16.mxu1 %v2502_v48  ;;  %2327 = vmatprep.mubr.bf16.mxu0 %v2504_v49 }
  0xb6   : > { %1323 = vmatmul.mubr.bf16.gmra.mrb[72].mxu1 %v2505_v50  ;;  %2328 = vmatmul.mubr.bf16.gmra.mrb[72].mxu0 %v2506_v51 }
  0xb7   : > { %1330 = vmatprep.mubr.bf16.mxu1 %v2507_v52  ;;  %2331 = vmatprep.mubr.bf16.mxu0 %v2509_v53 }
  0xbe   : > { %1331 = vmatmul.mubr.bf16.gmra.mrb[76].mxu1 %v2510_v54  ;;  %2332 = vmatmul.mubr.bf16.gmra.mrb[76].mxu0 %v2511_v55 }
  0xf9   : > { %v2127_v56 = vpop.f32.mrb[0].mxu1  ;;  %v2055_v57 = vpop.f32.mrb[0].mxu0 }
  0xfa   : > { %v2128_v58 = vpop.f32.mrb[1].mxu1  ;;  %v2056_v59 = vpop.f32.mrb[1].mxu0 }
  0xfb   : > { %v2756_v60 = vadd.f32 %v2128_v58, %v2127_v56  ;;  %v2130_v61 = vpop.f32.mrb[2].mxu1  ;;  %v2057_v62 = vadd.f32 %v2056_v59, %v2055_v57  ;;  %v2058_v63 = vpop.f32.mrb[2].mxu0 }
  0xfc   : > { %v2131_v0 = vpop.f32.mrb[3].mxu1  ;;  %v2059_v1 = vpop.f32.mrb[3].mxu0 }
  0xfd   : > { %v2758_v2 = vadd.f32 %v2131_v0, %v2130_v61  ;;  %v2060_v3 = vadd.f32 %v2059_v1, %v2058_v63  ;;  %v1052_v45 = vadd.f32 %v2057_v62, %v2775_v42 }
  0xff   : > { %v1055_v52 = vadd.f32 %v2060_v3, %v2775_v42 }
 0x101   : > { %v2133_v4 = vpop.f32.mrb[4].mxu1  ;;  %v2061_v5 = vpop.f32.mrb[4].mxu0 }
 0x102   : > { %v2134_v6 = vpop.f32.mrb[5].mxu1  ;;  %v2062_v7 = vpop.f32.mrb[5].mxu0 }
 0x103   : > { %v2760_v8 = vadd.f32 %v2134_v6, %v2133_v4  ;;  %v2136_v9 = vpop.f32.mrb[6].mxu1  ;;  %v2063_v10 = vadd.f32 %v2062_v7, %v2061_v5  ;;  %v2064_v11 = vpop.f32.mrb[6].mxu0 }
 0x104   : > { %v2137_v12 = vpop.f32.mrb[7].mxu1  ;;  %v2065_v13 = vpop.f32.mrb[7].mxu0 }
 0x105   : > { %v2762_v14 = vadd.f32 %v2137_v12, %v2136_v9  ;;  %v2066_v15 = vadd.f32 %v2065_v13, %v2064_v11  ;;  %v1060_v62 = vadd.f32 %v2063_v10, %v2775_v42 }
 0x107   : > { %v1063_v3 = vadd.f32 %v2066_v15, %v2775_v42 }
 0x109   : > { %v2139_v16 = vpop.f32.mrb[8].mxu1  ;;  %v2067_v17 = vpop.f32.mrb[8].mxu0 }
 0x10a   : > { %v2140_v18 = vpop.f32.mrb[9].mxu1  ;;  %v2068_v19 = vpop.f32.mrb[9].mxu0 }
 0x10b   : > { %v2764_v20 = vadd.f32 %v2140_v18, %v2139_v16  ;;  %v2142_v21 = vpop.f32.mrb[10].mxu1  ;;  %v2069_v22 = vadd.f32 %v2068_v19, %v2067_v17  ;;  %v2070_v23 = vpop.f32.mrb[10].mxu0 }
 0x10c   : > { %v2143_v24 = vpop.f32.mrb[11].mxu1  ;;  %v2071_v25 = vpop.f32.mrb[11].mxu0 }
 0x10d   : > { %v2766_v26 = vadd.f32 %v2143_v24, %v2142_v21  ;;  %v2072_v27 = vadd.f32 %v2071_v25, %v2070_v23  ;;  %v1068_v10 = vadd.f32 %v2069_v22, %v2775_v42 }
 0x10f   : > { %v1071_v15 = vadd.f32 %v2072_v27, %v2775_v42 }
 0x111   : > { %v2145_v28 = vpop.f32.mrb[12].mxu1  ;;  %v2073_v29 = vpop.f32.mrb[12].mxu0 }
 0x112   : > { %v2146_v30 = vpop.f32.mrb[13].mxu1  ;;  %v2074_v31 = vpop.f32.mrb[13].mxu0 }
 0x113   : > { %v2768_v32 = vadd.f32 %v2146_v30, %v2145_v28  ;;  %v2148_v33 = vpop.f32.mrb[14].mxu1  ;;  %v2075_v34 = vadd.f32 %v2074_v31, %v2073_v29  ;;  %v2076_v35 = vpop.f32.mrb[14].mxu0 }
 0x114   : > { %v2149_v36 = vpop.f32.mrb[15].mxu1  ;;  %v2077_v37 = vpop.f32.mrb[15].mxu0 }
 0x115   : > { %v2770_v38 = vadd.f32 %v2149_v36, %v2148_v33  ;;  %v2078_v39 = vadd.f32 %v2077_v37, %v2076_v35  ;;  %v1076_v22 = vadd.f32 %v2075_v34, %v2775_v42 }
 0x117   : > { %v1079_v27 = vadd.f32 %v2078_v39, %v2775_v42 }
 0x119   : > { %v2167_v40 = vpop.f32.mrb[16].mxu1  ;;  %v2079_v41 = vpop.f32.mrb[16].mxu0 }
 0x11a   : > { %v2168_v43 = vpop.f32.mrb[17].mxu1  ;;  %v2080_v44 = vpop.f32.mrb[17].mxu0 }
 0x11b   : > { %v2169_v46 = vadd.f32 %v2168_v43, %v2167_v40  ;;  %v2170_v47 = vpop.f32.mrb[18].mxu1  ;;  %v2081_v48 = vadd.f32 %v2080_v44, %v2079_v41  ;;  %v2082_v49 = vpop.f32.mrb[18].mxu0 }
 0x11c   : > { %v2171_v50 = vpop.f32.mrb[19].mxu1  ;;  %v2083_v51 = vpop.f32.mrb[19].mxu0 }
 0x11d   : > { %v2172_v53 = vadd.f32 %v2171_v50, %v2170_v47  ;;  %v2084_v54 = vadd.f32 %v2083_v51, %v2082_v49  ;;  %v2779_v55 = vadd.f32 %v2169_v46, %v1052_v45  ;;  %v1084_v34 = vadd.f32 %v2081_v48, %v2775_v42 }
 0x11f   : > { %v2781_v56 = vadd.f32 %v2172_v53, %v1055_v52  ;;  %v1087_v39 = vadd.f32 %v2084_v54, %v2775_v42 }
 0x121   : > { %v2173_v57 = vpop.f32.mrb[20].mxu1  ;;  %v2085_v58 = vpop.f32.mrb[20].mxu0 }
 0x122   : > { %v2174_v59 = vpop.f32.mrb[21].mxu1  ;;  %v2086_v61 = vpop.f32.mrb[21].mxu0 }
 0x123   : > { %v2175_v63 = vadd.f32 %v2174_v59, %v2173_v57  ;;  %v2176_v0 = vpop.f32.mrb[22].mxu1  ;;  %v2087_v1 = vadd.f32 %v2086_v61, %v2085_v58  ;;  %v2088_v4 = vpop.f32.mrb[22].mxu0 }
 0x124   : > { %v2177_v5 = vpop.f32.mrb[23].mxu1  ;;  %v2089_v6 = vpop.f32.mrb[23].mxu0 }
 0x125   : > { %v2178_v7 = vadd.f32 %v2177_v5, %v2176_v0  ;;  %v2090_v9 = vadd.f32 %v2089_v6, %v2088_v4  ;;  %v2785_v11 = vadd.f32 %v2175_v63, %v1060_v62  ;;  %v1092_v48 = vadd.f32 %v2087_v1, %v2775_v42 }
 0x127   : > { %v2787_v12 = vadd.f32 %v2178_v7, %v1063_v3 }
 0x129   : > { %v2179_v13 = vpop.f32.mrb[24].mxu1  ;;  %v2091_v16 = vpop.f32.mrb[24].mxu0 }
 0x12a   : > { %v2180_v17 = vpop.f32.mrb[25].mxu1  ;;  %v2092_v18 = vpop.f32.mrb[25].mxu0 }
 0x12b   : > { %v2181_v19 = vadd.f32 %v2180_v17, %v2179_v13  ;;  %v2182_v21 = vpop.f32.mrb[26].mxu1  ;;  %v2093_v23 = vadd.f32 %v2092_v18, %v2091_v16  ;;  %v2094_v24 = vpop.f32.mrb[26].mxu0 }
 0x12c   : > { %v2183_v25 = vpop.f32.mrb[27].mxu1  ;;  %v2095_v28 = vpop.f32.mrb[27].mxu0 }
 0x12d   : > { %v2184_v29 = vadd.f32 %v2183_v25, %v2182_v21  ;;  %v2096_v30 = vadd.f32 %v2095_v28, %v2094_v24  ;;  %v2791_v31 = vadd.f32 %v2181_v19, %v1068_v10 }
 0x12f   : > { %v2793_v33 = vadd.f32 %v2184_v29, %v1071_v15  ;;  %v1095_v15 = vadd.f32 %v2090_v9, %v2775_v42 }
 0x131   : > { %v2185_v35 = vpop.f32.mrb[28].mxu1  ;;  %v2097_v36 = vpop.f32.mrb[28].mxu0 }
 0x132   : > { %v2186_v37 = vpop.f32.mrb[29].mxu1  ;;  %v2098_v40 = vpop.f32.mrb[29].mxu0 }
 0x133   : > { %v2187_v41 = vadd.f32 %v2186_v37, %v2185_v35  ;;  %v2188_v43 = vpop.f32.mrb[30].mxu1  ;;  %v2099_v44 = vadd.f32 %v2098_v40, %v2097_v36  ;;  %v2100_v45 = vpop.f32.mrb[30].mxu0 }
 0x134   : > { %v2189_v46 = vpop.f32.mrb[31].mxu1  ;;  %v2101_v47 = vpop.f32.mrb[31].mxu0 }
 0x135   : > { %v2190_v49 = vadd.f32 %v2189_v46, %v2188_v43  ;;  %v2102_v50 = vadd.f32 %v2101_v47, %v2100_v45  ;;  %v2797_v51 = vadd.f32 %v2187_v41, %v1076_v22  ;;  %v1100_v43 = vadd.f32 %v2093_v23, %v2775_v42 }
 0x137   : > { %v2799_v52 = vadd.f32 %v2190_v49, %v1079_v27 }
 0x139   : > { %v2191_v53 = vpop.f32.mrb[32].mxu1  ;;  %v2103_v57 = vpop.f32.mrb[32].mxu0 }
 0x13a   : > { %v2192_v58 = vpop.f32.mrb[33].mxu1  ;;  %v2104_v59 = vpop.f32.mrb[33].mxu0 }
 0x13b   : > { %v2193_v61 = vadd.f32 %v2192_v58, %v2191_v53  ;;  %v2194_v62 = vpop.f32.mrb[34].mxu1  ;;  %v2105_v63 = vadd.f32 %v2104_v59, %v2103_v57  ;;  %v2106_v0 = vpop.f32.mrb[34].mxu0  ;;  %v1103_v53 = vadd.f32 %v2096_v30, %v2775_v42 }
 0x13c   : > { %v2195_v4 = vpop.f32.mrb[35].mxu1  ;;  %v2107_v5 = vpop.f32.mrb[35].mxu0 }
 0x13d   : > { %v2196_v6 = vadd.f32 %v2195_v4, %v2194_v62  ;;  %v2803_v3 = vadd.f32 %v2107_v5, %v2106_v0  ;;  %v2805_v7 = vadd.f32 %v2193_v61, %v1084_v34  ;;  %v1108_v4 = vadd.f32 %v2099_v44, %v2775_v42 }
 0x13f   : > { %v2807_v13 = vadd.f32 %v2196_v6, %v1087_v39 }
 0x141   : > { %v2197_v16 = vpop.f32.mrb[36].mxu1  ;;  %v2109_v17 = vpop.f32.mrb[36].mxu0 }
 0x142   : > { %v2198_v18 = vpop.f32.mrb[37].mxu1  ;;  %v2110_v10 = vpop.f32.mrb[37].mxu0 }
 0x143   : > { %v2199_v19 = vadd.f32 %v2198_v18, %v2197_v16  ;;  %v2200_v21 = vpop.f32.mrb[38].mxu1  ;;  %v2810_v24 = vadd.f32 %v2110_v10, %v2109_v17  ;;  %v2112_v25 = vpop.f32.mrb[38].mxu0  ;;  %v1111_v18 = vadd.f32 %v2102_v50, %v2775_v42 }
 0x144   : > { %v2201_v28 = vpop.f32.mrb[39].mxu1  ;;  %v2113_v54 = vpop.f32.mrb[39].mxu0 }
 0x145   : > { %v2202_v29 = vadd.f32 %v2201_v28, %v2200_v21  ;;  %v2813_v35 = vadd.f32 %v2113_v54, %v2112_v25  ;;  %v2815_v36 = vadd.f32 %v2199_v19, %v1092_v48 }
 0x147   : > { %v2817_v37 = vadd.f32 %v2202_v29, %v1095_v15  ;;  %v1116_v29 = vadd.f32 %v2105_v63, %v2775_v42 }
 0x149   : > { %v2203_v40 = vpop.f32.mrb[40].mxu1  ;;  %v2115_v22 = vpop.f32.mrb[40].mxu0 }
 0x14a   : > { %v2204_v41 = vpop.f32.mrb[41].mxu1  ;;  %v2116_v1 = vpop.f32.mrb[41].mxu0 }
 0x14b   : > { %v2205_v45 = vadd.f32 %v2204_v41, %v2203_v40  ;;  %v2206_v46 = vpop.f32.mrb[42].mxu1  ;;  %v2820_v47 = vadd.f32 %v2116_v1, %v2115_v22  ;;  %v2118_v27 = vpop.f32.mrb[42].mxu0 }
 0x14c   : > { %v2207_v49 = vpop.f32.mrb[43].mxu1  ;;  %v2119_v9 = vpop.f32.mrb[43].mxu0 }
 0x14d   : > { %v2208_v57 = vadd.f32 %v2207_v49, %v2206_v46  ;;  %v2823_v58 = vadd.f32 %v2119_v9, %v2118_v27  ;;  %v2825_v59 = vadd.f32 %v2205_v45, %v1100_v43  ;;  %v1119_v46 = vadd.f32 %v2803_v3, %v2775_v42 }
 0x14f   : > { %v2827_v34 = vadd.f32 %v2208_v57, %v1103_v53 }
 0x151   : > { %v2209_v61 = vpop.f32.mrb[44].mxu1  ;;  %v2121_v62 = vpop.f32.mrb[44].mxu0 }
 0x152   : > { %v2210_v0 = vpop.f32.mrb[45].mxu1  ;;  %v2122_v23 = vpop.f32.mrb[45].mxu0 }
 0x153   : > { %v2211_v5 = vadd.f32 %v2210_v0, %v2209_v61  ;;  %v2212_v39 = vpop.f32.mrb[46].mxu1  ;;  %v2830_v6 = vadd.f32 %v2122_v23, %v2121_v62  ;;  %v2124_v16 = vpop.f32.mrb[46].mxu0 }
 0x154   : > { %v2213_v17 = vpop.f32.mrb[47].mxu1  ;;  %v2125_v30 = vpop.f32.mrb[47].mxu0 }
 0x155   : > { %v2214_v10 = vadd.f32 %v2213_v17, %v2212_v39  ;;  %v2833_v48 = vadd.f32 %v2125_v30, %v2124_v16  ;;  %v2835_v19 = vadd.f32 %v2211_v5, %v1108_v4  ;;  %v1124_v4 = vadd.f32 %v2810_v24, %v2775_v42 }
 0x157   : > { %v2837_v21 = vadd.f32 %v2214_v10, %v1111_v18 }
 0x159   : > { %v2215_v25 = vpop.f32.mrb[48].mxu1  ;;  %v2305_v28 = vpop.f32.mrb[48].mxu0 }
 0x15a   : > { %v1382_v44 = vadd.f32 %v2305_v28, %v2785_v11  ;;  %v2216_v54 = vpop.f32.mrb[49].mxu1  ;;  %v1373_v15 = vpop.f32.mrb[49].mxu0 }
 0x15b   : > { %v2217_v40 = vadd.f32 %v2216_v54, %v2215_v25  ;;  %v1374_v22 = vadd.f32 %v1373_v15, %v2779_v55  ;;  %v2218_v41 = vpop.f32.mrb[50].mxu1  ;;  %v2306_v50 = vpop.f32.mrb[50].mxu0  ;;  %v1127_v25 = vadd.f32 %v2813_v35, %v2775_v42 }
 0x15c   : > { %v1385_v1 = vadd.f32 %v2306_v50, %v2787_v12  ;;  %v2219_v43 = vpop.f32.mrb[51].mxu1  ;;  %v1376_v45 = vpop.f32.mrb[51].mxu0  ;;  %v1502_v9 = vmax.f32 %v1382_v44, 0.0 }
 0x15d   : > { %v2220_v27 = vadd.f32 %v2219_v43, %v2218_v41  ;;  %v1377_v11 = vadd.f32 %v1376_v45, %v2781_v56  ;;  %v2847_v49 = vadd.f32 %v2217_v40, %v1116_v29  ;;  %v1500_v53 = vmax.f32 %v1374_v22, 0.0 }
 0x15e   : > { %v1503_v63 = vmax.f32 %v1385_v1, 0.0 }
 0x15f   : > { %v1501_v55 = vmax.f32 %v1377_v11, 0.0  ;;  %v2854_v12 = vadd.f32 %v2220_v27, %v1119_v46 }
 0x160   : > { %v1952_v57 = vpack.c.bf16 %v1503_v63, %v1502_v9 }
 0x161   : > { %v1947_v3 = vpack.c.bf16 %v1501_v55, %v1500_v53  ;;  %v2221_v61 = vpop.f32.mrb[52].mxu1  ;;  %v2309_v62 = vpop.f32.mrb[52].mxu0  ;;  %v1135_v53 = vadd.f32 %v2823_v58, %v2775_v42 }
 0x162   : > { %2024 = vst [vmem:[%s2852_s30 + $0x8] sm:$0xff] %v1952_v57   ;;  %v1398_v56 = vadd.f32 %v2309_v62, %v2797_v51  ;;  %v2222_v0 = vpop.f32.mrb[53].mxu1  ;;  %v1389_v23 = vpop.f32.mrb[53].mxu0 }
 0x163   : > { %1948 = vst [vmem:[%s2852_s30] sm:$0xff] %v1947_v3   ;;  %v2223_v5 = vadd.f32 %v2222_v0, %v2221_v61  ;;  %v1390_v39 = vadd.f32 %v1389_v23, %v2791_v31  ;;  %v2224_v16 = vpop.f32.mrb[54].mxu1  ;;  %v2310_v17 = vpop.f32.mrb[54].mxu0 }
 0x164   : > { %v1401_v30 = vadd.f32 %v2310_v17, %v2799_v52  ;;  %v2225_v18 = vpop.f32.mrb[55].mxu1  ;;  %v1392_v10 = vpop.f32.mrb[55].mxu0  ;;  %v1506_v24 = vmax.f32 %v1398_v56, 0.0 }
 0x165   : > { %v2226_v51 = vadd.f32 %v2225_v18, %v2224_v16  ;;  %v1393_v28 = vadd.f32 %v1392_v10, %v2793_v33  ;;  %v2866_v44 = vadd.f32 %v2223_v5, %v1124_v4  ;;  %v1504_v15 = vmax.f32 %v1390_v39, 0.0 }
 0x166   : > { %v1507_v54 = vmax.f32 %v1401_v30, 0.0  ;;  %v1132_v33 = vadd.f32 %v2820_v47, %v2775_v42 }
 0x167   : > { %v1505_v31 = vmax.f32 %v1393_v28, 0.0  ;;  %v2868_v29 = vadd.f32 %v2226_v51, %v1127_v25  ;;  %v1143_v51 = vadd.f32 %v2833_v48, %v2775_v42  ;;  %v1148_v48 = vadd.f32 %v2756_v60, %v2775_v42 }
 0x168   : > { %v1962_v40 = vpack.c.bf16 %v1507_v54, %v1506_v24 }
 0x169   : > { %v1957_v52 = vpack.c.bf16 %v1505_v31, %v1504_v15  ;;  %v2227_v22 = vpop.f32.mrb[56].mxu1  ;;  %v2313_v41 = vpop.f32.mrb[56].mxu0 }
 0x16a   : > { %2026 = vst [vmem:[%s2852_s30 + $0x18] sm:$0xff] %v1962_v40   ;;  %v1414_v50 = vadd.f32 %v2313_v41, %v2815_v36  ;;  %v2228_v35 = vpop.f32.mrb[57].mxu1  ;;  %v1405_v1 = vpop.f32.mrb[57].mxu0 }
 0x16b   : > { %2025 = vst [vmem:[%s2852_s30 + $0x10] sm:$0xff] %v1957_v52   ;;  %v2229_v43 = vadd.f32 %v2228_v35, %v2227_v22  ;;  %v1406_v45 = vadd.f32 %v1405_v1, %v2805_v7  ;;  %v2230_v46 = vpop.f32.mrb[58].mxu1  ;;  %v2314_v27 = vpop.f32.mrb[58].mxu0 }
 0x16c   : > { %v1417_v11 = vadd.f32 %v2314_v27, %v2817_v37  ;;  %v2231_v9 = vpop.f32.mrb[59].mxu1  ;;  %v1408_v63 = vpop.f32.mrb[59].mxu0  ;;  %v1510_v47 = vmax.f32 %v1414_v50, 0.0 }
 0x16d   : > { %v2232_v36 = vadd.f32 %v2231_v9, %v2230_v46  ;;  %v1409_v55 = vadd.f32 %v1408_v63, %v2807_v13  ;;  %v2880_v57 = vadd.f32 %v2229_v43, %v1132_v33  ;;  %v1508_v61 = vmax.f32 %v1406_v45, 0.0 }
 0x16e   : > { %v1511_v3 = vmax.f32 %v1417_v11, 0.0  ;;  %v1140_v13 = vadd.f32 %v2830_v6, %v2775_v42  ;;  %v1151_v11 = vadd.f32 %v2758_v2, %v2775_v42  ;;  %v1156_v2 = vadd.f32 %v2760_v8, %v2775_v42 }
 0x16f   : > { %v1509_v7 = vmax.f32 %v1409_v55, 0.0  ;;  %v2882_v62 = vadd.f32 %v2232_v36, %v1135_v53 }
 0x170   : > { %v1972_v56 = vpack.c.bf16 %v1511_v3, %v1510_v47 }
 0x171   : > { %v1967_v37 = vpack.c.bf16 %v1509_v7, %v1508_v61  ;;  %v2233_v0 = vpop.f32.mrb[60].mxu1  ;;  %v2317_v23 = vpop.f32.mrb[60].mxu0 }
 0x172   : > { %2028 = vst [vmem:[%s2852_s30 + $0x28] sm:$0xff] %v1972_v56   ;;  %v1430_v4 = vadd.f32 %v2317_v23, %v2835_v19  ;;  %v2234_v58 = vpop.f32.mrb[61].mxu1  ;;  %v1421_v5 = vpop.f32.mrb[61].mxu0 }
 0x173   : > { %2027 = vst [vmem:[%s2852_s30 + $0x20] sm:$0xff] %v1967_v37   ;;  %v2235_v39 = vadd.f32 %v2234_v58, %v2233_v0  ;;  %v1422_v16 = vadd.f32 %v1421_v5, %v2825_v59  ;;  %v2236_v17 = vpop.f32.mrb[62].mxu1  ;;  %v2318_v30 = vpop.f32.mrb[62].mxu0 }
 0x174   : > { %v1433_v18 = vadd.f32 %v2318_v30, %v2837_v21  ;;  %v2237_v10 = vpop.f32.mrb[63].mxu1  ;;  %v1424_v25 = vpop.f32.mrb[63].mxu0  ;;  %v1514_v6 = vmax.f32 %v1430_v4, 0.0 }
 0x175   : > { %v2238_v19 = vadd.f32 %v2237_v10, %v2236_v17  ;;  %v1425_v28 = vadd.f32 %v1424_v25, %v2827_v34  ;;  %v1301_v24 = vadd.f32 %v2235_v39, %v1140_v13  ;;  %v1512_v15 = vmax.f32 %v1422_v16, 0.0 }
 0x176   : > { %v1515_v54 = vmax.f32 %v1433_v18, 0.0  ;;  %v1159_v39 = vadd.f32 %v2762_v14, %v2775_v42  ;;  %v1164_v14 = vadd.f32 %v2764_v20, %v2775_v42 }
 0x177   : > { %v1513_v31 = vmax.f32 %v1425_v28, 0.0  ;;  %v1304_v59 = vadd.f32 %v2238_v19, %v1143_v51 }
 0x178   : > { %v1982_v40 = vpack.c.bf16 %v1515_v54, %v1514_v6 }
 0x179   : > { %v1977_v52 = vpack.c.bf16 %v1513_v31, %v1512_v15  ;;  %v2239_v22 = vpop.f32.mrb[64].mxu1  ;;  %v2321_v21 = vpop.f32.mrb[64].mxu0 }
 0x17a   : > { %2030 = vst [vmem:[%s2852_s30 + $0x38] sm:$0xff] %v1982_v40   ;;  %v1446_v41 = vadd.f32 %v2321_v21, %v2866_v44  ;;  %v2240_v50 = vpop.f32.mrb[65].mxu1  ;;  %v1437_v35 = vpop.f32.mrb[65].mxu0 }
 0x17b   : > { %2029 = vst [vmem:[%s2852_s30 + $0x30] sm:$0xff] %v1977_v52   ;;  %v2241_v34 = vadd.f32 %v2240_v50, %v2239_v22  ;;  %v1438_v1 = vadd.f32 %v1437_v35, %v2847_v49  ;;  %v2242_v33 = vpop.f32.mrb[66].mxu1  ;;  %v2322_v43 = vpop.f32.mrb[66].mxu0 }
 0x17c   : > { %v1449_v45 = vadd.f32 %v2322_v43, %v2868_v29  ;;  %v2243_v46 = vpop.f32.mrb[67].mxu1  ;;  %v1440_v27 = vpop.f32.mrb[67].mxu0  ;;  %v1518_v60 = vmax.f32 %v1446_v41, 0.0  ;;  %v1167_v41 = vadd.f32 %v2766_v26, %v2775_v42 }
 0x17d   : > { %v2244_v44 = vadd.f32 %v2243_v46, %v2242_v33  ;;  %v1441_v9 = vadd.f32 %v1440_v27, %v2854_v12  ;;  %v1309_v63 = vadd.f32 %v2241_v34, %v1148_v48  ;;  %v1516_v36 = vmax.f32 %v1438_v1, 0.0 }
 0x17e   : > { %v1519_v53 = vmax.f32 %v1449_v45, 0.0 }
 0x17f   : > { %v1517_v55 = vmax.f32 %v1441_v9, 0.0  ;;  %v1312_v49 = vadd.f32 %v2244_v44, %v1151_v11 }
 0x180   : > { %v1992_v47 = vpack.c.bf16 %v1519_v53, %v1518_v60 }
 0x181   : > { %v1987_v3 = vpack.c.bf16 %v1517_v55, %v1516_v36  ;;  %v2245_v61 = vpop.f32.mrb[68].mxu1  ;;  %v2325_v29 = vpop.f32.mrb[68].mxu0 }
 0x182   : > { %2032 = vst [vmem:[%s2852_s30 + $0x48] sm:$0xff] %v1992_v47   ;;  %v1462_v7 = vadd.f32 %v2325_v29, %v1301_v24  ;;  %v2246_v56 = vpop.f32.mrb[69].mxu1  ;;  %v1453_v37 = vpop.f32.mrb[69].mxu0  ;;  %v1175_v47 = vadd.f32 %v2770_v38, %v2775_v42 }
 0x183   : > { %2031 = vst [vmem:[%s2852_s30 + $0x40] sm:$0xff] %v1987_v3   ;;  %v2247_v12 = vadd.f32 %v2246_v56, %v2245_v61  ;;  %v1454_v0 = vadd.f32 %v1453_v37, %v2880_v57  ;;  %v2248_v23 = vpop.f32.mrb[70].mxu1  ;;  %v2326_v4 = vpop.f32.mrb[70].mxu0 }
 0x184   : > { %v1465_v58 = vadd.f32 %v2326_v4, %v1304_v59  ;;  %v2249_v5 = vpop.f32.mrb[71].mxu1  ;;  %v1456_v13 = vpop.f32.mrb[71].mxu0  ;;  %v1522_v18 = vmax.f32 %v1462_v7, 0.0 }
 0x185   : > { %v2250_v16 = vadd.f32 %v2249_v5, %v2248_v23  ;;  %v1457_v17 = vadd.f32 %v1456_v13, %v2882_v62  ;;  %v1317_v30 = vadd.f32 %v2247_v12, %v1156_v2  ;;  %v1520_v10 = vmax.f32 %v1454_v0, 0.0 }
 0x186   : > { %v1523_v8 = vmax.f32 %v1465_v58, 0.0 }
 0x187   : > { %v1521_v25 = vmax.f32 %v1457_v17, 0.0  ;;  %v1320_v51 = vadd.f32 %v2250_v16, %v1159_v39 }
 0x188   : > { %v2002_v57 = vpack.c.bf16 %v1523_v8, %v1522_v18 }
 0x189   : > { %v1997_v19 = vpack.c.bf16 %v1521_v25, %v1520_v10  ;;  %v2251_v28 = vpop.f32.mrb[72].mxu1  ;;  %v2329_v24 = vpop.f32.mrb[72].mxu0 }
 0x18a   : > { %2034 = vst [vmem:[%s2852_s30 + $0x58] sm:$0xff] %v2002_v57   ;;  %v1478_v6 = vadd.f32 %v2329_v24, %v1317_v30  ;;  %v2252_v54 = vpop.f32.mrb[73].mxu1  ;;  %v1469_v15 = vpop.f32.mrb[73].mxu0 }
 0x18b   : > { %2033 = vst [vmem:[%s2852_s30 + $0x50] sm:$0xff] %v1997_v19   ;;  %v2253_v62 = vadd.f32 %v2252_v54, %v2251_v28  ;;  %v1470_v31 = vadd.f32 %v1469_v15, %v1309_v63  ;;  %v2254_v59 = vpop.f32.mrb[74].mxu1  ;;  %v2330_v40 = vpop.f32.mrb[74].mxu0  ;;  %v1172_v63 = vadd.f32 %v2768_v32, %v2775_v42 }
 0x18c   : > { %v1481_v52 = vadd.f32 %v2330_v40, %v1320_v51  ;;  %v2255_v22 = vpop.f32.mrb[75].mxu1  ;;  %v1472_v21 = vpop.f32.mrb[75].mxu0  ;;  %v1526_v34 = vmax.f32 %v1478_v6, 0.0 }
 0x18d   : > { %v2256_v50 = vadd.f32 %v2255_v22, %v2254_v59  ;;  %v1473_v35 = vadd.f32 %v1472_v21, %v1312_v49  ;;  %v1325_v48 = vadd.f32 %v2253_v62, %v1164_v14  ;;  %v1524_v33 = vmax.f32 %v1470_v31, 0.0 }
 0x18e   : > { %v1527_v1 = vmax.f32 %v1481_v52, 0.0 }
 0x18f   : > { %v1525_v20 = vmax.f32 %v1473_v35, 0.0  ;;  %v1328_v43 = vadd.f32 %v2256_v50, %v1167_v41 }
 0x190   : > { %v2012_v45 = vpack.c.bf16 %v1527_v1, %v1526_v34 }
 0x191   : > { %v2007_v46 = vpack.c.bf16 %v1525_v20, %v1524_v33  ;;  %v2257_v27 = vpop.f32.mrb[76].mxu1  ;;  %v2333_v11 = vpop.f32.mrb[76].mxu0 }
 0x192   : > { %2036 = vst [vmem:[%s2852_s30 + $0x68] sm:$0xff] %v2012_v45   ;;  %v2258_v44 = vpop.f32.mrb[77].mxu1  ;;  %v1485_v9 = vpop.f32.mrb[77].mxu0 }
 0x193   : > { %2035 = vst [vmem:[%s2852_s30 + $0x60] sm:$0xff] %v2007_v46   ;;  %v2259_v26 = vadd.f32 %v2258_v44, %v2257_v27  ;;  %v1486_v60 = vadd.f32 %v1485_v9, %v1325_v48  ;;  %v2260_v53 = vpop.f32.mrb[78].mxu1  ;;  %v2334_v36 = vpop.f32.mrb[78].mxu0 }
 0x194   : > { %v2261_v55 = vpop.f32.mrb[79].mxu1  ;;  %v1488_v49 = vpop.f32.mrb[79].mxu0 }
 0x195   : > { %v1333_v3 = vadd.f32 %v2259_v26, %v1172_v63  ;;  %v2262_v61 = vadd.f32 %v2261_v55, %v2260_v53  ;;  %v1489_v29 = vadd.f32 %v1488_v49, %v1328_v43  ;;  %v1528_v56 = vmax.f32 %v1486_v60, 0.0 }
 0x197   : > { %v1494_v7 = vadd.f32 %v2333_v11, %v1333_v3  ;;  %v1336_v37 = vadd.f32 %v2262_v61, %v1175_v47  ;;  %v1529_v2 = vmax.f32 %v1489_v29, 0.0 }
 0x199   : > { %v1497_v32 = vadd.f32 %v2334_v36, %v1336_v37  ;;  %v2017_v12 = vpack.c.bf16 %v1529_v2, %v1528_v56  ;;  %v1530_v0 = vmax.f32 %v1494_v7, 0.0 }
 0x19b   : > { %v1531_v23 = vmax.f32 %v1497_v32, 0.0  ;;  %2037 = vst [vmem:[%s2852_s30 + $0x70] sm:$0xff] %v2017_v12  }
 0x19d   : > { %v2022_v4 = vpack.c.bf16 %v1531_v23, %v1530_v0 }
 0x19f   : > { %2038 = vst [vmem:[%s2852_s30 + $0x78] sm:$0xff] %v2022_v4  }
 0x1a0 PF: > { %s13_s12 = sadd.s32 1, %s2518_s12  }
 0x1a1   : > { %p10_p4 = scmp.ge.s32.totalorder %s13_s12, 5  }
 0x1a3   :  { %12 = sbr.rel (!%p10_p4) target bundleno = 1 (0x1), region = 62 }

// kernel: retinanet_serve.28
= control target key start
LH: loop header
LB: loop body
LE: loop exit
PB: predicated region body
PF: predicated region fallthrough
CT: control target
= control target key end

     0   :  { %s2221_s12 = smov 0   ;;  %s2617_s0 = inlined_call_operand.vmem [shape: bf16[768,640], index: 0, kind: input, shape index: {}]   ;;  %s2618_s1 = inlined_call_operand.vmem [shape: bf16[640,128], index: 1, kind: input, shape index: {}]   ;;  %s2619_s2 = inlined_call_operand.vmem [shape: f32[1,128], index: 2, kind: input, shape index: {}]   ;;  %s2620_s3 = inlined_call_operand.vmem [shape: f32[768,128], index: 3, kind: output, shape index: {}]  }
   0x1 LB: > { %s1588_s13 = sadd.s32 4294967295, %s2199_s12   ;;  %p1592_p0 = scmp.ge.s32.totalorder %s2199_s12, 1  ;;  %s2199_s12 = sphi %s2221_s12, %s13_s12  }
   0x2   : > { %p139_p1 = scmp.lt.s32.totalorder %s2199_s12, 4 }
   0x4   : > { %p140_p2 = pnand %p1592_p0, %p139_p1 }
   0x5   : > { %v2041_v0 = vld [vmem:[%s2618_s1 + $0x40] sm:$0xff] (!%p140_p2)   ;;  %s1593_s16 = sshll.u32 (!%p140_p2), %s1588_s13, 5  ;;  %v2043_v2 = vld [vmem:[%s2618_s1 + $0x48] sm:$0xff] (!%p140_p2)   ;;  %v2045_v4 = vld [vmem:[%s2618_s1 + $0x50] sm:$0xff] (!%p140_p2)  }
   0x6   : > { %143 = sbr.rel (%p140_p2) target bundleno = 412 (0x19c), region = 32  ;;  %v2042_v1 = vld [vmem:[%s2618_s1] sm:$0xff] (!%p140_p2)   ;;  %1720 = vmatprep.subr.bf16.mxu0 (!%p140_p2), %v2041_v0  ;;  %2016 = vmatprep.subr.bf16.mxu1 (!%p140_p2), %v2041_v0  ;;  %p165_p3 = scmp.lt.s32.totalorder (!%p140_p2), %s1593_s16, 95  ;;  %v2044_v3 = vld [vmem:[%s2618_s1 + $0x8] sm:$0xff] (!%p140_p2)   ;;  %v2046_v5 = vld [vmem:[%s2618_s1 + $0x10] sm:$0xff] (!%p140_p2)  }
   0x7   : > { %1721 = vmatpush3.bf16.msra.mxu0 (!%p140_p2), %v2042_v1  ;;  %2024 = vmatpush3.bf16.msra.mxu1 (!%p140_p2), %v2042_v1  ;;  %v2047_v6 = vld [vmem:[%s2618_s1 + $0x58] sm:$0xff] (!%p140_p2)   ;;  %v2049_v8 = vld [vmem:[%s2618_s1 + $0x60] sm:$0xff] (!%p140_p2)   ;;  %v2051_v10 = vld [vmem:[%s2618_s1 + $0x68] sm:$0xff] (!%p140_p2)  }
   0x8   : > { %1722 = vmatprep.subr.bf16.mxu0 (!%p140_p2), %v2043_v2  ;;  %2017 = vmatprep.subr.bf16.mxu1 (!%p140_p2), %v2043_v2  ;;  %v2048_v7 = vld [vmem:[%s2618_s1 + $0x18] sm:$0xff] (!%p140_p2)   ;;  %v2050_v9 = vld [vmem:[%s2618_s1 + $0x20] sm:$0xff] (!%p140_p2)   ;;  %v2052_v13 = vld [vmem:[%s2618_s1 + $0x28] sm:$0xff] (!%p140_p2)  }
   0x9   : > { %v2053_v14 = vld [vmem:[%s2618_s1 + $0x70] sm:$0xff] (!%p140_p2)   ;;  %v2055_v16 = vld [vmem:[%s2618_s1 + $0x78] sm:$0xff] (!%p140_p2)   ;;  %v2063_v18 = vld [vmem:[%s2618_s1 + $0xc0] sm:$0xff] (!%p140_p2)  }
   0xa   : > { %v2054_v15 = vld [vmem:[%s2618_s1 + $0x30] sm:$0xff] (!%p140_p2)   ;;  %v2056_v17 = vld [vmem:[%s2618_s1 + $0x38] sm:$0xff] (!%p140_p2)   ;;  %v2066_v19 = vld [vmem:[%s2618_s1 + $0x100] sm:$0xff] (!%p140_p2)  }
   0xb   : > { %1723 = vmatpush3.bf16.msra.mxu0 (!%p140_p2), %v2044_v3  ;;  %2025 = vmatpush3.bf16.msra.mxu1 (!%p140_p2), %v2044_v3  ;;  %v2064_v22 = vld [vmem:[%s2618_s1 + $0x80] sm:$0xff] (!%p140_p2)   ;;  %v2065_v23 = vld [vmem:[%s2618_s1 + $0xc8] sm:$0xff] (!%p140_p2)   ;;  %v2074_v29 = vld [vmem:[%s2618_s1 + $0xd0] sm:$0xff] (!%p140_p2)  }
   0xc   : > { %1724 = vmatprep.subr.bf16.mxu0 (!%p140_p2), %v2045_v4  ;;  %2018 = vmatprep.subr.bf16.mxu1 (!%p140_p2), %v2045_v4  ;;  %v2085_v26 = vld [vmem:[%s2618_s1 + $0x108] sm:$0xff] (!%p140_p2)   ;;  %v2075_v31 = vld [vmem:[%s2618_s1 + $0x90] sm:$0xff] (!%p140_p2)   ;;  %v2076_v33 = vld [vmem:[%s2618_s1 + $0xd8] sm:$0xff] (!%p140_p2)  }
   0xd   : > { %s2622_s16 = smov (!%p165_p3, %s1593_s16), 95  ;;  %v2067_v27 = vld [vmem:[%s2618_s1 + $0x88] sm:$0xff]   ;;  %v2077_v35 = vld [vmem:[%s2618_s1 + $0x98] sm:$0xff]   ;;  %v2084_v36 = vld [vmem:[%s2618_s1 + $0xe0] sm:$0xff]  }
   0xe   : > { %s2032_s29 = smul.u32 20, %s2622_s16  ;;  %v2098_v38 = vld [vmem:[%s2618_s1 + $0x110] sm:$0xff]   ;;  %v2086_v40 = vld [vmem:[%s2618_s1 + $0xa0] sm:$0xff]   ;;  %v2087_v41 = vld [vmem:[%s2618_s1 + $0xe8] sm:$0xff]   ;;  %s1596_s27 = sshll.u32 %s2622_s16, 3 }
   0xf   : > { %1725 = vmatpush3.bf16.msra.mxu0 %v2046_v5  ;;  %2026 = vmatpush3.bf16.msra.mxu1 %v2046_v5  ;;  %v2088_v44 = vld [vmem:[%s2618_s1 + $0xa8] sm:$0xff]   ;;  %v2112_v45 = vld [vmem:[%s2618_s1 + $0x118] sm:$0xff]   ;;  %v2095_v48 = vld [vmem:[%s2618_s1 + $0xf0] sm:$0xff]   ;;  %s2526_s30 = scalar_lea.vmem %s2620_s3, %s1596_s27 }
  0x10   : > { %1726 = vmatprep.subr.bf16.mxu0 %v2047_v6  ;;  %2019 = vmatprep.subr.bf16.mxu1 %v2047_v6  ;;  %s2262_s9 = scalar_lea.vmem %s2617_s0, %s2032_s29  ;;  %v2096_v49 = vld [vmem:[%s2618_s1 + $0xb0] sm:$0xff]   ;;  %v2097_v50 = vld [vmem:[%s2618_s1 + $0xf8] sm:$0xff]   ;;  %v2119_v52 = vld [vmem:[%s2618_s1 + $0x120] sm:$0xff]  }
  0x11   : > { %v2059_v11 = vld [vmem:[%s2262_s9 + $0x4] ss:$20 sps:$4 sm:$0xff]   ;;  %v2057_v20 = vld [vmem:[%s2262_s9] ss:$20 sps:$4 sm:$0xff]   ;;  %v2072_v28 = vld [vmem:[%s2262_s9 + $0x28] ss:$20 sps:$4 sm:$0xff]  }
  0x12   : > { %v2062_v12 = vld [vmem:[%s2262_s9 + $0x1e4] ss:$20 sps:$4 sm:$0xff]   ;;  %1049 = vmatprep.mubr.bf16.mxu0 %v2059_v11  ;;  %v2060_v21 = vld [vmem:[%s2262_s9 + $0x1e0] ss:$20 sps:$4 sm:$0xff]   ;;  %v2073_v30 = vld [vmem:[%s2262_s9 + $0x208] ss:$20 sps:$4 sm:$0xff]  }
  0x13   : > { %1727 = vmatpush3.bf16.msra.mxu0 %v2048_v7  ;;  %2027 = vmatpush3.bf16.msra.mxu1 %v2048_v7  ;;  %v2068_v24 = vld [vmem:[%s2262_s9 + $0x2c] ss:$20 sps:$4 sm:$0xff]   ;;  %v2078_v32 = vld [vmem:[%s2262_s9 + $0x54] ss:$20 sps:$4 sm:$0xff]   ;;  %v2082_v37 = vld [vmem:[%s2262_s9 + $0x50] ss:$20 sps:$4 sm:$0xff]  }
  0x14   : > { %1728 = vmatprep.subr.bf16.mxu0 %v2049_v8  ;;  %2020 = vmatprep.subr.bf16.mxu1 %v2049_v8  ;;  %v2070_v25 = vld [vmem:[%s2262_s9 + $0x20c] ss:$20 sps:$4 sm:$0xff]   ;;  %v2080_v34 = vld [vmem:[%s2262_s9 + $0x234] ss:$20 sps:$4 sm:$0xff]   ;;  %v2083_v39 = vld [vmem:[%s2262_s9 + $0x230] ss:$20 sps:$4 sm:$0xff]  }
  0x15   : > { %1145 = vmatprep.mubr.bf16.mxu1 %v2062_v12  ;;  %v2089_v42 = vld [vmem:[%s2262_s9 + $0x7c] ss:$20 sps:$4 sm:$0xff]   ;;  %v2093_v46 = vld [vmem:[%s2262_s9 + $0x78] ss:$20 sps:$4 sm:$0xff]   ;;  %v2105_v56 = vld [vmem:[%s2262_s9 + $0xa0] ss:$20 sps:$4 sm:$0xff]  }
  0x16   : > { %v2091_v43 = vld [vmem:[%s2262_s9 + $0x25c] ss:$20 sps:$4 sm:$0xff]   ;;  %v2094_v47 = vld [vmem:[%s2262_s9 + $0x258] ss:$20 sps:$4 sm:$0xff]   ;;  %v2108_v59 = vld [vmem:[%s2262_s9 + $0x34] ss:$20 sps:$4 sm:$0xff]  }
  0x17   : > { %1729 = vmatpush3.bf16.msra.mxu0 %v2050_v9  ;;  %2028 = vmatpush3.bf16.msra.mxu1 %v2050_v9  ;;  %v2100_v51 = vld [vmem:[%s2262_s9 + $0xa4] ss:$20 sps:$4 sm:$0xff]   ;;  %v2104_v53 = vld [vmem:[%s2262_s9 + $0xc] ss:$20 sps:$4 sm:$0xff]   ;;  %v2102_v55 = vld [vmem:[%s2262_s9 + $0x8] ss:$20 sps:$4 sm:$0xff]  }
  0x18   : > { %1730 = vmatprep.subr.bf16.mxu0 %v2051_v10  ;;  %2021 = vmatprep.subr.bf16.mxu1 %v2051_v10  ;;  %v2099_v54 = vld [vmem:[%s2618_s1 + $0xb8] sm:$0xff]   ;;  %v2132_v57 = vld [vmem:[%s2618_s1 + $0x128] sm:$0xff]   ;;  %v2139_v60 = vld [vmem:[%s2618_s1 + $0x130] sm:$0xff]  }
  0x19   : > { %v2106_v58 = vld [vmem:[%s2262_s9 + $0xcc] ss:$20 sps:$4 sm:$0xff]   ;;  %v2110_v61 = vld [vmem:[%s2262_s9 + $0xc8] ss:$20 sps:$4 sm:$0xff]   ;;  %v2111_v62 = vld [vmem:[%s2262_s9 + $0x30] ss:$20 sps:$4 sm:$0xff]  }
  0x1a   : > { %v2113_v63 = vld [vmem:[%s2262_s9 + $0xf4] ss:$20 sps:$4 sm:$0xff]   ;;  %v2115_v0 = vld [vmem:[%s2262_s9 + $0x5c] ss:$20 sps:$4 sm:$0xff]   ;;  %v2118_v3 = vld [vmem:[%s2262_s9 + $0x58] ss:$20 sps:$4 sm:$0xff]  }
  0x1b   : > { %1731 = vmatpush3.bf16.msra.mxu0 %v2052_v13  ;;  %2029 = vmatpush3.bf16.msra.mxu1 %v2052_v13  ;;  %v2152_v1 = vld [vmem:[%s2618_s1 + $0x138] sm:$0xff]   ;;  %v2117_v2 = vld [vmem:[%s2262_s9 + $0xf0] ss:$20 sps:$4 sm:$0xff]   ;;  %v2125_v7 = vld [vmem:[%s2262_s9 + $0x80] ss:$20 sps:$4 sm:$0xff]  }
  0x1c   : > { %1732 = vmatprep.subr.bf16.mxu0 %v2053_v14  ;;  %2022 = vmatprep.subr.bf16.mxu1 %v2053_v14  ;;  %v2120_v4 = vld [vmem:[%s2262_s9 + $0x11c] ss:$20 sps:$4 sm:$0xff]   ;;  %v2122_v5 = vld [vmem:[%s2262_s9 + $0x84] ss:$20 sps:$4 sm:$0xff]   ;;  %v2128_v9 = vld [vmem:[%s2262_s9 + $0xac] ss:$20 sps:$4 sm:$0xff]  }
  0x1d   : > { %v2124_v6 = vld [vmem:[%s2262_s9 + $0x118] ss:$20 sps:$4 sm:$0xff]   ;;  %v2130_v10 = vld [vmem:[%s2262_s9 + $0x140] ss:$20 sps:$4 sm:$0xff]   ;;  %v2131_v11 = vld [vmem:[%s2262_s9 + $0xa8] ss:$20 sps:$4 sm:$0xff]  }
  0x1e   : > { %v2126_v8 = vld [vmem:[%s2262_s9 + $0x144] ss:$20 sps:$4 sm:$0xff]   ;;  %v2133_v12 = vld [vmem:[%s2262_s9 + $0x16c] ss:$20 sps:$4 sm:$0xff]   ;;  %v2135_v13 = vld [vmem:[%s2262_s9 + $0xd4] ss:$20 sps:$4 sm:$0xff]  }
  0x1f   : > { %1733 = vmatpush3.bf16.msra.mxu0 %v2054_v15  ;;  %2030 = vmatpush3.bf16.msra.mxu1 %v2054_v15  ;;  %v2137_v14 = vld [vmem:[%s2262_s9 + $0x168] ss:$20 sps:$4 sm:$0xff]   ;;  %v2138_v15 = vld [vmem:[%s2262_s9 + $0xd0] ss:$20 sps:$4 sm:$0xff]  }
  0x20   : > { %1734 = vmatprep.subr.bf16.mxu0 %v2055_v16  ;;  %2023 = vmatprep.subr.bf16.mxu1 %v2055_v16  ;;  %v2140_v16 = vld [vmem:[%s2262_s9 + $0x194] ss:$20 sps:$4 sm:$0xff]  }
  0x23   : > { %1735 = vmatpush3.bf16.msra.mxu0 %v2056_v17  ;;  %2031 = vmatpush3.bf16.msra.mxu1 %v2056_v17  ;;  %v2142_v17 = vld [vmem:[%s2262_s9 + $0xfc] ss:$20 sps:$4 sm:$0xff]  }
  0x24   : > { %1832 = vmatprep.subr.bf16.mxu1 %v2063_v18  ;;  %1968 = vmatprep.subr.bf16.mxu0 %v2066_v19  ;;  %v2144_v18 = vld [vmem:[%s2262_s9 + $0x190] ss:$20 sps:$4 sm:$0xff]  }
  0x26   : > { %1050 = vmatmul.mubr.bf16.vlgmr.msra.gmra.mrb[0].mxu0 %v2057_v20  ;;  %1146 = vmatmul.mubr.bf16.vlgmr.msra.gmra.mrb[0].mxu1 %v2060_v21  ;;  %v2146_v20 = vld [vmem:[%s2262_s9 + $0x1bc] ss:$20 sps:$4 sm:$0xff]   ;;  %v2148_v21 = vld [vmem:[%s2262_s9 + $0x124] ss:$20 sps:$4 sm:$0xff]  }
  0x27   : > { %1833 = vmatpush3.bf16.msra.mxu1 %v2064_v22  ;;  %1969 = vmatpush3.bf16.msra.mxu0 %v2066_v19  ;;  %v2145_v19 = vld [vmem:[%s2262_s9 + $0xf8] ss:$20 sps:$4 sm:$0xff]  }
  0x28   : > { %1834 = vmatprep.subr.bf16.mxu1 %v2065_v23  ;;  %1057 = vmatprep.mubr.bf16.mxu0 %v2068_v24  ;;  %v2150_v22 = vld [vmem:[%s2262_s9 + $0x1b8] ss:$20 sps:$4 sm:$0xff]   ;;  %v2151_v23 = vld [vmem:[%s2262_s9 + $0x120] ss:$20 sps:$4 sm:$0xff]  }
  0x29   : > { %1153 = vmatprep.mubr.bf16.mxu1 %v2070_v25  ;;  %1970 = vmatprep.subr.bf16.mxu0 %v2085_v26  ;;  %v2153_v24 = vld [vmem:[%s2262_s9 + $0x14c] ss:$20 sps:$4 sm:$0xff]   ;;  %v2155_v25 = vld [vmem:[%s2262_s9 + $0x10] ss:$20 sps:$4 sm:$0xff]  }
  0x2b   : > { %1835 = vmatpush3.bf16.msra.mxu1 %v2067_v27  ;;  %1971 = vmatpush3.bf16.msra.mxu0 %v2085_v26  ;;  %v2156_v26 = vld [vmem:[%s2262_s9 + $0x148] ss:$20 sps:$4 sm:$0xff]   ;;  %v2157_v27 = vld [vmem:[%s2262_s9 + $0x38] ss:$20 sps:$4 sm:$0xff]  }
  0x2c   : > { %1836 = vmatprep.subr.bf16.mxu1 %v2074_v29  ;;  %1972 = vmatprep.subr.bf16.mxu0 %v2098_v38  ;;  %v2160_v29 = vld [vmem:[%s2262_s9 + $0x60] ss:$20 sps:$4 sm:$0xff]  }
  0x2e   : > { %1058 = vmatmul.mubr.bf16.gmra.mrb[4].mxu0 %v2072_v28  ;;  %1154 = vmatmul.mubr.bf16.gmra.mrb[4].mxu1 %v2073_v30  ;;  %v2158_v28 = vld [vmem:[%s2262_s9 + $0x174] ss:$20 sps:$4 sm:$0xff]   ;;  %v2161_v30 = vld [vmem:[%s2262_s9 + $0x170] ss:$20 sps:$4 sm:$0xff]  }
  0x2f   : > { %1837 = vmatpush3.bf16.msra.mxu1 %v2075_v31  ;;  %1065 = vmatprep.mubr.bf16.mxu0 %v2078_v32  ;;  %v2162_v31 = vld [vmem:[%s2262_s9 + $0x88] ss:$20 sps:$4 sm:$0xff]  }
  0x30   : > { %1838 = vmatprep.subr.bf16.mxu1 %v2076_v33  ;;  %1161 = vmatprep.mubr.bf16.mxu1 %v2080_v34  ;;  %v2163_v32 = vld [vmem:[%s2262_s9 + $0x19c] ss:$20 sps:$4 sm:$0xff]   ;;  %v2166_v34 = vld [vmem:[%s2262_s9 + $0x198] ss:$20 sps:$4 sm:$0xff]  }
  0x31   : > { %1973 = vmatpush3.bf16.msra.mxu0 %v2098_v38  ;;  %v2165_v33 = vld [vmem:[%s2262_s9 + $0xb0] ss:$20 sps:$4 sm:$0xff]   ;;  %v2171_v38 = vld [vmem:[%s2262_s9 + $0x1c0] ss:$20 sps:$4 sm:$0xff]  }
  0x32   : > { %1974 = vmatprep.subr.bf16.mxu0 %v2112_v45 }
  0x33   : > { %1839 = vmatpush3.bf16.msra.mxu1 %v2077_v35  ;;  %v2167_v35 = vld [vmem:[%s2262_s9 + $0xd8] ss:$20 sps:$4 sm:$0xff]  }
  0x34   : > { %1840 = vmatprep.subr.bf16.mxu1 %v2084_v36  ;;  %v2168_v36 = vld [vmem:[%s2262_s9 + $0x1c4] ss:$20 sps:$4 sm:$0xff]  }
  0x35   : > { %1975 = vmatpush3.bf16.msra.mxu0 %v2112_v45  ;;  %v2180_v45 = vld [vmem:[%s2262_s9 + $0x1a0] ss:$20 sps:$4 sm:$0xff]  }
  0x36   : > { %1066 = vmatmul.mubr.bf16.gmra.mrb[8].mxu0 %v2082_v37  ;;  %1162 = vmatmul.mubr.bf16.gmra.mrb[8].mxu1 %v2083_v39  ;;  %v2170_v37 = vld [vmem:[%s2262_s9 + $0x100] ss:$20 sps:$4 sm:$0xff]   ;;  %v2172_v39 = vld [vmem:[%s2262_s9 + $0x128] ss:$20 sps:$4 sm:$0xff]  }
  0x37   : > { %1841 = vmatpush3.bf16.msra.mxu1 %v2086_v40  ;;  %1073 = vmatprep.mubr.bf16.mxu0 %v2089_v42  ;;  %v2173_v40 = vld [vmem:[%s2262_s9 + $0x1ec] ss:$20 sps:$4 sm:$0xff]   ;;  %v2176_v42 = vld [vmem:[%s2262_s9 + $0x1e8] ss:$20 sps:$4 sm:$0xff]  }
  0x38   : > { %1842 = vmatprep.subr.bf16.mxu1 %v2087_v41  ;;  %1169 = vmatprep.mubr.bf16.mxu1 %v2091_v43  ;;  %v2175_v41 = vld [vmem:[%s2262_s9 + $0x150] ss:$20 sps:$4 sm:$0xff]   ;;  %v2177_v43 = vld [vmem:[%s2262_s9 + $0x178] ss:$20 sps:$4 sm:$0xff]  }
  0x39   : > { %1976 = vmatprep.subr.bf16.mxu0 %v2119_v52 }
  0x3a   : > { %1977 = vmatpush3.bf16.msra.mxu0 %v2119_v52  ;;  %v2188_v52 = vld [vmem:[%s2262_s9 + $0x264] ss:$20 sps:$4 sm:$0xff]  }
  0x3b   : > { %1843 = vmatpush3.bf16.msra.mxu1 %v2088_v44  ;;  %1978 = vmatprep.subr.bf16.mxu0 %v2132_v57  ;;  %v2178_v44 = vld [vmem:[%s2262_s9 + $0x214] ss:$20 sps:$4 sm:$0xff]  }
  0x3c   : > { %1844 = vmatprep.subr.bf16.mxu1 %v2095_v48  ;;  %v2183_v48 = vld [vmem:[%s2262_s9 + $0x23c] ss:$20 sps:$4 sm:$0xff]  }
  0x3e   : > { %1074 = vmatmul.mubr.bf16.gmra.mrb[12].mxu0 %v2093_v46  ;;  %1170 = vmatmul.mubr.bf16.gmra.mrb[12].mxu1 %v2094_v47  ;;  %v2181_v46 = vld [vmem:[%s2262_s9 + $0x210] ss:$20 sps:$4 sm:$0xff]   ;;  %v2182_v47 = vld [vmem:[%s2262_s9 + $0x1c8] ss:$20 sps:$4 sm:$0xff]  }
  0x3f   : > { %1845 = vmatpush3.bf16.msra.mxu1 %v2096_v49  ;;  %1081 = vmatprep.mubr.bf16.mxu0 %v2100_v51  ;;  %v2185_v49 = vld [vmem:[%s2262_s9 + $0x1f0] ss:$20 sps:$4 sm:$0xff]   ;;  %v2187_v51 = vld [vmem:[%s2262_s9 + $0x218] ss:$20 sps:$4 sm:$0xff]  }
  0x40   : > { %1846 = vmatprep.subr.bf16.mxu1 %v2097_v50  ;;  %1210 = vmatprep.mubr.bf16.mxu1 %v2104_v53  ;;  %v2186_v50 = vld [vmem:[%s2262_s9 + $0x238] ss:$20 sps:$4 sm:$0xff]   ;;  %v2190_v53 = vld [vmem:[%s2262_s9 + $0x240] ss:$20 sps:$4 sm:$0xff]  }
  0x41   : > { %1979 = vmatpush3.bf16.msra.mxu0 %v2132_v57 }
  0x42   : > { %1980 = vmatprep.subr.bf16.mxu0 %v2139_v60 }
  0x43   : > { %1847 = vmatpush3.bf16.msra.mxu1 %v2099_v54  ;;  %v2191_v54 = vld [vmem:[%s2262_s9 + $0x260] ss:$20 sps:$4 sm:$0xff]  }
  0x45   : > { %1981 = vmatpush3.bf16.msra.mxu0 %v2139_v60 }
  0x46   : > { %1082 = vmatmul.mubr.bf16.gmra.mrb[16].mxu0 %v2105_v56  ;;  %1211 = vmatmul.mubr.bf16.vlgmr.msra.gmra.mrb[16].mxu1 %v2102_v55  ;;  %v2192_v55 = vld [vmem:[%s2262_s9 + $0x268] ss:$20 sps:$4 sm:$0xff]  }
  0x47   : > { %1089 = vmatprep.mubr.bf16.mxu0 %v2106_v58  ;;  %1218 = vmatprep.mubr.bf16.mxu1 %v2108_v59 }
  0x48   : > { %1982 = vmatprep.subr.bf16.mxu0 %v2152_v1 }
  0x49   : > { %1983 = vmatpush3.bf16.msra.mxu0 %v2152_v1 }
  0x4e   : > { %1090 = vmatmul.mubr.bf16.gmra.mrb[20].mxu0 %v2110_v61  ;;  %1219 = vmatmul.mubr.bf16.gmra.mrb[20].mxu1 %v2111_v62 }
  0x4f   : > { %1097 = vmatprep.mubr.bf16.mxu0 %v2113_v63  ;;  %1226 = vmatprep.mubr.bf16.mxu1 %v2115_v0 }
  0x56   : > { %1098 = vmatmul.mubr.bf16.gmra.mrb[24].mxu0 %v2117_v2  ;;  %1227 = vmatmul.mubr.bf16.gmra.mrb[24].mxu1 %v2118_v3 }
  0x57   : > { %1105 = vmatprep.mubr.bf16.mxu0 %v2120_v4  ;;  %1234 = vmatprep.mubr.bf16.mxu1 %v2122_v5 }
  0x5e   : > { %1106 = vmatmul.mubr.bf16.gmra.mrb[28].mxu0 %v2124_v6  ;;  %1235 = vmatmul.mubr.bf16.gmra.mrb[28].mxu1 %v2125_v7 }
  0x5f   : > { %1113 = vmatprep.mubr.bf16.mxu0 %v2126_v8  ;;  %1242 = vmatprep.mubr.bf16.mxu1 %v2128_v9 }
  0x66   : > { %1114 = vmatmul.mubr.bf16.gmra.mrb[32].mxu0 %v2130_v10  ;;  %1243 = vmatmul.mubr.bf16.gmra.mrb[32].mxu1 %v2131_v11 }
  0x67   : > { %1121 = vmatprep.mubr.bf16.mxu0 %v2133_v12  ;;  %1250 = vmatprep.mubr.bf16.mxu1 %v2135_v13 }
  0x6e   : > { %1122 = vmatmul.mubr.bf16.gmra.mrb[36].mxu0 %v2137_v14  ;;  %1251 = vmatmul.mubr.bf16.gmra.mrb[36].mxu1 %v2138_v15 }
  0x6f   : > { %1129 = vmatprep.mubr.bf16.mxu0 %v2140_v16  ;;  %1258 = vmatprep.mubr.bf16.mxu1 %v2142_v17 }
  0x76   : > { %1130 = vmatmul.mubr.bf16.gmra.mrb[40].mxu0 %v2144_v18  ;;  %1259 = vmatmul.mubr.bf16.gmra.mrb[40].mxu1 %v2145_v19 }
  0x77   : > { %1137 = vmatprep.mubr.bf16.mxu0 %v2146_v20  ;;  %1266 = vmatprep.mubr.bf16.mxu1 %v2148_v21 }
  0x7e   : > { %1138 = vmatmul.mubr.bf16.gmra.mrb[44].mxu0 %v2150_v22  ;;  %1267 = vmatmul.mubr.bf16.gmra.mrb[44].mxu1 %v2151_v23 }
  0x7f   : > { %1274 = vmatprep.mubr.bf16.mxu1 %v2153_v24  ;;  %1984 = vmatprep.mubr.bf16.mxu0 %v2155_v25 }
  0x86   : > { %1275 = vmatmul.mubr.bf16.gmra.mrb[48].mxu1 %v2156_v26  ;;  %1985 = vmatmul.mubr.bf16.vlgmr.msra.gmra.mrb[48].mxu0 %v2157_v27 }
  0x87   : > { %1282 = vmatprep.mubr.bf16.mxu1 %v2158_v28  ;;  %1988 = vmatprep.mubr.bf16.mxu0 %v2160_v29 }
  0x8e   : > { %1283 = vmatmul.mubr.bf16.gmra.mrb[52].mxu1 %v2161_v30  ;;  %1989 = vmatmul.mubr.bf16.gmra.mrb[52].mxu0 %v2162_v31 }
  0x8f   : > { %1290 = vmatprep.mubr.bf16.mxu1 %v2163_v32  ;;  %1992 = vmatprep.mubr.bf16.mxu0 %v2165_v33 }
  0x96   : > { %1291 = vmatmul.mubr.bf16.gmra.mrb[56].mxu1 %v2166_v34  ;;  %1993 = vmatmul.mubr.bf16.gmra.mrb[56].mxu0 %v2167_v35 }
  0x97   : > { %1298 = vmatprep.mubr.bf16.mxu1 %v2168_v36  ;;  %1996 = vmatprep.mubr.bf16.mxu0 %v2170_v37 }
  0x9e   : > { %1299 = vmatmul.mubr.bf16.gmra.mrb[60].mxu1 %v2171_v38  ;;  %1997 = vmatmul.mubr.bf16.gmra.mrb[60].mxu0 %v2172_v39 }
  0x9f   : > { %1306 = vmatprep.mubr.bf16.mxu1 %v2173_v40  ;;  %2000 = vmatprep.mubr.bf16.mxu0 %v2175_v41 }
  0xa6   : > { %1307 = vmatmul.mubr.bf16.gmra.mrb[64].mxu1 %v2176_v42  ;;  %2001 = vmatmul.mubr.bf16.gmra.mrb[64].mxu0 %v2177_v43  ;;  %v2456_v42 = vld [vmem:[%s2619_s2] ss:$0 sm:$0xff] }
  0xa7   : > { %1314 = vmatprep.mubr.bf16.mxu1 %v2178_v44  ;;  %2004 = vmatprep.mubr.bf16.mxu0 %v2180_v45 }
  0xae   : > { %1315 = vmatmul.mubr.bf16.gmra.mrb[68].mxu1 %v2181_v46  ;;  %2005 = vmatmul.mubr.bf16.gmra.mrb[68].mxu0 %v2182_v47 }
  0xaf   : > { %1322 = vmatprep.mubr.bf16.mxu1 %v2183_v48  ;;  %2008 = vmatprep.mubr.bf16.mxu0 %v2185_v49 }
  0xb6   : > { %1323 = vmatmul.mubr.bf16.gmra.mrb[72].mxu1 %v2186_v50  ;;  %2009 = vmatmul.mubr.bf16.gmra.mrb[72].mxu0 %v2187_v51 }
  0xb7   : > { %1330 = vmatprep.mubr.bf16.mxu1 %v2188_v52  ;;  %2012 = vmatprep.mubr.bf16.mxu0 %v2190_v53 }
  0xbe   : > { %1331 = vmatmul.mubr.bf16.gmra.mrb[76].mxu1 %v2191_v54  ;;  %2013 = vmatmul.mubr.bf16.gmra.mrb[76].mxu0 %v2192_v55 }
  0xf9   : > { %v1808_v56 = vpop.f32.mrb[0].mxu1  ;;  %v1736_v57 = vpop.f32.mrb[0].mxu0 }
  0xfa   : > { %v1809_v58 = vpop.f32.mrb[1].mxu1  ;;  %v1737_v59 = vpop.f32.mrb[1].mxu0 }
  0xfb   : > { %v2437_v60 = vadd.f32 %v1809_v58, %v1808_v56  ;;  %v1811_v61 = vpop.f32.mrb[2].mxu1  ;;  %v1738_v62 = vadd.f32 %v1737_v59, %v1736_v57  ;;  %v1739_v63 = vpop.f32.mrb[2].mxu0 }
  0xfc   : > { %v1812_v0 = vpop.f32.mrb[3].mxu1  ;;  %v1740_v1 = vpop.f32.mrb[3].mxu0 }
  0xfd   : > { %v2439_v2 = vadd.f32 %v1812_v0, %v1811_v61  ;;  %v1741_v3 = vadd.f32 %v1740_v1, %v1739_v63  ;;  %v1052_v45 = vadd.f32 %v1738_v62, %v2456_v42 }
  0xff   : > { %v1055_v52 = vadd.f32 %v1741_v3, %v2456_v42 }
 0x101   : > { %v1814_v4 = vpop.f32.mrb[4].mxu1  ;;  %v1742_v5 = vpop.f32.mrb[4].mxu0 }
 0x102   : > { %v1815_v6 = vpop.f32.mrb[5].mxu1  ;;  %v1743_v7 = vpop.f32.mrb[5].mxu0 }
 0x103   : > { %v2441_v8 = vadd.f32 %v1815_v6, %v1814_v4  ;;  %v1817_v9 = vpop.f32.mrb[6].mxu1  ;;  %v1744_v10 = vadd.f32 %v1743_v7, %v1742_v5  ;;  %v1745_v11 = vpop.f32.mrb[6].mxu0 }
 0x104   : > { %v1818_v12 = vpop.f32.mrb[7].mxu1  ;;  %v1746_v13 = vpop.f32.mrb[7].mxu0 }
 0x105   : > { %v2443_v14 = vadd.f32 %v1818_v12, %v1817_v9  ;;  %v1747_v15 = vadd.f32 %v1746_v13, %v1745_v11  ;;  %v1060_v62 = vadd.f32 %v1744_v10, %v2456_v42 }
 0x107   : > { %v1063_v3 = vadd.f32 %v1747_v15, %v2456_v42 }
 0x109   : > { %v1820_v16 = vpop.f32.mrb[8].mxu1  ;;  %v1748_v17 = vpop.f32.mrb[8].mxu0 }
 0x10a   : > { %v1821_v18 = vpop.f32.mrb[9].mxu1  ;;  %v1749_v19 = vpop.f32.mrb[9].mxu0 }
 0x10b   : > { %v2445_v20 = vadd.f32 %v1821_v18, %v1820_v16  ;;  %v1823_v21 = vpop.f32.mrb[10].mxu1  ;;  %v1750_v22 = vadd.f32 %v1749_v19, %v1748_v17  ;;  %v1751_v23 = vpop.f32.mrb[10].mxu0 }
 0x10c   : > { %v1824_v24 = vpop.f32.mrb[11].mxu1  ;;  %v1752_v25 = vpop.f32.mrb[11].mxu0 }
 0x10d   : > { %v2447_v26 = vadd.f32 %v1824_v24, %v1823_v21  ;;  %v1753_v27 = vadd.f32 %v1752_v25, %v1751_v23  ;;  %v1068_v10 = vadd.f32 %v1750_v22, %v2456_v42 }
 0x10f   : > { %v1071_v15 = vadd.f32 %v1753_v27, %v2456_v42 }
 0x111   : > { %v1826_v28 = vpop.f32.mrb[12].mxu1  ;;  %v1754_v29 = vpop.f32.mrb[12].mxu0 }
 0x112   : > { %v1827_v30 = vpop.f32.mrb[13].mxu1  ;;  %v1755_v31 = vpop.f32.mrb[13].mxu0 }
 0x113   : > { %v2449_v32 = vadd.f32 %v1827_v30, %v1826_v28  ;;  %v1829_v33 = vpop.f32.mrb[14].mxu1  ;;  %v1756_v34 = vadd.f32 %v1755_v31, %v1754_v29  ;;  %v1757_v35 = vpop.f32.mrb[14].mxu0 }
 0x114   : > { %v1830_v36 = vpop.f32.mrb[15].mxu1  ;;  %v1758_v37 = vpop.f32.mrb[15].mxu0 }
 0x115   : > { %v2451_v38 = vadd.f32 %v1830_v36, %v1829_v33  ;;  %v1759_v39 = vadd.f32 %v1758_v37, %v1757_v35  ;;  %v1076_v22 = vadd.f32 %v1756_v34, %v2456_v42 }
 0x117   : > { %v1079_v27 = vadd.f32 %v1759_v39, %v2456_v42 }
 0x119   : > { %v1848_v40 = vpop.f32.mrb[16].mxu1  ;;  %v1760_v41 = vpop.f32.mrb[16].mxu0 }
 0x11a   : > { %v1849_v43 = vpop.f32.mrb[17].mxu1  ;;  %v1761_v44 = vpop.f32.mrb[17].mxu0 }
 0x11b   : > { %v1850_v46 = vadd.f32 %v1849_v43, %v1848_v40  ;;  %v1851_v47 = vpop.f32.mrb[18].mxu1  ;;  %v1762_v48 = vadd.f32 %v1761_v44, %v1760_v41  ;;  %v1763_v49 = vpop.f32.mrb[18].mxu0 }
 0x11c   : > { %v1852_v50 = vpop.f32.mrb[19].mxu1  ;;  %v1764_v51 = vpop.f32.mrb[19].mxu0 }
 0x11d   : > { %v1853_v53 = vadd.f32 %v1852_v50, %v1851_v47  ;;  %v1765_v54 = vadd.f32 %v1764_v51, %v1763_v49  ;;  %v2460_v55 = vadd.f32 %v1850_v46, %v1052_v45  ;;  %v1084_v34 = vadd.f32 %v1762_v48, %v2456_v42 }
 0x11f   : > { %v2462_v56 = vadd.f32 %v1853_v53, %v1055_v52  ;;  %v1087_v39 = vadd.f32 %v1765_v54, %v2456_v42 }
 0x121   : > { %v1854_v57 = vpop.f32.mrb[20].mxu1  ;;  %v1766_v58 = vpop.f32.mrb[20].mxu0 }
 0x122   : > { %v1855_v59 = vpop.f32.mrb[21].mxu1  ;;  %v1767_v61 = vpop.f32.mrb[21].mxu0 }
 0x123   : > { %v1856_v63 = vadd.f32 %v1855_v59, %v1854_v57  ;;  %v1857_v0 = vpop.f32.mrb[22].mxu1  ;;  %v1768_v1 = vadd.f32 %v1767_v61, %v1766_v58  ;;  %v1769_v4 = vpop.f32.mrb[22].mxu0 }
 0x124   : > { %v1858_v5 = vpop.f32.mrb[23].mxu1  ;;  %v1770_v6 = vpop.f32.mrb[23].mxu0 }
 0x125   : > { %v1859_v7 = vadd.f32 %v1858_v5, %v1857_v0  ;;  %v1771_v9 = vadd.f32 %v1770_v6, %v1769_v4  ;;  %v2466_v11 = vadd.f32 %v1856_v63, %v1060_v62 }
 0x127   : > { %v2468_v12 = vadd.f32 %v1859_v7, %v1063_v3 }
 0x129   : > { %v1860_v13 = vpop.f32.mrb[24].mxu1  ;;  %v1772_v16 = vpop.f32.mrb[24].mxu0 }
 0x12a   : > { %v1861_v17 = vpop.f32.mrb[25].mxu1  ;;  %v1773_v18 = vpop.f32.mrb[25].mxu0 }
 0x12b   : > { %v1862_v19 = vadd.f32 %v1861_v17, %v1860_v13  ;;  %v1863_v21 = vpop.f32.mrb[26].mxu1  ;;  %v1774_v23 = vadd.f32 %v1773_v18, %v1772_v16  ;;  %v1775_v24 = vpop.f32.mrb[26].mxu0 }
 0x12c   : > { %v1864_v25 = vpop.f32.mrb[27].mxu1  ;;  %v1776_v28 = vpop.f32.mrb[27].mxu0 }
 0x12d   : > { %v1865_v29 = vadd.f32 %v1864_v25, %v1863_v21  ;;  %v1777_v30 = vadd.f32 %v1776_v28, %v1775_v24  ;;  %v2472_v31 = vadd.f32 %v1862_v19, %v1068_v10  ;;  %v1092_v10 = vadd.f32 %v1768_v1, %v2456_v42 }
 0x12f   : > { %v2474_v33 = vadd.f32 %v1865_v29, %v1071_v15  ;;  %v1095_v15 = vadd.f32 %v1771_v9, %v2456_v42 }
 0x131   : > { %v1866_v35 = vpop.f32.mrb[28].mxu1  ;;  %v1778_v36 = vpop.f32.mrb[28].mxu0 }
 0x132   : > { %v1867_v37 = vpop.f32.mrb[29].mxu1  ;;  %v1779_v40 = vpop.f32.mrb[29].mxu0 }
 0x133   : > { %v1868_v41 = vadd.f32 %v1867_v37, %v1866_v35  ;;  %v1869_v43 = vpop.f32.mrb[30].mxu1  ;;  %v1780_v44 = vadd.f32 %v1779_v40, %v1778_v36  ;;  %v1781_v45 = vpop.f32.mrb[30].mxu0 }
 0x134   : > { %v1870_v46 = vpop.f32.mrb[31].mxu1  ;;  %v1782_v47 = vpop.f32.mrb[31].mxu0 }
 0x135   : > { %v1871_v49 = vadd.f32 %v1870_v46, %v1869_v43  ;;  %v1783_v50 = vadd.f32 %v1782_v47, %v1781_v45  ;;  %v2478_v51 = vadd.f32 %v1868_v41, %v1076_v22  ;;  %v1100_v43 = vadd.f32 %v1774_v23, %v2456_v42 }
 0x137   : > { %v2480_v52 = vadd.f32 %v1871_v49, %v1079_v27 }
 0x139   : > { %v1872_v53 = vpop.f32.mrb[32].mxu1  ;;  %v1784_v57 = vpop.f32.mrb[32].mxu0 }
 0x13a   : > { %v1873_v58 = vpop.f32.mrb[33].mxu1  ;;  %v1785_v59 = vpop.f32.mrb[33].mxu0 }
 0x13b   : > { %v1874_v61 = vadd.f32 %v1873_v58, %v1872_v53  ;;  %v1875_v62 = vpop.f32.mrb[34].mxu1  ;;  %v2483_v63 = vadd.f32 %v1785_v59, %v1784_v57  ;;  %v1787_v0 = vpop.f32.mrb[34].mxu0  ;;  %v1103_v53 = vadd.f32 %v1777_v30, %v2456_v42 }
 0x13c   : > { %v1876_v4 = vpop.f32.mrb[35].mxu1  ;;  %v1788_v5 = vpop.f32.mrb[35].mxu0 }
 0x13d   : > { %v1877_v6 = vadd.f32 %v1876_v4, %v1875_v62  ;;  %v2486_v3 = vadd.f32 %v1788_v5, %v1787_v0  ;;  %v2488_v7 = vadd.f32 %v1874_v61, %v1084_v34  ;;  %v1108_v4 = vadd.f32 %v1780_v44, %v2456_v42 }
 0x13f   : > { %v2490_v13 = vadd.f32 %v1877_v6, %v1087_v39 }
 0x141   : > { %v1878_v16 = vpop.f32.mrb[36].mxu1  ;;  %v1790_v17 = vpop.f32.mrb[36].mxu0 }
 0x142   : > { %v1879_v18 = vpop.f32.mrb[37].mxu1  ;;  %v1791_v48 = vpop.f32.mrb[37].mxu0 }
 0x143   : > { %v1880_v19 = vadd.f32 %v1879_v18, %v1878_v16  ;;  %v1881_v21 = vpop.f32.mrb[38].mxu1  ;;  %v2493_v24 = vadd.f32 %v1791_v48, %v1790_v17  ;;  %v1793_v25 = vpop.f32.mrb[38].mxu0  ;;  %v1111_v18 = vadd.f32 %v1783_v50, %v2456_v42 }
 0x144   : > { %v1882_v28 = vpop.f32.mrb[39].mxu1  ;;  %v1794_v54 = vpop.f32.mrb[39].mxu0 }
 0x145   : > { %v1883_v29 = vadd.f32 %v1882_v28, %v1881_v21  ;;  %v2496_v35 = vadd.f32 %v1794_v54, %v1793_v25  ;;  %v2498_v36 = vadd.f32 %v1880_v19, %v1092_v10 }
 0x147   : > { %v2500_v37 = vadd.f32 %v1883_v29, %v1095_v15  ;;  %v1116_v15 = vadd.f32 %v2483_v63, %v2456_v42 }
 0x149   : > { %v1884_v40 = vpop.f32.mrb[40].mxu1  ;;  %v1796_v22 = vpop.f32.mrb[40].mxu0 }
 0x14a   : > { %v1885_v41 = vpop.f32.mrb[41].mxu1  ;;  %v1797_v1 = vpop.f32.mrb[41].mxu0 }
 0x14b   : > { %v1886_v45 = vadd.f32 %v1885_v41, %v1884_v40  ;;  %v1887_v46 = vpop.f32.mrb[42].mxu1  ;;  %v2503_v47 = vadd.f32 %v1797_v1, %v1796_v22  ;;  %v1799_v27 = vpop.f32.mrb[42].mxu0 }
 0x14c   : > { %v1888_v49 = vpop.f32.mrb[43].mxu1  ;;  %v1800_v9 = vpop.f32.mrb[43].mxu0 }
 0x14d   : > { %v1889_v57 = vadd.f32 %v1888_v49, %v1887_v46  ;;  %v2506_v58 = vadd.f32 %v1800_v9, %v1799_v27  ;;  %v2508_v59 = vadd.f32 %v1886_v45, %v1100_v43 }
 0x14f   : > { %v2510_v34 = vadd.f32 %v1889_v57, %v1103_v53 }
 0x151   : > { %v1890_v61 = vpop.f32.mrb[44].mxu1  ;;  %v1802_v62 = vpop.f32.mrb[44].mxu0 }
 0x152   : > { %v1891_v23 = vpop.f32.mrb[45].mxu1  ;;  %v1803_v0 = vpop.f32.mrb[45].mxu0 }
 0x153   : > { %v1892_v5 = vadd.f32 %v1891_v23, %v1890_v61  ;;  %v1893_v39 = vpop.f32.mrb[46].mxu1  ;;  %v2513_v6 = vadd.f32 %v1803_v0, %v1802_v62  ;;  %v1805_v16 = vpop.f32.mrb[46].mxu0 }
 0x154   : > { %v1894_v30 = vpop.f32.mrb[47].mxu1  ;;  %v1806_v17 = vpop.f32.mrb[47].mxu0 }
 0x155   : > { %v1895_v48 = vadd.f32 %v1894_v30, %v1893_v39  ;;  %v2516_v10 = vadd.f32 %v1806_v17, %v1805_v16  ;;  %v2518_v19 = vadd.f32 %v1892_v5, %v1108_v4 }
 0x157   : > { %v2521_v21 = vadd.f32 %v1895_v48, %v1111_v18 }
 0x159   : > { %v1896_v25 = vpop.f32.mrb[48].mxu1  ;;  %v1986_v44 = vpop.f32.mrb[48].mxu0 }
 0x15a   : > { %v1382_v28 = vadd.f32 %v1986_v44, %v2466_v11  ;;  %v1897_v50 = vpop.f32.mrb[49].mxu1  ;;  %v1373_v54 = vpop.f32.mrb[49].mxu0  ;;  %v1119_v11 = vadd.f32 %v2486_v3, %v2456_v42  ;;  %v1124_v3 = vadd.f32 %v2493_v24, %v2456_v42 }
 0x15b   : > { %v1898_v29 = vadd.f32 %v1897_v50, %v1896_v25  ;;  %v1374_v40 = vadd.f32 %v1373_v54, %v2460_v55  ;;  %v1899_v22 = vpop.f32.mrb[50].mxu1  ;;  %v1987_v41 = vpop.f32.mrb[50].mxu0 }
 0x15c   : > { %1502 = vst [vmem:[%s2526_s30 + $0x10] sm:$0xff] %v1382_v28  ;;  %v1385_v1 = vadd.f32 %v1987_v41, %v2468_v12  ;;  %v1900_v43 = vpop.f32.mrb[51].mxu1  ;;  %v1376_v45 = vpop.f32.mrb[51].mxu0 }
 0x15d   : > { %1500 = vst [vmem:[%s2526_s30] sm:$0xff] %v1374_v40  ;;  %v1901_v46 = vadd.f32 %v1900_v43, %v1899_v22  ;;  %v1377_v27 = vadd.f32 %v1376_v45, %v2462_v56  ;;  %v2538_v49 = vadd.f32 %v1898_v29, %v1116_v15 }
 0x15e   : > { %1503 = vst [vmem:[%s2526_s30 + $0x18] sm:$0xff] %v1385_v1 }
 0x15f   : > { %1501 = vst [vmem:[%s2526_s30 + $0x8] sm:$0xff] %v1377_v27  ;;  %v2542_v55 = vadd.f32 %v1901_v46, %v1119_v11 }
 0x161   : > { %v1902_v63 = vpop.f32.mrb[52].mxu1  ;;  %v1990_v9 = vpop.f32.mrb[52].mxu0 }
 0x162   : > { %v1398_v12 = vadd.f32 %v1990_v9, %v2478_v51  ;;  %v1903_v53 = vpop.f32.mrb[53].mxu1  ;;  %v1389_v57 = vpop.f32.mrb[53].mxu0  ;;  %v1127_v51 = vadd.f32 %v2496_v35, %v2456_v42  ;;  %v1132_v35 = vadd.f32 %v2503_v47, %v2456_v42 }
 0x163   : > { %v1904_v61 = vadd.f32 %v1903_v53, %v1902_v63  ;;  %v1390_v56 = vadd.f32 %v1389_v57, %v2472_v31  ;;  %v1905_v62 = vpop.f32.mrb[54].mxu1  ;;  %v1991_v23 = vpop.f32.mrb[54].mxu0 }
 0x164   : > { %1506 = vst [vmem:[%s2526_s30 + $0x30] sm:$0xff] %v1398_v12  ;;  %v1401_v0 = vadd.f32 %v1991_v23, %v2480_v52  ;;  %v1906_v4 = vpop.f32.mrb[55].mxu1  ;;  %v1392_v5 = vpop.f32.mrb[55].mxu0 }
 0x165   : > { %1504 = vst [vmem:[%s2526_s30 + $0x20] sm:$0xff] %v1390_v56  ;;  %v1907_v39 = vadd.f32 %v1906_v4, %v1905_v62  ;;  %v1393_v16 = vadd.f32 %v1392_v5, %v2474_v33  ;;  %v1285_v30 = vadd.f32 %v1904_v61, %v1124_v3 }
 0x166   : > { %1507 = vst [vmem:[%s2526_s30 + $0x38] sm:$0xff] %v1401_v0 }
 0x167   : > { %1505 = vst [vmem:[%s2526_s30 + $0x28] sm:$0xff] %v1393_v16  ;;  %v1288_v24 = vadd.f32 %v1907_v39, %v1127_v51  ;;  %v1151_v39 = vadd.f32 %v2439_v2, %v2456_v42  ;;  %v1156_v2 = vadd.f32 %v2441_v8, %v2456_v42 }
 0x169   : > { %v1908_v31 = vpop.f32.mrb[56].mxu1  ;;  %v1994_v17 = vpop.f32.mrb[56].mxu0 }
 0x16a   : > { %v1414_v18 = vadd.f32 %v1994_v17, %v2498_v36  ;;  %v1909_v52 = vpop.f32.mrb[57].mxu1  ;;  %v1405_v48 = vpop.f32.mrb[57].mxu0  ;;  %v1135_v36 = vadd.f32 %v2506_v58, %v2456_v42  ;;  %v1140_v58 = vadd.f32 %v2513_v6, %v2456_v42 }
 0x16b   : > { %v1910_v25 = vadd.f32 %v1909_v52, %v1908_v31  ;;  %v1406_v44 = vadd.f32 %v1405_v48, %v2488_v7  ;;  %v1911_v33 = vpop.f32.mrb[58].mxu1  ;;  %v1995_v28 = vpop.f32.mrb[58].mxu0 }
 0x16c   : > { %1510 = vst [vmem:[%s2526_s30 + $0x50] sm:$0xff] %v1414_v18  ;;  %v1417_v50 = vadd.f32 %v1995_v28, %v2500_v37  ;;  %v1912_v54 = vpop.f32.mrb[59].mxu1  ;;  %v1408_v15 = vpop.f32.mrb[59].mxu0 }
 0x16d   : > { %1508 = vst [vmem:[%s2526_s30 + $0x40] sm:$0xff] %v1406_v44  ;;  %v1913_v29 = vadd.f32 %v1912_v54, %v1911_v33  ;;  %v1409_v40 = vadd.f32 %v1408_v15, %v2490_v13  ;;  %v1293_v22 = vadd.f32 %v1910_v25, %v1132_v35 }
 0x16e   : > { %1511 = vst [vmem:[%s2526_s30 + $0x58] sm:$0xff] %v1417_v50  ;;  %v1159_v50 = vadd.f32 %v2443_v14, %v2456_v42 }
 0x16f   : > { %1509 = vst [vmem:[%s2526_s30 + $0x48] sm:$0xff] %v1409_v40  ;;  %v1296_v47 = vadd.f32 %v1913_v29, %v1135_v36 }
 0x171   : > { %v1914_v7 = vpop.f32.mrb[60].mxu1  ;;  %v1998_v41 = vpop.f32.mrb[60].mxu0 }
 0x172   : > { %v1430_v1 = vadd.f32 %v1998_v41, %v2518_v19  ;;  %v1915_v37 = vpop.f32.mrb[61].mxu1  ;;  %v1421_v43 = vpop.f32.mrb[61].mxu0  ;;  %v1143_v19 = vadd.f32 %v2516_v10, %v2456_v42  ;;  %v1148_v10 = vadd.f32 %v2437_v60, %v2456_v42 }
 0x173   : > { %v1916_v45 = vadd.f32 %v1915_v37, %v1914_v7  ;;  %v1422_v11 = vadd.f32 %v1421_v43, %v2508_v59  ;;  %v1917_v13 = vpop.f32.mrb[62].mxu1  ;;  %v1999_v46 = vpop.f32.mrb[62].mxu0 }
 0x174   : > { %1514 = vst [vmem:[%s2526_s30 + $0x70] sm:$0xff] %v1430_v1  ;;  %v1433_v27 = vadd.f32 %v1999_v46, %v2521_v21  ;;  %v1918_v63 = vpop.f32.mrb[63].mxu1  ;;  %v1424_v9 = vpop.f32.mrb[63].mxu0  ;;  %v1164_v1 = vadd.f32 %v2445_v20, %v2456_v42 }
 0x175   : > { %1512 = vst [vmem:[%s2526_s30 + $0x60] sm:$0xff] %v1422_v11  ;;  %v1919_v12 = vadd.f32 %v1918_v63, %v1917_v13  ;;  %v1425_v53 = vadd.f32 %v1424_v9, %v2510_v34  ;;  %v1301_v57 = vadd.f32 %v1916_v45, %v1140_v58  ;;  %v1167_v13 = vadd.f32 %v2447_v26, %v2456_v42 }
 0x176   : > { %1515 = vst [vmem:[%s2526_s30 + $0x78] sm:$0xff] %v1433_v27 }
 0x177   : > { %1513 = vst [vmem:[%s2526_s30 + $0x68] sm:$0xff] %v1425_v53  ;;  %v1304_v6 = vadd.f32 %v1919_v12, %v1143_v19 }
 0x179   : > { %v1920_v59 = vpop.f32.mrb[64].mxu1  ;;  %v2002_v3 = vpop.f32.mrb[64].mxu0 }
 0x17a   : > { %v1446_v61 = vadd.f32 %v2002_v3, %v1285_v30  ;;  %v1921_v56 = vpop.f32.mrb[65].mxu1  ;;  %v1437_v21 = vpop.f32.mrb[65].mxu0 }
 0x17b   : > { %v1922_v62 = vadd.f32 %v1921_v56, %v1920_v59  ;;  %v1438_v23 = vadd.f32 %v1437_v21, %v2538_v49  ;;  %v1923_v0 = vpop.f32.mrb[66].mxu1  ;;  %v2003_v34 = vpop.f32.mrb[66].mxu0  ;;  %v1175_v21 = vadd.f32 %v2451_v38, %v2456_v42 }
 0x17c   : > { %1518 = vst [vmem:[%s2526_s30 + $0x90] sm:$0xff] %v1446_v61  ;;  %v1449_v4 = vadd.f32 %v2003_v34, %v1288_v24  ;;  %v1924_v5 = vpop.f32.mrb[67].mxu1  ;;  %v1440_v51 = vpop.f32.mrb[67].mxu0 }
 0x17d   : > { %1516 = vst [vmem:[%s2526_s30 + $0x80] sm:$0xff] %v1438_v23  ;;  %v1925_v16 = vadd.f32 %v1924_v5, %v1923_v0  ;;  %v1441_v30 = vadd.f32 %v1440_v51, %v2542_v55  ;;  %v1309_v31 = vadd.f32 %v1922_v62, %v1148_v10 }
 0x17e   : > { %1519 = vst [vmem:[%s2526_s30 + $0x98] sm:$0xff] %v1449_v4 }
 0x17f   : > { %1517 = vst [vmem:[%s2526_s30 + $0x88] sm:$0xff] %v1441_v30  ;;  %v1312_v60 = vadd.f32 %v1925_v16, %v1151_v39 }
 0x181   : > { %v1926_v49 = vpop.f32.mrb[68].mxu1  ;;  %v2006_v17 = vpop.f32.mrb[68].mxu0 }
 0x182   : > { %v1462_v18 = vadd.f32 %v2006_v17, %v1301_v57  ;;  %v1927_v52 = vpop.f32.mrb[69].mxu1  ;;  %v1453_v24 = vpop.f32.mrb[69].mxu0  ;;  %v1172_v57 = vadd.f32 %v2449_v32, %v2456_v42 }
 0x183   : > { %v1928_v48 = vadd.f32 %v1927_v52, %v1926_v49  ;;  %v1454_v35 = vadd.f32 %v1453_v24, %v1293_v22  ;;  %v1929_v25 = vpop.f32.mrb[70].mxu1  ;;  %v2007_v44 = vpop.f32.mrb[70].mxu0 }
 0x184   : > { %1522 = vst [vmem:[%s2526_s30 + $0xb0] sm:$0xff] %v1462_v18  ;;  %v1465_v55 = vadd.f32 %v2007_v44, %v1304_v6  ;;  %v1930_v33 = vpop.f32.mrb[71].mxu1  ;;  %v1456_v28 = vpop.f32.mrb[71].mxu0 }
 0x185   : > { %1520 = vst [vmem:[%s2526_s30 + $0xa0] sm:$0xff] %v1454_v35  ;;  %v1931_v54 = vadd.f32 %v1930_v33, %v1929_v25  ;;  %v1457_v15 = vadd.f32 %v1456_v28, %v1296_v47  ;;  %v1317_v36 = vadd.f32 %v1928_v48, %v1156_v2 }
 0x186   : > { %1523 = vst [vmem:[%s2526_s30 + $0xb8] sm:$0xff] %v1465_v55 }
 0x187   : > { %1521 = vst [vmem:[%s2526_s30 + $0xa8] sm:$0xff] %v1457_v15  ;;  %v1320_v29 = vadd.f32 %v1931_v54, %v1159_v50 }
 0x189   : > { %v1932_v8 = vpop.f32.mrb[72].mxu1  ;;  %v2010_v40 = vpop.f32.mrb[72].mxu0 }
 0x18a   : > { %v1478_v22 = vadd.f32 %v2010_v40, %v1317_v36  ;;  %v1933_v7 = vpop.f32.mrb[73].mxu1  ;;  %v1469_v41 = vpop.f32.mrb[73].mxu0 }
 0x18b   : > { %v1934_v14 = vadd.f32 %v1933_v7, %v1932_v8  ;;  %v1470_v37 = vadd.f32 %v1469_v41, %v1309_v31  ;;  %v1935_v43 = vpop.f32.mrb[74].mxu1  ;;  %v2011_v58 = vpop.f32.mrb[74].mxu0 }
 0x18c   : > { %1526 = vst [vmem:[%s2526_s30 + $0xd0] sm:$0xff] %v1478_v22  ;;  %v1481_v47 = vadd.f32 %v2011_v58, %v1320_v29  ;;  %v1936_v45 = vpop.f32.mrb[75].mxu1  ;;  %v1472_v11 = vpop.f32.mrb[75].mxu0 }
 0x18d   : > { %1524 = vst [vmem:[%s2526_s30 + $0xc0] sm:$0xff] %v1470_v37  ;;  %v1937_v46 = vadd.f32 %v1936_v45, %v1935_v43  ;;  %v1473_v27 = vadd.f32 %v1472_v11, %v1312_v60  ;;  %v1325_v63 = vadd.f32 %v1934_v14, %v1164_v1 }
 0x18e   : > { %1527 = vst [vmem:[%s2526_s30 + $0xd8] sm:$0xff] %v1481_v47 }
 0x18f   : > { %1525 = vst [vmem:[%s2526_s30 + $0xc8] sm:$0xff] %v1473_v27  ;;  %v1328_v9 = vadd.f32 %v1937_v46, %v1167_v13 }
 0x191   : > { %v1938_v20 = vpop.f32.mrb[76].mxu1  ;;  %v2014_v19 = vpop.f32.mrb[76].mxu0 }
 0x192   : > { %v1939_v12 = vpop.f32.mrb[77].mxu1  ;;  %v1485_v53 = vpop.f32.mrb[77].mxu0 }
 0x193   : > { %v1940_v6 = vadd.f32 %v1939_v12, %v1938_v20  ;;  %v1486_v26 = vadd.f32 %v1485_v53, %v1325_v63  ;;  %v1941_v59 = vpop.f32.mrb[78].mxu1  ;;  %v2015_v3 = vpop.f32.mrb[78].mxu0 }
 0x194   : > { %v1942_v61 = vpop.f32.mrb[79].mxu1  ;;  %v1488_v56 = vpop.f32.mrb[79].mxu0 }
 0x195   : > { %v1333_v10 = vadd.f32 %v1940_v6, %v1172_v57  ;;  %1528 = vst [vmem:[%s2526_s30 + $0xe0] sm:$0xff] %v1486_v26  ;;  %v1943_v62 = vadd.f32 %v1942_v61, %v1941_v59  ;;  %v1489_v23 = vadd.f32 %v1488_v56, %v1328_v9 }
 0x197   : > { %v1494_v0 = vadd.f32 %v2014_v19, %v1333_v10  ;;  %v1336_v34 = vadd.f32 %v1943_v62, %v1175_v21  ;;  %1529 = vst [vmem:[%s2526_s30 + $0xe8] sm:$0xff] %v1489_v23 }
 0x199   : > { %1530 = vst [vmem:[%s2526_s30 + $0xf0] sm:$0xff] %v1494_v0  ;;  %v1497_v4 = vadd.f32 %v2015_v3, %v1336_v34 }
 0x19b   : > { %1531 = vst [vmem:[%s2526_s30 + $0xf8] sm:$0xff] %v1497_v4 }
 0x19c PF: > { %s13_s12 = sadd.s32 1, %s2199_s12  }
 0x19d   : > { %p10_p4 = scmp.ge.s32.totalorder %s13_s12, 5  }
 0x19f   :  { %12 = sbr.rel (!%p10_p4) target bundleno = 1 (0x1), region = 62 }

// kernel: retinanet_serve.24
= control target key start
LH: loop header
LB: loop body
LE: loop exit
PB: predicated region body
PF: predicated region fallthrough
CT: control target
= control target key end

     0   :  { %s2961_s0 = inlined_call_operand.vmem [shape: s32[6], index: 0, kind: input, shape index: {}]   ;;  %s2962_s1 = inlined_call_operand.vmem [shape: bf16[1536,640], index: 1, kind: input, shape index: {}]   ;;  %s2963_s2 = inlined_call_operand.vmem [shape: bf16[2,640,128], index: 2, kind: input, shape index: {}]   ;;  %s2964_s3 = inlined_call_operand.vmem [shape: f32[2,1,128], index: 3, kind: input, shape index: {}]   ;;  %s2965_s4 = inlined_call_operand.vmem [shape: bf16[1536,128], index: 4, kind: output, shape index: {}]  }
   0x1   :  { %s9_s17 = sshll.u32 %s2961_s0, 4  ;;  %s10_s17 = int_to_ptr.vmem [resolvable:$true] %s9_s17 }
   0x2   :  { %s2591_s18 = scalar_lea.vmem %s10_s17, 16  ;;  %p2596_p1 = scmp.lt.s32.totalorder %s10_s17, %s10_s17 }
   0x3   :  { %p2592_p0 = scmp.ne.s32.totalorder %s10_s17, %s2591_s18  ;;  %p2597_p2 = scmp.lt.s32.totalorder %s2591_s18, %s2591_s18 }
   0x5   :  { %p2598_p3 = por %p2597_p2, %p2596_p1 }
   0x7   :  { %p2599_p4 = pnand %p2598_p3, %p2592_p0 }
   0x9   :  { %2602 = shalt.err (!%p2599_p4)  }
   0xa   :  { %s2613_s19 = smov [#allocation3]  }
   0xb   :  { %12 = dma.vmem_to_smem %s10_s17, 16, %s2613_s19, [#allocation2] }
   0xc   :  { %2607 = dma.done.wait [#allocation2], 16 }
   0xd   :  { %2608 = vsyncadd [#allocation2], 4294967280 }
   0xe   :  { %14 = sfence }
   0xf   :  { %s2642_s20 = smov 0  }
  0x10 LB: > { %s2648_s0 = sadd.s32 4294967295, %s2611_s20   ;;  %p1828_p5 = scmp.ge.s32.totalorder %s2611_s20, 1  ;;  %s2611_s20 = sphi %s2642_s20, %s20_s20  }
  0x11   : > { %p172_p6 = scmp.lt.s32.totalorder %s2611_s20, 7 }
  0x13   : > { %p173_p7 = pnand %p1828_p5, %p172_p6 }
  0x14   : > { %s214_s21 = sld [smem:[#allocation3 + %s2648_s0]] (!%p173_p7)  ;;  %s1829_s22 = sshll.u32 (!%p173_p7), %s2648_s0, 5 }
  0x15   : > { %176 = sbr.rel (%p173_p7) target bundleno = 445 (0x1bd), region = 32  ;;  %p208_p8 = scmp.lt.s32.totalorder (!%p173_p7), %s1829_s22, 191 }
  0x16   : > { %s221_s5 = sld [smem:[#allocation3 + %s2648_s0]] (!%p173_p7) }
  0x1a   : > { %p215_p9 = scmp.lt.s32.totalorder (!%p173_p7), %s214_s21, 1 }
  0x1c   : > { %s2967_s22 = smov (!%p208_p8, %s1829_s22), 191  ;;  %s2969_s21 = smov (!%p215_p9, %s214_s21), 1 }
  0x1d   : > { %s2428_s23 = smul.u32 20, %s2967_s22  ;;  %p222_p10 = scmp.lt.s32.totalorder %s221_s5, 1 }
  0x1e   : > { %s2429_s27 = smul.u32 320, %s2969_s21  ;;  %s1833_s9 = sshll.u32 %s2967_s22, 2 }
  0x1f   : > { %s2660_s26 = scalar_lea.vmem %s2962_s1, %s2428_s23  ;;  %s2971_s5 = smov (!%p222_p10, %s221_s5), 1 }
  0x20   : > { %v2457_v0 = vld [vmem:[%s2660_s26 + $0x4] ss:$20 sps:$4 sm:$0xff]   ;;  %s2667_s30 = scalar_lea.vmem %s2963_s2, %s2429_s27  ;;  %v2455_v19 = vld [vmem:[%s2660_s26] ss:$20 sps:$4 sm:$0xff]   ;;  %v2470_v28 = vld [vmem:[%s2660_s26 + $0x28] ss:$20 sps:$4 sm:$0xff]   ;;  %s224_s8 = scalar_lea.vmem %s2964_s3, %s2971_s5 }
  0x21   : > { %v2460_v1 = vld [vmem:[%s2660_s26 + $0x1e4] ss:$20 sps:$4 sm:$0xff]   ;;  %1104 = vmatprep.mubr.bf16.mxu0 %v2457_v0  ;;  %v2441_v4 = vld [vmem:[%s2667_s30 + $0x48] sm:$0xff]   ;;  %v2443_v6 = vld [vmem:[%s2667_s30 + $0x50] sm:$0xff]   ;;  %s2884_s12 = scalar_lea.vmem %s2965_s4, %s1833_s9 }
  0x22   : > { %1200 = vmatprep.mubr.bf16.mxu1 %v2460_v1  ;;  %v2439_v2 = vld [vmem:[%s2667_s30 + $0x40] sm:$0xff]   ;;  %v2442_v5 = vld [vmem:[%s2667_s30 + $0x8] sm:$0xff]   ;;  %v2444_v7 = vld [vmem:[%s2667_s30 + $0x10] sm:$0xff]  }
  0x23   : > { %v2440_v3 = vld [vmem:[%s2667_s30] sm:$0xff]   ;;  %2116 = vmatprep.subr.bf16.mxu0 %v2439_v2  ;;  %2412 = vmatprep.subr.bf16.mxu1 %v2439_v2  ;;  %v2445_v8 = vld [vmem:[%s2667_s30 + $0x58] sm:$0xff]   ;;  %v2449_v12 = vld [vmem:[%s2667_s30 + $0x68] sm:$0xff]  }
  0x24   : > { %2117 = vmatpush3.bf16.msra.mxu0 %v2440_v3  ;;  %2420 = vmatpush3.bf16.msra.mxu1 %v2440_v3  ;;  %v2446_v9 = vld [vmem:[%s2667_s30 + $0x18] sm:$0xff]   ;;  %v2447_v10 = vld [vmem:[%s2667_s30 + $0x60] sm:$0xff]   ;;  %v2450_v13 = vld [vmem:[%s2667_s30 + $0x28] sm:$0xff]  }
  0x25   : > { %2118 = vmatprep.subr.bf16.mxu0 %v2441_v4  ;;  %2413 = vmatprep.subr.bf16.mxu1 %v2441_v4  ;;  %v2448_v11 = vld [vmem:[%s2667_s30 + $0x20] sm:$0xff]   ;;  %v2451_v14 = vld [vmem:[%s2667_s30 + $0x70] sm:$0xff]   ;;  %v2453_v16 = vld [vmem:[%s2667_s30 + $0x78] sm:$0xff]  }
  0x26   : > { %v2452_v15 = vld [vmem:[%s2667_s30 + $0x30] sm:$0xff]   ;;  %v2454_v17 = vld [vmem:[%s2667_s30 + $0x38] sm:$0xff]   ;;  %v2461_v18 = vld [vmem:[%s2667_s30 + $0xc0] sm:$0xff]  }
  0x27   : > { %v2464_v20 = vld [vmem:[%s2667_s30 + $0x100] sm:$0xff]   ;;  %v2463_v25 = vld [vmem:[%s2667_s30 + $0xc8] sm:$0xff]   ;;  %v2472_v30 = vld [vmem:[%s2667_s30 + $0xd0] sm:$0xff]  }
  0x28   : > { %2119 = vmatpush3.bf16.msra.mxu0 %v2442_v5  ;;  %2421 = vmatpush3.bf16.msra.mxu1 %v2442_v5  ;;  %v2458_v21 = vld [vmem:[%s2660_s26 + $0x1e0] ss:$20 sps:$4 sm:$0xff]   ;;  %v2483_v26 = vld [vmem:[%s2667_s30 + $0x108] sm:$0xff]   ;;  %v2474_v32 = vld [vmem:[%s2667_s30 + $0xd8] sm:$0xff]  }
  0x29   : > { %2120 = vmatprep.subr.bf16.mxu0 %v2443_v6  ;;  %2414 = vmatprep.subr.bf16.mxu1 %v2443_v6  ;;  %v2466_v22 = vld [vmem:[%s2660_s26 + $0x2c] ss:$20 sps:$4 sm:$0xff]   ;;  %v2471_v29 = vld [vmem:[%s2660_s26 + $0x208] ss:$20 sps:$4 sm:$0xff]   ;;  %v2473_v31 = vld [vmem:[%s2667_s30 + $0x90] sm:$0xff]  }
  0x2a   : > { %v2462_v23 = vld [vmem:[%s2667_s30 + $0x80] sm:$0xff]   ;;  %v2465_v27 = vld [vmem:[%s2667_s30 + $0x88] sm:$0xff]   ;;  %v2496_v34 = vld [vmem:[%s2667_s30 + $0x110] sm:$0xff]  }
  0x2b   : > { %v2468_v24 = vld [vmem:[%s2660_s26 + $0x20c] ss:$20 sps:$4 sm:$0xff]   ;;  %v2476_v33 = vld [vmem:[%s2660_s26 + $0x54] ss:$20 sps:$4 sm:$0xff]   ;;  %v2475_v36 = vld [vmem:[%s2667_s30 + $0x98] sm:$0xff]  }
  0x2c   : > { %2121 = vmatpush3.bf16.msra.mxu0 %v2444_v7  ;;  %2422 = vmatpush3.bf16.msra.mxu1 %v2444_v7  ;;  %v2478_v35 = vld [vmem:[%s2660_s26 + $0x234] ss:$20 sps:$4 sm:$0xff]   ;;  %v2482_v37 = vld [vmem:[%s2667_s30 + $0xe0] sm:$0xff]   ;;  %v2510_v42 = vld [vmem:[%s2667_s30 + $0x118] sm:$0xff]  }
  0x2d   : > { %2122 = vmatprep.subr.bf16.mxu0 %v2445_v8  ;;  %2415 = vmatprep.subr.bf16.mxu1 %v2445_v8  ;;  %v2480_v38 = vld [vmem:[%s2660_s26 + $0x50] ss:$20 sps:$4 sm:$0xff]   ;;  %v2485_v41 = vld [vmem:[%s2667_s30 + $0xe8] sm:$0xff]   ;;  %v2495_v51 = vld [vmem:[%s2667_s30 + $0xf8] sm:$0xff]  }
  0x2e   : > { %v2481_v39 = vld [vmem:[%s2660_s26 + $0x230] ss:$20 sps:$4 sm:$0xff]   ;;  %v2486_v46 = vld [vmem:[%s2667_s30 + $0xa8] sm:$0xff]   ;;  %v2497_v55 = vld [vmem:[%s2667_s30 + $0xb8] sm:$0xff]  }
  0x2f   : > { %v2484_v40 = vld [vmem:[%s2667_s30 + $0xa0] sm:$0xff]   ;;  %v2487_v43 = vld [vmem:[%s2660_s26 + $0x7c] ss:$20 sps:$4 sm:$0xff]   ;;  %v2491_v48 = vld [vmem:[%s2660_s26 + $0x78] ss:$20 sps:$4 sm:$0xff]  }
  0x30   : > { %2123 = vmatpush3.bf16.msra.mxu0 %v2446_v9  ;;  %2423 = vmatpush3.bf16.msra.mxu1 %v2446_v9  ;;  %v2489_v44 = vld [vmem:[%s2660_s26 + $0x25c] ss:$20 sps:$4 sm:$0xff]   ;;  %v2517_v45 = vld [vmem:[%s2667_s30 + $0x120] sm:$0xff]   ;;  %v2492_v49 = vld [vmem:[%s2660_s26 + $0x258] ss:$20 sps:$4 sm:$0xff]  }
  0x31   : > { %2124 = vmatprep.subr.bf16.mxu0 %v2447_v10  ;;  %2416 = vmatprep.subr.bf16.mxu1 %v2447_v10  ;;  %v2493_v47 = vld [vmem:[%s2667_s30 + $0xf0] sm:$0xff]   ;;  %v2498_v52 = vld [vmem:[%s2660_s26 + $0xa4] ss:$20 sps:$4 sm:$0xff]   ;;  %v2502_v53 = vld [vmem:[%s2660_s26 + $0xc] ss:$20 sps:$4 sm:$0xff]  }
  0x32   : > { %v2494_v50 = vld [vmem:[%s2667_s30 + $0xb0] sm:$0xff]   ;;  %v2530_v54 = vld [vmem:[%s2667_s30 + $0x128] sm:$0xff]   ;;  %v2550_v61 = vld [vmem:[%s2667_s30 + $0x138] sm:$0xff]  }
  0x33   : > { %v2537_v56 = vld [vmem:[%s2667_s30 + $0x130] sm:$0xff]   ;;  %v2500_v57 = vld [vmem:[%s2660_s26 + $0x8] ss:$20 sps:$4 sm:$0xff]   ;;  %v2504_v59 = vld [vmem:[%s2660_s26 + $0xcc] ss:$20 sps:$4 sm:$0xff]  }
  0x34   : > { %2125 = vmatpush3.bf16.msra.mxu0 %v2448_v11  ;;  %2424 = vmatpush3.bf16.msra.mxu1 %v2448_v11  ;;  %v2503_v58 = vld [vmem:[%s2660_s26 + $0xa0] ss:$20 sps:$4 sm:$0xff]   ;;  %v2508_v62 = vld [vmem:[%s2660_s26 + $0xc8] ss:$20 sps:$4 sm:$0xff]   ;;  %v2509_v63 = vld [vmem:[%s2660_s26 + $0x30] ss:$20 sps:$4 sm:$0xff]  }
  0x35   : > { %2126 = vmatprep.subr.bf16.mxu0 %v2449_v12  ;;  %2417 = vmatprep.subr.bf16.mxu1 %v2449_v12  ;;  %v2506_v60 = vld [vmem:[%s2660_s26 + $0x34] ss:$20 sps:$4 sm:$0xff]   ;;  %v2513_v1 = vld [vmem:[%s2660_s26 + $0x5c] ss:$20 sps:$4 sm:$0xff]   ;;  %v2516_v3 = vld [vmem:[%s2660_s26 + $0x58] ss:$20 sps:$4 sm:$0xff]  }
  0x36   : > { %v2511_v0 = vld [vmem:[%s2660_s26 + $0xf4] ss:$20 sps:$4 sm:$0xff]   ;;  %v2515_v2 = vld [vmem:[%s2660_s26 + $0xf0] ss:$20 sps:$4 sm:$0xff]   ;;  %v2522_v6 = vld [vmem:[%s2660_s26 + $0x118] ss:$20 sps:$4 sm:$0xff]  }
  0x37   : > { %v2518_v4 = vld [vmem:[%s2660_s26 + $0x11c] ss:$20 sps:$4 sm:$0xff]   ;;  %v2520_v5 = vld [vmem:[%s2660_s26 + $0x84] ss:$20 sps:$4 sm:$0xff]   ;;  %v2523_v7 = vld [vmem:[%s2660_s26 + $0x80] ss:$20 sps:$4 sm:$0xff]  }
  0x38   : > { %2127 = vmatpush3.bf16.msra.mxu0 %v2450_v13  ;;  %2425 = vmatpush3.bf16.msra.mxu1 %v2450_v13  ;;  %v2524_v8 = vld [vmem:[%s2660_s26 + $0x144] ss:$20 sps:$4 sm:$0xff]   ;;  %v2526_v9 = vld [vmem:[%s2660_s26 + $0xac] ss:$20 sps:$4 sm:$0xff]   ;;  %v2529_v11 = vld [vmem:[%s2660_s26 + $0xa8] ss:$20 sps:$4 sm:$0xff]  }
  0x39   : > { %2128 = vmatprep.subr.bf16.mxu0 %v2451_v14  ;;  %2418 = vmatprep.subr.bf16.mxu1 %v2451_v14  ;;  %v2528_v10 = vld [vmem:[%s2660_s26 + $0x140] ss:$20 sps:$4 sm:$0xff]   ;;  %v2535_v14 = vld [vmem:[%s2660_s26 + $0x168] ss:$20 sps:$4 sm:$0xff]  }
  0x3a   : > { %v2531_v12 = vld [vmem:[%s2660_s26 + $0x16c] ss:$20 sps:$4 sm:$0xff]   ;;  %v2533_v13 = vld [vmem:[%s2660_s26 + $0xd4] ss:$20 sps:$4 sm:$0xff]  }
  0x3c   : > { %2129 = vmatpush3.bf16.msra.mxu0 %v2452_v15  ;;  %2426 = vmatpush3.bf16.msra.mxu1 %v2452_v15  ;;  %v2536_v15 = vld [vmem:[%s2660_s26 + $0xd0] ss:$20 sps:$4 sm:$0xff]  }
  0x3d   : > { %2130 = vmatprep.subr.bf16.mxu0 %v2453_v16  ;;  %2419 = vmatprep.subr.bf16.mxu1 %v2453_v16  ;;  %v2538_v16 = vld [vmem:[%s2660_s26 + $0x194] ss:$20 sps:$4 sm:$0xff]  }
  0x40   : > { %2131 = vmatpush3.bf16.msra.mxu0 %v2454_v17  ;;  %2427 = vmatpush3.bf16.msra.mxu1 %v2454_v17  ;;  %v2540_v17 = vld [vmem:[%s2660_s26 + $0xfc] ss:$20 sps:$4 sm:$0xff]  }
  0x41   : > { %2228 = vmatprep.subr.bf16.mxu1 %v2461_v18  ;;  %2364 = vmatprep.subr.bf16.mxu0 %v2464_v20  ;;  %v2542_v18 = vld [vmem:[%s2660_s26 + $0x190] ss:$20 sps:$4 sm:$0xff]  }
  0x43   : > { %1105 = vmatmul.mubr.bf16.vlgmr.msra.gmra.mrb[0].mxu0 %v2455_v19  ;;  %1201 = vmatmul.mubr.bf16.vlgmr.msra.gmra.mrb[0].mxu1 %v2458_v21  ;;  %v2543_v19 = vld [vmem:[%s2660_s26 + $0xf8] ss:$20 sps:$4 sm:$0xff]  }
  0x44   : > { %2229 = vmatpush3.bf16.msra.mxu1 %v2462_v23  ;;  %2365 = vmatpush3.bf16.msra.mxu0 %v2464_v20  ;;  %v2544_v20 = vld [vmem:[%s2660_s26 + $0x1bc] ss:$20 sps:$4 sm:$0xff]   ;;  %v2546_v21 = vld [vmem:[%s2660_s26 + $0x124] ss:$20 sps:$4 sm:$0xff]   ;;  %v2549_v23 = vld [vmem:[%s2660_s26 + $0x120] ss:$20 sps:$4 sm:$0xff]  }
  0x45   : > { %2230 = vmatprep.subr.bf16.mxu1 %v2463_v25  ;;  %1112 = vmatprep.mubr.bf16.mxu0 %v2466_v22  ;;  %v2548_v22 = vld [vmem:[%s2660_s26 + $0x1b8] ss:$20 sps:$4 sm:$0xff]   ;;  %v2553_v25 = vld [vmem:[%s2660_s26 + $0x10] ss:$20 sps:$4 sm:$0xff]  }
  0x46   : > { %1208 = vmatprep.mubr.bf16.mxu1 %v2468_v24  ;;  %2366 = vmatprep.subr.bf16.mxu0 %v2483_v26  ;;  %v2551_v24 = vld [vmem:[%s2660_s26 + $0x14c] ss:$20 sps:$4 sm:$0xff]  }
  0x48   : > { %2231 = vmatpush3.bf16.msra.mxu1 %v2465_v27  ;;  %2367 = vmatpush3.bf16.msra.mxu0 %v2483_v26  ;;  %v2554_v26 = vld [vmem:[%s2660_s26 + $0x148] ss:$20 sps:$4 sm:$0xff]   ;;  %v2555_v27 = vld [vmem:[%s2660_s26 + $0x38] ss:$20 sps:$4 sm:$0xff]  }
  0x49   : > { %2232 = vmatprep.subr.bf16.mxu1 %v2472_v30  ;;  %2368 = vmatprep.subr.bf16.mxu0 %v2496_v34  ;;  %v2559_v30 = vld [vmem:[%s2660_s26 + $0x170] ss:$20 sps:$4 sm:$0xff]  }
  0x4b   : > { %1113 = vmatmul.mubr.bf16.gmra.mrb[4].mxu0 %v2470_v28  ;;  %1209 = vmatmul.mubr.bf16.gmra.mrb[4].mxu1 %v2471_v29  ;;  %v2556_v28 = vld [vmem:[%s2660_s26 + $0x174] ss:$20 sps:$4 sm:$0xff]  }
  0x4c   : > { %2233 = vmatpush3.bf16.msra.mxu1 %v2473_v31  ;;  %1120 = vmatprep.mubr.bf16.mxu0 %v2476_v33  ;;  %v2558_v29 = vld [vmem:[%s2660_s26 + $0x60] ss:$20 sps:$4 sm:$0xff]   ;;  %v2560_v31 = vld [vmem:[%s2660_s26 + $0x88] ss:$20 sps:$4 sm:$0xff]   ;;  %v2563_v33 = vld [vmem:[%s2660_s26 + $0xb0] ss:$20 sps:$4 sm:$0xff]  }
  0x4d   : > { %2234 = vmatprep.subr.bf16.mxu1 %v2474_v32  ;;  %1216 = vmatprep.mubr.bf16.mxu1 %v2478_v35  ;;  %v2561_v32 = vld [vmem:[%s2660_s26 + $0x19c] ss:$20 sps:$4 sm:$0xff]   ;;  %v2565_v35 = vld [vmem:[%s2660_s26 + $0xd8] ss:$20 sps:$4 sm:$0xff]  }
  0x4e   : > { %2369 = vmatpush3.bf16.msra.mxu0 %v2496_v34  ;;  %v2564_v34 = vld [vmem:[%s2660_s26 + $0x198] ss:$20 sps:$4 sm:$0xff]  }
  0x4f   : > { %2370 = vmatprep.subr.bf16.mxu0 %v2510_v42 }
  0x50   : > { %2235 = vmatpush3.bf16.msra.mxu1 %v2475_v36  ;;  %v2566_v36 = vld [vmem:[%s2660_s26 + $0x1c4] ss:$20 sps:$4 sm:$0xff]  }
  0x51   : > { %2236 = vmatprep.subr.bf16.mxu1 %v2482_v37  ;;  %v2568_v37 = vld [vmem:[%s2660_s26 + $0x100] ss:$20 sps:$4 sm:$0xff]  }
  0x52   : > { %2371 = vmatpush3.bf16.msra.mxu0 %v2510_v42  ;;  %v2574_v42 = vld [vmem:[%s2660_s26 + $0x1e8] ss:$20 sps:$4 sm:$0xff]  }
  0x53   : > { %1121 = vmatmul.mubr.bf16.gmra.mrb[8].mxu0 %v2480_v38  ;;  %1217 = vmatmul.mubr.bf16.gmra.mrb[8].mxu1 %v2481_v39  ;;  %v2569_v38 = vld [vmem:[%s2660_s26 + $0x1c0] ss:$20 sps:$4 sm:$0xff]   ;;  %v2570_v39 = vld [vmem:[%s2660_s26 + $0x128] ss:$20 sps:$4 sm:$0xff]  }
  0x54   : > { %2237 = vmatpush3.bf16.msra.mxu1 %v2484_v40  ;;  %1128 = vmatprep.mubr.bf16.mxu0 %v2487_v43  ;;  %v2571_v40 = vld [vmem:[%s2660_s26 + $0x1ec] ss:$20 sps:$4 sm:$0xff]  }
  0x55   : > { %2238 = vmatprep.subr.bf16.mxu1 %v2485_v41  ;;  %1224 = vmatprep.mubr.bf16.mxu1 %v2489_v44  ;;  %v2573_v41 = vld [vmem:[%s2660_s26 + $0x150] ss:$20 sps:$4 sm:$0xff]   ;;  %v2575_v43 = vld [vmem:[%s2660_s26 + $0x178] ss:$20 sps:$4 sm:$0xff]   ;;  %v2576_v44 = vld [vmem:[%s2660_s26 + $0x214] ss:$20 sps:$4 sm:$0xff]  }
  0x56   : > { %2372 = vmatprep.subr.bf16.mxu0 %v2517_v45 }
  0x57   : > { %2373 = vmatpush3.bf16.msra.mxu0 %v2517_v45  ;;  %v2578_v45 = vld [vmem:[%s2660_s26 + $0x1a0] ss:$20 sps:$4 sm:$0xff]  }
  0x58   : > { %2239 = vmatpush3.bf16.msra.mxu1 %v2486_v46  ;;  %2374 = vmatprep.subr.bf16.mxu0 %v2530_v54  ;;  %v2579_v46 = vld [vmem:[%s2660_s26 + $0x210] ss:$20 sps:$4 sm:$0xff]  }
  0x59   : > { %2240 = vmatprep.subr.bf16.mxu1 %v2493_v47  ;;  %v2580_v47 = vld [vmem:[%s2660_s26 + $0x1c8] ss:$20 sps:$4 sm:$0xff]  }
  0x5b   : > { %1129 = vmatmul.mubr.bf16.gmra.mrb[12].mxu0 %v2491_v48  ;;  %1225 = vmatmul.mubr.bf16.gmra.mrb[12].mxu1 %v2492_v49  ;;  %v2581_v48 = vld [vmem:[%s2660_s26 + $0x23c] ss:$20 sps:$4 sm:$0xff]  }
  0x5c   : > { %2241 = vmatpush3.bf16.msra.mxu1 %v2494_v50  ;;  %1136 = vmatprep.mubr.bf16.mxu0 %v2498_v52  ;;  %v2583_v49 = vld [vmem:[%s2660_s26 + $0x1f0] ss:$20 sps:$4 sm:$0xff]   ;;  %v2584_v50 = vld [vmem:[%s2660_s26 + $0x238] ss:$20 sps:$4 sm:$0xff]  }
  0x5d   : > { %2242 = vmatprep.subr.bf16.mxu1 %v2495_v51  ;;  %1265 = vmatprep.mubr.bf16.mxu1 %v2502_v53  ;;  %v2585_v51 = vld [vmem:[%s2660_s26 + $0x218] ss:$20 sps:$4 sm:$0xff]   ;;  %v2588_v53 = vld [vmem:[%s2660_s26 + $0x240] ss:$20 sps:$4 sm:$0xff]  }
  0x5e   : > { %2375 = vmatpush3.bf16.msra.mxu0 %v2530_v54  ;;  %v2586_v52 = vld [vmem:[%s2660_s26 + $0x264] ss:$20 sps:$4 sm:$0xff]   ;;  %v2589_v54 = vld [vmem:[%s2660_s26 + $0x260] ss:$20 sps:$4 sm:$0xff]  }
  0x5f   : > { %2376 = vmatprep.subr.bf16.mxu0 %v2537_v56 }
  0x60   : > { %2243 = vmatpush3.bf16.msra.mxu1 %v2497_v55  ;;  %v2590_v55 = vld [vmem:[%s2660_s26 + $0x268] ss:$20 sps:$4 sm:$0xff]  }
  0x62   : > { %2377 = vmatpush3.bf16.msra.mxu0 %v2537_v56 }
  0x63   : > { %1137 = vmatmul.mubr.bf16.gmra.mrb[16].mxu0 %v2503_v58  ;;  %1266 = vmatmul.mubr.bf16.vlgmr.msra.gmra.mrb[16].mxu1 %v2500_v57 }
  0x64   : > { %1144 = vmatprep.mubr.bf16.mxu0 %v2504_v59  ;;  %1273 = vmatprep.mubr.bf16.mxu1 %v2506_v60 }
  0x65   : > { %2378 = vmatprep.subr.bf16.mxu0 %v2550_v61 }
  0x66   : > { %2379 = vmatpush3.bf16.msra.mxu0 %v2550_v61 }
  0x6b   : > { %1145 = vmatmul.mubr.bf16.gmra.mrb[20].mxu0 %v2508_v62  ;;  %1274 = vmatmul.mubr.bf16.gmra.mrb[20].mxu1 %v2509_v63 }
  0x6c   : > { %1152 = vmatprep.mubr.bf16.mxu0 %v2511_v0  ;;  %1281 = vmatprep.mubr.bf16.mxu1 %v2513_v1 }
  0x73   : > { %1153 = vmatmul.mubr.bf16.gmra.mrb[24].mxu0 %v2515_v2  ;;  %1282 = vmatmul.mubr.bf16.gmra.mrb[24].mxu1 %v2516_v3 }
  0x74   : > { %1160 = vmatprep.mubr.bf16.mxu0 %v2518_v4  ;;  %1289 = vmatprep.mubr.bf16.mxu1 %v2520_v5 }
  0x7b   : > { %1161 = vmatmul.mubr.bf16.gmra.mrb[28].mxu0 %v2522_v6  ;;  %1290 = vmatmul.mubr.bf16.gmra.mrb[28].mxu1 %v2523_v7 }
  0x7c   : > { %1168 = vmatprep.mubr.bf16.mxu0 %v2524_v8  ;;  %1297 = vmatprep.mubr.bf16.mxu1 %v2526_v9 }
  0x83   : > { %1169 = vmatmul.mubr.bf16.gmra.mrb[32].mxu0 %v2528_v10  ;;  %1298 = vmatmul.mubr.bf16.gmra.mrb[32].mxu1 %v2529_v11 }
  0x84   : > { %1176 = vmatprep.mubr.bf16.mxu0 %v2531_v12  ;;  %1305 = vmatprep.mubr.bf16.mxu1 %v2533_v13 }
  0x8b   : > { %1177 = vmatmul.mubr.bf16.gmra.mrb[36].mxu0 %v2535_v14  ;;  %1306 = vmatmul.mubr.bf16.gmra.mrb[36].mxu1 %v2536_v15 }
  0x8c   : > { %1184 = vmatprep.mubr.bf16.mxu0 %v2538_v16  ;;  %1313 = vmatprep.mubr.bf16.mxu1 %v2540_v17 }
  0x93   : > { %1185 = vmatmul.mubr.bf16.gmra.mrb[40].mxu0 %v2542_v18  ;;  %1314 = vmatmul.mubr.bf16.gmra.mrb[40].mxu1 %v2543_v19 }
  0x94   : > { %1192 = vmatprep.mubr.bf16.mxu0 %v2544_v20  ;;  %1321 = vmatprep.mubr.bf16.mxu1 %v2546_v21 }
  0x9b   : > { %1193 = vmatmul.mubr.bf16.gmra.mrb[44].mxu0 %v2548_v22  ;;  %1322 = vmatmul.mubr.bf16.gmra.mrb[44].mxu1 %v2549_v23 }
  0x9c   : > { %1329 = vmatprep.mubr.bf16.mxu1 %v2551_v24  ;;  %2380 = vmatprep.mubr.bf16.mxu0 %v2553_v25 }
  0xa3   : > { %1330 = vmatmul.mubr.bf16.gmra.mrb[48].mxu1 %v2554_v26  ;;  %2381 = vmatmul.mubr.bf16.vlgmr.msra.gmra.mrb[48].mxu0 %v2555_v27 }
  0xa4   : > { %1337 = vmatprep.mubr.bf16.mxu1 %v2556_v28  ;;  %2384 = vmatprep.mubr.bf16.mxu0 %v2558_v29 }
  0xab   : > { %1338 = vmatmul.mubr.bf16.gmra.mrb[52].mxu1 %v2559_v30  ;;  %2385 = vmatmul.mubr.bf16.gmra.mrb[52].mxu0 %v2560_v31 }
  0xac   : > { %1345 = vmatprep.mubr.bf16.mxu1 %v2561_v32  ;;  %2388 = vmatprep.mubr.bf16.mxu0 %v2563_v33 }
  0xb3   : > { %1346 = vmatmul.mubr.bf16.gmra.mrb[56].mxu1 %v2564_v34  ;;  %2389 = vmatmul.mubr.bf16.gmra.mrb[56].mxu0 %v2565_v35 }
  0xb4   : > { %1353 = vmatprep.mubr.bf16.mxu1 %v2566_v36  ;;  %2392 = vmatprep.mubr.bf16.mxu0 %v2568_v37 }
  0xbb   : > { %1354 = vmatmul.mubr.bf16.gmra.mrb[60].mxu1 %v2569_v38  ;;  %2393 = vmatmul.mubr.bf16.gmra.mrb[60].mxu0 %v2570_v39 }
  0xbc   : > { %1361 = vmatprep.mubr.bf16.mxu1 %v2571_v40  ;;  %2396 = vmatprep.mubr.bf16.mxu0 %v2573_v41 }
  0xc3   : > { %1362 = vmatmul.mubr.bf16.gmra.mrb[64].mxu1 %v2574_v42  ;;  %2397 = vmatmul.mubr.bf16.gmra.mrb[64].mxu0 %v2575_v43  ;;  %v2807_v42 = vld [vmem:[%s224_s8] ss:$0 sm:$0xff] }
  0xc4   : > { %1369 = vmatprep.mubr.bf16.mxu1 %v2576_v44  ;;  %2400 = vmatprep.mubr.bf16.mxu0 %v2578_v45 }
  0xcb   : > { %1370 = vmatmul.mubr.bf16.gmra.mrb[68].mxu1 %v2579_v46  ;;  %2401 = vmatmul.mubr.bf16.gmra.mrb[68].mxu0 %v2580_v47 }
  0xcc   : > { %1377 = vmatprep.mubr.bf16.mxu1 %v2581_v48  ;;  %2404 = vmatprep.mubr.bf16.mxu0 %v2583_v49 }
  0xd3   : > { %1378 = vmatmul.mubr.bf16.gmra.mrb[72].mxu1 %v2584_v50  ;;  %2405 = vmatmul.mubr.bf16.gmra.mrb[72].mxu0 %v2585_v51 }
  0xd4   : > { %1385 = vmatprep.mubr.bf16.mxu1 %v2586_v52  ;;  %2408 = vmatprep.mubr.bf16.mxu0 %v2588_v53 }
  0xdb   : > { %1386 = vmatmul.mubr.bf16.gmra.mrb[76].mxu1 %v2589_v54  ;;  %2409 = vmatmul.mubr.bf16.gmra.mrb[76].mxu0 %v2590_v55 }
 0x116   : > { %v2204_v56 = vpop.f32.mrb[0].mxu1  ;;  %v2132_v57 = vpop.f32.mrb[0].mxu0 }
 0x117   : > { %v2205_v58 = vpop.f32.mrb[1].mxu1  ;;  %v2133_v59 = vpop.f32.mrb[1].mxu0 }
 0x118   : > { %v2787_v60 = vadd.f32 %v2205_v58, %v2204_v56  ;;  %v2207_v61 = vpop.f32.mrb[2].mxu1  ;;  %v2134_v62 = vadd.f32 %v2133_v59, %v2132_v57  ;;  %v2135_v63 = vpop.f32.mrb[2].mxu0 }
 0x119   : > { %v2208_v0 = vpop.f32.mrb[3].mxu1  ;;  %v2136_v1 = vpop.f32.mrb[3].mxu0 }
 0x11a   : > { %v2789_v2 = vadd.f32 %v2208_v0, %v2207_v61  ;;  %v2137_v3 = vadd.f32 %v2136_v1, %v2135_v63  ;;  %v1107_v45 = vadd.f32 %v2134_v62, %v2807_v42 }
 0x11c   : > { %v1110_v52 = vadd.f32 %v2137_v3, %v2807_v42 }
 0x11e   : > { %v2210_v4 = vpop.f32.mrb[4].mxu1  ;;  %v2138_v5 = vpop.f32.mrb[4].mxu0 }
 0x11f   : > { %v2211_v6 = vpop.f32.mrb[5].mxu1  ;;  %v2139_v7 = vpop.f32.mrb[5].mxu0 }
 0x120   : > { %v2791_v8 = vadd.f32 %v2211_v6, %v2210_v4  ;;  %v2213_v9 = vpop.f32.mrb[6].mxu1  ;;  %v2140_v10 = vadd.f32 %v2139_v7, %v2138_v5  ;;  %v2141_v11 = vpop.f32.mrb[6].mxu0 }
 0x121   : > { %v2214_v12 = vpop.f32.mrb[7].mxu1  ;;  %v2142_v13 = vpop.f32.mrb[7].mxu0 }
 0x122   : > { %v2793_v14 = vadd.f32 %v2214_v12, %v2213_v9  ;;  %v2143_v15 = vadd.f32 %v2142_v13, %v2141_v11  ;;  %v1115_v62 = vadd.f32 %v2140_v10, %v2807_v42 }
 0x124   : > { %v1118_v3 = vadd.f32 %v2143_v15, %v2807_v42 }
 0x126   : > { %v2216_v16 = vpop.f32.mrb[8].mxu1  ;;  %v2144_v17 = vpop.f32.mrb[8].mxu0 }
 0x127   : > { %v2217_v18 = vpop.f32.mrb[9].mxu1  ;;  %v2145_v19 = vpop.f32.mrb[9].mxu0 }
 0x128   : > { %v2796_v20 = vadd.f32 %v2217_v18, %v2216_v16  ;;  %v2219_v21 = vpop.f32.mrb[10].mxu1  ;;  %v2146_v22 = vadd.f32 %v2145_v19, %v2144_v17  ;;  %v2147_v23 = vpop.f32.mrb[10].mxu0 }
 0x129   : > { %v2220_v24 = vpop.f32.mrb[11].mxu1  ;;  %v2148_v25 = vpop.f32.mrb[11].mxu0 }
 0x12a   : > { %v2798_v26 = vadd.f32 %v2220_v24, %v2219_v21  ;;  %v2149_v27 = vadd.f32 %v2148_v25, %v2147_v23  ;;  %v1123_v10 = vadd.f32 %v2146_v22, %v2807_v42 }
 0x12c   : > { %v1126_v15 = vadd.f32 %v2149_v27, %v2807_v42 }
 0x12e   : > { %v2222_v28 = vpop.f32.mrb[12].mxu1  ;;  %v2150_v29 = vpop.f32.mrb[12].mxu0 }
 0x12f   : > { %v2223_v30 = vpop.f32.mrb[13].mxu1  ;;  %v2151_v31 = vpop.f32.mrb[13].mxu0 }
 0x130   : > { %v2800_v32 = vadd.f32 %v2223_v30, %v2222_v28  ;;  %v2225_v33 = vpop.f32.mrb[14].mxu1  ;;  %v2152_v34 = vadd.f32 %v2151_v31, %v2150_v29  ;;  %v2153_v35 = vpop.f32.mrb[14].mxu0 }
 0x131   : > { %v2226_v36 = vpop.f32.mrb[15].mxu1  ;;  %v2154_v37 = vpop.f32.mrb[15].mxu0 }
 0x132   : > { %v2802_v38 = vadd.f32 %v2226_v36, %v2225_v33  ;;  %v2155_v39 = vadd.f32 %v2154_v37, %v2153_v35  ;;  %v1131_v22 = vadd.f32 %v2152_v34, %v2807_v42 }
 0x134   : > { %v1134_v27 = vadd.f32 %v2155_v39, %v2807_v42 }
 0x136   : > { %v2244_v40 = vpop.f32.mrb[16].mxu1  ;;  %v2156_v41 = vpop.f32.mrb[16].mxu0 }
 0x137   : > { %v2245_v43 = vpop.f32.mrb[17].mxu1  ;;  %v2157_v44 = vpop.f32.mrb[17].mxu0 }
 0x138   : > { %v2246_v46 = vadd.f32 %v2245_v43, %v2244_v40  ;;  %v2247_v47 = vpop.f32.mrb[18].mxu1  ;;  %v2158_v48 = vadd.f32 %v2157_v44, %v2156_v41  ;;  %v2159_v49 = vpop.f32.mrb[18].mxu0 }
 0x139   : > { %v2248_v50 = vpop.f32.mrb[19].mxu1  ;;  %v2160_v51 = vpop.f32.mrb[19].mxu0 }
 0x13a   : > { %v2249_v53 = vadd.f32 %v2248_v50, %v2247_v47  ;;  %v2161_v54 = vadd.f32 %v2160_v51, %v2159_v49  ;;  %v2811_v55 = vadd.f32 %v2246_v46, %v1107_v45  ;;  %v1139_v34 = vadd.f32 %v2158_v48, %v2807_v42 }
 0x13c   : > { %v2813_v56 = vadd.f32 %v2249_v53, %v1110_v52  ;;  %v1142_v39 = vadd.f32 %v2161_v54, %v2807_v42 }
 0x13e   : > { %v2250_v57 = vpop.f32.mrb[20].mxu1  ;;  %v2162_v58 = vpop.f32.mrb[20].mxu0 }
 0x13f   : > { %v2251_v59 = vpop.f32.mrb[21].mxu1  ;;  %v2163_v61 = vpop.f32.mrb[21].mxu0 }
 0x140   : > { %v2252_v63 = vadd.f32 %v2251_v59, %v2250_v57  ;;  %v2253_v0 = vpop.f32.mrb[22].mxu1  ;;  %v2164_v1 = vadd.f32 %v2163_v61, %v2162_v58  ;;  %v2165_v4 = vpop.f32.mrb[22].mxu0 }
 0x141   : > { %v2254_v5 = vpop.f32.mrb[23].mxu1  ;;  %v2166_v6 = vpop.f32.mrb[23].mxu0 }
 0x142   : > { %v2255_v7 = vadd.f32 %v2254_v5, %v2253_v0  ;;  %v2167_v9 = vadd.f32 %v2166_v6, %v2165_v4  ;;  %v2817_v11 = vadd.f32 %v2252_v63, %v1115_v62  ;;  %v1147_v48 = vadd.f32 %v2164_v1, %v2807_v42 }
 0x144   : > { %v2819_v12 = vadd.f32 %v2255_v7, %v1118_v3 }
 0x146   : > { %v2256_v13 = vpop.f32.mrb[24].mxu1  ;;  %v2168_v16 = vpop.f32.mrb[24].mxu0 }
 0x147   : > { %v2257_v17 = vpop.f32.mrb[25].mxu1  ;;  %v2169_v18 = vpop.f32.mrb[25].mxu0 }
 0x148   : > { %v2258_v19 = vadd.f32 %v2257_v17, %v2256_v13  ;;  %v2259_v21 = vpop.f32.mrb[26].mxu1  ;;  %v2170_v23 = vadd.f32 %v2169_v18, %v2168_v16  ;;  %v2171_v24 = vpop.f32.mrb[26].mxu0 }
 0x149   : > { %v2260_v25 = vpop.f32.mrb[27].mxu1  ;;  %v2172_v28 = vpop.f32.mrb[27].mxu0 }
 0x14a   : > { %v2261_v29 = vadd.f32 %v2260_v25, %v2259_v21  ;;  %v2173_v30 = vadd.f32 %v2172_v28, %v2171_v24  ;;  %v2823_v31 = vadd.f32 %v2258_v19, %v1123_v10 }
 0x14c   : > { %v2825_v33 = vadd.f32 %v2261_v29, %v1126_v15  ;;  %v1150_v15 = vadd.f32 %v2167_v9, %v2807_v42 }
 0x14e   : > { %v2262_v35 = vpop.f32.mrb[28].mxu1  ;;  %v2174_v36 = vpop.f32.mrb[28].mxu0 }
 0x14f   : > { %v2263_v37 = vpop.f32.mrb[29].mxu1  ;;  %v2175_v40 = vpop.f32.mrb[29].mxu0 }
 0x150   : > { %v2264_v41 = vadd.f32 %v2263_v37, %v2262_v35  ;;  %v2265_v43 = vpop.f32.mrb[30].mxu1  ;;  %v2176_v44 = vadd.f32 %v2175_v40, %v2174_v36  ;;  %v2177_v45 = vpop.f32.mrb[30].mxu0 }
 0x151   : > { %v2266_v46 = vpop.f32.mrb[31].mxu1  ;;  %v2178_v47 = vpop.f32.mrb[31].mxu0 }
 0x152   : > { %v2267_v49 = vadd.f32 %v2266_v46, %v2265_v43  ;;  %v2179_v50 = vadd.f32 %v2178_v47, %v2177_v45  ;;  %v2829_v51 = vadd.f32 %v2264_v41, %v1131_v22  ;;  %v1155_v43 = vadd.f32 %v2170_v23, %v2807_v42 }
 0x154   : > { %v2831_v52 = vadd.f32 %v2267_v49, %v1134_v27 }
 0x156   : > { %v2268_v53 = vpop.f32.mrb[32].mxu1  ;;  %v2180_v57 = vpop.f32.mrb[32].mxu0 }
 0x157   : > { %v2269_v58 = vpop.f32.mrb[33].mxu1  ;;  %v2181_v59 = vpop.f32.mrb[33].mxu0 }
 0x158   : > { %v2270_v61 = vadd.f32 %v2269_v58, %v2268_v53  ;;  %v2271_v62 = vpop.f32.mrb[34].mxu1  ;;  %v2182_v63 = vadd.f32 %v2181_v59, %v2180_v57  ;;  %v2183_v0 = vpop.f32.mrb[34].mxu0  ;;  %v1158_v53 = vadd.f32 %v2173_v30, %v2807_v42 }
 0x159   : > { %v2272_v4 = vpop.f32.mrb[35].mxu1  ;;  %v2184_v5 = vpop.f32.mrb[35].mxu0 }
 0x15a   : > { %v2273_v6 = vadd.f32 %v2272_v4, %v2271_v62  ;;  %v2835_v3 = vadd.f32 %v2184_v5, %v2183_v0  ;;  %v2837_v7 = vadd.f32 %v2270_v61, %v1139_v34  ;;  %v1163_v4 = vadd.f32 %v2176_v44, %v2807_v42 }
 0x15c   : > { %v2839_v13 = vadd.f32 %v2273_v6, %v1142_v39 }
 0x15e   : > { %v2274_v16 = vpop.f32.mrb[36].mxu1  ;;  %v2186_v17 = vpop.f32.mrb[36].mxu0 }
 0x15f   : > { %v2275_v18 = vpop.f32.mrb[37].mxu1  ;;  %v2187_v10 = vpop.f32.mrb[37].mxu0 }
 0x160   : > { %v2276_v19 = vadd.f32 %v2275_v18, %v2274_v16  ;;  %v2277_v21 = vpop.f32.mrb[38].mxu1  ;;  %v2842_v24 = vadd.f32 %v2187_v10, %v2186_v17  ;;  %v2189_v25 = vpop.f32.mrb[38].mxu0  ;;  %v1166_v18 = vadd.f32 %v2179_v50, %v2807_v42 }
 0x161   : > { %v2278_v28 = vpop.f32.mrb[39].mxu1  ;;  %v2190_v54 = vpop.f32.mrb[39].mxu0 }
 0x162   : > { %v2279_v29 = vadd.f32 %v2278_v28, %v2277_v21  ;;  %v2845_v35 = vadd.f32 %v2190_v54, %v2189_v25  ;;  %v2847_v36 = vadd.f32 %v2276_v19, %v1147_v48 }
 0x164   : > { %v2849_v37 = vadd.f32 %v2279_v29, %v1150_v15  ;;  %v1171_v29 = vadd.f32 %v2182_v63, %v2807_v42 }
 0x166   : > { %v2280_v40 = vpop.f32.mrb[40].mxu1  ;;  %v2192_v22 = vpop.f32.mrb[40].mxu0 }
 0x167   : > { %v2281_v41 = vpop.f32.mrb[41].mxu1  ;;  %v2193_v1 = vpop.f32.mrb[41].mxu0 }
 0x168   : > { %v2282_v45 = vadd.f32 %v2281_v41, %v2280_v40  ;;  %v2283_v46 = vpop.f32.mrb[42].mxu1  ;;  %v2852_v47 = vadd.f32 %v2193_v1, %v2192_v22  ;;  %v2195_v27 = vpop.f32.mrb[42].mxu0 }
 0x169   : > { %v2284_v49 = vpop.f32.mrb[43].mxu1  ;;  %v2196_v9 = vpop.f32.mrb[43].mxu0 }
 0x16a   : > { %v2285_v57 = vadd.f32 %v2284_v49, %v2283_v46  ;;  %v2855_v58 = vadd.f32 %v2196_v9, %v2195_v27  ;;  %v2857_v59 = vadd.f32 %v2282_v45, %v1155_v43  ;;  %v1174_v46 = vadd.f32 %v2835_v3, %v2807_v42 }
 0x16c   : > { %v2859_v34 = vadd.f32 %v2285_v57, %v1158_v53 }
 0x16e   : > { %v2286_v61 = vpop.f32.mrb[44].mxu1  ;;  %v2198_v62 = vpop.f32.mrb[44].mxu0 }
 0x16f   : > { %v2287_v0 = vpop.f32.mrb[45].mxu1  ;;  %v2199_v23 = vpop.f32.mrb[45].mxu0 }
 0x170   : > { %v2288_v5 = vadd.f32 %v2287_v0, %v2286_v61  ;;  %v2289_v39 = vpop.f32.mrb[46].mxu1  ;;  %v2862_v6 = vadd.f32 %v2199_v23, %v2198_v62  ;;  %v2201_v16 = vpop.f32.mrb[46].mxu0 }
 0x171   : > { %v2290_v17 = vpop.f32.mrb[47].mxu1  ;;  %v2202_v30 = vpop.f32.mrb[47].mxu0 }
 0x172   : > { %v2291_v10 = vadd.f32 %v2290_v17, %v2289_v39  ;;  %v2865_v48 = vadd.f32 %v2202_v30, %v2201_v16  ;;  %v2867_v19 = vadd.f32 %v2288_v5, %v1163_v4  ;;  %v1179_v4 = vadd.f32 %v2842_v24, %v2807_v42 }
 0x174   : > { %v2869_v21 = vadd.f32 %v2291_v10, %v1166_v18 }
 0x176   : > { %v2292_v25 = vpop.f32.mrb[48].mxu1  ;;  %v2382_v28 = vpop.f32.mrb[48].mxu0 }
 0x177   : > { %v1437_v44 = vadd.f32 %v2382_v28, %v2817_v11  ;;  %v2293_v54 = vpop.f32.mrb[49].mxu1  ;;  %v1428_v15 = vpop.f32.mrb[49].mxu0 }
 0x178   : > { %v2294_v40 = vadd.f32 %v2293_v54, %v2292_v25  ;;  %v1429_v22 = vadd.f32 %v1428_v15, %v2811_v55  ;;  %v2295_v41 = vpop.f32.mrb[50].mxu1  ;;  %v2383_v50 = vpop.f32.mrb[50].mxu0  ;;  %v1182_v25 = vadd.f32 %v2845_v35, %v2807_v42 }
 0x179   : > { %v1440_v1 = vadd.f32 %v2383_v50, %v2819_v12  ;;  %v2296_v43 = vpop.f32.mrb[51].mxu1  ;;  %v1431_v45 = vpop.f32.mrb[51].mxu0  ;;  %v1557_v9 = vmax.f32 %v1437_v44, 0.0 }
 0x17a   : > { %v2297_v27 = vadd.f32 %v2296_v43, %v2295_v41  ;;  %v1432_v11 = vadd.f32 %v1431_v45, %v2813_v56  ;;  %v2879_v49 = vadd.f32 %v2294_v40, %v1171_v29  ;;  %v1555_v53 = vmax.f32 %v1429_v22, 0.0 }
 0x17b   : > { %v1558_v63 = vmax.f32 %v1440_v1, 0.0 }
 0x17c   : > { %v1556_v55 = vmax.f32 %v1432_v11, 0.0  ;;  %v2886_v12 = vadd.f32 %v2297_v27, %v1174_v46 }
 0x17d   : > { %v2029_v57 = vpack.c.bf16 %v1558_v63, %v1557_v9 }
 0x17e   : > { %v2024_v3 = vpack.c.bf16 %v1556_v55, %v1555_v53  ;;  %v2298_v61 = vpop.f32.mrb[52].mxu1  ;;  %v2386_v62 = vpop.f32.mrb[52].mxu0  ;;  %v1190_v53 = vadd.f32 %v2855_v58, %v2807_v42 }
 0x17f   : > { %2101 = vst [vmem:[%s2884_s12 + $0x8] sm:$0xff] %v2029_v57   ;;  %v1453_v56 = vadd.f32 %v2386_v62, %v2829_v51  ;;  %v2299_v0 = vpop.f32.mrb[53].mxu1  ;;  %v1444_v23 = vpop.f32.mrb[53].mxu0 }
 0x180   : > { %2025 = vst [vmem:[%s2884_s12] sm:$0xff] %v2024_v3   ;;  %v2300_v5 = vadd.f32 %v2299_v0, %v2298_v61  ;;  %v1445_v39 = vadd.f32 %v1444_v23, %v2823_v31  ;;  %v2301_v16 = vpop.f32.mrb[54].mxu1  ;;  %v2387_v17 = vpop.f32.mrb[54].mxu0 }
 0x181   : > { %v1456_v30 = vadd.f32 %v2387_v17, %v2831_v52  ;;  %v2302_v18 = vpop.f32.mrb[55].mxu1  ;;  %v1447_v10 = vpop.f32.mrb[55].mxu0  ;;  %v1561_v24 = vmax.f32 %v1453_v56, 0.0 }
 0x182   : > { %v2303_v51 = vadd.f32 %v2302_v18, %v2301_v16  ;;  %v1448_v28 = vadd.f32 %v1447_v10, %v2825_v33  ;;  %v2898_v44 = vadd.f32 %v2300_v5, %v1179_v4  ;;  %v1559_v15 = vmax.f32 %v1445_v39, 0.0 }
 0x183   : > { %v1562_v54 = vmax.f32 %v1456_v30, 0.0  ;;  %v1187_v33 = vadd.f32 %v2852_v47, %v2807_v42 }
 0x184   : > { %v1560_v31 = vmax.f32 %v1448_v28, 0.0  ;;  %v2900_v29 = vadd.f32 %v2303_v51, %v1182_v25  ;;  %v1198_v51 = vadd.f32 %v2865_v48, %v2807_v42  ;;  %v1203_v48 = vadd.f32 %v2787_v60, %v2807_v42 }
 0x185   : > { %v2039_v40 = vpack.c.bf16 %v1562_v54, %v1561_v24 }
 0x186   : > { %v2034_v52 = vpack.c.bf16 %v1560_v31, %v1559_v15  ;;  %v2304_v22 = vpop.f32.mrb[56].mxu1  ;;  %v2390_v41 = vpop.f32.mrb[56].mxu0 }
 0x187   : > { %2103 = vst [vmem:[%s2884_s12 + $0x18] sm:$0xff] %v2039_v40   ;;  %v1469_v50 = vadd.f32 %v2390_v41, %v2847_v36  ;;  %v2305_v35 = vpop.f32.mrb[57].mxu1  ;;  %v1460_v1 = vpop.f32.mrb[57].mxu0 }
 0x188   : > { %2102 = vst [vmem:[%s2884_s12 + $0x10] sm:$0xff] %v2034_v52   ;;  %v2306_v43 = vadd.f32 %v2305_v35, %v2304_v22  ;;  %v1461_v45 = vadd.f32 %v1460_v1, %v2837_v7  ;;  %v2307_v46 = vpop.f32.mrb[58].mxu1  ;;  %v2391_v27 = vpop.f32.mrb[58].mxu0 }
 0x189   : > { %v1472_v11 = vadd.f32 %v2391_v27, %v2849_v37  ;;  %v2308_v9 = vpop.f32.mrb[59].mxu1  ;;  %v1463_v63 = vpop.f32.mrb[59].mxu0  ;;  %v1565_v47 = vmax.f32 %v1469_v50, 0.0 }
 0x18a   : > { %v2309_v36 = vadd.f32 %v2308_v9, %v2307_v46  ;;  %v1464_v55 = vadd.f32 %v1463_v63, %v2839_v13  ;;  %v2912_v57 = vadd.f32 %v2306_v43, %v1187_v33  ;;  %v1563_v61 = vmax.f32 %v1461_v45, 0.0 }
 0x18b   : > { %v1566_v3 = vmax.f32 %v1472_v11, 0.0  ;;  %v1195_v13 = vadd.f32 %v2862_v6, %v2807_v42  ;;  %v1206_v11 = vadd.f32 %v2789_v2, %v2807_v42  ;;  %v1211_v2 = vadd.f32 %v2791_v8, %v2807_v42 }
 0x18c   : > { %v1564_v7 = vmax.f32 %v1464_v55, 0.0  ;;  %v2914_v62 = vadd.f32 %v2309_v36, %v1190_v53 }
 0x18d   : > { %v2049_v56 = vpack.c.bf16 %v1566_v3, %v1565_v47 }
 0x18e   : > { %v2044_v37 = vpack.c.bf16 %v1564_v7, %v1563_v61  ;;  %v2310_v0 = vpop.f32.mrb[60].mxu1  ;;  %v2394_v23 = vpop.f32.mrb[60].mxu0 }
 0x18f   : > { %2105 = vst [vmem:[%s2884_s12 + $0x28] sm:$0xff] %v2049_v56   ;;  %v1485_v4 = vadd.f32 %v2394_v23, %v2867_v19  ;;  %v2311_v58 = vpop.f32.mrb[61].mxu1  ;;  %v1476_v5 = vpop.f32.mrb[61].mxu0 }
 0x190   : > { %2104 = vst [vmem:[%s2884_s12 + $0x20] sm:$0xff] %v2044_v37   ;;  %v2312_v39 = vadd.f32 %v2311_v58, %v2310_v0  ;;  %v1477_v16 = vadd.f32 %v1476_v5, %v2857_v59  ;;  %v2313_v17 = vpop.f32.mrb[62].mxu1  ;;  %v2395_v30 = vpop.f32.mrb[62].mxu0 }
 0x191   : > { %v1488_v18 = vadd.f32 %v2395_v30, %v2869_v21  ;;  %v2314_v10 = vpop.f32.mrb[63].mxu1  ;;  %v1479_v25 = vpop.f32.mrb[63].mxu0  ;;  %v1569_v6 = vmax.f32 %v1485_v4, 0.0 }
 0x192   : > { %v2315_v19 = vadd.f32 %v2314_v10, %v2313_v17  ;;  %v1480_v28 = vadd.f32 %v1479_v25, %v2859_v34  ;;  %v1356_v24 = vadd.f32 %v2312_v39, %v1195_v13  ;;  %v1567_v15 = vmax.f32 %v1477_v16, 0.0 }
 0x193   : > { %v1570_v54 = vmax.f32 %v1488_v18, 0.0  ;;  %v1214_v39 = vadd.f32 %v2793_v14, %v2807_v42  ;;  %v1219_v14 = vadd.f32 %v2796_v20, %v2807_v42 }
 0x194   : > { %v1568_v31 = vmax.f32 %v1480_v28, 0.0  ;;  %v1359_v59 = vadd.f32 %v2315_v19, %v1198_v51 }
 0x195   : > { %v2059_v40 = vpack.c.bf16 %v1570_v54, %v1569_v6 }
 0x196   : > { %v2054_v52 = vpack.c.bf16 %v1568_v31, %v1567_v15  ;;  %v2316_v22 = vpop.f32.mrb[64].mxu1  ;;  %v2398_v21 = vpop.f32.mrb[64].mxu0 }
 0x197   : > { %2107 = vst [vmem:[%s2884_s12 + $0x38] sm:$0xff] %v2059_v40   ;;  %v1501_v41 = vadd.f32 %v2398_v21, %v2898_v44  ;;  %v2317_v50 = vpop.f32.mrb[65].mxu1  ;;  %v1492_v35 = vpop.f32.mrb[65].mxu0 }
 0x198   : > { %2106 = vst [vmem:[%s2884_s12 + $0x30] sm:$0xff] %v2054_v52   ;;  %v2318_v34 = vadd.f32 %v2317_v50, %v2316_v22  ;;  %v1493_v1 = vadd.f32 %v1492_v35, %v2879_v49  ;;  %v2319_v33 = vpop.f32.mrb[66].mxu1  ;;  %v2399_v43 = vpop.f32.mrb[66].mxu0 }
 0x199   : > { %v1504_v45 = vadd.f32 %v2399_v43, %v2900_v29  ;;  %v2320_v46 = vpop.f32.mrb[67].mxu1  ;;  %v1495_v27 = vpop.f32.mrb[67].mxu0  ;;  %v1573_v60 = vmax.f32 %v1501_v41, 0.0  ;;  %v1222_v41 = vadd.f32 %v2798_v26, %v2807_v42 }
 0x19a   : > { %v2321_v44 = vadd.f32 %v2320_v46, %v2319_v33  ;;  %v1496_v9 = vadd.f32 %v1495_v27, %v2886_v12  ;;  %v1364_v63 = vadd.f32 %v2318_v34, %v1203_v48  ;;  %v1571_v36 = vmax.f32 %v1493_v1, 0.0 }
 0x19b   : > { %v1574_v53 = vmax.f32 %v1504_v45, 0.0 }
 0x19c   : > { %v1572_v55 = vmax.f32 %v1496_v9, 0.0  ;;  %v1367_v49 = vadd.f32 %v2321_v44, %v1206_v11 }
 0x19d   : > { %v2069_v47 = vpack.c.bf16 %v1574_v53, %v1573_v60 }
 0x19e   : > { %v2064_v3 = vpack.c.bf16 %v1572_v55, %v1571_v36  ;;  %v2322_v61 = vpop.f32.mrb[68].mxu1  ;;  %v2402_v29 = vpop.f32.mrb[68].mxu0 }
 0x19f   : > { %2109 = vst [vmem:[%s2884_s12 + $0x48] sm:$0xff] %v2069_v47   ;;  %v1517_v7 = vadd.f32 %v2402_v29, %v1356_v24  ;;  %v2323_v56 = vpop.f32.mrb[69].mxu1  ;;  %v1508_v37 = vpop.f32.mrb[69].mxu0  ;;  %v1230_v47 = vadd.f32 %v2802_v38, %v2807_v42 }
 0x1a0   : > { %2108 = vst [vmem:[%s2884_s12 + $0x40] sm:$0xff] %v2064_v3   ;;  %v2324_v12 = vadd.f32 %v2323_v56, %v2322_v61  ;;  %v1509_v0 = vadd.f32 %v1508_v37, %v2912_v57  ;;  %v2325_v23 = vpop.f32.mrb[70].mxu1  ;;  %v2403_v4 = vpop.f32.mrb[70].mxu0 }
 0x1a1   : > { %v1520_v58 = vadd.f32 %v2403_v4, %v1359_v59  ;;  %v2326_v5 = vpop.f32.mrb[71].mxu1  ;;  %v1511_v13 = vpop.f32.mrb[71].mxu0  ;;  %v1577_v18 = vmax.f32 %v1517_v7, 0.0 }
 0x1a2   : > { %v2327_v16 = vadd.f32 %v2326_v5, %v2325_v23  ;;  %v1512_v17 = vadd.f32 %v1511_v13, %v2914_v62  ;;  %v1372_v30 = vadd.f32 %v2324_v12, %v1211_v2  ;;  %v1575_v10 = vmax.f32 %v1509_v0, 0.0 }
 0x1a3   : > { %v1578_v8 = vmax.f32 %v1520_v58, 0.0 }
 0x1a4   : > { %v1576_v25 = vmax.f32 %v1512_v17, 0.0  ;;  %v1375_v51 = vadd.f32 %v2327_v16, %v1214_v39 }
 0x1a5   : > { %v2079_v57 = vpack.c.bf16 %v1578_v8, %v1577_v18 }
 0x1a6   : > { %v2074_v19 = vpack.c.bf16 %v1576_v25, %v1575_v10  ;;  %v2328_v28 = vpop.f32.mrb[72].mxu1  ;;  %v2406_v24 = vpop.f32.mrb[72].mxu0 }
 0x1a7   : > { %2111 = vst [vmem:[%s2884_s12 + $0x58] sm:$0xff] %v2079_v57   ;;  %v1533_v6 = vadd.f32 %v2406_v24, %v1372_v30  ;;  %v2329_v54 = vpop.f32.mrb[73].mxu1  ;;  %v1524_v15 = vpop.f32.mrb[73].mxu0 }
 0x1a8   : > { %2110 = vst [vmem:[%s2884_s12 + $0x50] sm:$0xff] %v2074_v19   ;;  %v2330_v62 = vadd.f32 %v2329_v54, %v2328_v28  ;;  %v1525_v31 = vadd.f32 %v1524_v15, %v1364_v63  ;;  %v2331_v59 = vpop.f32.mrb[74].mxu1  ;;  %v2407_v40 = vpop.f32.mrb[74].mxu0  ;;  %v1227_v63 = vadd.f32 %v2800_v32, %v2807_v42 }
 0x1a9   : > { %v1536_v52 = vadd.f32 %v2407_v40, %v1375_v51  ;;  %v2332_v22 = vpop.f32.mrb[75].mxu1  ;;  %v1527_v21 = vpop.f32.mrb[75].mxu0  ;;  %v1581_v34 = vmax.f32 %v1533_v6, 0.0 }
 0x1aa   : > { %v2333_v50 = vadd.f32 %v2332_v22, %v2331_v59  ;;  %v1528_v35 = vadd.f32 %v1527_v21, %v1367_v49  ;;  %v1380_v48 = vadd.f32 %v2330_v62, %v1219_v14  ;;  %v1579_v33 = vmax.f32 %v1525_v31, 0.0 }
 0x1ab   : > { %v1582_v1 = vmax.f32 %v1536_v52, 0.0 }
 0x1ac   : > { %v1580_v20 = vmax.f32 %v1528_v35, 0.0  ;;  %v1383_v43 = vadd.f32 %v2333_v50, %v1222_v41 }
 0x1ad   : > { %v2089_v45 = vpack.c.bf16 %v1582_v1, %v1581_v34 }
 0x1ae   : > { %v2084_v46 = vpack.c.bf16 %v1580_v20, %v1579_v33  ;;  %v2334_v27 = vpop.f32.mrb[76].mxu1  ;;  %v2410_v11 = vpop.f32.mrb[76].mxu0 }
 0x1af   : > { %2113 = vst [vmem:[%s2884_s12 + $0x68] sm:$0xff] %v2089_v45   ;;  %v2335_v44 = vpop.f32.mrb[77].mxu1  ;;  %v1540_v9 = vpop.f32.mrb[77].mxu0 }
 0x1b0   : > { %2112 = vst [vmem:[%s2884_s12 + $0x60] sm:$0xff] %v2084_v46   ;;  %v2336_v26 = vadd.f32 %v2335_v44, %v2334_v27  ;;  %v1541_v60 = vadd.f32 %v1540_v9, %v1380_v48  ;;  %v2337_v53 = vpop.f32.mrb[78].mxu1  ;;  %v2411_v36 = vpop.f32.mrb[78].mxu0 }
 0x1b1   : > { %v2338_v55 = vpop.f32.mrb[79].mxu1  ;;  %v1543_v49 = vpop.f32.mrb[79].mxu0 }
 0x1b2   : > { %v1388_v3 = vadd.f32 %v2336_v26, %v1227_v63  ;;  %v2339_v61 = vadd.f32 %v2338_v55, %v2337_v53  ;;  %v1544_v29 = vadd.f32 %v1543_v49, %v1383_v43  ;;  %v1583_v56 = vmax.f32 %v1541_v60, 0.0 }
 0x1b4   : > { %v1549_v7 = vadd.f32 %v2410_v11, %v1388_v3  ;;  %v1391_v37 = vadd.f32 %v2339_v61, %v1230_v47  ;;  %v1584_v2 = vmax.f32 %v1544_v29, 0.0 }
 0x1b6   : > { %v1552_v32 = vadd.f32 %v2411_v36, %v1391_v37  ;;  %v2094_v12 = vpack.c.bf16 %v1584_v2, %v1583_v56  ;;  %v1585_v0 = vmax.f32 %v1549_v7, 0.0 }
 0x1b8   : > { %v1586_v23 = vmax.f32 %v1552_v32, 0.0  ;;  %2114 = vst [vmem:[%s2884_s12 + $0x70] sm:$0xff] %v2094_v12  }
 0x1ba   : > { %v2099_v4 = vpack.c.bf16 %v1586_v23, %v1585_v0 }
 0x1bc   : > { %2115 = vst [vmem:[%s2884_s12 + $0x78] sm:$0xff] %v2099_v4  }
 0x1bd PF: > { %s20_s20 = sadd.s32 1, %s2611_s20  }
 0x1be   : > { %p17_p11 = scmp.ge.s32.totalorder %s20_s20, 8  }
 0x1c0   :  { %19 = sbr.rel (!%p17_p11) target bundleno = 16 (0x10), region = 68 }

// kernel: retinanet_serve.27
= control target key start
LH: loop header
LB: loop body
LE: loop exit
PB: predicated region body
PF: predicated region fallthrough
CT: control target
= control target key end

     0   :  { %s2541_s12 = smov 0   ;;  %s2955_s0 = inlined_call_operand.vmem [shape: bf16[768,640], index: 0, kind: input, shape index: {}]   ;;  %s2956_s1 = inlined_call_operand.vmem [shape: bf16[640,128], index: 1, kind: input, shape index: {}]   ;;  %s2957_s2 = inlined_call_operand.vmem [shape: f32[1,128], index: 2, kind: input, shape index: {}]   ;;  %s2958_s3 = inlined_call_operand.vmem [shape: f32[768,128], index: 3, kind: output, shape index: {}]  }
   0x1 LB: > { %s1780_s13 = sadd.s32 4294967295, %s2519_s12   ;;  %p1784_p0 = scmp.ge.s32.totalorder %s2519_s12, 1  ;;  %s2519_s12 = sphi %s2541_s12, %s13_s12  }
   0x2   : > { %p139_p1 = scmp.lt.s32.totalorder %s2519_s12, 4 }
   0x4   : > { %p140_p2 = pnand %p1784_p0, %p139_p1 }
   0x5   : > { %v2233_v0 = vld [vmem:[%s2956_s1 + $0x40] sm:$0xff] (!%p140_p2)   ;;  %s1785_s16 = sshll.u32 (!%p140_p2), %s1780_s13, 5  ;;  %v2235_v2 = vld [vmem:[%s2956_s1 + $0x48] sm:$0xff] (!%p140_p2)   ;;  %v2237_v4 = vld [vmem:[%s2956_s1 + $0x50] sm:$0xff] (!%p140_p2)  }
   0x6   : > { %143 = sbr.rel (%p140_p2) target bundleno = 443 (0x1bb), region = 32  ;;  %v2234_v1 = vld [vmem:[%s2956_s1] sm:$0xff] (!%p140_p2)   ;;  %1912 = vmatprep.subr.bf16.mxu0 (!%p140_p2), %v2233_v0  ;;  %2208 = vmatprep.subr.bf16.mxu1 (!%p140_p2), %v2233_v0  ;;  %p165_p3 = scmp.lt.s32.totalorder (!%p140_p2), %s1785_s16, 95  ;;  %v2236_v3 = vld [vmem:[%s2956_s1 + $0x8] sm:$0xff] (!%p140_p2)   ;;  %v2238_v5 = vld [vmem:[%s2956_s1 + $0x10] sm:$0xff] (!%p140_p2)  }
   0x7   : > { %1913 = vmatpush3.bf16.msra.mxu0 (!%p140_p2), %v2234_v1  ;;  %2216 = vmatpush3.bf16.msra.mxu1 (!%p140_p2), %v2234_v1  ;;  %v2239_v6 = vld [vmem:[%s2956_s1 + $0x58] sm:$0xff] (!%p140_p2)   ;;  %v2241_v8 = vld [vmem:[%s2956_s1 + $0x60] sm:$0xff] (!%p140_p2)   ;;  %v2243_v10 = vld [vmem:[%s2956_s1 + $0x68] sm:$0xff] (!%p140_p2)  }
   0x8   : > { %1914 = vmatprep.subr.bf16.mxu0 (!%p140_p2), %v2235_v2  ;;  %2209 = vmatprep.subr.bf16.mxu1 (!%p140_p2), %v2235_v2  ;;  %v2240_v7 = vld [vmem:[%s2956_s1 + $0x18] sm:$0xff] (!%p140_p2)   ;;  %v2242_v9 = vld [vmem:[%s2956_s1 + $0x20] sm:$0xff] (!%p140_p2)   ;;  %v2244_v13 = vld [vmem:[%s2956_s1 + $0x28] sm:$0xff] (!%p140_p2)  }
   0x9   : > { %v2245_v14 = vld [vmem:[%s2956_s1 + $0x70] sm:$0xff] (!%p140_p2)   ;;  %v2247_v16 = vld [vmem:[%s2956_s1 + $0x78] sm:$0xff] (!%p140_p2)   ;;  %v2255_v18 = vld [vmem:[%s2956_s1 + $0xc0] sm:$0xff] (!%p140_p2)  }
   0xa   : > { %v2246_v15 = vld [vmem:[%s2956_s1 + $0x30] sm:$0xff] (!%p140_p2)   ;;  %v2248_v17 = vld [vmem:[%s2956_s1 + $0x38] sm:$0xff] (!%p140_p2)   ;;  %v2258_v19 = vld [vmem:[%s2956_s1 + $0x100] sm:$0xff] (!%p140_p2)  }
   0xb   : > { %1915 = vmatpush3.bf16.msra.mxu0 (!%p140_p2), %v2236_v3  ;;  %2217 = vmatpush3.bf16.msra.mxu1 (!%p140_p2), %v2236_v3  ;;  %v2256_v22 = vld [vmem:[%s2956_s1 + $0x80] sm:$0xff] (!%p140_p2)   ;;  %v2257_v23 = vld [vmem:[%s2956_s1 + $0xc8] sm:$0xff] (!%p140_p2)   ;;  %v2266_v29 = vld [vmem:[%s2956_s1 + $0xd0] sm:$0xff] (!%p140_p2)  }
   0xc   : > { %1916 = vmatprep.subr.bf16.mxu0 (!%p140_p2), %v2237_v4  ;;  %2210 = vmatprep.subr.bf16.mxu1 (!%p140_p2), %v2237_v4  ;;  %v2277_v26 = vld [vmem:[%s2956_s1 + $0x108] sm:$0xff] (!%p140_p2)   ;;  %v2267_v31 = vld [vmem:[%s2956_s1 + $0x90] sm:$0xff] (!%p140_p2)   ;;  %v2268_v33 = vld [vmem:[%s2956_s1 + $0xd8] sm:$0xff] (!%p140_p2)  }
   0xd   : > { %s2960_s16 = smov (!%p165_p3, %s1785_s16), 95  ;;  %v2259_v27 = vld [vmem:[%s2956_s1 + $0x88] sm:$0xff]   ;;  %v2269_v35 = vld [vmem:[%s2956_s1 + $0x98] sm:$0xff]   ;;  %v2276_v36 = vld [vmem:[%s2956_s1 + $0xe0] sm:$0xff]  }
   0xe   : > { %s2224_s29 = smul.u32 20, %s2960_s16  ;;  %v2290_v38 = vld [vmem:[%s2956_s1 + $0x110] sm:$0xff]   ;;  %v2278_v40 = vld [vmem:[%s2956_s1 + $0xa0] sm:$0xff]   ;;  %v2279_v41 = vld [vmem:[%s2956_s1 + $0xe8] sm:$0xff]   ;;  %s1788_s27 = sshll.u32 %s2960_s16, 3 }
   0xf   : > { %1917 = vmatpush3.bf16.msra.mxu0 %v2238_v5  ;;  %2218 = vmatpush3.bf16.msra.mxu1 %v2238_v5  ;;  %v2280_v44 = vld [vmem:[%s2956_s1 + $0xa8] sm:$0xff]   ;;  %v2304_v45 = vld [vmem:[%s2956_s1 + $0x118] sm:$0xff]   ;;  %v2287_v48 = vld [vmem:[%s2956_s1 + $0xf0] sm:$0xff]  }
  0x10   : > { %1918 = vmatprep.subr.bf16.mxu0 %v2239_v6  ;;  %2211 = vmatprep.subr.bf16.mxu1 %v2239_v6  ;;  %s2582_s9 = scalar_lea.vmem %s2955_s0, %s2224_s29  ;;  %v2288_v49 = vld [vmem:[%s2956_s1 + $0xb0] sm:$0xff]   ;;  %v2289_v50 = vld [vmem:[%s2956_s1 + $0xf8] sm:$0xff]   ;;  %v2311_v52 = vld [vmem:[%s2956_s1 + $0x120] sm:$0xff]   ;;  %s2883_s29 = scalar_lea.vmem %s2958_s3, %s1788_s27 }
  0x11   : > { %v2251_v11 = vld [vmem:[%s2582_s9 + $0x4] ss:$20 sps:$4 sm:$0xff]   ;;  %v2249_v20 = vld [vmem:[%s2582_s9] ss:$20 sps:$4 sm:$0xff]   ;;  %v2264_v28 = vld [vmem:[%s2582_s9 + $0x28] ss:$20 sps:$4 sm:$0xff]  }
  0x12   : > { %v2254_v12 = vld [vmem:[%s2582_s9 + $0x1e4] ss:$20 sps:$4 sm:$0xff]   ;;  %1049 = vmatprep.mubr.bf16.mxu0 %v2251_v11  ;;  %v2252_v21 = vld [vmem:[%s2582_s9 + $0x1e0] ss:$20 sps:$4 sm:$0xff]   ;;  %v2265_v30 = vld [vmem:[%s2582_s9 + $0x208] ss:$20 sps:$4 sm:$0xff]  }
  0x13   : > { %1919 = vmatpush3.bf16.msra.mxu0 %v2240_v7  ;;  %2219 = vmatpush3.bf16.msra.mxu1 %v2240_v7  ;;  %v2260_v24 = vld [vmem:[%s2582_s9 + $0x2c] ss:$20 sps:$4 sm:$0xff]   ;;  %v2270_v32 = vld [vmem:[%s2582_s9 + $0x54] ss:$20 sps:$4 sm:$0xff]   ;;  %v2274_v37 = vld [vmem:[%s2582_s9 + $0x50] ss:$20 sps:$4 sm:$0xff]  }
  0x14   : > { %1920 = vmatprep.subr.bf16.mxu0 %v2241_v8  ;;  %2212 = vmatprep.subr.bf16.mxu1 %v2241_v8  ;;  %v2262_v25 = vld [vmem:[%s2582_s9 + $0x20c] ss:$20 sps:$4 sm:$0xff]   ;;  %v2272_v34 = vld [vmem:[%s2582_s9 + $0x234] ss:$20 sps:$4 sm:$0xff]   ;;  %v2275_v39 = vld [vmem:[%s2582_s9 + $0x230] ss:$20 sps:$4 sm:$0xff]  }
  0x15   : > { %1145 = vmatprep.mubr.bf16.mxu1 %v2254_v12  ;;  %v2281_v42 = vld [vmem:[%s2582_s9 + $0x7c] ss:$20 sps:$4 sm:$0xff]   ;;  %v2285_v46 = vld [vmem:[%s2582_s9 + $0x78] ss:$20 sps:$4 sm:$0xff]   ;;  %v2297_v56 = vld [vmem:[%s2582_s9 + $0xa0] ss:$20 sps:$4 sm:$0xff]  }
  0x16   : > { %v2283_v43 = vld [vmem:[%s2582_s9 + $0x25c] ss:$20 sps:$4 sm:$0xff]   ;;  %v2286_v47 = vld [vmem:[%s2582_s9 + $0x258] ss:$20 sps:$4 sm:$0xff]   ;;  %v2300_v59 = vld [vmem:[%s2582_s9 + $0x34] ss:$20 sps:$4 sm:$0xff]  }
  0x17   : > { %1921 = vmatpush3.bf16.msra.mxu0 %v2242_v9  ;;  %2220 = vmatpush3.bf16.msra.mxu1 %v2242_v9  ;;  %v2292_v51 = vld [vmem:[%s2582_s9 + $0xa4] ss:$20 sps:$4 sm:$0xff]   ;;  %v2296_v53 = vld [vmem:[%s2582_s9 + $0xc] ss:$20 sps:$4 sm:$0xff]   ;;  %v2294_v55 = vld [vmem:[%s2582_s9 + $0x8] ss:$20 sps:$4 sm:$0xff]  }
  0x18   : > { %1922 = vmatprep.subr.bf16.mxu0 %v2243_v10  ;;  %2213 = vmatprep.subr.bf16.mxu1 %v2243_v10  ;;  %v2291_v54 = vld [vmem:[%s2956_s1 + $0xb8] sm:$0xff]   ;;  %v2324_v57 = vld [vmem:[%s2956_s1 + $0x128] sm:$0xff]   ;;  %v2331_v60 = vld [vmem:[%s2956_s1 + $0x130] sm:$0xff]  }
  0x19   : > { %v2298_v58 = vld [vmem:[%s2582_s9 + $0xcc] ss:$20 sps:$4 sm:$0xff]   ;;  %v2302_v61 = vld [vmem:[%s2582_s9 + $0xc8] ss:$20 sps:$4 sm:$0xff]   ;;  %v2303_v62 = vld [vmem:[%s2582_s9 + $0x30] ss:$20 sps:$4 sm:$0xff]  }
  0x1a   : > { %v2305_v63 = vld [vmem:[%s2582_s9 + $0xf4] ss:$20 sps:$4 sm:$0xff]   ;;  %v2307_v0 = vld [vmem:[%s2582_s9 + $0x5c] ss:$20 sps:$4 sm:$0xff]   ;;  %v2310_v3 = vld [vmem:[%s2582_s9 + $0x58] ss:$20 sps:$4 sm:$0xff]  }
  0x1b   : > { %1923 = vmatpush3.bf16.msra.mxu0 %v2244_v13  ;;  %2221 = vmatpush3.bf16.msra.mxu1 %v2244_v13  ;;  %v2344_v1 = vld [vmem:[%s2956_s1 + $0x138] sm:$0xff]   ;;  %v2309_v2 = vld [vmem:[%s2582_s9 + $0xf0] ss:$20 sps:$4 sm:$0xff]   ;;  %v2317_v7 = vld [vmem:[%s2582_s9 + $0x80] ss:$20 sps:$4 sm:$0xff]  }
  0x1c   : > { %1924 = vmatprep.subr.bf16.mxu0 %v2245_v14  ;;  %2214 = vmatprep.subr.bf16.mxu1 %v2245_v14  ;;  %v2312_v4 = vld [vmem:[%s2582_s9 + $0x11c] ss:$20 sps:$4 sm:$0xff]   ;;  %v2314_v5 = vld [vmem:[%s2582_s9 + $0x84] ss:$20 sps:$4 sm:$0xff]   ;;  %v2320_v9 = vld [vmem:[%s2582_s9 + $0xac] ss:$20 sps:$4 sm:$0xff]  }
  0x1d   : > { %v2316_v6 = vld [vmem:[%s2582_s9 + $0x118] ss:$20 sps:$4 sm:$0xff]   ;;  %v2322_v10 = vld [vmem:[%s2582_s9 + $0x140] ss:$20 sps:$4 sm:$0xff]   ;;  %v2323_v11 = vld [vmem:[%s2582_s9 + $0xa8] ss:$20 sps:$4 sm:$0xff]  }
  0x1e   : > { %v2318_v8 = vld [vmem:[%s2582_s9 + $0x144] ss:$20 sps:$4 sm:$0xff]   ;;  %v2325_v12 = vld [vmem:[%s2582_s9 + $0x16c] ss:$20 sps:$4 sm:$0xff]   ;;  %v2327_v13 = vld [vmem:[%s2582_s9 + $0xd4] ss:$20 sps:$4 sm:$0xff]  }
  0x1f   : > { %1925 = vmatpush3.bf16.msra.mxu0 %v2246_v15  ;;  %2222 = vmatpush3.bf16.msra.mxu1 %v2246_v15  ;;  %v2329_v14 = vld [vmem:[%s2582_s9 + $0x168] ss:$20 sps:$4 sm:$0xff]   ;;  %v2330_v15 = vld [vmem:[%s2582_s9 + $0xd0] ss:$20 sps:$4 sm:$0xff]  }
  0x20   : > { %1926 = vmatprep.subr.bf16.mxu0 %v2247_v16  ;;  %2215 = vmatprep.subr.bf16.mxu1 %v2247_v16  ;;  %v2332_v16 = vld [vmem:[%s2582_s9 + $0x194] ss:$20 sps:$4 sm:$0xff]  }
  0x23   : > { %1927 = vmatpush3.bf16.msra.mxu0 %v2248_v17  ;;  %2223 = vmatpush3.bf16.msra.mxu1 %v2248_v17  ;;  %v2334_v17 = vld [vmem:[%s2582_s9 + $0xfc] ss:$20 sps:$4 sm:$0xff]  }
  0x24   : > { %2024 = vmatprep.subr.bf16.mxu1 %v2255_v18  ;;  %2160 = vmatprep.subr.bf16.mxu0 %v2258_v19  ;;  %v2336_v18 = vld [vmem:[%s2582_s9 + $0x190] ss:$20 sps:$4 sm:$0xff]  }
  0x26   : > { %1050 = vmatmul.mubr.bf16.vlgmr.msra.gmra.mrb[0].mxu0 %v2249_v20  ;;  %1146 = vmatmul.mubr.bf16.vlgmr.msra.gmra.mrb[0].mxu1 %v2252_v21  ;;  %v2338_v20 = vld [vmem:[%s2582_s9 + $0x1bc] ss:$20 sps:$4 sm:$0xff]   ;;  %v2340_v21 = vld [vmem:[%s2582_s9 + $0x124] ss:$20 sps:$4 sm:$0xff]  }
  0x27   : > { %2025 = vmatpush3.bf16.msra.mxu1 %v2256_v22  ;;  %2161 = vmatpush3.bf16.msra.mxu0 %v2258_v19  ;;  %v2337_v19 = vld [vmem:[%s2582_s9 + $0xf8] ss:$20 sps:$4 sm:$0xff]  }
  0x28   : > { %2026 = vmatprep.subr.bf16.mxu1 %v2257_v23  ;;  %1057 = vmatprep.mubr.bf16.mxu0 %v2260_v24  ;;  %v2342_v22 = vld [vmem:[%s2582_s9 + $0x1b8] ss:$20 sps:$4 sm:$0xff]   ;;  %v2343_v23 = vld [vmem:[%s2582_s9 + $0x120] ss:$20 sps:$4 sm:$0xff]  }
  0x29   : > { %1153 = vmatprep.mubr.bf16.mxu1 %v2262_v25  ;;  %2162 = vmatprep.subr.bf16.mxu0 %v2277_v26  ;;  %v2345_v24 = vld [vmem:[%s2582_s9 + $0x14c] ss:$20 sps:$4 sm:$0xff]   ;;  %v2347_v25 = vld [vmem:[%s2582_s9 + $0x10] ss:$20 sps:$4 sm:$0xff]  }
  0x2b   : > { %2027 = vmatpush3.bf16.msra.mxu1 %v2259_v27  ;;  %2163 = vmatpush3.bf16.msra.mxu0 %v2277_v26  ;;  %v2348_v26 = vld [vmem:[%s2582_s9 + $0x148] ss:$20 sps:$4 sm:$0xff]   ;;  %v2349_v27 = vld [vmem:[%s2582_s9 + $0x38] ss:$20 sps:$4 sm:$0xff]  }
  0x2c   : > { %2028 = vmatprep.subr.bf16.mxu1 %v2266_v29  ;;  %2164 = vmatprep.subr.bf16.mxu0 %v2290_v38  ;;  %v2352_v29 = vld [vmem:[%s2582_s9 + $0x60] ss:$20 sps:$4 sm:$0xff]  }
  0x2e   : > { %1058 = vmatmul.mubr.bf16.gmra.mrb[4].mxu0 %v2264_v28  ;;  %1154 = vmatmul.mubr.bf16.gmra.mrb[4].mxu1 %v2265_v30  ;;  %v2350_v28 = vld [vmem:[%s2582_s9 + $0x174] ss:$20 sps:$4 sm:$0xff]   ;;  %v2353_v30 = vld [vmem:[%s2582_s9 + $0x170] ss:$20 sps:$4 sm:$0xff]  }
  0x2f   : > { %2029 = vmatpush3.bf16.msra.mxu1 %v2267_v31  ;;  %1065 = vmatprep.mubr.bf16.mxu0 %v2270_v32  ;;  %v2354_v31 = vld [vmem:[%s2582_s9 + $0x88] ss:$20 sps:$4 sm:$0xff]  }
  0x30   : > { %2030 = vmatprep.subr.bf16.mxu1 %v2268_v33  ;;  %1161 = vmatprep.mubr.bf16.mxu1 %v2272_v34  ;;  %v2355_v32 = vld [vmem:[%s2582_s9 + $0x19c] ss:$20 sps:$4 sm:$0xff]   ;;  %v2358_v34 = vld [vmem:[%s2582_s9 + $0x198] ss:$20 sps:$4 sm:$0xff]  }
  0x31   : > { %2165 = vmatpush3.bf16.msra.mxu0 %v2290_v38  ;;  %v2357_v33 = vld [vmem:[%s2582_s9 + $0xb0] ss:$20 sps:$4 sm:$0xff]   ;;  %v2363_v38 = vld [vmem:[%s2582_s9 + $0x1c0] ss:$20 sps:$4 sm:$0xff]  }
  0x32   : > { %2166 = vmatprep.subr.bf16.mxu0 %v2304_v45 }
  0x33   : > { %2031 = vmatpush3.bf16.msra.mxu1 %v2269_v35  ;;  %v2359_v35 = vld [vmem:[%s2582_s9 + $0xd8] ss:$20 sps:$4 sm:$0xff]  }
  0x34   : > { %2032 = vmatprep.subr.bf16.mxu1 %v2276_v36  ;;  %v2360_v36 = vld [vmem:[%s2582_s9 + $0x1c4] ss:$20 sps:$4 sm:$0xff]  }
  0x35   : > { %2167 = vmatpush3.bf16.msra.mxu0 %v2304_v45  ;;  %v2372_v45 = vld [vmem:[%s2582_s9 + $0x1a0] ss:$20 sps:$4 sm:$0xff]  }
  0x36   : > { %1066 = vmatmul.mubr.bf16.gmra.mrb[8].mxu0 %v2274_v37  ;;  %1162 = vmatmul.mubr.bf16.gmra.mrb[8].mxu1 %v2275_v39  ;;  %v2362_v37 = vld [vmem:[%s2582_s9 + $0x100] ss:$20 sps:$4 sm:$0xff]   ;;  %v2364_v39 = vld [vmem:[%s2582_s9 + $0x128] ss:$20 sps:$4 sm:$0xff]  }
  0x37   : > { %2033 = vmatpush3.bf16.msra.mxu1 %v2278_v40  ;;  %1073 = vmatprep.mubr.bf16.mxu0 %v2281_v42  ;;  %v2365_v40 = vld [vmem:[%s2582_s9 + $0x1ec] ss:$20 sps:$4 sm:$0xff]   ;;  %v2368_v42 = vld [vmem:[%s2582_s9 + $0x1e8] ss:$20 sps:$4 sm:$0xff]  }
  0x38   : > { %2034 = vmatprep.subr.bf16.mxu1 %v2279_v41  ;;  %1169 = vmatprep.mubr.bf16.mxu1 %v2283_v43  ;;  %v2367_v41 = vld [vmem:[%s2582_s9 + $0x150] ss:$20 sps:$4 sm:$0xff]   ;;  %v2369_v43 = vld [vmem:[%s2582_s9 + $0x178] ss:$20 sps:$4 sm:$0xff]  }
  0x39   : > { %2168 = vmatprep.subr.bf16.mxu0 %v2311_v52 }
  0x3a   : > { %2169 = vmatpush3.bf16.msra.mxu0 %v2311_v52  ;;  %v2380_v52 = vld [vmem:[%s2582_s9 + $0x264] ss:$20 sps:$4 sm:$0xff]  }
  0x3b   : > { %2035 = vmatpush3.bf16.msra.mxu1 %v2280_v44  ;;  %2170 = vmatprep.subr.bf16.mxu0 %v2324_v57  ;;  %v2370_v44 = vld [vmem:[%s2582_s9 + $0x214] ss:$20 sps:$4 sm:$0xff]  }
  0x3c   : > { %2036 = vmatprep.subr.bf16.mxu1 %v2287_v48  ;;  %v2375_v48 = vld [vmem:[%s2582_s9 + $0x23c] ss:$20 sps:$4 sm:$0xff]  }
  0x3e   : > { %1074 = vmatmul.mubr.bf16.gmra.mrb[12].mxu0 %v2285_v46  ;;  %1170 = vmatmul.mubr.bf16.gmra.mrb[12].mxu1 %v2286_v47  ;;  %v2373_v46 = vld [vmem:[%s2582_s9 + $0x210] ss:$20 sps:$4 sm:$0xff]   ;;  %v2374_v47 = vld [vmem:[%s2582_s9 + $0x1c8] ss:$20 sps:$4 sm:$0xff]  }
  0x3f   : > { %2037 = vmatpush3.bf16.msra.mxu1 %v2288_v49  ;;  %1081 = vmatprep.mubr.bf16.mxu0 %v2292_v51  ;;  %v2377_v49 = vld [vmem:[%s2582_s9 + $0x1f0] ss:$20 sps:$4 sm:$0xff]   ;;  %v2379_v51 = vld [vmem:[%s2582_s9 + $0x218] ss:$20 sps:$4 sm:$0xff]  }
  0x40   : > { %2038 = vmatprep.subr.bf16.mxu1 %v2289_v50  ;;  %1210 = vmatprep.mubr.bf16.mxu1 %v2296_v53  ;;  %v2378_v50 = vld [vmem:[%s2582_s9 + $0x238] ss:$20 sps:$4 sm:$0xff]   ;;  %v2382_v53 = vld [vmem:[%s2582_s9 + $0x240] ss:$20 sps:$4 sm:$0xff]  }
  0x41   : > { %2171 = vmatpush3.bf16.msra.mxu0 %v2324_v57 }
  0x42   : > { %2172 = vmatprep.subr.bf16.mxu0 %v2331_v60 }
  0x43   : > { %2039 = vmatpush3.bf16.msra.mxu1 %v2291_v54  ;;  %v2383_v54 = vld [vmem:[%s2582_s9 + $0x260] ss:$20 sps:$4 sm:$0xff]  }
  0x45   : > { %2173 = vmatpush3.bf16.msra.mxu0 %v2331_v60 }
  0x46   : > { %1082 = vmatmul.mubr.bf16.gmra.mrb[16].mxu0 %v2297_v56  ;;  %1211 = vmatmul.mubr.bf16.vlgmr.msra.gmra.mrb[16].mxu1 %v2294_v55  ;;  %v2384_v55 = vld [vmem:[%s2582_s9 + $0x268] ss:$20 sps:$4 sm:$0xff]  }
  0x47   : > { %1089 = vmatprep.mubr.bf16.mxu0 %v2298_v58  ;;  %1218 = vmatprep.mubr.bf16.mxu1 %v2300_v59 }
  0x48   : > { %2174 = vmatprep.subr.bf16.mxu0 %v2344_v1 }
  0x49   : > { %2175 = vmatpush3.bf16.msra.mxu0 %v2344_v1 }
  0x4e   : > { %1090 = vmatmul.mubr.bf16.gmra.mrb[20].mxu0 %v2302_v61  ;;  %1219 = vmatmul.mubr.bf16.gmra.mrb[20].mxu1 %v2303_v62 }
  0x4f   : > { %1097 = vmatprep.mubr.bf16.mxu0 %v2305_v63  ;;  %1226 = vmatprep.mubr.bf16.mxu1 %v2307_v0 }
  0x56   : > { %1098 = vmatmul.mubr.bf16.gmra.mrb[24].mxu0 %v2309_v2  ;;  %1227 = vmatmul.mubr.bf16.gmra.mrb[24].mxu1 %v2310_v3 }
  0x57   : > { %1105 = vmatprep.mubr.bf16.mxu0 %v2312_v4  ;;  %1234 = vmatprep.mubr.bf16.mxu1 %v2314_v5 }
  0x5e   : > { %1106 = vmatmul.mubr.bf16.gmra.mrb[28].mxu0 %v2316_v6  ;;  %1235 = vmatmul.mubr.bf16.gmra.mrb[28].mxu1 %v2317_v7 }
  0x5f   : > { %1113 = vmatprep.mubr.bf16.mxu0 %v2318_v8  ;;  %1242 = vmatprep.mubr.bf16.mxu1 %v2320_v9 }
  0x66   : > { %1114 = vmatmul.mubr.bf16.gmra.mrb[32].mxu0 %v2322_v10  ;;  %1243 = vmatmul.mubr.bf16.gmra.mrb[32].mxu1 %v2323_v11 }
  0x67   : > { %1121 = vmatprep.mubr.bf16.mxu0 %v2325_v12  ;;  %1250 = vmatprep.mubr.bf16.mxu1 %v2327_v13 }
  0x6e   : > { %1122 = vmatmul.mubr.bf16.gmra.mrb[36].mxu0 %v2329_v14  ;;  %1251 = vmatmul.mubr.bf16.gmra.mrb[36].mxu1 %v2330_v15 }
  0x6f   : > { %1129 = vmatprep.mubr.bf16.mxu0 %v2332_v16  ;;  %1258 = vmatprep.mubr.bf16.mxu1 %v2334_v17 }
  0x76   : > { %1130 = vmatmul.mubr.bf16.gmra.mrb[40].mxu0 %v2336_v18  ;;  %1259 = vmatmul.mubr.bf16.gmra.mrb[40].mxu1 %v2337_v19 }
  0x77   : > { %1137 = vmatprep.mubr.bf16.mxu0 %v2338_v20  ;;  %1266 = vmatprep.mubr.bf16.mxu1 %v2340_v21 }
  0x7e   : > { %1138 = vmatmul.mubr.bf16.gmra.mrb[44].mxu0 %v2342_v22  ;;  %1267 = vmatmul.mubr.bf16.gmra.mrb[44].mxu1 %v2343_v23 }
  0x7f   : > { %1274 = vmatprep.mubr.bf16.mxu1 %v2345_v24  ;;  %2176 = vmatprep.mubr.bf16.mxu0 %v2347_v25 }
  0x86   : > { %1275 = vmatmul.mubr.bf16.gmra.mrb[48].mxu1 %v2348_v26  ;;  %2177 = vmatmul.mubr.bf16.vlgmr.msra.gmra.mrb[48].mxu0 %v2349_v27 }
  0x87   : > { %1282 = vmatprep.mubr.bf16.mxu1 %v2350_v28  ;;  %2180 = vmatprep.mubr.bf16.mxu0 %v2352_v29 }
  0x8e   : > { %1283 = vmatmul.mubr.bf16.gmra.mrb[52].mxu1 %v2353_v30  ;;  %2181 = vmatmul.mubr.bf16.gmra.mrb[52].mxu0 %v2354_v31 }
  0x8f   : > { %1290 = vmatprep.mubr.bf16.mxu1 %v2355_v32  ;;  %2184 = vmatprep.mubr.bf16.mxu0 %v2357_v33 }
  0x96   : > { %1291 = vmatmul.mubr.bf16.gmra.mrb[56].mxu1 %v2358_v34  ;;  %2185 = vmatmul.mubr.bf16.gmra.mrb[56].mxu0 %v2359_v35 }
  0x97   : > { %1298 = vmatprep.mubr.bf16.mxu1 %v2360_v36  ;;  %2188 = vmatprep.mubr.bf16.mxu0 %v2362_v37 }
  0x9e   : > { %1299 = vmatmul.mubr.bf16.gmra.mrb[60].mxu1 %v2363_v38  ;;  %2189 = vmatmul.mubr.bf16.gmra.mrb[60].mxu0 %v2364_v39 }
  0x9f   : > { %1306 = vmatprep.mubr.bf16.mxu1 %v2365_v40  ;;  %2192 = vmatprep.mubr.bf16.mxu0 %v2367_v41 }
  0xa6   : > { %1307 = vmatmul.mubr.bf16.gmra.mrb[64].mxu1 %v2368_v42  ;;  %2193 = vmatmul.mubr.bf16.gmra.mrb[64].mxu0 %v2369_v43  ;;  %v2776_v42 = vld [vmem:[%s2957_s2] ss:$0 sm:$0xff] }
  0xa7   : > { %1314 = vmatprep.mubr.bf16.mxu1 %v2370_v44  ;;  %2196 = vmatprep.mubr.bf16.mxu0 %v2372_v45 }
  0xae   : > { %1315 = vmatmul.mubr.bf16.gmra.mrb[68].mxu1 %v2373_v46  ;;  %2197 = vmatmul.mubr.bf16.gmra.mrb[68].mxu0 %v2374_v47 }
  0xaf   : > { %1322 = vmatprep.mubr.bf16.mxu1 %v2375_v48  ;;  %2200 = vmatprep.mubr.bf16.mxu0 %v2377_v49 }
  0xb6   : > { %1323 = vmatmul.mubr.bf16.gmra.mrb[72].mxu1 %v2378_v50  ;;  %2201 = vmatmul.mubr.bf16.gmra.mrb[72].mxu0 %v2379_v51 }
  0xb7   : > { %1330 = vmatprep.mubr.bf16.mxu1 %v2380_v52  ;;  %2204 = vmatprep.mubr.bf16.mxu0 %v2382_v53 }
  0xbe   : > { %1331 = vmatmul.mubr.bf16.gmra.mrb[76].mxu1 %v2383_v54  ;;  %2205 = vmatmul.mubr.bf16.gmra.mrb[76].mxu0 %v2384_v55 }
  0xf9   : > { %v2000_v56 = vpop.f32.mrb[0].mxu1  ;;  %v1928_v57 = vpop.f32.mrb[0].mxu0 }
  0xfa   : > { %v2001_v58 = vpop.f32.mrb[1].mxu1  ;;  %v1929_v59 = vpop.f32.mrb[1].mxu0 }
  0xfb   : > { %v2757_v60 = vadd.f32 %v2001_v58, %v2000_v56  ;;  %v2003_v61 = vpop.f32.mrb[2].mxu1  ;;  %v1930_v62 = vadd.f32 %v1929_v59, %v1928_v57  ;;  %v1931_v63 = vpop.f32.mrb[2].mxu0 }
  0xfc   : > { %v2004_v0 = vpop.f32.mrb[3].mxu1  ;;  %v1932_v1 = vpop.f32.mrb[3].mxu0 }
  0xfd   : > { %v2759_v2 = vadd.f32 %v2004_v0, %v2003_v61  ;;  %v1933_v3 = vadd.f32 %v1932_v1, %v1931_v63  ;;  %v1052_v45 = vadd.f32 %v1930_v62, %v2776_v42 }
  0xff   : > { %v1055_v52 = vadd.f32 %v1933_v3, %v2776_v42 }
 0x101   : > { %v2006_v4 = vpop.f32.mrb[4].mxu1  ;;  %v1934_v5 = vpop.f32.mrb[4].mxu0 }
 0x102   : > { %v2007_v6 = vpop.f32.mrb[5].mxu1  ;;  %v1935_v7 = vpop.f32.mrb[5].mxu0 }
 0x103   : > { %v2761_v8 = vadd.f32 %v2007_v6, %v2006_v4  ;;  %v2009_v9 = vpop.f32.mrb[6].mxu1  ;;  %v1936_v10 = vadd.f32 %v1935_v7, %v1934_v5  ;;  %v1937_v11 = vpop.f32.mrb[6].mxu0 }
 0x104   : > { %v2010_v12 = vpop.f32.mrb[7].mxu1  ;;  %v1938_v13 = vpop.f32.mrb[7].mxu0 }
 0x105   : > { %v2763_v14 = vadd.f32 %v2010_v12, %v2009_v9  ;;  %v1939_v15 = vadd.f32 %v1938_v13, %v1937_v11  ;;  %v1060_v62 = vadd.f32 %v1936_v10, %v2776_v42 }
 0x107   : > { %v1063_v3 = vadd.f32 %v1939_v15, %v2776_v42 }
 0x109   : > { %v2012_v16 = vpop.f32.mrb[8].mxu1  ;;  %v1940_v17 = vpop.f32.mrb[8].mxu0 }
 0x10a   : > { %v2013_v18 = vpop.f32.mrb[9].mxu1  ;;  %v1941_v19 = vpop.f32.mrb[9].mxu0 }
 0x10b   : > { %v2765_v20 = vadd.f32 %v2013_v18, %v2012_v16  ;;  %v2015_v21 = vpop.f32.mrb[10].mxu1  ;;  %v1942_v22 = vadd.f32 %v1941_v19, %v1940_v17  ;;  %v1943_v23 = vpop.f32.mrb[10].mxu0 }
 0x10c   : > { %v2016_v24 = vpop.f32.mrb[11].mxu1  ;;  %v1944_v25 = vpop.f32.mrb[11].mxu0 }
 0x10d   : > { %v2767_v26 = vadd.f32 %v2016_v24, %v2015_v21  ;;  %v1945_v27 = vadd.f32 %v1944_v25, %v1943_v23  ;;  %v1068_v10 = vadd.f32 %v1942_v22, %v2776_v42 }
 0x10f   : > { %v1071_v15 = vadd.f32 %v1945_v27, %v2776_v42 }
 0x111   : > { %v2018_v28 = vpop.f32.mrb[12].mxu1  ;;  %v1946_v29 = vpop.f32.mrb[12].mxu0 }
 0x112   : > { %v2019_v30 = vpop.f32.mrb[13].mxu1  ;;  %v1947_v31 = vpop.f32.mrb[13].mxu0 }
 0x113   : > { %v2769_v32 = vadd.f32 %v2019_v30, %v2018_v28  ;;  %v2021_v33 = vpop.f32.mrb[14].mxu1  ;;  %v1948_v34 = vadd.f32 %v1947_v31, %v1946_v29  ;;  %v1949_v35 = vpop.f32.mrb[14].mxu0 }
 0x114   : > { %v2022_v36 = vpop.f32.mrb[15].mxu1  ;;  %v1950_v37 = vpop.f32.mrb[15].mxu0 }
 0x115   : > { %v2771_v38 = vadd.f32 %v2022_v36, %v2021_v33  ;;  %v1951_v39 = vadd.f32 %v1950_v37, %v1949_v35  ;;  %v1076_v22 = vadd.f32 %v1948_v34, %v2776_v42 }
 0x117   : > { %v1079_v27 = vadd.f32 %v1951_v39, %v2776_v42 }
 0x119   : > { %v2040_v40 = vpop.f32.mrb[16].mxu1  ;;  %v1952_v41 = vpop.f32.mrb[16].mxu0 }
 0x11a   : > { %v2041_v43 = vpop.f32.mrb[17].mxu1  ;;  %v1953_v44 = vpop.f32.mrb[17].mxu0 }
 0x11b   : > { %v2042_v46 = vadd.f32 %v2041_v43, %v2040_v40  ;;  %v2043_v47 = vpop.f32.mrb[18].mxu1  ;;  %v1954_v48 = vadd.f32 %v1953_v44, %v1952_v41  ;;  %v1955_v49 = vpop.f32.mrb[18].mxu0 }
 0x11c   : > { %v2044_v50 = vpop.f32.mrb[19].mxu1  ;;  %v1956_v51 = vpop.f32.mrb[19].mxu0 }
 0x11d   : > { %v2045_v53 = vadd.f32 %v2044_v50, %v2043_v47  ;;  %v1957_v54 = vadd.f32 %v1956_v51, %v1955_v49  ;;  %v2780_v55 = vadd.f32 %v2042_v46, %v1052_v45  ;;  %v1084_v34 = vadd.f32 %v1954_v48, %v2776_v42 }
 0x11f   : > { %v2782_v56 = vadd.f32 %v2045_v53, %v1055_v52  ;;  %v1087_v39 = vadd.f32 %v1957_v54, %v2776_v42 }
 0x121   : > { %v2046_v57 = vpop.f32.mrb[20].mxu1  ;;  %v1958_v58 = vpop.f32.mrb[20].mxu0 }
 0x122   : > { %v2047_v59 = vpop.f32.mrb[21].mxu1  ;;  %v1959_v61 = vpop.f32.mrb[21].mxu0 }
 0x123   : > { %v2048_v63 = vadd.f32 %v2047_v59, %v2046_v57  ;;  %v2049_v0 = vpop.f32.mrb[22].mxu1  ;;  %v1960_v1 = vadd.f32 %v1959_v61, %v1958_v58  ;;  %v1961_v4 = vpop.f32.mrb[22].mxu0 }
 0x124   : > { %v2050_v5 = vpop.f32.mrb[23].mxu1  ;;  %v1962_v6 = vpop.f32.mrb[23].mxu0 }
 0x125   : > { %v2051_v7 = vadd.f32 %v2050_v5, %v2049_v0  ;;  %v1963_v9 = vadd.f32 %v1962_v6, %v1961_v4  ;;  %v2786_v11 = vadd.f32 %v2048_v63, %v1060_v62  ;;  %v1092_v48 = vadd.f32 %v1960_v1, %v2776_v42 }
 0x127   : > { %v2788_v12 = vadd.f32 %v2051_v7, %v1063_v3  ;;  %v1095_v54 = vadd.f32 %v1963_v9, %v2776_v42 }
 0x129   : > { %v2052_v13 = vpop.f32.mrb[24].mxu1  ;;  %v1964_v16 = vpop.f32.mrb[24].mxu0 }
 0x12a   : > { %v2053_v17 = vpop.f32.mrb[25].mxu1  ;;  %v1965_v18 = vpop.f32.mrb[25].mxu0 }
 0x12b   : > { %v2054_v19 = vadd.f32 %v2053_v17, %v2052_v13  ;;  %v2055_v21 = vpop.f32.mrb[26].mxu1  ;;  %v1966_v23 = vadd.f32 %v1965_v18, %v1964_v16  ;;  %v1967_v24 = vpop.f32.mrb[26].mxu0 }
 0x12c   : > { %v2056_v25 = vpop.f32.mrb[27].mxu1  ;;  %v1968_v28 = vpop.f32.mrb[27].mxu0 }
 0x12d   : > { %v2057_v29 = vadd.f32 %v2056_v25, %v2055_v21  ;;  %v1969_v30 = vadd.f32 %v1968_v28, %v1967_v24  ;;  %v2792_v31 = vadd.f32 %v2054_v19, %v1068_v10 }
 0x12f   : > { %v2794_v33 = vadd.f32 %v2057_v29, %v1071_v15 }
 0x131   : > { %v2058_v35 = vpop.f32.mrb[28].mxu1  ;;  %v1970_v36 = vpop.f32.mrb[28].mxu0 }
 0x132   : > { %v2059_v37 = vpop.f32.mrb[29].mxu1  ;;  %v1971_v40 = vpop.f32.mrb[29].mxu0 }
 0x133   : > { %v2060_v41 = vadd.f32 %v2059_v37, %v2058_v35  ;;  %v2061_v43 = vpop.f32.mrb[30].mxu1  ;;  %v1972_v44 = vadd.f32 %v1971_v40, %v1970_v36  ;;  %v1973_v45 = vpop.f32.mrb[30].mxu0 }
 0x134   : > { %v2062_v46 = vpop.f32.mrb[31].mxu1  ;;  %v1974_v47 = vpop.f32.mrb[31].mxu0 }
 0x135   : > { %v2063_v49 = vadd.f32 %v2062_v46, %v2061_v43  ;;  %v1975_v50 = vadd.f32 %v1974_v47, %v1973_v45  ;;  %v2798_v51 = vadd.f32 %v2060_v41, %v1076_v22  ;;  %v1100_v43 = vadd.f32 %v1966_v23, %v2776_v42 }
 0x137   : > { %v2800_v52 = vadd.f32 %v2063_v49, %v1079_v27 }
 0x139   : > { %v2064_v53 = vpop.f32.mrb[32].mxu1  ;;  %v1976_v57 = vpop.f32.mrb[32].mxu0 }
 0x13a   : > { %v2065_v58 = vpop.f32.mrb[33].mxu1  ;;  %v1977_v59 = vpop.f32.mrb[33].mxu0 }
 0x13b   : > { %v2066_v61 = vadd.f32 %v2065_v58, %v2064_v53  ;;  %v2067_v62 = vpop.f32.mrb[34].mxu1  ;;  %v1978_v63 = vadd.f32 %v1977_v59, %v1976_v57  ;;  %v1979_v0 = vpop.f32.mrb[34].mxu0  ;;  %v1103_v53 = vadd.f32 %v1969_v30, %v2776_v42 }
 0x13c   : > { %v2068_v4 = vpop.f32.mrb[35].mxu1  ;;  %v1980_v5 = vpop.f32.mrb[35].mxu0 }
 0x13d   : > { %v2069_v6 = vadd.f32 %v2068_v4, %v2067_v62  ;;  %v1981_v3 = vadd.f32 %v1980_v5, %v1979_v0  ;;  %v2804_v7 = vadd.f32 %v2066_v61, %v1084_v34  ;;  %v1108_v4 = vadd.f32 %v1972_v44, %v2776_v42 }
 0x13f   : > { %v2806_v13 = vadd.f32 %v2069_v6, %v1087_v39 }
 0x141   : > { %v2070_v16 = vpop.f32.mrb[36].mxu1  ;;  %v1982_v17 = vpop.f32.mrb[36].mxu0 }
 0x142   : > { %v2071_v18 = vpop.f32.mrb[37].mxu1  ;;  %v1983_v10 = vpop.f32.mrb[37].mxu0 }
 0x143   : > { %v2072_v19 = vadd.f32 %v2071_v18, %v2070_v16  ;;  %v2073_v21 = vpop.f32.mrb[38].mxu1  ;;  %v2809_v24 = vadd.f32 %v1983_v10, %v1982_v17  ;;  %v1985_v25 = vpop.f32.mrb[38].mxu0  ;;  %v1111_v18 = vadd.f32 %v1975_v50, %v2776_v42 }
 0x144   : > { %v2074_v28 = vpop.f32.mrb[39].mxu1  ;;  %v1986_v15 = vpop.f32.mrb[39].mxu0 }
 0x145   : > { %v2075_v29 = vadd.f32 %v2074_v28, %v2073_v21  ;;  %v2812_v35 = vadd.f32 %v1986_v15, %v1985_v25  ;;  %v2814_v36 = vadd.f32 %v2072_v19, %v1092_v48 }
 0x147   : > { %v2816_v37 = vadd.f32 %v2075_v29, %v1095_v54  ;;  %v1116_v29 = vadd.f32 %v1978_v63, %v2776_v42 }
 0x149   : > { %v2076_v40 = vpop.f32.mrb[40].mxu1  ;;  %v1988_v22 = vpop.f32.mrb[40].mxu0 }
 0x14a   : > { %v2077_v41 = vpop.f32.mrb[41].mxu1  ;;  %v1989_v1 = vpop.f32.mrb[41].mxu0 }
 0x14b   : > { %v2078_v45 = vadd.f32 %v2077_v41, %v2076_v40  ;;  %v2079_v46 = vpop.f32.mrb[42].mxu1  ;;  %v2819_v47 = vadd.f32 %v1989_v1, %v1988_v22  ;;  %v1991_v27 = vpop.f32.mrb[42].mxu0  ;;  %v1119_v1 = vadd.f32 %v1981_v3, %v2776_v42 }
 0x14c   : > { %v2080_v49 = vpop.f32.mrb[43].mxu1  ;;  %v1992_v9 = vpop.f32.mrb[43].mxu0 }
 0x14d   : > { %v2081_v57 = vadd.f32 %v2080_v49, %v2079_v46  ;;  %v2822_v58 = vadd.f32 %v1992_v9, %v1991_v27  ;;  %v2824_v59 = vadd.f32 %v2078_v45, %v1100_v43 }
 0x14f   : > { %v2826_v34 = vadd.f32 %v2081_v57, %v1103_v53 }
 0x151   : > { %v2082_v61 = vpop.f32.mrb[44].mxu1  ;;  %v1994_v62 = vpop.f32.mrb[44].mxu0 }
 0x152   : > { %v2083_v0 = vpop.f32.mrb[45].mxu1  ;;  %v1995_v23 = vpop.f32.mrb[45].mxu0 }
 0x153   : > { %v2084_v5 = vadd.f32 %v2083_v0, %v2082_v61  ;;  %v2085_v39 = vpop.f32.mrb[46].mxu1  ;;  %v2829_v6 = vadd.f32 %v1995_v23, %v1994_v62  ;;  %v1997_v16 = vpop.f32.mrb[46].mxu0 }
 0x154   : > { %v2086_v17 = vpop.f32.mrb[47].mxu1  ;;  %v1998_v30 = vpop.f32.mrb[47].mxu0 }
 0x155   : > { %v2087_v10 = vadd.f32 %v2086_v17, %v2085_v39  ;;  %v2832_v48 = vadd.f32 %v1998_v30, %v1997_v16  ;;  %v2834_v19 = vadd.f32 %v2084_v5, %v1108_v4 }
 0x157   : > { %v2836_v21 = vadd.f32 %v2087_v10, %v1111_v18  ;;  %v1127_v10 = vadd.f32 %v2812_v35, %v2776_v42 }
 0x159   : > { %v2088_v25 = vpop.f32.mrb[48].mxu1  ;;  %v2178_v28 = vpop.f32.mrb[48].mxu0 }
 0x15a   : > { %v1382_v44 = vadd.f32 %v2178_v28, %v2786_v11  ;;  %v2089_v15 = vpop.f32.mrb[49].mxu1  ;;  %v1373_v54 = vpop.f32.mrb[49].mxu0 }
 0x15b   : > { %v2090_v40 = vadd.f32 %v2089_v15, %v2088_v25  ;;  %v1374_v22 = vadd.f32 %v1373_v54, %v2780_v55  ;;  %v2091_v41 = vpop.f32.mrb[50].mxu1  ;;  %v2179_v50 = vpop.f32.mrb[50].mxu0 }
 0x15c   : > { %v1502_v43 = vsub.f32 0.0, %v1382_v44  ;;  %v1385_v45 = vadd.f32 %v2179_v50, %v2788_v12  ;;  %v2092_v46 = vpop.f32.mrb[51].mxu1  ;;  %v1376_v27 = vpop.f32.mrb[51].mxu0 }
 0x15d   : > { %v1500_v49 = vsub.f32 0.0, %v1374_v22  ;;  %v2093_v9 = vadd.f32 %v2092_v46, %v2091_v41  ;;  %v1377_v11 = vadd.f32 %v1376_v27, %v2782_v56  ;;  %v2844_v53 = vadd.f32 %v2090_v40, %v1116_v29 }
 0x15e   : > { %v1536_v57 = vmul.f32 1.442695, %v1502_v43  ;;  %v1503_v63 = vsub.f32 0.0, %v1385_v45  ;;  %v1124_v56 = vadd.f32 %v2809_v24, %v2776_v42  ;;  %v1132_v46 = vadd.f32 %v2819_v47, %v2776_v42 }
 0x15f   : > { %v1532_v61 = vmul.f32 1.442695, %v1500_v49  ;;  %v1501_v62 = vsub.f32 0.0, %v1377_v11  ;;  %v2846_v55 = vadd.f32 %v2093_v9, %v1119_v1 }
 0x160   : > { %2385 = vpow2.f32 %v1536_v57  ;;  %v1538_v0 = vmul.f32 1.442695, %v1503_v63 }
 0x161   : > { %2387 = vpow2.f32 %v1532_v61  ;;  %v1534_v3 = vmul.f32 1.442695, %v1501_v62  ;;  %v2094_v23 = vpop.f32.mrb[52].mxu1  ;;  %v2182_v12 = vpop.f32.mrb[52].mxu0 }
 0x162   : > { %2389 = vpow2.f32 %v1538_v0  ;;  %v1398_v4 = vadd.f32 %v2182_v12, %v2798_v51  ;;  %v2095_v5 = vpop.f32.mrb[53].mxu1  ;;  %v1389_v39 = vpop.f32.mrb[53].mxu0 }
 0x163   : > { %2391 = vpow2.f32 %v1534_v3  ;;  %v2096_v16 = vadd.f32 %v2095_v5, %v2094_v23  ;;  %v1390_v17 = vadd.f32 %v1389_v39, %v2792_v31  ;;  %v2097_v30 = vpop.f32.mrb[54].mxu1  ;;  %v2183_v18 = vpop.f32.mrb[54].mxu0  ;;  %v1135_v3 = vadd.f32 %v2822_v58, %v2776_v42 }
 0x164   : > { %v1506_v25 = vsub.f32 0.0, %v1398_v4  ;;  %v1401_v28 = vadd.f32 %v2183_v18, %v2800_v52  ;;  %v2098_v44 = vpop.f32.mrb[55].mxu1  ;;  %v1392_v15 = vpop.f32.mrb[55].mxu0 }
 0x165   : > { %v1504_v51 = vsub.f32 0.0, %v1390_v17  ;;  %v2099_v54 = vadd.f32 %v2098_v44, %v2097_v30  ;;  %v1393_v29 = vadd.f32 %v1392_v15, %v2794_v33  ;;  %v2856_v40 = vadd.f32 %v2096_v16, %v1124_v56 }
 0x166   : > { %v1544_v24 = vmul.f32 1.442695, %v1506_v25  ;;  %v1507_v22 = vsub.f32 0.0, %v1401_v28 }
 0x167   : > { %v1540_v41 = vmul.f32 1.442695, %v1504_v51  ;;  %v1505_v31 = vsub.f32 0.0, %v1393_v29  ;;  %v2858_v50 = vadd.f32 %v2099_v54, %v1127_v10  ;;  %v1140_v54 = vadd.f32 %v2829_v6, %v2776_v42 }
 0x168   : > { %2393 = vpow2.f32 %v1544_v24  ;;  %v1546_v1 = vmul.f32 1.442695, %v1507_v22  ;;  %v1143_v29 = vadd.f32 %v2832_v48, %v2776_v42 }
 0x169   : > { %2395 = vpow2.f32 %v1540_v41  ;;  %v1542_v35 = vmul.f32 1.442695, %v1505_v31  ;;  %v2100_v43 = vpop.f32.mrb[56].mxu1  ;;  %v2186_v52 = vpop.f32.mrb[56].mxu0 }
 0x16a   : > { %v2386_v45 = vpop.eup %2385  ;;  %2397 = vpow2.f32 %v1546_v1  ;;  %v1414_v33 = vadd.f32 %v2186_v52, %v2814_v36  ;;  %v2101_v27 = vpop.f32.mrb[57].mxu1 }
 0x16b   : > { %v1405_v49 = vpop.f32.mrb[57].mxu0  ;;  %v2388_v9 = vpop.eup %2387  ;;  %v1598_v11 = vadd.f32 1.0, %v2386_v45  ;;  %2399 = vpow2.f32 %v1542_v35  ;;  %v2102_v57 = vadd.f32 %v2101_v27, %v2100_v43 }
 0x16c   : > { %v1406_v63 = vadd.f32 %v1405_v49, %v2804_v7  ;;  %v2103_v61 = vpop.f32.mrb[58].mxu1  ;;  %v2187_v62 = vpop.f32.mrb[58].mxu0  ;;  %v1596_v23 = vadd.f32 1.0, %v2388_v9  ;;  %v1510_v12 = vsub.f32 0.0, %v1414_v33 }
 0x16d   : > { %v2390_v0 = vpop.eup %2389  ;;  %v1417_v47 = vadd.f32 %v2187_v62, %v2816_v37  ;;  %v2104_v4 = vpop.f32.mrb[59].mxu1  ;;  %2401 = vrcp.f32 %v1598_v11  ;;  %v2868_v10 = vadd.f32 %v2102_v57, %v1132_v46 }
 0x16e   : > { %v1408_v36 = vpop.f32.mrb[59].mxu0  ;;  %v2392_v5 = vpop.eup %2391  ;;  %v1599_v39 = vadd.f32 1.0, %v2390_v0  ;;  %v1508_v56 = vsub.f32 0.0, %v1406_v63  ;;  %v2105_v16 = vadd.f32 %v2104_v4, %v2103_v61  ;;  %2403 = vrcp.f32 %v1596_v23 }
 0x16f   : > { %v1597_v17 = vadd.f32 1.0, %v2392_v5  ;;  %v1552_v7 = vmul.f32 1.442695, %v1510_v12  ;;  %v1511_v30 = vsub.f32 0.0, %v1417_v47  ;;  %v1409_v58 = vadd.f32 %v1408_v36, %v2806_v13 }
 0x170   : > { %2405 = vrcp.f32 %v1599_v39  ;;  %v1548_v18 = vmul.f32 1.442695, %v1508_v56  ;;  %v2870_v25 = vadd.f32 %v2105_v16, %v1135_v3  ;;  %v1148_v16 = vadd.f32 %v2757_v60, %v2776_v42 }
 0x171   : > { %2407 = vrcp.f32 %v1597_v17  ;;  %v1554_v37 = vmul.f32 1.442695, %v1511_v30  ;;  %v1509_v28 = vsub.f32 0.0, %v1409_v58  ;;  %v2106_v44 = vpop.f32.mrb[60].mxu1  ;;  %v2190_v15 = vpop.f32.mrb[60].mxu0  ;;  %v1151_v58 = vadd.f32 %v2759_v2, %v2776_v42 }
 0x172   : > { %2409 = vpow2.f32 %v1552_v7  ;;  %v2394_v51 = vpop.eup %2393  ;;  %v1430_v13 = vadd.f32 %v2190_v15, %v2834_v19  ;;  %v2107_v24 = vpop.f32.mrb[61].mxu1 }
 0x173   : > { %2411 = vpow2.f32 %v1548_v18  ;;  %v1421_v22 = vpop.f32.mrb[61].mxu0  ;;  %v2396_v41 = vpop.eup %2395  ;;  %v1602_v31 = vadd.f32 1.0, %v2394_v51  ;;  %v1550_v1 = vmul.f32 1.442695, %v1509_v28  ;;  %v2108_v35 = vadd.f32 %v2107_v24, %v2106_v44 }
 0x174   : > { %2413 = vpow2.f32 %v1554_v37  ;;  %v2109_v43 = vpop.f32.mrb[62].mxu1  ;;  %v2191_v52 = vpop.f32.mrb[62].mxu0  ;;  %v1600_v46 = vadd.f32 1.0, %v2396_v41  ;;  %v1514_v33 = vsub.f32 0.0, %v1430_v13  ;;  %v1422_v6 = vadd.f32 %v1421_v22, %v2824_v59 }
 0x175   : > { %v2398_v45 = vpop.eup %2397  ;;  %v1433_v48 = vadd.f32 %v2191_v52, %v2836_v21  ;;  %v2110_v27 = vpop.f32.mrb[63].mxu1  ;;  %2415 = vrcp.f32 %v1602_v31  ;;  %v2886_v3 = vadd.f32 %v2108_v35, %v1140_v54 }
 0x176   : > { %v1424_v49 = vpop.f32.mrb[63].mxu0  ;;  %v2400_v9 = vpop.eup %2399  ;;  %v1603_v19 = vadd.f32 1.0, %v2398_v45  ;;  %v2111_v11 = vadd.f32 %v2110_v27, %v2109_v43  ;;  %2417 = vrcp.f32 %v1600_v46  ;;  %v1560_v59 = vmul.f32 1.442695, %v1514_v33 }
 0x177   : > { %v1425_v57 = vadd.f32 %v1424_v49, %v2826_v34  ;;  %v1601_v63 = vadd.f32 1.0, %v2400_v9  ;;  %v1512_v61 = vsub.f32 0.0, %v1422_v6  ;;  %v2402_v21 = vpop.eup %2401  ;;  %v1515_v62 = vsub.f32 0.0, %v1433_v48 }
 0x178   : > { %2419 = vrcp.f32 %v1603_v19  ;;  %v2404_v23 = vpop.eup %2403  ;;  %1694 = vst [vmem:[%s2883_s29 + $0x10] sm:$0xff] %v2402_v21  ;;  %v2889_v47 = vadd.f32 %v2111_v11, %v1143_v29 }
 0x179   : > { %v1513_v0 = vsub.f32 0.0, %v1425_v57  ;;  %2421 = vrcp.f32 %v1601_v63  ;;  %v1556_v12 = vmul.f32 1.442695, %v1512_v61  ;;  %1692 = vst [vmem:[%s2883_s29] sm:$0xff] %v2404_v23  ;;  %v1562_v34 = vmul.f32 1.442695, %v1515_v62  ;;  %v2112_v5 = vpop.f32.mrb[64].mxu1 }
 0x17a   : > { %v2406_v4 = vpop.eup %2405  ;;  %2423 = vpow2.f32 %v1550_v1  ;;  %v2194_v39 = vpop.f32.mrb[64].mxu0  ;;  %v1156_v23 = vadd.f32 %v2761_v8, %v2776_v42 }
 0x17b   : > { %v1558_v36 = vmul.f32 1.442695, %v1513_v0  ;;  %v2408_v56 = vpop.eup %2407  ;;  %1695 = vst [vmem:[%s2883_s29 + $0x18] sm:$0xff] %v2406_v4  ;;  %2425 = vpow2.f32 %v1560_v59  ;;  %v1446_v17 = vadd.f32 %v2194_v39, %v2856_v40  ;;  %v2113_v7 = vpop.f32.mrb[65].mxu1 }
 0x17c   : > { %v1437_v30 = vpop.f32.mrb[65].mxu0  ;;  %v2410_v18 = vpop.eup %2409  ;;  %1693 = vst [vmem:[%s2883_s29 + $0x8] sm:$0xff] %v2408_v56  ;;  %2427 = vpow2.f32 %v1556_v12  ;;  %v2114_v37 = vadd.f32 %v2113_v7, %v2112_v5 }
 0x17d   : > { %v1438_v28 = vadd.f32 %v1437_v30, %v2844_v53  ;;  %v2115_v44 = vpop.f32.mrb[66].mxu1  ;;  %v2195_v15 = vpop.f32.mrb[66].mxu0  ;;  %v1606_v54 = vadd.f32 1.0, %v2410_v18  ;;  %2429 = vpow2.f32 %v1562_v34  ;;  %v1518_v60 = vsub.f32 0.0, %v1446_v17 }
 0x17e   : > { %v2412_v51 = vpop.eup %2411  ;;  %v1449_v29 = vadd.f32 %v2195_v15, %v2858_v50  ;;  %v2116_v40 = vpop.f32.mrb[67].mxu1  ;;  %2431 = vpow2.f32 %v1558_v36  ;;  %v2902_v50 = vadd.f32 %v2114_v37, %v1148_v16 }
 0x17f   : > { %v1440_v13 = vpop.f32.mrb[67].mxu0  ;;  %v2414_v24 = vpop.eup %2413  ;;  %v1604_v22 = vadd.f32 1.0, %v2412_v51  ;;  %v1516_v2 = vsub.f32 0.0, %v1438_v28  ;;  %v2117_v41 = vadd.f32 %v2116_v40, %v2115_v44  ;;  %2433 = vrcp.f32 %v1606_v54 }
 0x180   : > { %v1607_v31 = vadd.f32 1.0, %v2414_v24  ;;  %v1568_v53 = vmul.f32 1.442695, %v1518_v60  ;;  %v1519_v1 = vsub.f32 0.0, %v1449_v29  ;;  %v2416_v35 = vpop.eup %2415  ;;  %v1441_v52 = vadd.f32 %v1440_v13, %v2846_v55 }
 0x181   : > { %2435 = vrcp.f32 %v1604_v22  ;;  %v1564_v43 = vmul.f32 1.442695, %v1516_v2  ;;  %v2418_v45 = vpop.eup %2417  ;;  %1698 = vst [vmem:[%s2883_s29 + $0x30] sm:$0xff] %v2416_v35  ;;  %v2905_v33 = vadd.f32 %v2117_v41, %v1151_v58  ;;  %v2118_v27 = vpop.f32.mrb[68].mxu1  ;;  %v1164_v24 = vadd.f32 %v2765_v20, %v2776_v42 }
 0x182   : > { %2437 = vrcp.f32 %v1607_v31  ;;  %v1570_v46 = vmul.f32 1.442695, %v1519_v1  ;;  %v2420_v6 = vpop.eup %2419  ;;  %1696 = vst [vmem:[%s2883_s29 + $0x20] sm:$0xff] %v2418_v45  ;;  %v1517_v48 = vsub.f32 0.0, %v1441_v52  ;;  %v2198_v49 = vpop.f32.mrb[68].mxu0 }
 0x183   : > { %2439 = vpow2.f32 %v1568_v53  ;;  %v2422_v9 = vpop.eup %2421  ;;  %1699 = vst [vmem:[%s2883_s29 + $0x38] sm:$0xff] %v2420_v6  ;;  %v1462_v55 = vadd.f32 %v2198_v49, %v2886_v3  ;;  %v2119_v19 = vpop.f32.mrb[69].mxu1 }
 0x184   : > { %2441 = vpow2.f32 %v1564_v43  ;;  %v1453_v11 = vpop.f32.mrb[69].mxu0  ;;  %v2424_v57 = vpop.eup %2423  ;;  %1697 = vst [vmem:[%s2883_s29 + $0x28] sm:$0xff] %v2422_v9  ;;  %v1566_v63 = vmul.f32 1.442695, %v1517_v48  ;;  %v2120_v59 = vadd.f32 %v2119_v19, %v2118_v27  ;;  %v1167_v19 = vadd.f32 %v2767_v26, %v2776_v42 }
 0x185   : > { %2443 = vpow2.f32 %v1570_v46  ;;  %v1454_v61 = vadd.f32 %v1453_v11, %v2868_v10  ;;  %v2121_v21 = vpop.f32.mrb[70].mxu1  ;;  %v2199_v62 = vpop.f32.mrb[70].mxu0  ;;  %v1605_v12 = vadd.f32 1.0, %v2424_v57  ;;  %v1522_v4 = vsub.f32 0.0, %v1462_v55 }
 0x186   : > { %v2426_v0 = vpop.eup %2425  ;;  %v1465_v34 = vadd.f32 %v2199_v62, %v2889_v47  ;;  %v2122_v3 = vpop.f32.mrb[71].mxu1  ;;  %2445 = vpow2.f32 %v1566_v63  ;;  %v1159_v10 = vadd.f32 %v2763_v14, %v2776_v42  ;;  %v1317_v15 = vadd.f32 %v2120_v59, %v1156_v23 }
 0x187   : > { %v1456_v36 = vpop.f32.mrb[71].mxu0  ;;  %v2428_v5 = vpop.eup %2427  ;;  %v1610_v39 = vadd.f32 1.0, %v2426_v0  ;;  %v1520_v56 = vsub.f32 0.0, %v1454_v61  ;;  %v2123_v16 = vadd.f32 %v2122_v3, %v2121_v21  ;;  %2447 = vrcp.f32 %v1605_v12 }
 0x188   : > { %v2430_v17 = vpop.eup %2429  ;;  %v1608_v7 = vadd.f32 1.0, %v2428_v5  ;;  %v1523_v30 = vsub.f32 0.0, %v1465_v34  ;;  %v1576_v58 = vmul.f32 1.442695, %v1522_v4  ;;  %v1457_v47 = vadd.f32 %v1456_v36, %v2870_v25 }
 0x189   : > { %v2432_v8 = vpop.eup %2431  ;;  %2449 = vrcp.f32 %v1610_v39  ;;  %v1611_v18 = vadd.f32 1.0, %v2430_v17  ;;  %v1572_v44 = vmul.f32 1.442695, %v1520_v56  ;;  %v2124_v60 = vpop.f32.mrb[72].mxu1  ;;  %v1320_v40 = vadd.f32 %v2123_v16, %v1159_v10 }
 0x18a   : > { %v2434_v37 = vpop.eup %2433  ;;  %2451 = vrcp.f32 %v1608_v7  ;;  %v1609_v28 = vadd.f32 1.0, %v2432_v8  ;;  %v1578_v14 = vmul.f32 1.442695, %v1523_v30  ;;  %v1521_v54 = vsub.f32 0.0, %v1457_v47  ;;  %v2202_v29 = vpop.f32.mrb[72].mxu0 }
 0x18b   : > { %v2436_v51 = vpop.eup %2435  ;;  %1702 = vst [vmem:[%s2883_s29 + $0x50] sm:$0xff] %v2434_v37  ;;  %2453 = vrcp.f32 %v1611_v18  ;;  %v1478_v25 = vadd.f32 %v2202_v29, %v1317_v15  ;;  %v2125_v22 = vpop.f32.mrb[73].mxu1  ;;  %v1175_v18 = vadd.f32 %v2771_v38, %v2776_v42 }
 0x18c   : > { %v2438_v13 = vpop.eup %2437  ;;  %1700 = vst [vmem:[%s2883_s29 + $0x40] sm:$0xff] %v2436_v51  ;;  %2455 = vrcp.f32 %v1609_v28  ;;  %v1469_v2 = vpop.f32.mrb[73].mxu0  ;;  %v1574_v31 = vmul.f32 1.442695, %v1521_v54  ;;  %v2126_v53 = vadd.f32 %v2125_v22, %v2124_v60 }
 0x18d   : > { %v2440_v41 = vpop.eup %2439  ;;  %1703 = vst [vmem:[%s2883_s29 + $0x58] sm:$0xff] %v2438_v13  ;;  %2457 = vpow2.f32 %v1576_v58  ;;  %v1470_v1 = vadd.f32 %v1469_v2, %v2902_v50  ;;  %v2127_v35 = vpop.f32.mrb[74].mxu1  ;;  %v1526_v46 = vsub.f32 0.0, %v1478_v25 }
 0x18e   : > { %v2203_v43 = vpop.f32.mrb[74].mxu0  ;;  %v2442_v52 = vpop.eup %2441  ;;  %v1614_v45 = vadd.f32 1.0, %v2440_v41  ;;  %2459 = vpow2.f32 %v1572_v44  ;;  %v1325_v61 = vadd.f32 %v2126_v53, %v1164_v24 }
 0x18f   : > { %v1481_v6 = vadd.f32 %v2203_v43, %v1320_v40  ;;  %v2128_v20 = vpop.f32.mrb[75].mxu1  ;;  %v1472_v48 = vpop.f32.mrb[75].mxu0  ;;  %v1612_v49 = vadd.f32 1.0, %v2442_v52  ;;  %2461 = vpow2.f32 %v1578_v14  ;;  %v1524_v9 = vsub.f32 0.0, %v1470_v1 }
 0x190   : > { %v2444_v27 = vpop.eup %2443  ;;  %v2129_v55 = vadd.f32 %v2128_v20, %v2127_v35  ;;  %2463 = vrcp.f32 %v1614_v45  ;;  %v1584_v63 = vmul.f32 1.442695, %v1526_v46  ;;  %v1473_v59 = vadd.f32 %v1472_v48, %v2905_v33 }
 0x191   : > { %v1615_v50 = vadd.f32 1.0, %v2444_v27  ;;  %v1527_v11 = vsub.f32 0.0, %v1481_v6  ;;  %v2446_v57 = vpop.eup %2445  ;;  %2465 = vrcp.f32 %v1612_v49  ;;  %v1580_v0 = vmul.f32 1.442695, %v1524_v9  ;;  %v2130_v34 = vpop.f32.mrb[76].mxu1 }
 0x192   : > { %v2448_v21 = vpop.eup %2447  ;;  %v1613_v62 = vadd.f32 1.0, %v2446_v57  ;;  %v1328_v23 = vadd.f32 %v2129_v55, %v1167_v19  ;;  %v1525_v4 = vsub.f32 0.0, %v1473_v59  ;;  %v2206_v3 = vpop.f32.mrb[76].mxu0  ;;  %v1172_v33 = vadd.f32 %v2769_v32, %v2776_v42 }
 0x193   : > { %2467 = vrcp.f32 %v1615_v50  ;;  %v2450_v12 = vpop.eup %2449  ;;  %1701 = vst [vmem:[%s2883_s29 + $0x48] sm:$0xff] %v2448_v21  ;;  %v1586_v26 = vmul.f32 1.442695, %v1527_v11  ;;  %v2131_v5 = vpop.f32.mrb[77].mxu1 }
 0x194   : > { %2469 = vpow2.f32 %v1574_v31  ;;  %v2452_v36 = vpop.eup %2451  ;;  %1706 = vst [vmem:[%s2883_s29 + $0x70] sm:$0xff] %v2450_v12  ;;  %v1485_v39 = vpop.f32.mrb[77].mxu0  ;;  %v1582_v16 = vmul.f32 1.442695, %v1525_v4  ;;  %v2132_v17 = vadd.f32 %v2131_v5, %v2130_v34 }
 0x195   : > { %2471 = vrcp.f32 %v1613_v62  ;;  %v2454_v56 = vpop.eup %2453  ;;  %1704 = vst [vmem:[%s2883_s29 + $0x60] sm:$0xff] %v2452_v36  ;;  %v1486_v10 = vadd.f32 %v1485_v39, %v1325_v61  ;;  %v2133_v7 = vpop.f32.mrb[78].mxu1 }
 0x196   : > { %2473 = vpow2.f32 %v1584_v63  ;;  %v2207_v30 = vpop.f32.mrb[78].mxu0  ;;  %v2456_v8 = vpop.eup %2455  ;;  %1707 = vst [vmem:[%s2883_s29 + $0x78] sm:$0xff] %v2454_v56  ;;  %v1333_v37 = vadd.f32 %v2132_v17, %v1172_v33 }
 0x197   : > { %2475 = vpow2.f32 %v1580_v0  ;;  %v2134_v32 = vpop.f32.mrb[79].mxu1  ;;  %v1488_v58 = vpop.f32.mrb[79].mxu0  ;;  %1705 = vst [vmem:[%s2883_s29 + $0x68] sm:$0xff] %v2456_v8  ;;  %v1528_v28 = vsub.f32 0.0, %v1486_v10 }
 0x198   : > { %v2458_v47 = vpop.eup %2457  ;;  %2477 = vpow2.f32 %v1586_v26  ;;  %v2135_v44 = vadd.f32 %v2134_v32, %v2133_v7  ;;  %v1489_v14 = vadd.f32 %v1488_v58, %v1328_v23  ;;  %v1494_v29 = vadd.f32 %v2206_v3, %v1333_v37 }
 0x199   : > { %v2460_v15 = vpop.eup %2459  ;;  %v1618_v51 = vadd.f32 1.0, %v2458_v47  ;;  %2479 = vpow2.f32 %v1582_v16  ;;  %v1588_v38 = vmul.f32 1.442695, %v1528_v28 }
 0x19a   : > { %v2462_v54 = vpop.eup %2461  ;;  %v1616_v60 = vadd.f32 1.0, %v2460_v15  ;;  %v1336_v42 = vadd.f32 %v2135_v44, %v1175_v18  ;;  %v1529_v24 = vsub.f32 0.0, %v1489_v14  ;;  %v1530_v22 = vsub.f32 0.0, %v1494_v29 }
 0x19b   : > { %v2464_v40 = vpop.eup %2463  ;;  %2481 = vrcp.f32 %v1618_v51  ;;  %v1619_v13 = vadd.f32 1.0, %v2462_v54 }
 0x19c   : > { %v2466_v25 = vpop.eup %2465  ;;  %1710 = vst [vmem:[%s2883_s29 + $0x90] sm:$0xff] %v2464_v40  ;;  %2483 = vrcp.f32 %v1616_v60  ;;  %v1497_v2 = vadd.f32 %v2207_v30, %v1336_v42  ;;  %v1590_v31 = vmul.f32 1.442695, %v1529_v24  ;;  %v1592_v1 = vmul.f32 1.442695, %v1530_v22 }
 0x19d   : > { %v2468_v41 = vpop.eup %2467  ;;  %1708 = vst [vmem:[%s2883_s29 + $0x80] sm:$0xff] %v2466_v25  ;;  %2485 = vrcp.f32 %v1619_v13 }
 0x19e   : > { %v2470_v53 = vpop.eup %2469  ;;  %1711 = vst [vmem:[%s2883_s29 + $0x98] sm:$0xff] %v2468_v41  ;;  %2487 = vpow2.f32 %v1588_v38  ;;  %v1531_v35 = vsub.f32 0.0, %v1497_v2 }
 0x19f   : > { %v2472_v43 = vpop.eup %2471  ;;  %v1617_v52 = vadd.f32 1.0, %v2470_v53  ;;  %2489 = vpow2.f32 %v1590_v31 }
 0x1a0   : > { %v2474_v45 = vpop.eup %2473  ;;  %1709 = vst [vmem:[%s2883_s29 + $0x88] sm:$0xff] %v2472_v43  ;;  %2491 = vpow2.f32 %v1592_v1  ;;  %v1594_v46 = vmul.f32 1.442695, %v1531_v35 }
 0x1a1   : > { %v2476_v6 = vpop.eup %2475  ;;  %2493 = vrcp.f32 %v1617_v52  ;;  %v1622_v20 = vadd.f32 1.0, %v2474_v45 }
 0x1a2   : > { %v2478_v48 = vpop.eup %2477  ;;  %v1620_v27 = vadd.f32 1.0, %v2476_v6  ;;  %2495 = vpow2.f32 %v1594_v46 }
 0x1a3   : > { %v2480_v49 = vpop.eup %2479  ;;  %2497 = vrcp.f32 %v1622_v20  ;;  %v1623_v9 = vadd.f32 1.0, %v2478_v48 }
 0x1a4   : > { %2499 = vrcp.f32 %v1620_v27  ;;  %v1621_v55 = vadd.f32 1.0, %v2480_v49 }
 0x1a5   : > { %v2482_v19 = vpop.eup %2481  ;;  %2501 = vrcp.f32 %v1623_v9 }
 0x1a6   : > { %v2484_v50 = vpop.eup %2483  ;;  %1714 = vst [vmem:[%s2883_s29 + $0xb0] sm:$0xff] %v2482_v19  ;;  %2503 = vrcp.f32 %v1621_v55 }
 0x1a7   : > { %v2486_v11 = vpop.eup %2485  ;;  %1712 = vst [vmem:[%s2883_s29 + $0xa0] sm:$0xff] %v2484_v50 }
 0x1a8   : > { %v2488_v57 = vpop.eup %2487  ;;  %1715 = vst [vmem:[%s2883_s29 + $0xb8] sm:$0xff] %v2486_v11 }
 0x1a9   : > { %v2490_v63 = vpop.eup %2489  ;;  %v1624_v59 = vadd.f32 1.0, %v2488_v57 }
 0x1aa   : > { %v2492_v61 = vpop.eup %2491  ;;  %v1625_v21 = vadd.f32 1.0, %v2490_v63 }
 0x1ab   : > { %v2494_v62 = vpop.eup %2493  ;;  %v1626_v0 = vadd.f32 1.0, %v2492_v61  ;;  %2505 = vrcp.f32 %v1624_v59 }
 0x1ac   : > { %v2496_v23 = vpop.eup %2495  ;;  %1713 = vst [vmem:[%s2883_s29 + $0xa8] sm:$0xff] %v2494_v62  ;;  %2507 = vrcp.f32 %v1625_v21 }
 0x1ad   : > { %v2498_v12 = vpop.eup %2497  ;;  %2509 = vrcp.f32 %v1626_v0  ;;  %v1627_v26 = vadd.f32 1.0, %v2496_v23 }
 0x1ae   : > { %v2500_v4 = vpop.eup %2499  ;;  %1718 = vst [vmem:[%s2883_s29 + $0xd0] sm:$0xff] %v2498_v12 }
 0x1af   : > { %v2502_v34 = vpop.eup %2501  ;;  %1716 = vst [vmem:[%s2883_s29 + $0xc0] sm:$0xff] %v2500_v4  ;;  %2511 = vrcp.f32 %v1627_v26 }
 0x1b0   : > { %v2504_v3 = vpop.eup %2503  ;;  %1719 = vst [vmem:[%s2883_s29 + $0xd8] sm:$0xff] %v2502_v34 }
 0x1b1   : > { %1717 = vst [vmem:[%s2883_s29 + $0xc8] sm:$0xff] %v2504_v3 }
 0x1b5   : > { %v2506_v36 = vpop.eup %2505 }
 0x1b6   : > { %v2508_v33 = vpop.eup %2507  ;;  %1720 = vst [vmem:[%s2883_s29 + $0xe0] sm:$0xff] %v2506_v36 }
 0x1b7   : > { %v2510_v5 = vpop.eup %2509  ;;  %1721 = vst [vmem:[%s2883_s29 + $0xe8] sm:$0xff] %v2508_v33 }
 0x1b8   : > { %1722 = vst [vmem:[%s2883_s29 + $0xf0] sm:$0xff] %v2510_v5 }
 0x1b9   : > { %v2512_v39 = vpop.eup %2511 }
 0x1ba   : > { %1723 = vst [vmem:[%s2883_s29 + $0xf8] sm:$0xff] %v2512_v39 }
 0x1bb PF: > { %s13_s12 = sadd.s32 1, %s2519_s12  }
 0x1bc   : > { %p10_p4 = scmp.ge.s32.totalorder %s13_s12, 5  }
 0x1be   :  { %12 = sbr.rel (!%p10_p4) target bundleno = 1 (0x1), region = 62 }

// kernel: retinanet_serve.29
= control target key start
LH: loop header
LB: loop body
LE: loop exit
PB: predicated region body
PF: predicated region fallthrough
CT: control target
= control target key end

     0   :  { %vm48_vm0 = vcmask 1041408   ;;  %vm50_vm1 = vcmask 1042432   ;;  %s75_s0 = inlined_call_operand.vmem [shape: f32[8,128], index: 0, kind: input, shape index: {}]   ;;  %s76_s1 = inlined_call_operand.vmem [shape: f32[4,128], index: 1, kind: output, shape index: {}]  }
   0x1   :  { %v8_v0 = vld [vmem:[%s75_s0] sm:$0xff] }
   0x2   :  { %v9_v1 = vmin.f32 %v8_v0, 4.1351666  ;;  %v11_v2 = vrot.slane %v8_v0, 6 }
   0x4   :  { %v13_v3 = vsub.f32 %v8_v0, %v11_v2  ;;  %v27_v4 = vmul.f32 1.442695, %v9_v1 }
   0x6   :  { %v14_v5 = vmul.f32 0.5, %v13_v3  ;;  %57 = vpow2.f32 %v27_v4  ;;  %v20_v8 = vrot.slane %v13_v3, 6  ;;  %v29_v9 = vrot.slane %v13_v3, 4 }
   0x8   :  { %v16_v6 = vrot.slane %v14_v5, 2  ;;  %v22_v10 = vmul.f32 %v20_v8, %v8_v0 }
   0xa   :  { %v18_v7 = vadd.f32 %v16_v6, %v8_v0 }
   0xc   :  { %v24_v11 = vrot.slane %v18_v7, 4 }
   0xe   :  { %v26_v14 = vadd.f32 %v24_v11, %v22_v10 }
  0x10   :  { %v58_v12 = vpop.eup %57 }
  0x11   :  { %v31_v13 = vmul.f32 %v58_v12, %v29_v9 }
  0x13   :  { %v32_v15 = vmul.f32 0.5, %v31_v13 }
  0x15   :  { %v34_v16 = vrot.slane %v32_v15, 2 }
  0x17   :  { %v36_v17 = vsub.f32 %v26_v14, %v34_v16  ;;  %v39_v18 = vadd.f32 %v34_v16, %v26_v14 }
  0x19   :  { %v37_v19 = vmax.f32 %v36_v17, 0.0  ;;  %v40_v20 = vmax.f32 %v39_v18, 0.0 }
  0x1b   :  { %v38_v21 = vmin.f32 %v37_v19, 64.0  ;;  %v41_v22 = vmin.f32 %v40_v20, 64.0 }
  0x1d   :  { %v43_v23 = vrot.slane %v38_v21, 4  ;;  %v46_v24 = vrot.slane %v41_v22, 2 }
  0x1f   :  { %v49_v25 = vsel %vm48_vm0, %v43_v23, %v46_v24 }
  0x20   :  { %v51_v26 = vsel %vm50_vm1, %v49_v25, %v46_v24 }
  0x21   :  { %52 = vst [vmem:[%s76_s1] sm:$0xf] %v51_v26 }

// kernel: custom-call.6
= control target key start
LH: loop header
LB: loop body
LE: loop exit
PB: predicated region body
PF: predicated region fallthrough
CT: control target
= control target key end

     0   :  { %s6_s0 = inlined_call_operand.vmem [shape: pred[2,64], index: 0, kind: output, shape index: {}]  }

</bundles_post_ra>
